<compile_context>
chip_gen: v6e
topology: v6e:2x2x1
jax: 0.10.0
libtpu: 0.0.40
codegen_flags: <defaults>
</compile_context>

<pallas_src>
import functools

import jax
import jax.numpy as jnp
from jax.experimental import pallas as pl
from jax.experimental.pallas import tpu as pltpu


_LN_EPS = 1e-5
_VMEM_LIMIT_BYTES = 32 * 1024 * 1024   # explicit scoped-VMEM limit (safe on v5e/v6e/v7x)


# ----------------------------------------------------------------------------
# Small helpers
# ----------------------------------------------------------------------------
def _ln_f32(x, gamma, beta, eps):
    """LayerNorm over the last axis; statistics in f32. gamma/beta broadcastable."""
    mean = jnp.mean(x, axis=-1, keepdims=True)
    var = jnp.mean(jnp.square(x - mean), axis=-1, keepdims=True)
    return (x - mean) * jax.lax.rsqrt(var + eps) * gamma + beta


def _pick_block_b(batch, max_block=4):
    """Largest divisor of `batch` that is <= max_block (amortizes ~0.35us/step)."""
    bb = min(batch, max_block)
    while batch % bb:
        bb -= 1
    return bb


# ----------------------------------------------------------------------------
# Conv-stem matmul kernel (M-tiled, bf16 MXU inputs, fused bias + ReLU)
# ----------------------------------------------------------------------------
def _matmul_bias_kernel(x_ref, w_ref, b_ref, o_ref, *, relu):
    # x: (tm, K) f32, w: (K, N) bf16, b: (1, N) f32
    x16 = x_ref[...].astype(jnp.bfloat16)
    y = jnp.dot(x16, w_ref[...], preferred_element_type=jnp.float32) + b_ref[...]
    if relu:
        y = jnp.maximum(y, 0.0)
    o_ref[...] = y.astype(o_ref.dtype)


def matmul_bias(x, w, b, *, relu=False, tile_m=256):
    """y = relu?(x @ w + b)   x:(M,K) f32, w:(K,N), b:(N,).  Grid over M rows."""
    M, K = x.shape
    K2, N = w.shape
    assert K == K2
    if M <= tile_m or M % tile_m != 0:
        tile_m = M
    grid = (M // tile_m,)
    return pl.pallas_call(
        functools.partial(_matmul_bias_kernel, relu=relu),
        out_shape=jax.ShapeDtypeStruct((M, N), x.dtype),
        grid=grid,
        in_specs=[
            pl.BlockSpec((tile_m, K), lambda i: (i, 0)),
            pl.BlockSpec((K, N), lambda i: (0, 0)),
            pl.BlockSpec((1, N), lambda i: (0, 0)),
        ],
        out_specs=pl.BlockSpec((tile_m, N), lambda i: (i, 0)),
        compiler_params=pltpu.CompilerParams(
            dimension_semantics=("parallel",),
            vmem_limit_bytes=_VMEM_LIMIT_BYTES),
    )(x, w.astype(jnp.bfloat16), b.reshape(1, N).astype(jnp.float32))


# ----------------------------------------------------------------------------
# Fused transformer-layer kernel
#   (optionally also fuses patch-embed + cls concat + pos add for layer 0)
# ----------------------------------------------------------------------------
def _transformer_layer_kernel(*args, heads, dim_head, eps, fuse_embed):
    if fuse_embed:
        (x_ref, patch_w, seq_bias,
         ln1_g, ln1_b, wq, wk, wv, wo, out_b,
         ln2_g, ln2_b, ff1_w, ff1_b, ff2_w, ff2_b, o_ref) = args
    else:
        (x_ref,
         ln1_g, ln1_b, wq, wk, wv, wo, out_b,
         ln2_g, ln2_b, ff1_w, ff1_b, ff2_w, ff2_b, o_ref) = args

    bf16 = jnp.bfloat16
    block_b, N, dim = o_ref.shape

    # Statically unrolled loop over the batch elements of this block
    # (amortizes grid-step overhead at small B).
    for b in range(block_b):
        if fuse_embed:
            # Patch embedding + cls token + positional embedding, fused.
            tok = x_ref[b].astype(bf16)                              # (n, conv1)
            emb = jnp.dot(tok, patch_w[...],
                          preferred_element_type=jnp.float32)        # (n, dim)
            x = jnp.concatenate(
                [jnp.zeros((1, dim), jnp.float32), emb], axis=0) + seq_bias[...]
        else:
            x = x_ref[b].astype(jnp.float32)                         # (N, dim)

        # --- PreNorm (LN1) + multi-head self-attention (heads batched) ------
        xn = _ln_f32(x, ln1_g[...], ln1_b[...], eps).astype(bf16)    # (N, dim)
        xn_h = jnp.broadcast_to(xn[None], (heads, N, dim))           # (h, N, dim)
        # scale is folded into wq host-side; all dots are bf16 -> f32 acc
        q = jnp.einsum('hnd,hdf->hnf', xn_h, wq[...],
                       preferred_element_type=jnp.float32)           # (h, N, dh)
        k = jnp.einsum('hnd,hdf->hnf', xn_h, wk[...],
                       preferred_element_type=jnp.float32)
        v = jnp.einsum('hnd,hdf->hnf', xn_h, wv[...],
                       preferred_element_type=jnp.float32)
        s = jnp.einsum('hqd,hkd->hqk', q.astype(bf16), k.astype(bf16),
                       preferred_element_type=jnp.float32)           # (h, N, N)
        m = jnp.max(s, axis=-1, keepdims=True)
        e = jnp.exp(s - m)
        p = e * pl.reciprocal(jnp.sum(e, axis=-1, keepdims=True), approx=True)
        ctx = jnp.einsum('hqk,hkd->hqd', p.astype(bf16), v.astype(bf16),
                         preferred_element_type=jnp.float32)          # (h, N, dh)
        # Per-head output projection followed by a sum over the head axis is
        # mathematically identical to concat(heads) @ out_w — no lane shuffles.
        proj = jnp.einsum('hnd,hdf->hnf', ctx.astype(bf16), wo[...],
                          preferred_element_type=jnp.float32)         # (h, N, dim)
        x = x + jnp.sum(proj, axis=0) + out_b[...]                    # residual 1

        # --- PreNorm (LN2) + FeedForward -------------------------------------
        xn2 = _ln_f32(x, ln2_g[...], ln2_b[...], eps).astype(bf16)
        h1 = jnp.dot(xn2, ff1_w[...],
                     preferred_element_type=jnp.float32) + ff1_b[...]
        h1 = jnp.maximum(h1, 0.0).astype(bf16)
        h2 = jnp.dot(h1, ff2_w[...],
                     preferred_element_type=jnp.float32) + ff2_b[...]

        o_ref[b] = (x + h2).astype(o_ref.dtype)                       # residual 2


def transformer_layer(xseq, lp, *, heads, dim_head, eps=_LN_EPS,
                      patch_w=None, seq_bias=None, block_b=None):
    """One fused transformer block (PreNorm-LN1 -> MHSA -> +res -> PreNorm-LN2
    -> FF -> +res) as a single pallas_call.

    If `patch_w`/`seq_bias` are given, the patch-embedding matmul, cls-token
    concat and positional-embedding add are fused into the same call (used for
    the first layer): `xseq` is then the raw conv-stem tokens (B, n, conv1) and
    `seq_bias` is (n+1, dim) with row 0 = cls + pos[0], rows 1: = pos[1:] + patch_b.
    """
    fuse_embed = patch_w is not None
    B = xseq.shape[0]
    inner = heads * dim_head
    if fuse_embed:
        c_in = xseq.shape[2]
        N, dim = seq_bias.shape
        assert N == xseq.shape[1] + 1
    else:
        N, dim = xseq.shape[1], xseq.shape[2]
    mlp_dim = lp["ff1_w"].shape[1]
    assert lp["qkv_w"].shape == (dim, 3 * inner)
    scale = float(dim_head) ** -0.5

    if block_b is None:
        block_b = _pick_block_b(B)
    assert B % block_b == 0
    grid = (B // block_b,)

    bf16, f32 = jnp.bfloat16, jnp.float32

    # --- host-side weight restructuring (cheap, once per call) --------------
    #  * per-head layouts so attention runs as head-batched dot_generals
    #  * softmax scale folded into the q weights
    #  * MXU operands in bf16
    qkv_w = lp["qkv_w"]

    def per_head_cols(w2d):             # (dim, inner) -> (heads, dim, dim_head)
        return w2d.reshape(dim, heads, dim_head).transpose(1, 0, 2)

    wq = (per_head_cols(qkv_w[:, 0 * inner:1 * inner]) * scale).astype(bf16)
    wk = per_head_cols(qkv_w[:, 1 * inner:2 * inner]).astype(bf16)
    wv = per_head_cols(qkv_w[:, 2 * inner:3 * inner]).astype(bf16)
    wo = lp["out_w"].reshape(heads, dim_head, dim).astype(bf16)       # (h, dh, dim)

    def vec(name, n):
        return lp[name].reshape(1, n).astype(f32)

    def full(shape):
        nd = len(shape)
        return pl.BlockSpec(shape, lambda i, _nd=nd: (0,) * _nd)

    x_block = (block_b,) + tuple(xseq.shape[1:])
    x_spec = pl.BlockSpec(x_block, lambda i: (i, 0, 0))
    out_spec = pl.BlockSpec((block_b, N, dim), lambda i: (i, 0, 0))

    args = [xseq]
    in_specs = [x_spec]
    if fuse_embed:
        args += [patch_w.astype(bf16), seq_bias.astype(f32)]
        in_specs += [full((c_in, dim)), full((N, dim))]
    args += [vec("ln1_g", dim), vec("ln1_b", dim),
             wq, wk, wv, wo, vec("out_b", dim),
             vec("ln2_g", dim), vec("ln2_b", dim),
             lp["ff1_w"].astype(bf16), vec("ff1_b", mlp_dim),
             lp["ff2_w"].astype(bf16), vec("ff2_b", dim)]
    in_specs += [full((1, dim)), full((1, dim)),
                 full((heads, dim, dim_head)), full((heads, dim, dim_head)),
                 full((heads, dim, dim_head)), full((heads, dim_head, dim)),
                 full((1, dim)),
                 full((1, dim)), full((1, dim)),
                 full((dim, mlp_dim)), full((1, mlp_dim)),
                 full((mlp_dim, dim)), full((1, dim))]

    return pl.pallas_call(
        functools.partial(_transformer_layer_kernel, heads=heads,
                          dim_head=dim_head, eps=eps, fuse_embed=fuse_embed),
        out_shape=jax.ShapeDtypeStruct((B, N, dim), jnp.float32),
        grid=grid,
        in_specs=in_specs,
        out_specs=out_spec,
        compiler_params=pltpu.CompilerParams(
            dimension_semantics=("parallel",),
            vmem_limit_bytes=_VMEM_LIMIT_BYTES),
    )(*args)


# ----------------------------------------------------------------------------
# Conv stem helpers (im2col is data-layout glue in XLA; matmul runs in Pallas)
# ----------------------------------------------------------------------------
def im2col_3x3(x, stride):
    """x: (B, H, W, C) NHWC, 3x3 kernel, pad=1 -> (B*Ho*Wo, 9*C), (B, Ho, Wo)"""
    B, H, W, C = x.shape
    xp = jnp.pad(x, ((0, 0), (1, 1), (1, 1), (0, 0)))
    Ho = (H + 2 - 3) // stride + 1
    Wo = (W + 2 - 3) // stride + 1
    cols = []
    for di in range(3):
        for dj in range(3):
            patch = xp[:, di:di + stride * Ho:stride,
                          dj:dj + stride * Wo:stride, :]
            cols.append(patch)
    cols = jnp.concatenate(cols, axis=-1)          # (B, Ho, Wo, 9*C)
    return cols.reshape(B * Ho * Wo, 9 * C), (B, Ho, Wo)


def conv_bn_relu(x, conv_w, conv_b, bn, stride):
    """PyTorch semantics: ReLU(BN_eval(Conv2d(x))).  x is NHWC."""
    gamma, beta, r_mean, r_var, eps = bn
    cout, cin, kh, kw = conv_w.shape
    # fold eval-mode BatchNorm into the conv weights / bias
    scale = gamma / jnp.sqrt(r_var + eps)                        # (cout,)
    w2d = jnp.transpose(conv_w, (2, 3, 1, 0)).reshape(kh * kw * cin, cout)
    w2d = w2d * scale[None, :]
    bias = (conv_b - r_mean) * scale + beta
    cols, (B, Ho, Wo) = im2col_3x3(x, stride)
    y = matmul_bias(cols, w2d, bias, relu=True)
    return y.reshape(B, Ho, Wo, cout)


# ----------------------------------------------------------------------------
# Parameter construction (deterministic, synthetic)
# ----------------------------------------------------------------------------
def _normal(key, shape, std=0.05):
    return (jax.random.normal(key, shape, jnp.float32) * std).astype(jnp.float32)


def init_params(key, *, channels, conv, conv1, dim, depth, heads, dim_head,
                mlp_dim, num_classes, num_patches):
    ks = iter(jax.random.split(key, 256))
    p = {}

    def conv_block(cin, cout):
        return dict(
            w=_normal(next(ks), (cout, cin, 3, 3)),
            b=_normal(next(ks), (cout,)),
            gamma=1.0 + _normal(next(ks), (cout,), 0.05),
            beta=_normal(next(ks), (cout,), 0.05),
            mean=_normal(next(ks), (cout,), 0.05),
            var=0.8 + jnp.abs(_normal(next(ks), (cout,), 0.1)),
        )

    p["conv"] = [conv_block(channels, conv), conv_block(conv, conv),
                 conv_block(conv, conv1), conv_block(conv1, conv1)]

    p["patch_w"] = _normal(next(ks), (conv1, dim))
    p["patch_b"] = _normal(next(ks), (dim,))
    p["pos"] = _normal(next(ks), (1, num_patches + 1, dim), 0.5)
    p["cls"] = _normal(next(ks), (1, 1, dim), 0.5)

    inner = heads * dim_head
    layers = []
    for _ in range(depth):
        layers.append(dict(
            ln1_g=jnp.ones((dim,), jnp.float32),
            ln1_b=jnp.zeros((dim,), jnp.float32),
            qkv_w=_normal(next(ks), (dim, 3 * inner)),
            out_w=_normal(next(ks), (inner, dim)),
            out_b=_normal(next(ks), (dim,)),
            ln2_g=jnp.ones((dim,), jnp.float32),
            ln2_b=jnp.zeros((dim,), jnp.float32),
            ff1_w=_normal(next(ks), (dim, mlp_dim)),
            ff1_b=_normal(next(ks), (mlp_dim,)),
            ff2_w=_normal(next(ks), (mlp_dim, dim)),
            ff2_b=_normal(next(ks), (dim,)),
        ))
    p["layers"] = layers

    p["head_ln_g"] = jnp.ones((dim,), jnp.float32)
    p["head_ln_b"] = jnp.zeros((dim,), jnp.float32)
    p["head_w"] = _normal(next(ks), (dim, num_classes))
    p["head_b"] = _normal(next(ks), (num_classes,))
    return p


# ----------------------------------------------------------------------------
# Forward pass (matches ViT.forward of the PyTorch module, pool='cls')
# ----------------------------------------------------------------------------
def vit_forward(params, img_nchw, *, heads, dim_head, pool="cls"):
    x = jnp.transpose(img_nchw, (0, 2, 3, 1))             # NCHW -> NHWC

    # conv stem: strides 1, 1, 2, 2  (each Conv -> BN(eval) -> ReLU)
    strides = (1, 1, 2, 2)
    for cp, s in zip(params["conv"], strides):
        bn = (cp["gamma"], cp["beta"], cp["mean"], cp["var"], 1e-5)
        x = conv_bn_relu(x, cp["w"], cp["b"], bn, s)

    Bc, Hc, Wc, Cc = x.shape
    tokens = x.reshape(Bc, Hc * Wc, Cc)                   # 'b c h w -> b (h w) c'
    n = tokens.shape[1]
    dim = params["patch_w"].shape[1]

    # seq_bias: row 0 = cls + pos[0]; rows 1..n = pos[1..n] + patch_b.
    # (patch-embed matmul, cls concat and pos add are all fused into layer 0)
    pos = params["pos"][0, :n + 1]                         # (n+1, dim)
    seq_bias = jnp.concatenate(
        [params["cls"][0] + pos[:1],
         pos[1:] + params["patch_b"][None, :]], axis=0)    # (n+1, dim)

    layers = params["layers"]
    xseq = transformer_layer(tokens, layers[0], heads=heads, dim_head=dim_head,
                             patch_w=params["patch_w"], seq_bias=seq_bias)
    for lp in layers[1:]:
        xseq = transformer_layer(xseq, lp, heads=heads, dim_head=dim_head)

    # pool
    pooled = jnp.mean(xseq, axis=1) if pool == "mean" else xseq[:, 0]

    # mlp head (LayerNorm + Linear): left in plain XLA per the perf review —
    # a (B, 32) -> (B, 10) op is pure launch overhead as a separate kernel.
    normed = _ln_f32(pooled, params["head_ln_g"], params["head_ln_b"], _LN_EPS)
    logits = normed @ params["head_w"] + params["head_b"]
    return logits


# ----------------------------------------------------------------------------
# Main
# ----------------------------------------------------------------------------
if __name__ == "__main__":
    # small ViT config
    image_size = 16
    channels = 3
    conv = 16
    conv1 = 32
    dim = 32
    depth = 2
    heads = 4
    dim_head = 8
    mlp_dim = 64
    num_classes = 10
    batch = 2
    num_patches = (image_size // 4) * (image_size // 4)    # conv stem /4

    key = jax.random.PRNGKey(0)
    pkey, xkey = jax.random.split(key)
    params = init_params(pkey, channels=channels, conv=conv, conv1=conv1,
                         dim=dim, depth=depth, heads=heads, dim_head=dim_head,
                         mlp_dim=mlp_dim, num_classes=num_classes,
                         num_patches=num_patches)

    img = jax.random.normal(xkey, (batch, channels, image_size, image_size),
                            jnp.float32)                   # NCHW like PyTorch

    fwd = jax.jit(functools.partial(vit_forward, heads=heads,
                                    dim_head=dim_head, pool="cls"))
    logits = fwd(params, img)
    jax.block_until_ready(logits)
    assert logits.shape == (batch, num_classes)
    print("KERNEL_OK")
</pallas_src>

<mosaic_0001>
module attributes {stable_mosaic.version = 11 : i64} {
  func.func @_matmul_bias_kernel(%arg0: i32, %arg1: memref<256x27xf32, #tpu.memory_space<vmem>>, %arg2: memref<27x16xbf16, #tpu.memory_space<vmem>>, %arg3: memref<1x16xf32, #tpu.memory_space<vmem>>, %arg4: memref<256x16xf32, #tpu.memory_space<vmem>>) attributes {dimension_semantics = [#tpu.dimension_semantics<parallel>], iteration_bounds = array<i64: 2>, scalar_prefetch = 0 : i64, scratch_operands = 0 : i64, tpu.core_type = #tpu.core_type<tc>, window_params = [{transform_indices = @transform_0, window_bounds = array<i64: 256, 27>}, {pipeline_mode = #tpu.pipeline_mode<synchronous>, transform_indices = @transform_1, window_bounds = array<i64: 27, 16>}, {pipeline_mode = #tpu.pipeline_mode<synchronous>, transform_indices = @transform_2, window_bounds = array<i64: 1, 16>}, {transform_indices = @transform_3, window_bounds = array<i64: 256, 16>}]} {
    %c0 = arith.constant 0 : index
    %c0_0 = arith.constant 0 : index
    %0 = vector.load %arg1[%c0, %c0_0] : memref<256x27xf32, #tpu.memory_space<vmem>>, vector<256x27xf32>
    %1 = arith.truncf %0 : vector<256x27xf32> to vector<256x27xbf16>
    %c0_1 = arith.constant 0 : index
    %c0_2 = arith.constant 0 : index
    %2 = vector.load %arg2[%c0_1, %c0_2] : memref<27x16xbf16, #tpu.memory_space<vmem>>, vector<27x16xbf16>
    %cst = arith.constant dense<0.000000e+00> : vector<256x16xf32>
    %3 = tpu.matmul %1, %2, %cst {dimension_numbers = #tpu.dot_dimension_numbers<[1], [0], [0], [1], [0, 0, 1, 1], [], []>} : vector<256x27xbf16>, vector<27x16xbf16>, vector<256x16xf32> -> vector<256x16xf32>
    %c0_3 = arith.constant 0 : index
    %c0_4 = arith.constant 0 : index
    %4 = vector.load %arg3[%c0_3, %c0_4] : memref<1x16xf32, #tpu.memory_space<vmem>>, vector<1x16xf32>
    %5 = vector.broadcast %4 : vector<1x16xf32> to vector<256x16xf32>
    %6 = arith.addf %3, %5 : vector<256x16xf32>
    %cst_5 = arith.constant 0.000000e+00 : f32
    %7 = vector.broadcast %cst_5 : f32 to vector<256x16xf32>
    %8 = arith.maximumf %6, %7 : vector<256x16xf32>
    %c0_6 = arith.constant 0 : index
    %c0_7 = arith.constant 0 : index
    %9 = vector.load %arg4[%c0_6, %c0_7] : memref<256x16xf32, #tpu.memory_space<vmem>>, vector<256x16xf32>
    tpu.vector_store %arg4[%c0_6, %c0_7], %8 {strides = array<i32>} : memref<256x16xf32, #tpu.memory_space<vmem>>, vector<256x16xf32>,
    return
  }
  func.func @transform_0(%arg0: i32) -> (i32, i32) {
    %c0_i32 = arith.constant 0 : i32
    %c0_i32_0 = arith.constant 0 : i32
    return %arg0, %c0_i32 : i32, i32
  }
  func.func @transform_1(%arg0: i32) -> (i32, i32) {
    %c0_i32 = arith.constant 0 : i32
    %c0_i32_0 = arith.constant 0 : i32
    %c0_i32_1 = arith.constant 0 : i32
    return %c0_i32, %c0_i32_0 : i32, i32
  }
  func.func @transform_2(%arg0: i32) -> (i32, i32) {
    %c0_i32 = arith.constant 0 : i32
    %c0_i32_0 = arith.constant 0 : i32
    %c0_i32_1 = arith.constant 0 : i32
    return %c0_i32, %c0_i32_0 : i32, i32
  }
  func.func @transform_3(%arg0: i32) -> (i32, i32) {
    %c0_i32 = arith.constant 0 : i32
    %c0_i32_0 = arith.constant 0 : i32
    return %arg0, %c0_i32 : i32, i32
  }
}

module attributes {stable_mosaic.version = 11 : i64} {
  func.func @_matmul_bias_kernel(%arg0: i32, %arg1: memref<256x144xf32, #tpu.memory_space<vmem>>, %arg2: memref<144x16xbf16, #tpu.memory_space<vmem>>, %arg3: memref<1x16xf32, #tpu.memory_space<vmem>>, %arg4: memref<256x16xf32, #tpu.memory_space<vmem>>) attributes {dimension_semantics = [#tpu.dimension_semantics<parallel>], iteration_bounds = array<i64: 2>, scalar_prefetch = 0 : i64, scratch_operands = 0 : i64, tpu.core_type = #tpu.core_type<tc>, window_params = [{transform_indices = @transform_0, window_bounds = array<i64: 256, 144>}, {pipeline_mode = #tpu.pipeline_mode<synchronous>, transform_indices = @transform_1, window_bounds = array<i64: 144, 16>}, {pipeline_mode = #tpu.pipeline_mode<synchronous>, transform_indices = @transform_2, window_bounds = array<i64: 1, 16>}, {transform_indices = @transform_3, window_bounds = array<i64: 256, 16>}]} {
    %c0 = arith.constant 0 : index
    %c0_0 = arith.constant 0 : index
    %0 = vector.load %arg1[%c0, %c0_0] : memref<256x144xf32, #tpu.memory_space<vmem>>, vector<256x144xf32>
    %1 = arith.truncf %0 : vector<256x144xf32> to vector<256x144xbf16>
    %c0_1 = arith.constant 0 : index
    %c0_2 = arith.constant 0 : index
    %2 = vector.load %arg2[%c0_1, %c0_2] : memref<144x16xbf16, #tpu.memory_space<vmem>>, vector<144x16xbf16>
    %cst = arith.constant dense<0.000000e+00> : vector<256x16xf32>
    %3 = tpu.matmul %1, %2, %cst {dimension_numbers = #tpu.dot_dimension_numbers<[1], [0], [0], [1], [0, 0, 1, 1], [], []>} : vector<256x144xbf16>, vector<144x16xbf16>, vector<256x16xf32> -> vector<256x16xf32>
    %c0_3 = arith.constant 0 : index
    %c0_4 = arith.constant 0 : index
    %4 = vector.load %arg3[%c0_3, %c0_4] : memref<1x16xf32, #tpu.memory_space<vmem>>, vector<1x16xf32>
    %5 = vector.broadcast %4 : vector<1x16xf32> to vector<256x16xf32>
    %6 = arith.addf %3, %5 : vector<256x16xf32>
    %cst_5 = arith.constant 0.000000e+00 : f32
    %7 = vector.broadcast %cst_5 : f32 to vector<256x16xf32>
    %8 = arith.maximumf %6, %7 : vector<256x16xf32>
    %c0_6 = arith.constant 0 : index
    %c0_7 = arith.constant 0 : index
    %9 = vector.load %arg4[%c0_6, %c0_7] : memref<256x16xf32, #tpu.memory_space<vmem>>, vector<256x16xf32>
    tpu.vector_store %arg4[%c0_6, %c0_7], %8 {strides = array<i32>} : memref<256x16xf32, #tpu.memory_space<vmem>>, vector<256x16xf32>,
    return
  }
  func.func @transform_0(%arg0: i32) -> (i32, i32) {
    %c0_i32 = arith.constant 0 : i32
    %c0_i32_0 = arith.constant 0 : i32
    return %arg0, %c0_i32 : i32, i32
  }
  func.func @transform_1(%arg0: i32) -> (i32, i32) {
    %c0_i32 = arith.constant 0 : i32
    %c0_i32_0 = arith.constant 0 : i32
    %c0_i32_1 = arith.constant 0 : i32
    return %c0_i32, %c0_i32_0 : i32, i32
  }
  func.func @transform_2(%arg0: i32) -> (i32, i32) {
    %c0_i32 = arith.constant 0 : i32
    %c0_i32_0 = arith.constant 0 : i32
    %c0_i32_1 = arith.constant 0 : i32
    return %c0_i32, %c0_i32_0 : i32, i32
  }
  func.func @transform_3(%arg0: i32) -> (i32, i32) {
    %c0_i32 = arith.constant 0 : i32
    %c0_i32_0 = arith.constant 0 : i32
    return %arg0, %c0_i32 : i32, i32
  }
}

module attributes {stable_mosaic.version = 11 : i64} {
  func.func @_matmul_bias_kernel(%arg0: i32, %arg1: memref<128x144xf32, #tpu.memory_space<vmem>>, %arg2: memref<144x32xbf16, #tpu.memory_space<vmem>>, %arg3: memref<1x32xf32, #tpu.memory_space<vmem>>, %arg4: memref<128x32xf32, #tpu.memory_space<vmem>>) attributes {dimension_semantics = [#tpu.dimension_semantics<parallel>], iteration_bounds = array<i64: 1>, scalar_prefetch = 0 : i64, scratch_operands = 0 : i64, tpu.core_type = #tpu.core_type<tc>, window_params = [{transform_indices = @transform_0, window_bounds = array<i64: 128, 144>}, {pipeline_mode = #tpu.pipeline_mode<synchronous>, transform_indices = @transform_1, window_bounds = array<i64: 144, 32>}, {pipeline_mode = #tpu.pipeline_mode<synchronous>, transform_indices = @transform_2, window_bounds = array<i64: 1, 32>}, {transform_indices = @transform_3, window_bounds = array<i64: 128, 32>}]} {
    %c0 = arith.constant 0 : index
    %c0_0 = arith.constant 0 : index
    %0 = vector.load %arg1[%c0, %c0_0] : memref<128x144xf32, #tpu.memory_space<vmem>>, vector<128x144xf32>
    %1 = arith.truncf %0 : vector<128x144xf32> to vector<128x144xbf16>
    %c0_1 = arith.constant 0 : index
    %c0_2 = arith.constant 0 : index
    %2 = vector.load %arg2[%c0_1, %c0_2] : memref<144x32xbf16, #tpu.memory_space<vmem>>, vector<144x32xbf16>
    %cst = arith.constant dense<0.000000e+00> : vector<128x32xf32>
    %3 = tpu.matmul %1, %2, %cst {dimension_numbers = #tpu.dot_dimension_numbers<[1], [0], [0], [1], [0, 0, 1, 1], [], []>} : vector<128x144xbf16>, vector<144x32xbf16>, vector<128x32xf32> -> vector<128x32xf32>
    %c0_3 = arith.constant 0 : index
    %c0_4 = arith.constant 0 : index
    %4 = vector.load %arg3[%c0_3, %c0_4] : memref<1x32xf32, #tpu.memory_space<vmem>>, vector<1x32xf32>
    %5 = vector.broadcast %4 : vector<1x32xf32> to vector<128x32xf32>
    %6 = arith.addf %3, %5 : vector<128x32xf32>
    %cst_5 = arith.constant 0.000000e+00 : f32
    %7 = vector.broadcast %cst_5 : f32 to vector<128x32xf32>
    %8 = arith.maximumf %6, %7 : vector<128x32xf32>
    %c0_6 = arith.constant 0 : index
    %c0_7 = arith.constant 0 : index
    %9 = vector.load %arg4[%c0_6, %c0_7] : memref<128x32xf32, #tpu.memory_space<vmem>>, vector<128x32xf32>
    tpu.vector_store %arg4[%c0_6, %c0_7], %8 {strides = array<i32>} : memref<128x32xf32, #tpu.memory_space<vmem>>, vector<128x32xf32>,
    return
  }
  func.func @transform_0(%arg0: i32) -> (i32, i32) {
    %c0_i32 = arith.constant 0 : i32
    %c0_i32_0 = arith.constant 0 : i32
    return %arg0, %c0_i32 : i32, i32
  }
  func.func @transform_1(%arg0: i32) -> (i32, i32) {
    %c0_i32 = arith.constant 0 : i32
    %c0_i32_0 = arith.constant 0 : i32
    %c0_i32_1 = arith.constant 0 : i32
    return %c0_i32, %c0_i32_0 : i32, i32
  }
  func.func @transform_2(%arg0: i32) -> (i32, i32) {
    %c0_i32 = arith.constant 0 : i32
    %c0_i32_0 = arith.constant 0 : i32
    %c0_i32_1 = arith.constant 0 : i32
    return %c0_i32, %c0_i32_0 : i32, i32
  }
  func.func @transform_3(%arg0: i32) -> (i32, i32) {
    %c0_i32 = arith.constant 0 : i32
    %c0_i32_0 = arith.constant 0 : i32
    return %arg0, %c0_i32 : i32, i32
  }
}

module attributes {stable_mosaic.version = 11 : i64} {
  func.func @_matmul_bias_kernel(%arg0: i32, %arg1: memref<32x288xf32, #tpu.memory_space<vmem>>, %arg2: memref<288x32xbf16, #tpu.memory_space<vmem>>, %arg3: memref<1x32xf32, #tpu.memory_space<vmem>>, %arg4: memref<32x32xf32, #tpu.memory_space<vmem>>) attributes {dimension_semantics = [#tpu.dimension_semantics<parallel>], iteration_bounds = array<i64: 1>, scalar_prefetch = 0 : i64, scratch_operands = 0 : i64, tpu.core_type = #tpu.core_type<tc>, window_params = [{transform_indices = @transform_0, window_bounds = array<i64: 32, 288>}, {pipeline_mode = #tpu.pipeline_mode<synchronous>, transform_indices = @transform_1, window_bounds = array<i64: 288, 32>}, {pipeline_mode = #tpu.pipeline_mode<synchronous>, transform_indices = @transform_2, window_bounds = array<i64: 1, 32>}, {transform_indices = @transform_3, window_bounds = array<i64: 32, 32>}]} {
    %c0 = arith.constant 0 : index
    %c0_0 = arith.constant 0 : index
    %0 = vector.load %arg1[%c0, %c0_0] : memref<32x288xf32, #tpu.memory_space<vmem>>, vector<32x288xf32>
    %1 = arith.truncf %0 : vector<32x288xf32> to vector<32x288xbf16>
    %c0_1 = arith.constant 0 : index
    %c0_2 = arith.constant 0 : index
    %2 = vector.load %arg2[%c0_1, %c0_2] : memref<288x32xbf16, #tpu.memory_space<vmem>>, vector<288x32xbf16>
    %cst = arith.constant dense<0.000000e+00> : vector<32x32xf32>
    %3 = tpu.matmul %1, %2, %cst {dimension_numbers = #tpu.dot_dimension_numbers<[1], [0], [0], [1], [0, 0, 1, 1], [], []>} : vector<32x288xbf16>, vector<288x32xbf16>, vector<32x32xf32> -> vector<32x32xf32>
    %c0_3 = arith.constant 0 : index
    %c0_4 = arith.constant 0 : index
    %4 = vector.load %arg3[%c0_3, %c0_4] : memref<1x32xf32, #tpu.memory_space<vmem>>, vector<1x32xf32>
    %5 = vector.broadcast %4 : vector<1x32xf32> to vector<32x32xf32>
    %6 = arith.addf %3, %5 : vector<32x32xf32>
    %cst_5 = arith.constant 0.000000e+00 : f32
    %7 = vector.broadcast %cst_5 : f32 to vector<32x32xf32>
    %8 = arith.maximumf %6, %7 : vector<32x32xf32>
    %c0_6 = arith.constant 0 : index
    %c0_7 = arith.constant 0 : index
    %9 = vector.load %arg4[%c0_6, %c0_7] : memref<32x32xf32, #tpu.memory_space<vmem>>, vector<32x32xf32>
    tpu.vector_store %arg4[%c0_6, %c0_7], %8 {strides = array<i32>} : memref<32x32xf32, #tpu.memory_space<vmem>>, vector<32x32xf32>,
    return
  }
  func.func @transform_0(%arg0: i32) -> (i32, i32) {
    %c0_i32 = arith.constant 0 : i32
    %c0_i32_0 = arith.constant 0 : i32
    return %arg0, %c0_i32 : i32, i32
  }
  func.func @transform_1(%arg0: i32) -> (i32, i32) {
    %c0_i32 = arith.constant 0 : i32
    %c0_i32_0 = arith.constant 0 : i32
    %c0_i32_1 = arith.constant 0 : i32
    return %c0_i32, %c0_i32_0 : i32, i32
  }
  func.func @transform_2(%arg0: i32) -> (i32, i32) {
    %c0_i32 = arith.constant 0 : i32
    %c0_i32_0 = arith.constant 0 : i32
    %c0_i32_1 = arith.constant 0 : i32
    return %c0_i32, %c0_i32_0 : i32, i32
  }
  func.func @transform_3(%arg0: i32) -> (i32, i32) {
    %c0_i32 = arith.constant 0 : i32
    %c0_i32_0 = arith.constant 0 : i32
    return %arg0, %c0_i32 : i32, i32
  }
}

module attributes {stable_mosaic.version = 11 : i64} {
  func.func @_transformer_layer_kernel(%arg0: i32, %arg1: memref<2x16x32xf32, #tpu.memory_space<vmem>>, %arg2: memref<32x32xbf16, #tpu.memory_space<vmem>>, %arg3: memref<17x32xf32, #tpu.memory_space<vmem>>, %arg4: memref<1x32xf32, #tpu.memory_space<vmem>>, %arg5: memref<1x32xf32, #tpu.memory_space<vmem>>, %arg6: memref<4x32x8xbf16, #tpu.memory_space<vmem>>, %arg7: memref<4x32x8xbf16, #tpu.memory_space<vmem>>, %arg8: memref<4x32x8xbf16, #tpu.memory_space<vmem>>, %arg9: memref<4x8x32xbf16, #tpu.memory_space<vmem>>, %arg10: memref<1x32xf32, #tpu.memory_space<vmem>>, %arg11: memref<1x32xf32, #tpu.memory_space<vmem>>, %arg12: memref<1x32xf32, #tpu.memory_space<vmem>>, %arg13: memref<32x64xbf16, #tpu.memory_space<vmem>>, %arg14: memref<1x64xf32, #tpu.memory_space<vmem>>, %arg15: memref<64x32xbf16, #tpu.memory_space<vmem>>, %arg16: memref<1x32xf32, #tpu.memory_space<vmem>>, %arg17: memref<2x17x32xf32, #tpu.memory_space<vmem>>) attributes {dimension_semantics = [#tpu.dimension_semantics<parallel>], iteration_bounds = array<i64: 1>, scalar_prefetch = 0 : i64, scratch_operands = 0 : i64, tpu.core_type = #tpu.core_type<tc>, window_params = [{transform_indices = @transform_0, window_bounds = array<i64: 2, 16, 32>}, {pipeline_mode = #tpu.pipeline_mode<synchronous>, transform_indices = @transform_1, window_bounds = array<i64: 32, 32>}, {pipeline_mode = #tpu.pipeline_mode<synchronous>, transform_indices = @transform_2, window_bounds = array<i64: 17, 32>}, {pipeline_mode = #tpu.pipeline_mode<synchronous>, transform_indices = @transform_3, window_bounds = array<i64: 1, 32>}, {pipeline_mode = #tpu.pipeline_mode<synchronous>, transform_indices = @transform_4, window_bounds = array<i64: 1, 32>}, {pipeline_mode = #tpu.pipeline_mode<synchronous>, transform_indices = @transform_5, window_bounds = array<i64: 4, 32, 8>}, {pipeline_mode = #tpu.pipeline_mode<synchronous>, transform_indices = @transform_6, window_bounds = array<i64: 4, 32, 8>}, {pipeline_mode = #tpu.pipeline_mode<synchronous>, transform_indices = @transform_7, window_bounds = array<i64: 4, 32, 8>}, {pipeline_mode = #tpu.pipeline_mode<synchronous>, transform_indices = @transform_8, window_bounds = array<i64: 4, 8, 32>}, {pipeline_mode = #tpu.pipeline_mode<synchronous>, transform_indices = @transform_9, window_bounds = array<i64: 1, 32>}, {pipeline_mode = #tpu.pipeline_mode<synchronous>, transform_indices = @transform_10, window_bounds = array<i64: 1, 32>}, {pipeline_mode = #tpu.pipeline_mode<synchronous>, transform_indices = @transform_11, window_bounds = array<i64: 1, 32>}, {pipeline_mode = #tpu.pipeline_mode<synchronous>, transform_indices = @transform_12, window_bounds = array<i64: 32, 64>}, {pipeline_mode = #tpu.pipeline_mode<synchronous>, transform_indices = @transform_13, window_bounds = array<i64: 1, 64>}, {pipeline_mode = #tpu.pipeline_mode<synchronous>, transform_indices = @transform_14, window_bounds = array<i64: 64, 32>}, {pipeline_mode = #tpu.pipeline_mode<synchronous>, transform_indices = @transform_15, window_bounds = array<i64: 1, 32>}, {transform_indices = @transform_16, window_bounds = array<i64: 2, 17, 32>}]} {
    %c0 = arith.constant 0 : index
    %c0_0 = arith.constant 0 : index
    %c0_1 = arith.constant 0 : index
    %0 = vector.load %arg1[%c0, %c0_0, %c0_1] : memref<2x16x32xf32, #tpu.memory_space<vmem>>, vector<1x16x32xf32>
    %1 = vector.shape_cast %0 : vector<1x16x32xf32> to vector<16x32xf32>
    %2 = arith.truncf %1 : vector<16x32xf32> to vector<16x32xbf16>
    %c0_2 = arith.constant 0 : index
    %c0_3 = arith.constant 0 : index
    %3 = vector.load %arg2[%c0_2, %c0_3] : memref<32x32xbf16, #tpu.memory_space<vmem>>, vector<32x32xbf16>
    %cst = arith.constant dense<0.000000e+00> : vector<16x32xf32>
    %4 = tpu.matmul %2, %3, %cst {dimension_numbers = #tpu.dot_dimension_numbers<[1], [0], [0], [1], [0, 0, 1, 1], [], []>} : vector<16x32xbf16>, vector<32x32xbf16>, vector<16x32xf32> -> vector<16x32xf32>
    %cst_4 = arith.constant 0.000000e+00 : f32
    %5 = vector.broadcast %cst_4 : f32 to vector<1x32xf32>
    %6 = tpu.concatenate %5, %4 in 0 : vector<1x32xf32>, vector<16x32xf32> -> vector<17x32xf32>
    %c0_5 = arith.constant 0 : index
    %c0_6 = arith.constant 0 : index
    %7 = vector.load %arg3[%c0_5, %c0_6] : memref<17x32xf32, #tpu.memory_space<vmem>>, vector<17x32xf32>
    %8 = arith.addf %6, %7 : vector<17x32xf32>
    %c0_7 = arith.constant 0 : index
    %c0_8 = arith.constant 0 : index
    %9 = vector.load %arg4[%c0_7, %c0_8] : memref<1x32xf32, #tpu.memory_space<vmem>>, vector<1x32xf32>
    %c0_9 = arith.constant 0 : index
    %c0_10 = arith.constant 0 : index
    %10 = vector.load %arg5[%c0_9, %c0_10] : memref<1x32xf32, #tpu.memory_space<vmem>>, vector<1x32xf32>
    %cst_11 = arith.constant dense<0.000000e+00> : vector<17xf32>
    %11 = vector.multi_reduction <add>, %8, %cst_11 [1] : vector<17x32xf32> to vector<17xf32>
    %12 = vector.shape_cast %11 : vector<17xf32> to vector<17x1xf32>
    %cst_12 = arith.constant 3.200000e+01 : f32
    %13 = vector.broadcast %cst_12 : f32 to vector<17x1xf32>
    %14 = arith.divf %12, %13 : vector<17x1xf32>
    %15 = vector.broadcast %14 : vector<17x1xf32> to vector<17x32xf32>
    %16 = arith.subf %8, %15 : vector<17x32xf32>
    %17 = arith.mulf %16, %16 : vector<17x32xf32>
    %cst_13 = arith.constant dense<0.000000e+00> : vector<17xf32>
    %18 = vector.multi_reduction <add>, %17, %cst_13 [1] : vector<17x32xf32> to vector<17xf32>
    %19 = vector.shape_cast %18 : vector<17xf32> to vector<17x1xf32>
    %cst_14 = arith.constant 3.200000e+01 : f32
    %20 = vector.broadcast %cst_14 : f32 to vector<17x1xf32>
    %21 = arith.divf %19, %20 : vector<17x1xf32>
    %22 = vector.broadcast %14 : vector<17x1xf32> to vector<17x32xf32>
    %23 = arith.subf %8, %22 : vector<17x32xf32>
    %cst_15 = arith.constant 9.99999974E-6 : f32
    %24 = vector.broadcast %cst_15 : f32 to vector<17x1xf32>
    %25 = arith.addf %21, %24 : vector<17x1xf32>
    %26 = math.rsqrt %25 : vector<17x1xf32>
    %27 = vector.broadcast %26 : vector<17x1xf32> to vector<17x32xf32>
    %28 = arith.mulf %23, %27 : vector<17x32xf32>
    %29 = vector.broadcast %9 : vector<1x32xf32> to vector<17x32xf32>
    %30 = arith.mulf %28, %29 : vector<17x32xf32>
    %31 = vector.broadcast %10 : vector<1x32xf32> to vector<17x32xf32>
    %32 = arith.addf %30, %31 : vector<17x32xf32>
    %33 = arith.truncf %32 : vector<17x32xf32> to vector<17x32xbf16>
    %34 = vector.shape_cast %33 : vector<17x32xbf16> to vector<1x17x32xbf16>
    %35 = vector.shape_cast %34 : vector<1x17x32xbf16> to vector<1x17x32xbf16>
    %36 = vector.broadcast %35 : vector<1x17x32xbf16> to vector<4x17x32xbf16>
    %c0_16 = arith.constant 0 : index
    %c0_17 = arith.constant 0 : index
    %c0_18 = arith.constant 0 : index
    %37 = vector.load %arg6[%c0_16, %c0_17, %c0_18] : memref<4x32x8xbf16, #tpu.memory_space<vmem>>, vector<4x32x8xbf16>
    "tpu.trace_start"() <{level = 10 : i32, message = "hnd,hdf->hnf"}> : () -> ()
    %cst_19 = arith.constant dense<0.000000e+00> : vector<4x17x8xf32>
    %38 = tpu.matmul %36, %37, %cst_19 {dimension_numbers = #tpu.dot_dimension_numbers<[2], [1], [1], [2], [0, 0, 0, 1, 1, 2], [0], [0]>} : vector<4x17x32xbf16>, vector<4x32x8xbf16>, vector<4x17x8xf32> -> vector<4x17x8xf32>
    "tpu.trace_stop"() : () -> ()
    %c0_20 = arith.constant 0 : index
    %c0_21 = arith.constant 0 : index
    %c0_22 = arith.constant 0 : index
    %39 = vector.load %arg7[%c0_20, %c0_21, %c0_22] : memref<4x32x8xbf16, #tpu.memory_space<vmem>>, vector<4x32x8xbf16>
    "tpu.trace_start"() <{level = 10 : i32, message = "hnd,hdf->hnf"}> : () -> ()
    %cst_23 = arith.constant dense<0.000000e+00> : vector<4x17x8xf32>
    %40 = tpu.matmul %36, %39, %cst_23 {dimension_numbers = #tpu.dot_dimension_numbers<[2], [1], [1], [2], [0, 0, 0, 1, 1, 2], [0], [0]>} : vector<4x17x32xbf16>, vector<4x32x8xbf16>, vector<4x17x8xf32> -> vector<4x17x8xf32>
    "tpu.trace_stop"() : () -> ()
    %c0_24 = arith.constant 0 : index
    %c0_25 = arith.constant 0 : index
    %c0_26 = arith.constant 0 : index
    %41 = vector.load %arg8[%c0_24, %c0_25, %c0_26] : memref<4x32x8xbf16, #tpu.memory_space<vmem>>, vector<4x32x8xbf16>
    "tpu.trace_start"() <{level = 10 : i32, message = "hnd,hdf->hnf"}> : () -> ()
    %cst_27 = arith.constant dense<0.000000e+00> : vector<4x17x8xf32>
    %42 = tpu.matmul %36, %41, %cst_27 {dimension_numbers = #tpu.dot_dimension_numbers<[2], [1], [1], [2], [0, 0, 0, 1, 1, 2], [0], [0]>} : vector<4x17x32xbf16>, vector<4x32x8xbf16>, vector<4x17x8xf32> -> vector<4x17x8xf32>
    "tpu.trace_stop"() : () -> ()
    %43 = arith.truncf %38 : vector<4x17x8xf32> to vector<4x17x8xbf16>
    %44 = arith.truncf %40 : vector<4x17x8xf32> to vector<4x17x8xbf16>
    "tpu.trace_start"() <{level = 10 : i32, message = "hqd,hkd->hqk"}> : () -> ()
    %cst_28 = arith.constant dense<0.000000e+00> : vector<4x17x17xf32>
    %45 = tpu.matmul %43, %44, %cst_28 {dimension_numbers = #tpu.dot_dimension_numbers<[2], [2], [1], [1], [0, 0, 0, 1, 1, 1], [0], [0]>} : vector<4x17x8xbf16>, vector<4x17x8xbf16>, vector<4x17x17xf32> -> vector<4x17x17xf32>
    "tpu.trace_stop"() : () -> ()
    %cst_29 = arith.constant dense<0xFF800000> : vector<4x17xf32>
    %46 = vector.multi_reduction <maximumf>, %45, %cst_29 [2] : vector<4x17x17xf32> to vector<4x17xf32>
    %47 = vector.shape_cast %46 : vector<4x17xf32> to vector<4x17x1xf32>
    %48 = vector.broadcast %47 : vector<4x17x1xf32> to vector<4x17x17xf32>
    %49 = arith.subf %45, %48 : vector<4x17x17xf32>
    %50 = math.exp %49 : vector<4x17x17xf32>
    %cst_30 = arith.constant dense<0.000000e+00> : vector<4x17xf32>
    %51 = vector.multi_reduction <add>, %50, %cst_30 [2] : vector<4x17x17xf32> to vector<4x17xf32>
    %52 = vector.shape_cast %51 : vector<4x17xf32> to vector<4x17x1xf32>
    %53 = tpu.reciprocal %52 {approx = true} : vector<4x17x1xf32> -> vector<4x17x1xf32>
    %54 = vector.broadcast %53 : vector<4x17x1xf32> to vector<4x17x17xf32>
    %55 = arith.mulf %50, %54 : vector<4x17x17xf32>
    %56 = arith.truncf %55 : vector<4x17x17xf32> to vector<4x17x17xbf16>
    %57 = arith.truncf %42 : vector<4x17x8xf32> to vector<4x17x8xbf16>
    "tpu.trace_start"() <{level = 10 : i32, message = "hqk,hkd->hqd"}> : () -> ()
    %cst_31 = arith.constant dense<0.000000e+00> : vector<4x17x8xf32>
    %58 = tpu.matmul %56, %57, %cst_31 {dimension_numbers = #tpu.dot_dimension_numbers<[2], [1], [1], [2], [0, 0, 0, 1, 1, 2], [0], [0]>} : vector<4x17x17xbf16>, vector<4x17x8xbf16>, vector<4x17x8xf32> -> vector<4x17x8xf32>
    "tpu.trace_stop"() : () -> ()
    %59 = arith.truncf %58 : vector<4x17x8xf32> to vector<4x17x8xbf16>
    %c0_32 = arith.constant 0 : index
    %c0_33 = arith.constant 0 : index
    %c0_34 = arith.constant 0 : index
    %60 = vector.load %arg9[%c0_32, %c0_33, %c0_34] : memref<4x8x32xbf16, #tpu.memory_space<vmem>>, vector<4x8x32xbf16>
    "tpu.trace_start"() <{level = 10 : i32, message = "hnd,hdf->hnf"}> : () -> ()
    %cst_35 = arith.constant dense<0.000000e+00> : vector<4x17x32xf32>
    %61 = tpu.matmul %59, %60, %cst_35 {dimension_numbers = #tpu.dot_dimension_numbers<[2], [1], [1], [2], [0, 0, 0, 1, 1, 2], [0], [0]>} : vector<4x17x8xbf16>, vector<4x8x32xbf16>, vector<4x17x32xf32> -> vector<4x17x32xf32>
    "tpu.trace_stop"() : () -> ()
    %cst_36 = arith.constant dense<0.000000e+00> : vector<17x32xf32>
    %62 = vector.multi_reduction <add>, %61, %cst_36 [0] : vector<4x17x32xf32> to vector<17x32xf32>
    %63 = arith.addf %8, %62 : vector<17x32xf32>
    %c0_37 = arith.constant 0 : index
    %c0_38 = arith.constant 0 : index
    %64 = vector.load %arg10[%c0_37, %c0_38] : memref<1x32xf32, #tpu.memory_space<vmem>>, vector<1x32xf32>
    %65 = vector.broadcast %64 : vector<1x32xf32> to vector<17x32xf32>
    %66 = arith.addf %63, %65 : vector<17x32xf32>
    %c0_39 = arith.constant 0 : index
    %c0_40 = arith.constant 0 : index
    %67 = vector.load %arg11[%c0_39, %c0_40] : memref<1x32xf32, #tpu.memory_space<vmem>>, vector<1x32xf32>
    %c0_41 = arith.constant 0 : index
    %c0_42 = arith.constant 0 : index
    %68 = vector.load %arg12[%c0_41, %c0_42] : memref<1x32xf32, #tpu.memory_space<vmem>>, vector<1x32xf32>
    %cst_43 = arith.constant dense<0.000000e+00> : vector<17xf32>
    %69 = vector.multi_reduction <add>, %66, %cst_43 [1] : vector<17x32xf32> to vector<17xf32>
    %70 = vector.shape_cast %69 : vector<17xf32> to vector<17x1xf32>
    %cst_44 = arith.constant 3.200000e+01 : f32
    %71 = vector.broadcast %cst_44 : f32 to vector<17x1xf32>
    %72 = arith.divf %70, %71 : vector<17x1xf32>
    %73 = vector.broadcast %72 : vector<17x1xf32> to vector<17x32xf32>
    %74 = arith.subf %66, %73 : vector<17x32xf32>
    %75 = arith.mulf %74, %74 : vector<17x32xf32>
    %cst_45 = arith.constant dense<0.000000e+00> : vector<17xf32>
    %76 = vector.multi_reduction <add>, %75, %cst_45 [1] : vector<17x32xf32> to vector<17xf32>
    %77 = vector.shape_cast %76 : vector<17xf32> to vector<17x1xf32>
    %cst_46 = arith.constant 3.200000e+01 : f32
    %78 = vector.broadcast %cst_46 : f32 to vector<17x1xf32>
    %79 = arith.divf %77, %78 : vector<17x1xf32>
    %80 = vector.broadcast %72 : vector<17x1xf32> to vector<17x32xf32>
    %81 = arith.subf %66, %80 : vector<17x32xf32>
    %cst_47 = arith.constant 9.99999974E-6 : f32
    %82 = vector.broadcast %cst_47 : f32 to vector<17x1xf32>
    %83 = arith.addf %79, %82 : vector<17x1xf32>
    %84 = math.rsqrt %83 : vector<17x1xf32>
    %85 = vector.broadcast %84 : vector<17x1xf32> to vector<17x32xf32>
    %86 = arith.mulf %81, %85 : vector<17x32xf32>
    %87 = vector.broadcast %67 : vector<1x32xf32> to vector<17x32xf32>
    %88 = arith.mulf %86, %87 : vector<17x32xf32>
    %89 = vector.broadcast %68 : vector<1x32xf32> to vector<17x32xf32>
    %90 = arith.addf %88, %89 : vector<17x32xf32>
    %91 = arith.truncf %90 : vector<17x32xf32> to vector<17x32xbf16>
    %c0_48 = arith.constant 0 : index
    %c0_49 = arith.constant 0 : index
    %92 = vector.load %arg13[%c0_48, %c0_49] : memref<32x64xbf16, #tpu.memory_space<vmem>>, vector<32x64xbf16>
    %cst_50 = arith.constant dense<0.000000e+00> : vector<17x64xf32>
    %93 = tpu.matmul %91, %92, %cst_50 {dimension_numbers = #tpu.dot_dimension_numbers<[1], [0], [0], [1], [0, 0, 1, 1], [], []>} : vector<17x32xbf16>, vector<32x64xbf16>, vector<17x64xf32> -> vector<17x64xf32>
    %c0_51 = arith.constant 0 : index
    %c0_52 = arith.constant 0 : index
    %94 = vector.load %arg14[%c0_51, %c0_52] : memref<1x64xf32, #tpu.memory_space<vmem>>, vector<1x64xf32>
    %95 = vector.broadcast %94 : vector<1x64xf32> to vector<17x64xf32>
    %96 = arith.addf %93, %95 : vector<17x64xf32>
    %cst_53 = arith.constant 0.000000e+00 : f32
    %97 = vector.broadcast %cst_53 : f32 to vector<17x64xf32>
    %98 = arith.maximumf %96, %97 : vector<17x64xf32>
    %99 = arith.truncf %98 : vector<17x64xf32> to vector<17x64xbf16>
    %c0_54 = arith.constant 0 : index
    %c0_55 = arith.constant 0 : index
    %100 = vector.load %arg15[%c0_54, %c0_55] : memref<64x32xbf16, #tpu.memory_space<vmem>>, vector<64x32xbf16>
    %cst_56 = arith.constant dense<0.000000e+00> : vector<17x32xf32>
    %101 = tpu.matmul %99, %100, %cst_56 {dimension_numbers = #tpu.dot_dimension_numbers<[1], [0], [0], [1], [0, 0, 1, 1], [], []>} : vector<17x64xbf16>, vector<64x32xbf16>, vector<17x32xf32> -> vector<17x32xf32>
    %c0_57 = arith.constant 0 : index
    %c0_58 = arith.constant 0 : index
    %102 = vector.load %arg16[%c0_57, %c0_58] : memref<1x32xf32, #tpu.memory_space<vmem>>, vector<1x32xf32>
    %103 = vector.broadcast %102 : vector<1x32xf32> to vector<17x32xf32>
    %104 = arith.addf %101, %103 : vector<17x32xf32>
    %105 = arith.addf %66, %104 : vector<17x32xf32>
    %c0_59 = arith.constant 0 : index
    %c0_60 = arith.constant 0 : index
    %c0_61 = arith.constant 0 : index
    %106 = vector.load %arg17[%c0_59, %c0_60, %c0_61] : memref<2x17x32xf32, #tpu.memory_space<vmem>>, vector<1x17x32xf32>
    %107 = vector.shape_cast %106 : vector<1x17x32xf32> to vector<17x32xf32>
    %108 = vector.shape_cast %105 : vector<17x32xf32> to vector<1x17x32xf32>
    tpu.vector_store %arg17[%c0_59, %c0_60, %c0_61], %108 {strides = array<i32>} : memref<2x17x32xf32, #tpu.memory_space<vmem>>, vector<1x17x32xf32>,
    %c1 = arith.constant 1 : index
    %c0_62 = arith.constant 0 : index
    %c0_63 = arith.constant 0 : index
    %109 = vector.load %arg1[%c1, %c0_62, %c0_63] : memref<2x16x32xf32, #tpu.memory_space<vmem>>, vector<1x16x32xf32>
    %110 = vector.shape_cast %109 : vector<1x16x32xf32> to vector<16x32xf32>
    %111 = arith.truncf %110 : vector<16x32xf32> to vector<16x32xbf16>
    %c0_64 = arith.constant 0 : index
    %c0_65 = arith.constant 0 : index
    %112 = vector.load %arg2[%c0_64, %c0_65] : memref<32x32xbf16, #tpu.memory_space<vmem>>, vector<32x32xbf16>
    %cst_66 = arith.constant dense<0.000000e+00> : vector<16x32xf32>
    %113 = tpu.matmul %111, %112, %cst_66 {dimension_numbers = #tpu.dot_dimension_numbers<[1], [0], [0], [1], [0, 0, 1, 1], [], []>} : vector<16x32xbf16>, vector<32x32xbf16>, vector<16x32xf32> -> vector<16x32xf32>
    %cst_67 = arith.constant 0.000000e+00 : f32
    %114 = vector.broadcast %cst_67 : f32 to vector<1x32xf32>
    %115 = tpu.concatenate %114, %113 in 0 : vector<1x32xf32>, vector<16x32xf32> -> vector<17x32xf32>
    %c0_68 = arith.constant 0 : index
    %c0_69 = arith.constant 0 : index
    %116 = vector.load %arg3[%c0_68, %c0_69] : memref<17x32xf32, #tpu.memory_space<vmem>>, vector<17x32xf32>
    %117 = arith.addf %115, %116 : vector<17x32xf32>
    %c0_70 = arith.constant 0 : index
    %c0_71 = arith.constant 0 : index
    %118 = vector.load %arg4[%c0_70, %c0_71] : memref<1x32xf32, #tpu.memory_space<vmem>>, vector<1x32xf32>
    %c0_72 = arith.constant 0 : index
    %c0_73 = arith.constant 0 : index
    %119 = vector.load %arg5[%c0_72, %c0_73] : memref<1x32xf32, #tpu.memory_space<vmem>>, vector<1x32xf32>
    %cst_74 = arith.constant dense<0.000000e+00> : vector<17xf32>
    %120 = vector.multi_reduction <add>, %117, %cst_74 [1] : vector<17x32xf32> to vector<17xf32>
    %121 = vector.shape_cast %120 : vector<17xf32> to vector<17x1xf32>
    %cst_75 = arith.constant 3.200000e+01 : f32
    %122 = vector.broadcast %cst_75 : f32 to vector<17x1xf32>
    %123 = arith.divf %121, %122 : vector<17x1xf32>
    %124 = vector.broadcast %123 : vector<17x1xf32> to vector<17x32xf32>
    %125 = arith.subf %117, %124 : vector<17x32xf32>
    %126 = arith.mulf %125, %125 : vector<17x32xf32>
    %cst_76 = arith.constant dense<0.000000e+00> : vector<17xf32>
    %127 = vector.multi_reduction <add>, %126, %cst_76 [1] : vector<17x32xf32> to vector<17xf32>
    %128 = vector.shape_cast %127 : vector<17xf32> to vector<17x1xf32>
    %cst_77 = arith.constant 3.200000e+01 : f32
    %129 = vector.broadcast %cst_77 : f32 to vector<17x1xf32>
    %130 = arith.divf %128, %129 : vector<17x1xf32>
    %131 = vector.broadcast %123 : vector<17x1xf32> to vector<17x32xf32>
    %132 = arith.subf %117, %131 : vector<17x32xf32>
    %cst_78 = arith.constant 9.99999974E-6 : f32
    %133 = vector.broadcast %cst_78 : f32 to vector<17x1xf32>
    %134 = arith.addf %130, %133 : vector<17x1xf32>
    %135 = math.rsqrt %134 : vector<17x1xf32>
    %136 = vector.broadcast %135 : vector<17x1xf32> to vector<17x32xf32>
    %137 = arith.mulf %132, %136 : vector<17x32xf32>
    %138 = vector.broadcast %118 : vector<1x32xf32> to vector<17x32xf32>
    %139 = arith.mulf %137, %138 : vector<17x32xf32>
    %140 = vector.broadcast %119 : vector<1x32xf32> to vector<17x32xf32>
    %141 = arith.addf %139, %140 : vector<17x32xf32>
    %142 = arith.truncf %141 : vector<17x32xf32> to vector<17x32xbf16>
    %143 = vector.shape_cast %142 : vector<17x32xbf16> to vector<1x17x32xbf16>
    %144 = vector.shape_cast %143 : vector<1x17x32xbf16> to vector<1x17x32xbf16>
    %145 = vector.broadcast %144 : vector<1x17x32xbf16> to vector<4x17x32xbf16>
    %c0_79 = arith.constant 0 : index
    %c0_80 = arith.constant 0 : index
    %c0_81 = arith.constant 0 : index
    %146 = vector.load %arg6[%c0_79, %c0_80, %c0_81] : memref<4x32x8xbf16, #tpu.memory_space<vmem>>, vector<4x32x8xbf16>
    "tpu.trace_start"() <{level = 10 : i32, message = "hnd,hdf->hnf"}> : () -> ()
    %cst_82 = arith.constant dense<0.000000e+00> : vector<4x17x8xf32>
    %147 = tpu.matmul %145, %146, %cst_82 {dimension_numbers = #tpu.dot_dimension_numbers<[2], [1], [1], [2], [0, 0, 0, 1, 1, 2], [0], [0]>} : vector<4x17x32xbf16>, vector<4x32x8xbf16>, vector<4x17x8xf32> -> vector<4x17x8xf32>
    "tpu.trace_stop"() : () -> ()
    %c0_83 = arith.constant 0 : index
    %c0_84 = arith.constant 0 : index
    %c0_85 = arith.constant 0 : index
    %148 = vector.load %arg7[%c0_83, %c0_84, %c0_85] : memref<4x32x8xbf16, #tpu.memory_space<vmem>>, vector<4x32x8xbf16>
    "tpu.trace_start"() <{level = 10 : i32, message = "hnd,hdf->hnf"}> : () -> ()
    %cst_86 = arith.constant dense<0.000000e+00> : vector<4x17x8xf32>
    %149 = tpu.matmul %145, %148, %cst_86 {dimension_numbers = #tpu.dot_dimension_numbers<[2], [1], [1], [2], [0, 0, 0, 1, 1, 2], [0], [0]>} : vector<4x17x32xbf16>, vector<4x32x8xbf16>, vector<4x17x8xf32> -> vector<4x17x8xf32>
    "tpu.trace_stop"() : () -> ()
    %c0_87 = arith.constant 0 : index
    %c0_88 = arith.constant 0 : index
    %c0_89 = arith.constant 0 : index
    %150 = vector.load %arg8[%c0_87, %c0_88, %c0_89] : memref<4x32x8xbf16, #tpu.memory_space<vmem>>, vector<4x32x8xbf16>
    "tpu.trace_start"() <{level = 10 : i32, message = "hnd,hdf->hnf"}> : () -> ()
    %cst_90 = arith.constant dense<0.000000e+00> : vector<4x17x8xf32>
    %151 = tpu.matmul %145, %150, %cst_90 {dimension_numbers = #tpu.dot_dimension_numbers<[2], [1], [1], [2], [0, 0, 0, 1, 1, 2], [0], [0]>} : vector<4x17x32xbf16>, vector<4x32x8xbf16>, vector<4x17x8xf32> -> vector<4x17x8xf32>
    "tpu.trace_stop"() : () -> ()
    %152 = arith.truncf %147 : vector<4x17x8xf32> to vector<4x17x8xbf16>
    %153 = arith.truncf %149 : vector<4x17x8xf32> to vector<4x17x8xbf16>
    "tpu.trace_start"() <{level = 10 : i32, message = "hqd,hkd->hqk"}> : () -> ()
    %cst_91 = arith.constant dense<0.000000e+00> : vector<4x17x17xf32>
    %154 = tpu.matmul %152, %153, %cst_91 {dimension_numbers = #tpu.dot_dimension_numbers<[2], [2], [1], [1], [0, 0, 0, 1, 1, 1], [0], [0]>} : vector<4x17x8xbf16>, vector<4x17x8xbf16>, vector<4x17x17xf32> -> vector<4x17x17xf32>
    "tpu.trace_stop"() : () -> ()
    %cst_92 = arith.constant dense<0xFF800000> : vector<4x17xf32>
    %155 = vector.multi_reduction <maximumf>, %154, %cst_92 [2] : vector<4x17x17xf32> to vector<4x17xf32>
    %156 = vector.shape_cast %155 : vector<4x17xf32> to vector<4x17x1xf32>
    %157 = vector.broadcast %156 : vector<4x17x1xf32> to vector<4x17x17xf32>
    %158 = arith.subf %154, %157 : vector<4x17x17xf32>
    %159 = math.exp %158 : vector<4x17x17xf32>
    %cst_93 = arith.constant dense<0.000000e+00> : vector<4x17xf32>
    %160 = vector.multi_reduction <add>, %159, %cst_93 [2] : vector<4x17x17xf32> to vector<4x17xf32>
    %161 = vector.shape_cast %160 : vector<4x17xf32> to vector<4x17x1xf32>
    %162 = tpu.reciprocal %161 {approx = true} : vector<4x17x1xf32> -> vector<4x17x1xf32>
    %163 = vector.broadcast %162 : vector<4x17x1xf32> to vector<4x17x17xf32>
    %164 = arith.mulf %159, %163 : vector<4x17x17xf32>
    %165 = arith.truncf %164 : vector<4x17x17xf32> to vector<4x17x17xbf16>
    %166 = arith.truncf %151 : vector<4x17x8xf32> to vector<4x17x8xbf16>
    "tpu.trace_start"() <{level = 10 : i32, message = "hqk,hkd->hqd"}> : () -> ()
    %cst_94 = arith.constant dense<0.000000e+00> : vector<4x17x8xf32>
    %167 = tpu.matmul %165, %166, %cst_94 {dimension_numbers = #tpu.dot_dimension_numbers<[2], [1], [1], [2], [0, 0, 0, 1, 1, 2], [0], [0]>} : vector<4x17x17xbf16>, vector<4x17x8xbf16>, vector<4x17x8xf32> -> vector<4x17x8xf32>
    "tpu.trace_stop"() : () -> ()
    %168 = arith.truncf %167 : vector<4x17x8xf32> to vector<4x17x8xbf16>
    %c0_95 = arith.constant 0 : index
    %c0_96 = arith.constant 0 : index
    %c0_97 = arith.constant 0 : index
    %169 = vector.load %arg9[%c0_95, %c0_96, %c0_97] : memref<4x8x32xbf16, #tpu.memory_space<vmem>>, vector<4x8x32xbf16>
    "tpu.trace_start"() <{level = 10 : i32, message = "hnd,hdf->hnf"}> : () -> ()
    %cst_98 = arith.constant dense<0.000000e+00> : vector<4x17x32xf32>
    %170 = tpu.matmul %168, %169, %cst_98 {dimension_numbers = #tpu.dot_dimension_numbers<[2], [1], [1], [2], [0, 0, 0, 1, 1, 2], [0], [0]>} : vector<4x17x8xbf16>, vector<4x8x32xbf16>, vector<4x17x32xf32> -> vector<4x17x32xf32>
    "tpu.trace_stop"() : () -> ()
    %cst_99 = arith.constant dense<0.000000e+00> : vector<17x32xf32>
    %171 = vector.multi_reduction <add>, %170, %cst_99 [0] : vector<4x17x32xf32> to vector<17x32xf32>
    %172 = arith.addf %117, %171 : vector<17x32xf32>
    %c0_100 = arith.constant 0 : index
    %c0_101 = arith.constant 0 : index
    %173 = vector.load %arg10[%c0_100, %c0_101] : memref<1x32xf32, #tpu.memory_space<vmem>>, vector<1x32xf32>
    %174 = vector.broadcast %173 : vector<1x32xf32> to vector<17x32xf32>
    %175 = arith.addf %172, %174 : vector<17x32xf32>
    %c0_102 = arith.constant 0 : index
    %c0_103 = arith.constant 0 : index
    %176 = vector.load %arg11[%c0_102, %c0_103] : memref<1x32xf32, #tpu.memory_space<vmem>>, vector<1x32xf32>
    %c0_104 = arith.constant 0 : index
    %c0_105 = arith.constant 0 : index
    %177 = vector.load %arg12[%c0_104, %c0_105] : memref<1x32xf32, #tpu.memory_space<vmem>>, vector<1x32xf32>
    %cst_106 = arith.constant dense<0.000000e+00> : vector<17xf32>
    %178 = vector.multi_reduction <add>, %175, %cst_106 [1] : vector<17x32xf32> to vector<17xf32>
    %179 = vector.shape_cast %178 : vector<17xf32> to vector<17x1xf32>
    %cst_107 = arith.constant 3.200000e+01 : f32
    %180 = vector.broadcast %cst_107 : f32 to vector<17x1xf32>
    %181 = arith.divf %179, %180 : vector<17x1xf32>
    %182 = vector.broadcast %181 : vector<17x1xf32> to vector<17x32xf32>
    %183 = arith.subf %175, %182 : vector<17x32xf32>
    %184 = arith.mulf %183, %183 : vector<17x32xf32>
    %cst_108 = arith.constant dense<0.000000e+00> : vector<17xf32>
    %185 = vector.multi_reduction <add>, %184, %cst_108 [1] : vector<17x32xf32> to vector<17xf32>
    %186 = vector.shape_cast %185 : vector<17xf32> to vector<17x1xf32>
    %cst_109 = arith.constant 3.200000e+01 : f32
    %187 = vector.broadcast %cst_109 : f32 to vector<17x1xf32>
    %188 = arith.divf %186, %187 : vector<17x1xf32>
    %189 = vector.broadcast %181 : vector<17x1xf32> to vector<17x32xf32>
    %190 = arith.subf %175, %189 : vector<17x32xf32>
    %cst_110 = arith.constant 9.99999974E-6 : f32
    %191 = vector.broadcast %cst_110 : f32 to vector<17x1xf32>
    %192 = arith.addf %188, %191 : vector<17x1xf32>
    %193 = math.rsqrt %192 : vector<17x1xf32>
    %194 = vector.broadcast %193 : vector<17x1xf32> to vector<17x32xf32>
    %195 = arith.mulf %190, %194 : vector<17x32xf32>
    %196 = vector.broadcast %176 : vector<1x32xf32> to vector<17x32xf32>
    %197 = arith.mulf %195, %196 : vector<17x32xf32>
    %198 = vector.broadcast %177 : vector<1x32xf32> to vector<17x32xf32>
    %199 = arith.addf %197, %198 : vector<17x32xf32>
    %200 = arith.truncf %199 : vector<17x32xf32> to vector<17x32xbf16>
    %c0_111 = arith.constant 0 : index
    %c0_112 = arith.constant 0 : index
    %201 = vector.load %arg13[%c0_111, %c0_112] : memref<32x64xbf16, #tpu.memory_space<vmem>>, vector<32x64xbf16>
    %cst_113 = arith.constant dense<0.000000e+00> : vector<17x64xf32>
    %202 = tpu.matmul %200, %201, %cst_113 {dimension_numbers = #tpu.dot_dimension_numbers<[1], [0], [0], [1], [0, 0, 1, 1], [], []>} : vector<17x32xbf16>, vector<32x64xbf16>, vector<17x64xf32> -> vector<17x64xf32>
    %c0_114 = arith.constant 0 : index
    %c0_115 = arith.constant 0 : index
    %203 = vector.load %arg14[%c0_114, %c0_115] : memref<1x64xf32, #tpu.memory_space<vmem>>, vector<1x64xf32>
    %204 = vector.broadcast %203 : vector<1x64xf32> to vector<17x64xf32>
    %205 = arith.addf %202, %204 : vector<17x64xf32>
    %cst_116 = arith.constant 0.000000e+00 : f32
    %206 = vector.broadcast %cst_116 : f32 to vector<17x64xf32>
    %207 = arith.maximumf %205, %206 : vector<17x64xf32>
    %208 = arith.truncf %207 : vector<17x64xf32> to vector<17x64xbf16>
    %c0_117 = arith.constant 0 : index
    %c0_118 = arith.constant 0 : index
    %209 = vector.load %arg15[%c0_117, %c0_118] : memref<64x32xbf16, #tpu.memory_space<vmem>>, vector<64x32xbf16>
    %cst_119 = arith.constant dense<0.000000e+00> : vector<17x32xf32>
    %210 = tpu.matmul %208, %209, %cst_119 {dimension_numbers = #tpu.dot_dimension_numbers<[1], [0], [0], [1], [0, 0, 1, 1], [], []>} : vector<17x64xbf16>, vector<64x32xbf16>, vector<17x32xf32> -> vector<17x32xf32>
    %c0_120 = arith.constant 0 : index
    %c0_121 = arith.constant 0 : index
    %211 = vector.load %arg16[%c0_120, %c0_121] : memref<1x32xf32, #tpu.memory_space<vmem>>, vector<1x32xf32>
    %212 = vector.broadcast %211 : vector<1x32xf32> to vector<17x32xf32>
    %213 = arith.addf %210, %212 : vector<17x32xf32>
    %214 = arith.addf %175, %213 : vector<17x32xf32>
    %c1_122 = arith.constant 1 : index
    %c0_123 = arith.constant 0 : index
    %c0_124 = arith.constant 0 : index
    %215 = vector.load %arg17[%c1_122, %c0_123, %c0_124] : memref<2x17x32xf32, #tpu.memory_space<vmem>>, vector<1x17x32xf32>
    %216 = vector.shape_cast %215 : vector<1x17x32xf32> to vector<17x32xf32>
    %217 = vector.shape_cast %214 : vector<17x32xf32> to vector<1x17x32xf32>
    tpu.vector_store %arg17[%c1_122, %c0_123, %c0_124], %217 {strides = array<i32>} : memref<2x17x32xf32, #tpu.memory_space<vmem>>, vector<1x17x32xf32>,
    return
  }
  func.func @transform_0(%arg0: i32) -> (i32, i32, i32) {
    %c0_i32 = arith.constant 0 : i32
    %c0_i32_0 = arith.constant 0 : i32
    %c0_i32_1 = arith.constant 0 : i32
    return %arg0, %c0_i32, %c0_i32_0 : i32, i32, i32
  }
  func.func @transform_1(%arg0: i32) -> (i32, i32) {
    %c0_i32 = arith.constant 0 : i32
    %c0_i32_0 = arith.constant 0 : i32
    %c0_i32_1 = arith.constant 0 : i32
    return %c0_i32, %c0_i32_0 : i32, i32
  }
  func.func @transform_2(%arg0: i32) -> (i32, i32) {
    %c0_i32 = arith.constant 0 : i32
    %c0_i32_0 = arith.constant 0 : i32
    %c0_i32_1 = arith.constant 0 : i32
    return %c0_i32, %c0_i32_0 : i32, i32
  }
  func.func @transform_3(%arg0: i32) -> (i32, i32) {
    %c0_i32 = arith.constant 0 : i32
    %c0_i32_0 = arith.constant 0 : i32
    %c0_i32_1 = arith.constant 0 : i32
    return %c0_i32, %c0_i32_0 : i32, i32
  }
  func.func @transform_4(%arg0: i32) -> (i32, i32) {
    %c0_i32 = arith.constant 0 : i32
    %c0_i32_0 = arith.constant 0 : i32
    %c0_i32_1 = arith.constant 0 : i32
    return %c0_i32, %c0_i32_0 : i32, i32
  }
  func.func @transform_5(%arg0: i32) -> (i32, i32, i32) {
    %c0_i32 = arith.constant 0 : i32
    %c0_i32_0 = arith.constant 0 : i32
    %c0_i32_1 = arith.constant 0 : i32
    %c0_i32_2 = arith.constant 0 : i32
    return %c0_i32, %c0_i32_0, %c0_i32_1 : i32, i32, i32
  }
  func.func @transform_6(%arg0: i32) -> (i32, i32, i32) {
    %c0_i32 = arith.constant 0 : i32
    %c0_i32_0 = arith.constant 0 : i32
    %c0_i32_1 = arith.constant 0 : i32
    %c0_i32_2 = arith.constant 0 : i32
    return %c0_i32, %c0_i32_0, %c0_i32_1 : i32, i32, i32
  }
  func.func @transform_7(%arg0: i32) -> (i32, i32, i32) {
    %c0_i32 = arith.constant 0 : i32
    %c0_i32_0 = arith.constant 0 : i32
    %c0_i32_1 = arith.constant 0 : i32
    %c0_i32_2 = arith.constant 0 : i32
    return %c0_i32, %c0_i32_0, %c0_i32_1 : i32, i32, i32
  }
  func.func @transform_8(%arg0: i32) -> (i32, i32, i32) {
    %c0_i32 = arith.constant 0 : i32
    %c0_i32_0 = arith.constant 0 : i32
    %c0_i32_1 = arith.constant 0 : i32
    %c0_i32_2 = arith.constant 0 : i32
    return %c0_i32, %c0_i32_0, %c0_i32_1 : i32, i32, i32
  }
  func.func @transform_9(%arg0: i32) -> (i32, i32) {
    %c0_i32 = arith.constant 0 : i32
    %c0_i32_0 = arith.constant 0 : i32
    %c0_i32_1 = arith.constant 0 : i32
    return %c0_i32, %c0_i32_0 : i32, i32
  }
  func.func @transform_10(%arg0: i32) -> (i32, i32) {
    %c0_i32 = arith.constant 0 : i32
    %c0_i32_0 = arith.constant 0 : i32
    %c0_i32_1 = arith.constant 0 : i32
    return %c0_i32, %c0_i32_0 : i32, i32
  }
  func.func @transform_11(%arg0: i32) -> (i32, i32) {
    %c0_i32 = arith.constant 0 : i32
    %c0_i32_0 = arith.constant 0 : i32
    %c0_i32_1 = arith.constant 0 : i32
    return %c0_i32, %c0_i32_0 : i32, i32
  }
  func.func @transform_12(%arg0: i32) -> (i32, i32) {
    %c0_i32 = arith.constant 0 : i32
    %c0_i32_0 = arith.constant 0 : i32
    %c0_i32_1 = arith.constant 0 : i32
    return %c0_i32, %c0_i32_0 : i32, i32
  }
  func.func @transform_13(%arg0: i32) -> (i32, i32) {
    %c0_i32 = arith.constant 0 : i32
    %c0_i32_0 = arith.constant 0 : i32
    %c0_i32_1 = arith.constant 0 : i32
    return %c0_i32, %c0_i32_0 : i32, i32
  }
  func.func @transform_14(%arg0: i32) -> (i32, i32) {
    %c0_i32 = arith.constant 0 : i32
    %c0_i32_0 = arith.constant 0 : i32
    %c0_i32_1 = arith.constant 0 : i32
    return %c0_i32, %c0_i32_0 : i32, i32
  }
  func.func @transform_15(%arg0: i32) -> (i32, i32) {
    %c0_i32 = arith.constant 0 : i32
    %c0_i32_0 = arith.constant 0 : i32
    %c0_i32_1 = arith.constant 0 : i32
    return %c0_i32, %c0_i32_0 : i32, i32
  }
  func.func @transform_16(%arg0: i32) -> (i32, i32, i32) {
    %c0_i32 = arith.constant 0 : i32
    %c0_i32_0 = arith.constant 0 : i32
    %c0_i32_1 = arith.constant 0 : i32
    return %arg0, %c0_i32, %c0_i32_0 : i32, i32, i32
  }
}

module attributes {stable_mosaic.version = 11 : i64} {
  func.func @_transformer_layer_kernel(%arg0: i32, %arg1: memref<2x17x32xf32, #tpu.memory_space<vmem>>, %arg2: memref<1x32xf32, #tpu.memory_space<vmem>>, %arg3: memref<1x32xf32, #tpu.memory_space<vmem>>, %arg4: memref<4x32x8xbf16, #tpu.memory_space<vmem>>, %arg5: memref<4x32x8xbf16, #tpu.memory_space<vmem>>, %arg6: memref<4x32x8xbf16, #tpu.memory_space<vmem>>, %arg7: memref<4x8x32xbf16, #tpu.memory_space<vmem>>, %arg8: memref<1x32xf32, #tpu.memory_space<vmem>>, %arg9: memref<1x32xf32, #tpu.memory_space<vmem>>, %arg10: memref<1x32xf32, #tpu.memory_space<vmem>>, %arg11: memref<32x64xbf16, #tpu.memory_space<vmem>>, %arg12: memref<1x64xf32, #tpu.memory_space<vmem>>, %arg13: memref<64x32xbf16, #tpu.memory_space<vmem>>, %arg14: memref<1x32xf32, #tpu.memory_space<vmem>>, %arg15: memref<2x17x32xf32, #tpu.memory_space<vmem>>) attributes {dimension_semantics = [#tpu.dimension_semantics<parallel>], iteration_bounds = array<i64: 1>, scalar_prefetch = 0 : i64, scratch_operands = 0 : i64, tpu.core_type = #tpu.core_type<tc>, window_params = [{transform_indices = @transform_0, window_bounds = array<i64: 2, 17, 32>}, {pipeline_mode = #tpu.pipeline_mode<synchronous>, transform_indices = @transform_1, window_bounds = array<i64: 1, 32>}, {pipeline_mode = #tpu.pipeline_mode<synchronous>, transform_indices = @transform_2, window_bounds = array<i64: 1, 32>}, {pipeline_mode = #tpu.pipeline_mode<synchronous>, transform_indices = @transform_3, window_bounds = array<i64: 4, 32, 8>}, {pipeline_mode = #tpu.pipeline_mode<synchronous>, transform_indices = @transform_4, window_bounds = array<i64: 4, 32, 8>}, {pipeline_mode = #tpu.pipeline_mode<synchronous>, transform_indices = @transform_5, window_bounds = array<i64: 4, 32, 8>}, {pipeline_mode = #tpu.pipeline_mode<synchronous>, transform_indices = @transform_6, window_bounds = array<i64: 4, 8, 32>}, {pipeline_mode = #tpu.pipeline_mode<synchronous>, transform_indices = @transform_7, window_bounds = array<i64: 1, 32>}, {pipeline_mode = #tpu.pipeline_mode<synchronous>, transform_indices = @transform_8, window_bounds = array<i64: 1, 32>}, {pipeline_mode = #tpu.pipeline_mode<synchronous>, transform_indices = @transform_9, window_bounds = array<i64: 1, 32>}, {pipeline_mode = #tpu.pipeline_mode<synchronous>, transform_indices = @transform_10, window_bounds = array<i64: 32, 64>}, {pipeline_mode = #tpu.pipeline_mode<synchronous>, transform_indices = @transform_11, window_bounds = array<i64: 1, 64>}, {pipeline_mode = #tpu.pipeline_mode<synchronous>, transform_indices = @transform_12, window_bounds = array<i64: 64, 32>}, {pipeline_mode = #tpu.pipeline_mode<synchronous>, transform_indices = @transform_13, window_bounds = array<i64: 1, 32>}, {transform_indices = @transform_14, window_bounds = array<i64: 2, 17, 32>}]} {
    %c0 = arith.constant 0 : index
    %c0_0 = arith.constant 0 : index
    %c0_1 = arith.constant 0 : index
    %0 = vector.load %arg1[%c0, %c0_0, %c0_1] : memref<2x17x32xf32, #tpu.memory_space<vmem>>, vector<1x17x32xf32>
    %1 = vector.shape_cast %0 : vector<1x17x32xf32> to vector<17x32xf32>
    %c0_2 = arith.constant 0 : index
    %c0_3 = arith.constant 0 : index
    %2 = vector.load %arg2[%c0_2, %c0_3] : memref<1x32xf32, #tpu.memory_space<vmem>>, vector<1x32xf32>
    %c0_4 = arith.constant 0 : index
    %c0_5 = arith.constant 0 : index
    %3 = vector.load %arg3[%c0_4, %c0_5] : memref<1x32xf32, #tpu.memory_space<vmem>>, vector<1x32xf32>
    %cst = arith.constant dense<0.000000e+00> : vector<17xf32>
    %4 = vector.multi_reduction <add>, %1, %cst [1] : vector<17x32xf32> to vector<17xf32>
    %5 = vector.shape_cast %4 : vector<17xf32> to vector<17x1xf32>
    %cst_6 = arith.constant 3.200000e+01 : f32
    %6 = vector.broadcast %cst_6 : f32 to vector<17x1xf32>
    %7 = arith.divf %5, %6 : vector<17x1xf32>
    %8 = vector.broadcast %7 : vector<17x1xf32> to vector<17x32xf32>
    %9 = arith.subf %1, %8 : vector<17x32xf32>
    %10 = arith.mulf %9, %9 : vector<17x32xf32>
    %cst_7 = arith.constant dense<0.000000e+00> : vector<17xf32>
    %11 = vector.multi_reduction <add>, %10, %cst_7 [1] : vector<17x32xf32> to vector<17xf32>
    %12 = vector.shape_cast %11 : vector<17xf32> to vector<17x1xf32>
    %cst_8 = arith.constant 3.200000e+01 : f32
    %13 = vector.broadcast %cst_8 : f32 to vector<17x1xf32>
    %14 = arith.divf %12, %13 : vector<17x1xf32>
    %15 = vector.broadcast %7 : vector<17x1xf32> to vector<17x32xf32>
    %16 = arith.subf %1, %15 : vector<17x32xf32>
    %cst_9 = arith.constant 9.99999974E-6 : f32
    %17 = vector.broadcast %cst_9 : f32 to vector<17x1xf32>
    %18 = arith.addf %14, %17 : vector<17x1xf32>
    %19 = math.rsqrt %18 : vector<17x1xf32>
    %20 = vector.broadcast %19 : vector<17x1xf32> to vector<17x32xf32>
    %21 = arith.mulf %16, %20 : vector<17x32xf32>
    %22 = vector.broadcast %2 : vector<1x32xf32> to vector<17x32xf32>
    %23 = arith.mulf %21, %22 : vector<17x32xf32>
    %24 = vector.broadcast %3 : vector<1x32xf32> to vector<17x32xf32>
    %25 = arith.addf %23, %24 : vector<17x32xf32>
    %26 = arith.truncf %25 : vector<17x32xf32> to vector<17x32xbf16>
    %27 = vector.shape_cast %26 : vector<17x32xbf16> to vector<1x17x32xbf16>
    %28 = vector.shape_cast %27 : vector<1x17x32xbf16> to vector<1x17x32xbf16>
    %29 = vector.broadcast %28 : vector<1x17x32xbf16> to vector<4x17x32xbf16>
    %c0_10 = arith.constant 0 : index
    %c0_11 = arith.constant 0 : index
    %c0_12 = arith.constant 0 : index
    %30 = vector.load %arg4[%c0_10, %c0_11, %c0_12] : memref<4x32x8xbf16, #tpu.memory_space<vmem>>, vector<4x32x8xbf16>
    "tpu.trace_start"() <{level = 10 : i32, message = "hnd,hdf->hnf"}> : () -> ()
    %cst_13 = arith.constant dense<0.000000e+00> : vector<4x17x8xf32>
    %31 = tpu.matmul %29, %30, %cst_13 {dimension_numbers = #tpu.dot_dimension_numbers<[2], [1], [1], [2], [0, 0, 0, 1, 1, 2], [0], [0]>} : vector<4x17x32xbf16>, vector<4x32x8xbf16>, vector<4x17x8xf32> -> vector<4x17x8xf32>
    "tpu.trace_stop"() : () -> ()
    %c0_14 = arith.constant 0 : index
    %c0_15 = arith.constant 0 : index
    %c0_16 = arith.constant 0 : index
    %32 = vector.load %arg5[%c0_14, %c0_15, %c0_16] : memref<4x32x8xbf16, #tpu.memory_space<vmem>>, vector<4x32x8xbf16>
    "tpu.trace_start"() <{level = 10 : i32, message = "hnd,hdf->hnf"}> : () -> ()
    %cst_17 = arith.constant dense<0.000000e+00> : vector<4x17x8xf32>
    %33 = tpu.matmul %29, %32, %cst_17 {dimension_numbers = #tpu.dot_dimension_numbers<[2], [1], [1], [2], [0, 0, 0, 1, 1, 2], [0], [0]>} : vector<4x17x32xbf16>, vector<4x32x8xbf16>, vector<4x17x8xf32> -> vector<4x17x8xf32>
    "tpu.trace_stop"() : () -> ()
    %c0_18 = arith.constant 0 : index
    %c0_19 = arith.constant 0 : index
    %c0_20 = arith.constant 0 : index
    %34 = vector.load %arg6[%c0_18, %c0_19, %c0_20] : memref<4x32x8xbf16, #tpu.memory_space<vmem>>, vector<4x32x8xbf16>
    "tpu.trace_start"() <{level = 10 : i32, message = "hnd,hdf->hnf"}> : () -> ()
    %cst_21 = arith.constant dense<0.000000e+00> : vector<4x17x8xf32>
    %35 = tpu.matmul %29, %34, %cst_21 {dimension_numbers = #tpu.dot_dimension_numbers<[2], [1], [1], [2], [0, 0, 0, 1, 1, 2], [0], [0]>} : vector<4x17x32xbf16>, vector<4x32x8xbf16>, vector<4x17x8xf32> -> vector<4x17x8xf32>
    "tpu.trace_stop"() : () -> ()
    %36 = arith.truncf %31 : vector<4x17x8xf32> to vector<4x17x8xbf16>
    %37 = arith.truncf %33 : vector<4x17x8xf32> to vector<4x17x8xbf16>
    "tpu.trace_start"() <{level = 10 : i32, message = "hqd,hkd->hqk"}> : () -> ()
    %cst_22 = arith.constant dense<0.000000e+00> : vector<4x17x17xf32>
    %38 = tpu.matmul %36, %37, %cst_22 {dimension_numbers = #tpu.dot_dimension_numbers<[2], [2], [1], [1], [0, 0, 0, 1, 1, 1], [0], [0]>} : vector<4x17x8xbf16>, vector<4x17x8xbf16>, vector<4x17x17xf32> -> vector<4x17x17xf32>
    "tpu.trace_stop"() : () -> ()
    %cst_23 = arith.constant dense<0xFF800000> : vector<4x17xf32>
    %39 = vector.multi_reduction <maximumf>, %38, %cst_23 [2] : vector<4x17x17xf32> to vector<4x17xf32>
    %40 = vector.shape_cast %39 : vector<4x17xf32> to vector<4x17x1xf32>
    %41 = vector.broadcast %40 : vector<4x17x1xf32> to vector<4x17x17xf32>
    %42 = arith.subf %38, %41 : vector<4x17x17xf32>
    %43 = math.exp %42 : vector<4x17x17xf32>
    %cst_24 = arith.constant dense<0.000000e+00> : vector<4x17xf32>
    %44 = vector.multi_reduction <add>, %43, %cst_24 [2] : vector<4x17x17xf32> to vector<4x17xf32>
    %45 = vector.shape_cast %44 : vector<4x17xf32> to vector<4x17x1xf32>
    %46 = tpu.reciprocal %45 {approx = true} : vector<4x17x1xf32> -> vector<4x17x1xf32>
    %47 = vector.broadcast %46 : vector<4x17x1xf32> to vector<4x17x17xf32>
    %48 = arith.mulf %43, %47 : vector<4x17x17xf32>
    %49 = arith.truncf %48 : vector<4x17x17xf32> to vector<4x17x17xbf16>
    %50 = arith.truncf %35 : vector<4x17x8xf32> to vector<4x17x8xbf16>
    "tpu.trace_start"() <{level = 10 : i32, message = "hqk,hkd->hqd"}> : () -> ()
    %cst_25 = arith.constant dense<0.000000e+00> : vector<4x17x8xf32>
    %51 = tpu.matmul %49, %50, %cst_25 {dimension_numbers = #tpu.dot_dimension_numbers<[2], [1], [1], [2], [0, 0, 0, 1, 1, 2], [0], [0]>} : vector<4x17x17xbf16>, vector<4x17x8xbf16>, vector<4x17x8xf32> -> vector<4x17x8xf32>
    "tpu.trace_stop"() : () -> ()
    %52 = arith.truncf %51 : vector<4x17x8xf32> to vector<4x17x8xbf16>
    %c0_26 = arith.constant 0 : index
    %c0_27 = arith.constant 0 : index
    %c0_28 = arith.constant 0 : index
    %53 = vector.load %arg7[%c0_26, %c0_27, %c0_28] : memref<4x8x32xbf16, #tpu.memory_space<vmem>>, vector<4x8x32xbf16>
    "tpu.trace_start"() <{level = 10 : i32, message = "hnd,hdf->hnf"}> : () -> ()
    %cst_29 = arith.constant dense<0.000000e+00> : vector<4x17x32xf32>
    %54 = tpu.matmul %52, %53, %cst_29 {dimension_numbers = #tpu.dot_dimension_numbers<[2], [1], [1], [2], [0, 0, 0, 1, 1, 2], [0], [0]>} : vector<4x17x8xbf16>, vector<4x8x32xbf16>, vector<4x17x32xf32> -> vector<4x17x32xf32>
    "tpu.trace_stop"() : () -> ()
    %cst_30 = arith.constant dense<0.000000e+00> : vector<17x32xf32>
    %55 = vector.multi_reduction <add>, %54, %cst_30 [0] : vector<4x17x32xf32> to vector<17x32xf32>
    %56 = arith.addf %1, %55 : vector<17x32xf32>
    %c0_31 = arith.constant 0 : index
    %c0_32 = arith.constant 0 : index
    %57 = vector.load %arg8[%c0_31, %c0_32] : memref<1x32xf32, #tpu.memory_space<vmem>>, vector<1x32xf32>
    %58 = vector.broadcast %57 : vector<1x32xf32> to vector<17x32xf32>
    %59 = arith.addf %56, %58 : vector<17x32xf32>
    %c0_33 = arith.constant 0 : index
    %c0_34 = arith.constant 0 : index
    %60 = vector.load %arg9[%c0_33, %c0_34] : memref<1x32xf32, #tpu.memory_space<vmem>>, vector<1x32xf32>
    %c0_35 = arith.constant 0 : index
    %c0_36 = arith.constant 0 : index
    %61 = vector.load %arg10[%c0_35, %c0_36] : memref<1x32xf32, #tpu.memory_space<vmem>>, vector<1x32xf32>
    %cst_37 = arith.constant dense<0.000000e+00> : vector<17xf32>
    %62 = vector.multi_reduction <add>, %59, %cst_37 [1] : vector<17x32xf32> to vector<17xf32>
    %63 = vector.shape_cast %62 : vector<17xf32> to vector<17x1xf32>
    %cst_38 = arith.constant 3.200000e+01 : f32
    %64 = vector.broadcast %cst_38 : f32 to vector<17x1xf32>
    %65 = arith.divf %63, %64 : vector<17x1xf32>
    %66 = vector.broadcast %65 : vector<17x1xf32> to vector<17x32xf32>
    %67 = arith.subf %59, %66 : vector<17x32xf32>
    %68 = arith.mulf %67, %67 : vector<17x32xf32>
    %cst_39 = arith.constant dense<0.000000e+00> : vector<17xf32>
    %69 = vector.multi_reduction <add>, %68, %cst_39 [1] : vector<17x32xf32> to vector<17xf32>
    %70 = vector.shape_cast %69 : vector<17xf32> to vector<17x1xf32>
    %cst_40 = arith.constant 3.200000e+01 : f32
    %71 = vector.broadcast %cst_40 : f32 to vector<17x1xf32>
    %72 = arith.divf %70, %71 : vector<17x1xf32>
    %73 = vector.broadcast %65 : vector<17x1xf32> to vector<17x32xf32>
    %74 = arith.subf %59, %73 : vector<17x32xf32>
    %cst_41 = arith.constant 9.99999974E-6 : f32
    %75 = vector.broadcast %cst_41 : f32 to vector<17x1xf32>
    %76 = arith.addf %72, %75 : vector<17x1xf32>
    %77 = math.rsqrt %76 : vector<17x1xf32>
    %78 = vector.broadcast %77 : vector<17x1xf32> to vector<17x32xf32>
    %79 = arith.mulf %74, %78 : vector<17x32xf32>
    %80 = vector.broadcast %60 : vector<1x32xf32> to vector<17x32xf32>
    %81 = arith.mulf %79, %80 : vector<17x32xf32>
    %82 = vector.broadcast %61 : vector<1x32xf32> to vector<17x32xf32>
    %83 = arith.addf %81, %82 : vector<17x32xf32>
    %84 = arith.truncf %83 : vector<17x32xf32> to vector<17x32xbf16>
    %c0_42 = arith.constant 0 : index
    %c0_43 = arith.constant 0 : index
    %85 = vector.load %arg11[%c0_42, %c0_43] : memref<32x64xbf16, #tpu.memory_space<vmem>>, vector<32x64xbf16>
    %cst_44 = arith.constant dense<0.000000e+00> : vector<17x64xf32>
    %86 = tpu.matmul %84, %85, %cst_44 {dimension_numbers = #tpu.dot_dimension_numbers<[1], [0], [0], [1], [0, 0, 1, 1], [], []>} : vector<17x32xbf16>, vector<32x64xbf16>, vector<17x64xf32> -> vector<17x64xf32>
    %c0_45 = arith.constant 0 : index
    %c0_46 = arith.constant 0 : index
    %87 = vector.load %arg12[%c0_45, %c0_46] : memref<1x64xf32, #tpu.memory_space<vmem>>, vector<1x64xf32>
    %88 = vector.broadcast %87 : vector<1x64xf32> to vector<17x64xf32>
    %89 = arith.addf %86, %88 : vector<17x64xf32>
    %cst_47 = arith.constant 0.000000e+00 : f32
    %90 = vector.broadcast %cst_47 : f32 to vector<17x64xf32>
    %91 = arith.maximumf %89, %90 : vector<17x64xf32>
    %92 = arith.truncf %91 : vector<17x64xf32> to vector<17x64xbf16>
    %c0_48 = arith.constant 0 : index
    %c0_49 = arith.constant 0 : index
    %93 = vector.load %arg13[%c0_48, %c0_49] : memref<64x32xbf16, #tpu.memory_space<vmem>>, vector<64x32xbf16>
    %cst_50 = arith.constant dense<0.000000e+00> : vector<17x32xf32>
    %94 = tpu.matmul %92, %93, %cst_50 {dimension_numbers = #tpu.dot_dimension_numbers<[1], [0], [0], [1], [0, 0, 1, 1], [], []>} : vector<17x64xbf16>, vector<64x32xbf16>, vector<17x32xf32> -> vector<17x32xf32>
    %c0_51 = arith.constant 0 : index
    %c0_52 = arith.constant 0 : index
    %95 = vector.load %arg14[%c0_51, %c0_52] : memref<1x32xf32, #tpu.memory_space<vmem>>, vector<1x32xf32>
    %96 = vector.broadcast %95 : vector<1x32xf32> to vector<17x32xf32>
    %97 = arith.addf %94, %96 : vector<17x32xf32>
    %98 = arith.addf %59, %97 : vector<17x32xf32>
    %c0_53 = arith.constant 0 : index
    %c0_54 = arith.constant 0 : index
    %c0_55 = arith.constant 0 : index
    %99 = vector.load %arg15[%c0_53, %c0_54, %c0_55] : memref<2x17x32xf32, #tpu.memory_space<vmem>>, vector<1x17x32xf32>
    %100 = vector.shape_cast %99 : vector<1x17x32xf32> to vector<17x32xf32>
    %101 = vector.shape_cast %98 : vector<17x32xf32> to vector<1x17x32xf32>
    tpu.vector_store %arg15[%c0_53, %c0_54, %c0_55], %101 {strides = array<i32>} : memref<2x17x32xf32, #tpu.memory_space<vmem>>, vector<1x17x32xf32>,
    %c1 = arith.constant 1 : index
    %c0_56 = arith.constant 0 : index
    %c0_57 = arith.constant 0 : index
    %102 = vector.load %arg1[%c1, %c0_56, %c0_57] : memref<2x17x32xf32, #tpu.memory_space<vmem>>, vector<1x17x32xf32>
    %103 = vector.shape_cast %102 : vector<1x17x32xf32> to vector<17x32xf32>
    %c0_58 = arith.constant 0 : index
    %c0_59 = arith.constant 0 : index
    %104 = vector.load %arg2[%c0_58, %c0_59] : memref<1x32xf32, #tpu.memory_space<vmem>>, vector<1x32xf32>
    %c0_60 = arith.constant 0 : index
    %c0_61 = arith.constant 0 : index
    %105 = vector.load %arg3[%c0_60, %c0_61] : memref<1x32xf32, #tpu.memory_space<vmem>>, vector<1x32xf32>
    %cst_62 = arith.constant dense<0.000000e+00> : vector<17xf32>
    %106 = vector.multi_reduction <add>, %103, %cst_62 [1] : vector<17x32xf32> to vector<17xf32>
    %107 = vector.shape_cast %106 : vector<17xf32> to vector<17x1xf32>
    %cst_63 = arith.constant 3.200000e+01 : f32
    %108 = vector.broadcast %cst_63 : f32 to vector<17x1xf32>
    %109 = arith.divf %107, %108 : vector<17x1xf32>
    %110 = vector.broadcast %109 : vector<17x1xf32> to vector<17x32xf32>
    %111 = arith.subf %103, %110 : vector<17x32xf32>
    %112 = arith.mulf %111, %111 : vector<17x32xf32>
    %cst_64 = arith.constant dense<0.000000e+00> : vector<17xf32>
    %113 = vector.multi_reduction <add>, %112, %cst_64 [1] : vector<17x32xf32> to vector<17xf32>
    %114 = vector.shape_cast %113 : vector<17xf32> to vector<17x1xf32>
    %cst_65 = arith.constant 3.200000e+01 : f32
    %115 = vector.broadcast %cst_65 : f32 to vector<17x1xf32>
    %116 = arith.divf %114, %115 : vector<17x1xf32>
    %117 = vector.broadcast %109 : vector<17x1xf32> to vector<17x32xf32>
    %118 = arith.subf %103, %117 : vector<17x32xf32>
    %cst_66 = arith.constant 9.99999974E-6 : f32
    %119 = vector.broadcast %cst_66 : f32 to vector<17x1xf32>
    %120 = arith.addf %116, %119 : vector<17x1xf32>
    %121 = math.rsqrt %120 : vector<17x1xf32>
    %122 = vector.broadcast %121 : vector<17x1xf32> to vector<17x32xf32>
    %123 = arith.mulf %118, %122 : vector<17x32xf32>
    %124 = vector.broadcast %104 : vector<1x32xf32> to vector<17x32xf32>
    %125 = arith.mulf %123, %124 : vector<17x32xf32>
    %126 = vector.broadcast %105 : vector<1x32xf32> to vector<17x32xf32>
    %127 = arith.addf %125, %126 : vector<17x32xf32>
    %128 = arith.truncf %127 : vector<17x32xf32> to vector<17x32xbf16>
    %129 = vector.shape_cast %128 : vector<17x32xbf16> to vector<1x17x32xbf16>
    %130 = vector.shape_cast %129 : vector<1x17x32xbf16> to vector<1x17x32xbf16>
    %131 = vector.broadcast %130 : vector<1x17x32xbf16> to vector<4x17x32xbf16>
    %c0_67 = arith.constant 0 : index
    %c0_68 = arith.constant 0 : index
    %c0_69 = arith.constant 0 : index
    %132 = vector.load %arg4[%c0_67, %c0_68, %c0_69] : memref<4x32x8xbf16, #tpu.memory_space<vmem>>, vector<4x32x8xbf16>
    "tpu.trace_start"() <{level = 10 : i32, message = "hnd,hdf->hnf"}> : () -> ()
    %cst_70 = arith.constant dense<0.000000e+00> : vector<4x17x8xf32>
    %133 = tpu.matmul %131, %132, %cst_70 {dimension_numbers = #tpu.dot_dimension_numbers<[2], [1], [1], [2], [0, 0, 0, 1, 1, 2], [0], [0]>} : vector<4x17x32xbf16>, vector<4x32x8xbf16>, vector<4x17x8xf32> -> vector<4x17x8xf32>
    "tpu.trace_stop"() : () -> ()
    %c0_71 = arith.constant 0 : index
    %c0_72 = arith.constant 0 : index
    %c0_73 = arith.constant 0 : index
    %134 = vector.load %arg5[%c0_71, %c0_72, %c0_73] : memref<4x32x8xbf16, #tpu.memory_space<vmem>>, vector<4x32x8xbf16>
    "tpu.trace_start"() <{level = 10 : i32, message = "hnd,hdf->hnf"}> : () -> ()
    %cst_74 = arith.constant dense<0.000000e+00> : vector<4x17x8xf32>
    %135 = tpu.matmul %131, %134, %cst_74 {dimension_numbers = #tpu.dot_dimension_numbers<[2], [1], [1], [2], [0, 0, 0, 1, 1, 2], [0], [0]>} : vector<4x17x32xbf16>, vector<4x32x8xbf16>, vector<4x17x8xf32> -> vector<4x17x8xf32>
    "tpu.trace_stop"() : () -> ()
    %c0_75 = arith.constant 0 : index
    %c0_76 = arith.constant 0 : index
    %c0_77 = arith.constant 0 : index
    %136 = vector.load %arg6[%c0_75, %c0_76, %c0_77] : memref<4x32x8xbf16, #tpu.memory_space<vmem>>, vector<4x32x8xbf16>
    "tpu.trace_start"() <{level = 10 : i32, message = "hnd,hdf->hnf"}> : () -> ()
    %cst_78 = arith.constant dense<0.000000e+00> : vector<4x17x8xf32>
    %137 = tpu.matmul %131, %136, %cst_78 {dimension_numbers = #tpu.dot_dimension_numbers<[2], [1], [1], [2], [0, 0, 0, 1, 1, 2], [0], [0]>} : vector<4x17x32xbf16>, vector<4x32x8xbf16>, vector<4x17x8xf32> -> vector<4x17x8xf32>
    "tpu.trace_stop"() : () -> ()
    %138 = arith.truncf %133 : vector<4x17x8xf32> to vector<4x17x8xbf16>
    %139 = arith.truncf %135 : vector<4x17x8xf32> to vector<4x17x8xbf16>
    "tpu.trace_start"() <{level = 10 : i32, message = "hqd,hkd->hqk"}> : () -> ()
    %cst_79 = arith.constant dense<0.000000e+00> : vector<4x17x17xf32>
    %140 = tpu.matmul %138, %139, %cst_79 {dimension_numbers = #tpu.dot_dimension_numbers<[2], [2], [1], [1], [0, 0, 0, 1, 1, 1], [0], [0]>} : vector<4x17x8xbf16>, vector<4x17x8xbf16>, vector<4x17x17xf32> -> vector<4x17x17xf32>
    "tpu.trace_stop"() : () -> ()
    %cst_80 = arith.constant dense<0xFF800000> : vector<4x17xf32>
    %141 = vector.multi_reduction <maximumf>, %140, %cst_80 [2] : vector<4x17x17xf32> to vector<4x17xf32>
    %142 = vector.shape_cast %141 : vector<4x17xf32> to vector<4x17x1xf32>
    %143 = vector.broadcast %142 : vector<4x17x1xf32> to vector<4x17x17xf32>
    %144 = arith.subf %140, %143 : vector<4x17x17xf32>
    %145 = math.exp %144 : vector<4x17x17xf32>
    %cst_81 = arith.constant dense<0.000000e+00> : vector<4x17xf32>
    %146 = vector.multi_reduction <add>, %145, %cst_81 [2] : vector<4x17x17xf32> to vector<4x17xf32>
    %147 = vector.shape_cast %146 : vector<4x17xf32> to vector<4x17x1xf32>
    %148 = tpu.reciprocal %147 {approx = true} : vector<4x17x1xf32> -> vector<4x17x1xf32>
    %149 = vector.broadcast %148 : vector<4x17x1xf32> to vector<4x17x17xf32>
    %150 = arith.mulf %145, %149 : vector<4x17x17xf32>
    %151 = arith.truncf %150 : vector<4x17x17xf32> to vector<4x17x17xbf16>
    %152 = arith.truncf %137 : vector<4x17x8xf32> to vector<4x17x8xbf16>
    "tpu.trace_start"() <{level = 10 : i32, message = "hqk,hkd->hqd"}> : () -> ()
    %cst_82 = arith.constant dense<0.000000e+00> : vector<4x17x8xf32>
    %153 = tpu.matmul %151, %152, %cst_82 {dimension_numbers = #tpu.dot_dimension_numbers<[2], [1], [1], [2], [0, 0, 0, 1, 1, 2], [0], [0]>} : vector<4x17x17xbf16>, vector<4x17x8xbf16>, vector<4x17x8xf32> -> vector<4x17x8xf32>
    "tpu.trace_stop"() : () -> ()
    %154 = arith.truncf %153 : vector<4x17x8xf32> to vector<4x17x8xbf16>
    %c0_83 = arith.constant 0 : index
    %c0_84 = arith.constant 0 : index
    %c0_85 = arith.constant 0 : index
    %155 = vector.load %arg7[%c0_83, %c0_84, %c0_85] : memref<4x8x32xbf16, #tpu.memory_space<vmem>>, vector<4x8x32xbf16>
    "tpu.trace_start"() <{level = 10 : i32, message = "hnd,hdf->hnf"}> : () -> ()
    %cst_86 = arith.constant dense<0.000000e+00> : vector<4x17x32xf32>
    %156 = tpu.matmul %154, %155, %cst_86 {dimension_numbers = #tpu.dot_dimension_numbers<[2], [1], [1], [2], [0, 0, 0, 1, 1, 2], [0], [0]>} : vector<4x17x8xbf16>, vector<4x8x32xbf16>, vector<4x17x32xf32> -> vector<4x17x32xf32>
    "tpu.trace_stop"() : () -> ()
    %cst_87 = arith.constant dense<0.000000e+00> : vector<17x32xf32>
    %157 = vector.multi_reduction <add>, %156, %cst_87 [0] : vector<4x17x32xf32> to vector<17x32xf32>
    %158 = arith.addf %103, %157 : vector<17x32xf32>
    %c0_88 = arith.constant 0 : index
    %c0_89 = arith.constant 0 : index
    %159 = vector.load %arg8[%c0_88, %c0_89] : memref<1x32xf32, #tpu.memory_space<vmem>>, vector<1x32xf32>
    %160 = vector.broadcast %159 : vector<1x32xf32> to vector<17x32xf32>
    %161 = arith.addf %158, %160 : vector<17x32xf32>
    %c0_90 = arith.constant 0 : index
    %c0_91 = arith.constant 0 : index
    %162 = vector.load %arg9[%c0_90, %c0_91] : memref<1x32xf32, #tpu.memory_space<vmem>>, vector<1x32xf32>
    %c0_92 = arith.constant 0 : index
    %c0_93 = arith.constant 0 : index
    %163 = vector.load %arg10[%c0_92, %c0_93] : memref<1x32xf32, #tpu.memory_space<vmem>>, vector<1x32xf32>
    %cst_94 = arith.constant dense<0.000000e+00> : vector<17xf32>
    %164 = vector.multi_reduction <add>, %161, %cst_94 [1] : vector<17x32xf32> to vector<17xf32>
    %165 = vector.shape_cast %164 : vector<17xf32> to vector<17x1xf32>
    %cst_95 = arith.constant 3.200000e+01 : f32
    %166 = vector.broadcast %cst_95 : f32 to vector<17x1xf32>
    %167 = arith.divf %165, %166 : vector<17x1xf32>
    %168 = vector.broadcast %167 : vector<17x1xf32> to vector<17x32xf32>
    %169 = arith.subf %161, %168 : vector<17x32xf32>
    %170 = arith.mulf %169, %169 : vector<17x32xf32>
    %cst_96 = arith.constant dense<0.000000e+00> : vector<17xf32>
    %171 = vector.multi_reduction <add>, %170, %cst_96 [1] : vector<17x32xf32> to vector<17xf32>
    %172 = vector.shape_cast %171 : vector<17xf32> to vector<17x1xf32>
    %cst_97 = arith.constant 3.200000e+01 : f32
    %173 = vector.broadcast %cst_97 : f32 to vector<17x1xf32>
    %174 = arith.divf %172, %173 : vector<17x1xf32>
    %175 = vector.broadcast %167 : vector<17x1xf32> to vector<17x32xf32>
    %176 = arith.subf %161, %175 : vector<17x32xf32>
    %cst_98 = arith.constant 9.99999974E-6 : f32
    %177 = vector.broadcast %cst_98 : f32 to vector<17x1xf32>
    %178 = arith.addf %174, %177 : vector<17x1xf32>
    %179 = math.rsqrt %178 : vector<17x1xf32>
    %180 = vector.broadcast %179 : vector<17x1xf32> to vector<17x32xf32>
    %181 = arith.mulf %176, %180 : vector<17x32xf32>
    %182 = vector.broadcast %162 : vector<1x32xf32> to vector<17x32xf32>
    %183 = arith.mulf %181, %182 : vector<17x32xf32>
    %184 = vector.broadcast %163 : vector<1x32xf32> to vector<17x32xf32>
    %185 = arith.addf %183, %184 : vector<17x32xf32>
    %186 = arith.truncf %185 : vector<17x32xf32> to vector<17x32xbf16>
    %c0_99 = arith.constant 0 : index
    %c0_100 = arith.constant 0 : index
    %187 = vector.load %arg11[%c0_99, %c0_100] : memref<32x64xbf16, #tpu.memory_space<vmem>>, vector<32x64xbf16>
    %cst_101 = arith.constant dense<0.000000e+00> : vector<17x64xf32>
    %188 = tpu.matmul %186, %187, %cst_101 {dimension_numbers = #tpu.dot_dimension_numbers<[1], [0], [0], [1], [0, 0, 1, 1], [], []>} : vector<17x32xbf16>, vector<32x64xbf16>, vector<17x64xf32> -> vector<17x64xf32>
    %c0_102 = arith.constant 0 : index
    %c0_103 = arith.constant 0 : index
    %189 = vector.load %arg12[%c0_102, %c0_103] : memref<1x64xf32, #tpu.memory_space<vmem>>, vector<1x64xf32>
    %190 = vector.broadcast %189 : vector<1x64xf32> to vector<17x64xf32>
    %191 = arith.addf %188, %190 : vector<17x64xf32>
    %cst_104 = arith.constant 0.000000e+00 : f32
    %192 = vector.broadcast %cst_104 : f32 to vector<17x64xf32>
    %193 = arith.maximumf %191, %192 : vector<17x64xf32>
    %194 = arith.truncf %193 : vector<17x64xf32> to vector<17x64xbf16>
    %c0_105 = arith.constant 0 : index
    %c0_106 = arith.constant 0 : index
    %195 = vector.load %arg13[%c0_105, %c0_106] : memref<64x32xbf16, #tpu.memory_space<vmem>>, vector<64x32xbf16>
    %cst_107 = arith.constant dense<0.000000e+00> : vector<17x32xf32>
    %196 = tpu.matmul %194, %195, %cst_107 {dimension_numbers = #tpu.dot_dimension_numbers<[1], [0], [0], [1], [0, 0, 1, 1], [], []>} : vector<17x64xbf16>, vector<64x32xbf16>, vector<17x32xf32> -> vector<17x32xf32>
    %c0_108 = arith.constant 0 : index
    %c0_109 = arith.constant 0 : index
    %197 = vector.load %arg14[%c0_108, %c0_109] : memref<1x32xf32, #tpu.memory_space<vmem>>, vector<1x32xf32>
    %198 = vector.broadcast %197 : vector<1x32xf32> to vector<17x32xf32>
    %199 = arith.addf %196, %198 : vector<17x32xf32>
    %200 = arith.addf %161, %199 : vector<17x32xf32>
    %c1_110 = arith.constant 1 : index
    %c0_111 = arith.constant 0 : index
    %c0_112 = arith.constant 0 : index
    %201 = vector.load %arg15[%c1_110, %c0_111, %c0_112] : memref<2x17x32xf32, #tpu.memory_space<vmem>>, vector<1x17x32xf32>
    %202 = vector.shape_cast %201 : vector<1x17x32xf32> to vector<17x32xf32>
    %203 = vector.shape_cast %200 : vector<17x32xf32> to vector<1x17x32xf32>
    tpu.vector_store %arg15[%c1_110, %c0_111, %c0_112], %203 {strides = array<i32>} : memref<2x17x32xf32, #tpu.memory_space<vmem>>, vector<1x17x32xf32>,
    return
  }
  func.func @transform_0(%arg0: i32) -> (i32, i32, i32) {
    %c0_i32 = arith.constant 0 : i32
    %c0_i32_0 = arith.constant 0 : i32
    %c0_i32_1 = arith.constant 0 : i32
    return %arg0, %c0_i32, %c0_i32_0 : i32, i32, i32
  }
  func.func @transform_1(%arg0: i32) -> (i32, i32) {
    %c0_i32 = arith.constant 0 : i32
    %c0_i32_0 = arith.constant 0 : i32
    %c0_i32_1 = arith.constant 0 : i32
    return %c0_i32, %c0_i32_0 : i32, i32
  }
  func.func @transform_2(%arg0: i32) -> (i32, i32) {
    %c0_i32 = arith.constant 0 : i32
    %c0_i32_0 = arith.constant 0 : i32
    %c0_i32_1 = arith.constant 0 : i32
    return %c0_i32, %c0_i32_0 : i32, i32
  }
  func.func @transform_3(%arg0: i32) -> (i32, i32, i32) {
    %c0_i32 = arith.constant 0 : i32
    %c0_i32_0 = arith.constant 0 : i32
    %c0_i32_1 = arith.constant 0 : i32
    %c0_i32_2 = arith.constant 0 : i32
    return %c0_i32, %c0_i32_0, %c0_i32_1 : i32, i32, i32
  }
  func.func @transform_4(%arg0: i32) -> (i32, i32, i32) {
    %c0_i32 = arith.constant 0 : i32
    %c0_i32_0 = arith.constant 0 : i32
    %c0_i32_1 = arith.constant 0 : i32
    %c0_i32_2 = arith.constant 0 : i32
    return %c0_i32, %c0_i32_0, %c0_i32_1 : i32, i32, i32
  }
  func.func @transform_5(%arg0: i32) -> (i32, i32, i32) {
    %c0_i32 = arith.constant 0 : i32
    %c0_i32_0 = arith.constant 0 : i32
    %c0_i32_1 = arith.constant 0 : i32
    %c0_i32_2 = arith.constant 0 : i32
    return %c0_i32, %c0_i32_0, %c0_i32_1 : i32, i32, i32
  }
  func.func @transform_6(%arg0: i32) -> (i32, i32, i32) {
    %c0_i32 = arith.constant 0 : i32
    %c0_i32_0 = arith.constant 0 : i32
    %c0_i32_1 = arith.constant 0 : i32
    %c0_i32_2 = arith.constant 0 : i32
    return %c0_i32, %c0_i32_0, %c0_i32_1 : i32, i32, i32
  }
  func.func @transform_7(%arg0: i32) -> (i32, i32) {
    %c0_i32 = arith.constant 0 : i32
    %c0_i32_0 = arith.constant 0 : i32
    %c0_i32_1 = arith.constant 0 : i32
    return %c0_i32, %c0_i32_0 : i32, i32
  }
  func.func @transform_8(%arg0: i32) -> (i32, i32) {
    %c0_i32 = arith.constant 0 : i32
    %c0_i32_0 = arith.constant 0 : i32
    %c0_i32_1 = arith.constant 0 : i32
    return %c0_i32, %c0_i32_0 : i32, i32
  }
  func.func @transform_9(%arg0: i32) -> (i32, i32) {
    %c0_i32 = arith.constant 0 : i32
    %c0_i32_0 = arith.constant 0 : i32
    %c0_i32_1 = arith.constant 0 : i32
    return %c0_i32, %c0_i32_0 : i32, i32
  }
  func.func @transform_10(%arg0: i32) -> (i32, i32) {
    %c0_i32 = arith.constant 0 : i32
    %c0_i32_0 = arith.constant 0 : i32
    %c0_i32_1 = arith.constant 0 : i32
    return %c0_i32, %c0_i32_0 : i32, i32
  }
  func.func @transform_11(%arg0: i32) -> (i32, i32) {
    %c0_i32 = arith.constant 0 : i32
    %c0_i32_0 = arith.constant 0 : i32
    %c0_i32_1 = arith.constant 0 : i32
    return %c0_i32, %c0_i32_0 : i32, i32
  }
  func.func @transform_12(%arg0: i32) -> (i32, i32) {
    %c0_i32 = arith.constant 0 : i32
    %c0_i32_0 = arith.constant 0 : i32
    %c0_i32_1 = arith.constant 0 : i32
    return %c0_i32, %c0_i32_0 : i32, i32
  }
  func.func @transform_13(%arg0: i32) -> (i32, i32) {
    %c0_i32 = arith.constant 0 : i32
    %c0_i32_0 = arith.constant 0 : i32
    %c0_i32_1 = arith.constant 0 : i32
    return %c0_i32, %c0_i32_0 : i32, i32
  }
  func.func @transform_14(%arg0: i32) -> (i32, i32, i32) {
    %c0_i32 = arith.constant 0 : i32
    %c0_i32_0 = arith.constant 0 : i32
    %c0_i32_1 = arith.constant 0 : i32
    return %arg0, %c0_i32, %c0_i32_0 : i32, i32, i32
  }
}

</mosaic_0001>

<bundles_post_ra>
// kernel: vit_forward.6
= control target key start
LH: loop header
LB: loop body
LE: loop exit
PB: predicated region body
PF: predicated region fallthrough
CT: control target
= control target key end

     0   :  { %s711_s12 = smov 0   ;;  %s894_s0 = inlined_call_operand.vmem [shape: f32[512,27], index: 0, kind: input, shape index: {}]   ;;  %s895_s1 = inlined_call_operand.vmem [shape: bf16[27,16], index: 1, kind: input, shape index: {}]   ;;  %s896_s2 = inlined_call_operand.vmem [shape: f32[1,16], index: 2, kind: input, shape index: {}]   ;;  %s897_s3 = inlined_call_operand.vmem [shape: f32[512,16], index: 3, kind: output, shape index: {}]  }
   0x1 LB: > { %s583_s13 = sadd.s32 4294967295, %s688_s12   ;;  %p587_p0 = scmp.ge.s32.totalorder %s688_s12, 1  ;;  %s688_s12 = sphi %s711_s12, %s13_s12  }
   0x2   : > { %p138_p1 = scmp.lt.s32.totalorder %s688_s12, 3 }
   0x4   : > { %p139_p2 = pnand %p587_p0, %p138_p1 }
   0x5   : > { %s588_s16 = sshll.u32 (!%p139_p2), %s583_s13, 5 }
   0x6   : > { %142 = sbr.rel (%p139_p2) target bundleno = 252 (0xfc), region = 32  ;;  %p163_p3 = scmp.lt.s32.totalorder (!%p139_p2), %s588_s16, 63 }
   0xb   : > { %v680_v0 = vld [vmem:[%s895_s1 + $0x8] sm:$0x3f]   ;;  %vm294_vm0 = vcmask 1044480   ;;  %vm295_vm1 = vcmask 1045504   ;;  %v690_v1 = vmov 65535   ;;  %v681_v5 = vld [vmem:[%s895_s1] sm:$0xff]  }
   0xc   : > { %v296_v2 = vsel %vm294_vm0, 4294967295, %v690_v1  ;;  %s899_s16 = smov (!%p163_p3, %s588_s16), 63  ;;  %vm245_vm2 = vcmask 220160   ;;  %v786_v54 = vld [vmem:[%s896_s2] ss:$0 sm:$0xff]  ;;  %vm494_vm3 = vcmask 130048  }
   0xd   : > { %v297_v3 = vsel %vm295_vm1, %v296_v2, 0  ;;  %s589_s19 = sshll.u32 %s899_s16, 3 }
   0xe   : > { %v299_v4 = vand.u32 %v680_v0, %v297_v3  ;;  %s733_s22 = scalar_lea.vmem %s894_s0, %s589_s19  ;;  %s795_s27 = scalar_lea.vmem %s897_s3, %s589_s19 }
   0xf   : > { %v175_v6 = vld [vmem:[%s733_s22] sm:$0xff]  ;;  %v176_v7 = vld [vmem:[%s733_s22 + $0x8] sm:$0xff]  ;;  %v177_v11 = vld [vmem:[%s733_s22 + $0x10] sm:$0xff] }
  0x10   : > { %631 = vmatprep.subr.bf16.mxu0 %v299_v4  ;;  %667 = vmatprep.subr.bf16.mxu1 %v299_v4  ;;  %v191_v8 = vld [vmem:[%s733_s22 + $0x80] sm:$0xff]  ;;  %v207_v9 = vpack.c.bf16 %v176_v7, %v175_v6  ;;  %v192_v10 = vld [vmem:[%s733_s22 + $0x88] sm:$0xff]  ;;  %v178_v12 = vld [vmem:[%s733_s22 + $0x18] sm:$0xff] }
  0x11   : > { %632 = vmatpush3.bf16.msra.mxu0 %v299_v4  ;;  %669 = vmatpush3.bf16.msra.mxu1 %v299_v4  ;;  %v215_v13 = vpack.c.bf16 %v192_v10, %v191_v8  ;;  %v208_v14 = vpack.c.bf16 %v178_v12, %v177_v11  ;;  %v193_v15 = vld [vmem:[%s733_s22 + $0x90] sm:$0xff]  ;;  %v194_v16 = vld [vmem:[%s733_s22 + $0x98] sm:$0xff]  ;;  %v179_v17 = vld [vmem:[%s733_s22 + $0x20] sm:$0xff] }
  0x12   : > { %633 = vmatprep.subr.bf16.mxu0 %v681_v5  ;;  %668 = vmatprep.subr.bf16.mxu1 %v681_v5  ;;  %v216_v18 = vpack.c.bf16 %v194_v16, %v193_v15  ;;  %v180_v19 = vld [vmem:[%s733_s22 + $0x28] sm:$0xff]  ;;  %v195_v20 = vld [vmem:[%s733_s22 + $0xa0] sm:$0xff]  ;;  %v181_v24 = vld [vmem:[%s733_s22 + $0x30] sm:$0xff] }
  0x13   : > { %635 = vmatprep.mubr.msk.bf16.mxu0 %vm245_vm2, %v207_v9  ;;  %v196_v21 = vld [vmem:[%s733_s22 + $0xa8] sm:$0xff]  ;;  %651 = vmatprep.mubr.msk.bf16.mxu1 %vm245_vm2, %v215_v13  ;;  %v209_v22 = vpack.c.bf16 %v180_v19, %v179_v17  ;;  %v182_v25 = vld [vmem:[%s733_s22 + $0x38] sm:$0xff]  ;;  %v197_v26 = vld [vmem:[%s733_s22 + $0xb0] sm:$0xff] }
  0x14   : > { %v217_v23 = vpack.c.bf16 %v196_v21, %v195_v20  ;;  %v198_v27 = vld [vmem:[%s733_s22 + $0xb8] sm:$0xff]  ;;  %v183_v28 = vld [vmem:[%s733_s22 + $0x40] sm:$0xff]  ;;  %v184_v29 = vld [vmem:[%s733_s22 + $0x48] sm:$0xff]  ;;  %v210_v32 = vpack.c.bf16 %v182_v25, %v181_v24 }
  0x15   : > { %634 = vmatpush3.bf16.msra.mxu0 %v681_v5  ;;  %670 = vmatpush3.bf16.msra.mxu1 %v681_v5  ;;  %v199_v30 = vld [vmem:[%s733_s22 + $0xc0] sm:$0xff]  ;;  %v200_v31 = vld [vmem:[%s733_s22 + $0xc8] sm:$0xff]  ;;  %v218_v33 = vpack.c.bf16 %v198_v27, %v197_v26  ;;  %v211_v34 = vpack.c.bf16 %v184_v29, %v183_v28  ;;  %v185_v36 = vld [vmem:[%s733_s22 + $0x50] sm:$0xff] }
  0x16   : > { %v219_v35 = vpack.c.bf16 %v200_v31, %v199_v30  ;;  %v186_v37 = vld [vmem:[%s733_s22 + $0x58] sm:$0xff]  ;;  %v201_v38 = vld [vmem:[%s733_s22 + $0xd0] sm:$0xff]  ;;  %v187_v40 = vld [vmem:[%s733_s22 + $0x60] sm:$0xff] }
  0x17   : > { %v202_v39 = vld [vmem:[%s733_s22 + $0xd8] sm:$0xff]  ;;  %v188_v41 = vld [vmem:[%s733_s22 + $0x68] sm:$0xff]  ;;  %v203_v42 = vld [vmem:[%s733_s22 + $0xe0] sm:$0xff]  ;;  %v212_v44 = vpack.c.bf16 %v186_v37, %v185_v36 }
  0x18   : > { %636 = vmatmul.mubr.msk.bf16.vlgmr.msra.gmra.mxu0 %vm245_vm2, %v208_v14  ;;  %652 = vmatmul.mubr.msk.bf16.vlgmr.msra.gmra.mxu1 %vm245_vm2, %v216_v18  ;;  %v204_v43 = vld [vmem:[%s733_s22 + $0xe8] sm:$0xff]  ;;  %v220_v45 = vpack.c.bf16 %v202_v39, %v201_v38  ;;  %v213_v46 = vpack.c.bf16 %v188_v41, %v187_v40  ;;  %v189_v48 = vld [vmem:[%s733_s22 + $0x70] sm:$0xff]  ;;  %v190_v49 = vld [vmem:[%s733_s22 + $0x78] sm:$0xff] }
  0x19   : > { %639 = vmatprep.mubr.msk.bf16.mxu0 %vm245_vm2, %v209_v22  ;;  %655 = vmatprep.mubr.msk.bf16.mxu1 %vm245_vm2, %v217_v23  ;;  %v221_v47 = vpack.c.bf16 %v204_v43, %v203_v42  ;;  %v205_v50 = vld [vmem:[%s733_s22 + $0xf0] sm:$0xff]  ;;  %v206_v51 = vld [vmem:[%s733_s22 + $0xf8] sm:$0xff]  ;;  %v214_v52 = vpack.c.bf16 %v190_v49, %v189_v48 }
  0x1a   : > { %v222_v53 = vpack.c.bf16 %v206_v51, %v205_v50 }
  0x20   : > { %640 = vmatmul.mubr.msk.bf16.gmra.mxu0 %vm245_vm2, %v210_v32  ;;  %656 = vmatmul.mubr.msk.bf16.gmra.mxu1 %vm245_vm2, %v218_v33 }
  0x21   : > { %643 = vmatprep.mubr.msk.bf16.mxu0 %vm245_vm2, %v211_v34  ;;  %659 = vmatprep.mubr.msk.bf16.mxu1 %vm245_vm2, %v219_v35 }
  0x28   : > { %644 = vmatmul.mubr.msk.bf16.gmra.mxu0 %vm245_vm2, %v212_v44  ;;  %660 = vmatmul.mubr.msk.bf16.gmra.mxu1 %vm245_vm2, %v220_v45 }
  0x29   : > { %647 = vmatprep.mubr.msk.bf16.mxu0 %vm245_vm2, %v213_v46  ;;  %663 = vmatprep.mubr.msk.bf16.mxu1 %vm245_vm2, %v221_v47 }
  0x30   : > { %648 = vmatmul.mubr.msk.bf16.gmra.mxu0 %vm245_vm2, %v214_v52  ;;  %664 = vmatmul.mubr.msk.bf16.gmra.mxu1 %vm245_vm2, %v222_v53 }
  0xd8   : > { %v637_v55 = vpop.f32.mrf.mxu0  ;;  %v653_v56 = vpop.f32.mrf.mxu1 }
  0xd9   : > { %v344_v57 = vadd.f32 %v637_v55, %v786_v54  ;;  %v408_v58 = vadd.f32 %v653_v56, %v786_v54 }
  0xda   : > { %v335_v59 = vpop.f32.mrf.mxu0  ;;  %v399_v60 = vpop.f32.mrf.mxu1 }
  0xdb   : > { %v464_v61 = vmax.f32 %v344_v57, 0.0  ;;  %v480_v62 = vmax.f32 %v408_v58, 0.0  ;;  %v336_v63 = vadd.f32 %v786_v54, %v335_v59  ;;  %v400_v0 = vadd.f32 %v786_v54, %v399_v60 }
  0xdc   : > { %v638_v1 = vpop.f32.mrf.mxu0  ;;  %v654_v2 = vpop.f32.mrf.mxu1 }
  0xdd   : > { %497 = vst.msk [vmem:[%s795_s27 + $0x10] sm:$0xff] %vm494_vm3, %v464_v61  ;;  %513 = vst.msk [vmem:[%s795_s27 + $0x90] sm:$0xff] %vm494_vm3, %v480_v62  ;;  %v462_v3 = vmax.f32 %v336_v63, 0.0  ;;  %v478_v4 = vmax.f32 %v400_v0, 0.0  ;;  %v347_v5 = vadd.f32 %v638_v1, %v786_v54  ;;  %v411_v6 = vadd.f32 %v654_v2, %v786_v54 }
  0xde   : > { %v338_v7 = vpop.f32.mrf.mxu0  ;;  %v402_v8 = vpop.f32.mrf.mxu1 }
  0xdf   : > { %495 = vst.msk [vmem:[%s795_s27] sm:$0xff] %vm494_vm3, %v462_v3  ;;  %511 = vst.msk [vmem:[%s795_s27 + $0x80] sm:$0xff] %vm494_vm3, %v478_v4  ;;  %v465_v9 = vmax.f32 %v347_v5, 0.0  ;;  %v481_v10 = vmax.f32 %v411_v6, 0.0  ;;  %v339_v11 = vadd.f32 %v786_v54, %v338_v7  ;;  %v403_v12 = vadd.f32 %v786_v54, %v402_v8 }
  0xe0   : > { %v641_v13 = vpop.f32.mrf.mxu0  ;;  %v657_v14 = vpop.f32.mrf.mxu1 }
  0xe1   : > { %498 = vst.msk [vmem:[%s795_s27 + $0x18] sm:$0xff] %vm494_vm3, %v465_v9  ;;  %514 = vst.msk [vmem:[%s795_s27 + $0x98] sm:$0xff] %vm494_vm3, %v481_v10  ;;  %v463_v15 = vmax.f32 %v339_v11, 0.0  ;;  %v479_v16 = vmax.f32 %v403_v12, 0.0  ;;  %v360_v17 = vadd.f32 %v641_v13, %v786_v54  ;;  %v424_v18 = vadd.f32 %v657_v14, %v786_v54 }
  0xe2   : > { %v351_v19 = vpop.f32.mrf.mxu0  ;;  %v415_v20 = vpop.f32.mrf.mxu1 }
  0xe3   : > { %496 = vst.msk [vmem:[%s795_s27 + $0x8] sm:$0xff] %vm494_vm3, %v463_v15  ;;  %512 = vst.msk [vmem:[%s795_s27 + $0x88] sm:$0xff] %vm494_vm3, %v479_v16  ;;  %v468_v21 = vmax.f32 %v360_v17, 0.0  ;;  %v484_v22 = vmax.f32 %v424_v18, 0.0  ;;  %v352_v23 = vadd.f32 %v786_v54, %v351_v19  ;;  %v416_v24 = vadd.f32 %v786_v54, %v415_v20 }
  0xe4   : > { %v642_v25 = vpop.f32.mrf.mxu0  ;;  %v658_v26 = vpop.f32.mrf.mxu1 }
  0xe5   : > { %501 = vst.msk [vmem:[%s795_s27 + $0x30] sm:$0xff] %vm494_vm3, %v468_v21  ;;  %517 = vst.msk [vmem:[%s795_s27 + $0xb0] sm:$0xff] %vm494_vm3, %v484_v22  ;;  %v466_v27 = vmax.f32 %v352_v23, 0.0  ;;  %v482_v28 = vmax.f32 %v416_v24, 0.0  ;;  %v363_v29 = vadd.f32 %v642_v25, %v786_v54  ;;  %v427_v30 = vadd.f32 %v658_v26, %v786_v54 }
  0xe6   : > { %v354_v31 = vpop.f32.mrf.mxu0  ;;  %v418_v32 = vpop.f32.mrf.mxu1 }
  0xe7   : > { %499 = vst.msk [vmem:[%s795_s27 + $0x20] sm:$0xff] %vm494_vm3, %v466_v27  ;;  %515 = vst.msk [vmem:[%s795_s27 + $0xa0] sm:$0xff] %vm494_vm3, %v482_v28  ;;  %v469_v33 = vmax.f32 %v363_v29, 0.0  ;;  %v485_v34 = vmax.f32 %v427_v30, 0.0  ;;  %v355_v35 = vadd.f32 %v786_v54, %v354_v31  ;;  %v419_v36 = vadd.f32 %v786_v54, %v418_v32 }
  0xe8   : > { %v645_v37 = vpop.f32.mrf.mxu0  ;;  %v661_v38 = vpop.f32.mrf.mxu1 }
  0xe9   : > { %502 = vst.msk [vmem:[%s795_s27 + $0x38] sm:$0xff] %vm494_vm3, %v469_v33  ;;  %518 = vst.msk [vmem:[%s795_s27 + $0xb8] sm:$0xff] %vm494_vm3, %v485_v34  ;;  %v467_v39 = vmax.f32 %v355_v35, 0.0  ;;  %v483_v40 = vmax.f32 %v419_v36, 0.0  ;;  %v376_v41 = vadd.f32 %v645_v37, %v786_v54  ;;  %v440_v42 = vadd.f32 %v661_v38, %v786_v54 }
  0xea   : > { %v367_v43 = vpop.f32.mrf.mxu0  ;;  %v431_v44 = vpop.f32.mrf.mxu1 }
  0xeb   : > { %500 = vst.msk [vmem:[%s795_s27 + $0x28] sm:$0xff] %vm494_vm3, %v467_v39  ;;  %516 = vst.msk [vmem:[%s795_s27 + $0xa8] sm:$0xff] %vm494_vm3, %v483_v40  ;;  %v472_v45 = vmax.f32 %v376_v41, 0.0  ;;  %v488_v46 = vmax.f32 %v440_v42, 0.0  ;;  %v368_v47 = vadd.f32 %v786_v54, %v367_v43  ;;  %v432_v48 = vadd.f32 %v786_v54, %v431_v44 }
  0xec   : > { %v646_v49 = vpop.f32.mrf.mxu0  ;;  %v662_v50 = vpop.f32.mrf.mxu1 }
  0xed   : > { %505 = vst.msk [vmem:[%s795_s27 + $0x50] sm:$0xff] %vm494_vm3, %v472_v45  ;;  %521 = vst.msk [vmem:[%s795_s27 + $0xd0] sm:$0xff] %vm494_vm3, %v488_v46  ;;  %v470_v51 = vmax.f32 %v368_v47, 0.0  ;;  %v486_v52 = vmax.f32 %v432_v48, 0.0  ;;  %v379_v53 = vadd.f32 %v646_v49, %v786_v54  ;;  %v443_v55 = vadd.f32 %v662_v50, %v786_v54 }
  0xee   : > { %v370_v56 = vpop.f32.mrf.mxu0  ;;  %v434_v57 = vpop.f32.mrf.mxu1 }
  0xef   : > { %503 = vst.msk [vmem:[%s795_s27 + $0x40] sm:$0xff] %vm494_vm3, %v470_v51  ;;  %519 = vst.msk [vmem:[%s795_s27 + $0xc0] sm:$0xff] %vm494_vm3, %v486_v52  ;;  %v473_v58 = vmax.f32 %v379_v53, 0.0  ;;  %v489_v59 = vmax.f32 %v443_v55, 0.0  ;;  %v371_v60 = vadd.f32 %v786_v54, %v370_v56  ;;  %v435_v61 = vadd.f32 %v786_v54, %v434_v57 }
  0xf0   : > { %v649_v62 = vpop.f32.mrf.mxu0  ;;  %v665_v63 = vpop.f32.mrf.mxu1 }
  0xf1   : > { %506 = vst.msk [vmem:[%s795_s27 + $0x58] sm:$0xff] %vm494_vm3, %v473_v58  ;;  %522 = vst.msk [vmem:[%s795_s27 + $0xd8] sm:$0xff] %vm494_vm3, %v489_v59  ;;  %v471_v0 = vmax.f32 %v371_v60, 0.0  ;;  %v487_v1 = vmax.f32 %v435_v61, 0.0  ;;  %v392_v2 = vadd.f32 %v649_v62, %v786_v54  ;;  %v456_v3 = vadd.f32 %v665_v63, %v786_v54 }
  0xf2   : > { %v383_v4 = vpop.f32.mrf.mxu0  ;;  %v447_v5 = vpop.f32.mrf.mxu1 }
  0xf3   : > { %504 = vst.msk [vmem:[%s795_s27 + $0x48] sm:$0xff] %vm494_vm3, %v471_v0  ;;  %520 = vst.msk [vmem:[%s795_s27 + $0xc8] sm:$0xff] %vm494_vm3, %v487_v1  ;;  %v476_v6 = vmax.f32 %v392_v2, 0.0  ;;  %v492_v7 = vmax.f32 %v456_v3, 0.0  ;;  %v384_v8 = vadd.f32 %v786_v54, %v383_v4  ;;  %v448_v9 = vadd.f32 %v786_v54, %v447_v5 }
  0xf4   : > { %v650_v10 = vpop.f32.mrf.mxu0  ;;  %v666_v11 = vpop.f32.mrf.mxu1 }
  0xf5   : > { %509 = vst.msk [vmem:[%s795_s27 + $0x70] sm:$0xff] %vm494_vm3, %v476_v6  ;;  %525 = vst.msk [vmem:[%s795_s27 + $0xf0] sm:$0xff] %vm494_vm3, %v492_v7  ;;  %v474_v12 = vmax.f32 %v384_v8, 0.0  ;;  %v490_v13 = vmax.f32 %v448_v9, 0.0  ;;  %v395_v14 = vadd.f32 %v650_v10, %v786_v54  ;;  %v459_v15 = vadd.f32 %v666_v11, %v786_v54 }
  0xf6   : > { %v386_v16 = vpop.f32.mrf.mxu0  ;;  %v450_v17 = vpop.f32.mrf.mxu1 }
  0xf7   : > { %507 = vst.msk [vmem:[%s795_s27 + $0x60] sm:$0xff] %vm494_vm3, %v474_v12  ;;  %523 = vst.msk [vmem:[%s795_s27 + $0xe0] sm:$0xff] %vm494_vm3, %v490_v13  ;;  %v477_v18 = vmax.f32 %v395_v14, 0.0  ;;  %v493_v19 = vmax.f32 %v459_v15, 0.0  ;;  %v387_v20 = vadd.f32 %v786_v54, %v386_v16  ;;  %v451_v21 = vadd.f32 %v786_v54, %v450_v17 }
  0xf9   : > { %510 = vst.msk [vmem:[%s795_s27 + $0x78] sm:$0xff] %vm494_vm3, %v477_v18  ;;  %526 = vst.msk [vmem:[%s795_s27 + $0xf8] sm:$0xff] %vm494_vm3, %v493_v19  ;;  %v475_v22 = vmax.f32 %v387_v20, 0.0  ;;  %v491_v23 = vmax.f32 %v451_v21, 0.0 }
  0xfb   : > { %508 = vst.msk [vmem:[%s795_s27 + $0x68] sm:$0xff] %vm494_vm3, %v475_v22  ;;  %524 = vst.msk [vmem:[%s795_s27 + $0xe8] sm:$0xff] %vm494_vm3, %v491_v23 }
  0xfc PF: > { %s13_s12 = sadd.s32 1, %s688_s12  }
  0xfd   : > { %p10_p4 = scmp.ge.s32.totalorder %s13_s12, 4  }
  0xff   :  { %12 = sbr.rel (!%p10_p4) target bundleno = 1 (0x1), region = 62 }

// kernel: vit_forward.7
= control target key start
LH: loop header
LB: loop body
LE: loop exit
PB: predicated region body
PF: predicated region fallthrough
CT: control target
= control target key end

     0   :  { %s787_s12 = smov 0   ;;  %s1020_s0 = inlined_call_operand.vmem [shape: f32[512,144], index: 0, kind: input, shape index: {}]   ;;  %s1021_s1 = inlined_call_operand.vmem [shape: bf16[144,16], index: 1, kind: input, shape index: {}]   ;;  %s1022_s2 = inlined_call_operand.vmem [shape: f32[1,16], index: 2, kind: input, shape index: {}]   ;;  %s1023_s3 = inlined_call_operand.vmem [shape: f32[512,16], index: 3, kind: output, shape index: {}]  }
   0x1 LB: > { %s683_s13 = sadd.s32 4294967295, %s764_s12   ;;  %p687_p0 = scmp.ge.s32.totalorder %s764_s12, 1  ;;  %s764_s12 = sphi %s787_s12, %s13_s12  }
   0x2   : > { %p139_p1 = scmp.lt.s32.totalorder %s764_s12, 3 }
   0x4   : > { %p140_p2 = pnand %p687_p0, %p139_p1 }
   0x5   : > { %s688_s16 = sshll.u32 (!%p140_p2), %s683_s13, 5 }
   0x6   : > { %143 = sbr.rel (%p140_p2) target bundleno = 306 (0x132), region = 32  ;;  %p165_p3 = scmp.lt.s32.totalorder (!%p140_p2), %s688_s16, 63 }
   0xb   : > { %v749_v0 = vld [vmem:[%s1021_s1 + $0x38] sm:$0xff]   ;;  %v766_v1 = vmov 0   ;;  %v750_v2 = vld [vmem:[%s1021_s1 + $0x30] sm:$0xff]   ;;  %s1025_s16 = smov (!%p165_p3, %s688_s16), 63  ;;  %v751_v3 = vld [vmem:[%s1021_s1 + $0x28] sm:$0xff]   ;;  %vm353_vm0 = vcmask 130048  }
   0xc   : > { %402 = vmatprep.subr.bf16.mxu0 %v766_v1  ;;  %722 = vmatprep.subr.bf16.mxu1 %v766_v1  ;;  %s721_s21 = sshll.u32 %s1025_s16, 4  ;;  %v752_v7 = vld [vmem:[%s1021_s1 + $0x20] sm:$0xff]   ;;  %v753_v11 = vld [vmem:[%s1021_s1 + $0x18] sm:$0xff]   ;;  %v754_v12 = vld [vmem:[%s1021_s1 + $0x10] sm:$0xff]   ;;  %s692_s13 = sshll.u32 %s1025_s16, 3 }
   0xd   : > { %403 = vmatpush1.bf16.msra.mxu0 %v749_v0  ;;  %731 = vmatpush1.bf16.msra.mxu1 %v749_v0  ;;  %s810_s24 = scalar_lea.vmem %s1020_s0, %s721_s21  ;;  %v755_v13 = vld [vmem:[%s1021_s1 + $0x8] sm:$0xff]   ;;  %v756_v14 = vld [vmem:[%s1021_s1] sm:$0xff]   ;;  %s921_s17 = scalar_lea.vmem %s1023_s3, %s692_s13 }
   0xe   : > { %404 = vmatprep.subr.bf16.mxu0 %v766_v1  ;;  %723 = vmatprep.subr.bf16.mxu1 %v766_v1  ;;  %v179_v4 = vld [vmem:[%s810_s24 + $0x8] sm:$0xff]  ;;  %v181_v5 = vld [vmem:[%s810_s24 + $0x18] sm:$0xff]  ;;  %v757_v15 = vld [vmem:[%s1021_s1 + $0x40] sm:$0xff]  }
   0xf   : > { %v211_v6 = vld [vmem:[%s810_s24 + $0x108] sm:$0xff]  ;;  %v243_v8 = vpack.c.bf16 %v181_v5, %v179_v4  ;;  %v213_v9 = vld [vmem:[%s810_s24 + $0x118] sm:$0xff]  ;;  %v178_v16 = vld [vmem:[%s810_s24] sm:$0xff] }
  0x10   : > { %v259_v10 = vpack.c.bf16 %v213_v9, %v211_v6  ;;  %v180_v17 = vld [vmem:[%s810_s24 + $0x10] sm:$0xff]  ;;  %v210_v18 = vld [vmem:[%s810_s24 + $0x100] sm:$0xff]  ;;  %v183_v20 = vld [vmem:[%s810_s24 + $0x28] sm:$0xff] }
  0x11   : > { %405 = vmatpush1.bf16.msra.mxu0 %v750_v2  ;;  %732 = vmatpush1.bf16.msra.mxu1 %v750_v2  ;;  %v212_v19 = vld [vmem:[%s810_s24 + $0x110] sm:$0xff]  ;;  %v185_v21 = vld [vmem:[%s810_s24 + $0x38] sm:$0xff]  ;;  %v215_v22 = vld [vmem:[%s810_s24 + $0x128] sm:$0xff]  ;;  %v242_v24 = vpack.c.bf16 %v180_v17, %v178_v16 }
  0x12   : > { %406 = vmatprep.subr.bf16.mxu0 %v766_v1  ;;  %724 = vmatprep.subr.bf16.mxu1 %v766_v1  ;;  %v217_v23 = vld [vmem:[%s810_s24 + $0x138] sm:$0xff]  ;;  %v258_v25 = vpack.c.bf16 %v212_v19, %v210_v18  ;;  %v245_v26 = vpack.c.bf16 %v185_v21, %v183_v20  ;;  %v182_v28 = vld [vmem:[%s810_s24 + $0x20] sm:$0xff]  ;;  %v184_v29 = vld [vmem:[%s810_s24 + $0x30] sm:$0xff] }
  0x13   : > { %703 = vmatprep.mubr.msk.bf16.mxu0 %vm353_vm0, %v243_v8  ;;  %711 = vmatprep.mubr.msk.bf16.mxu1 %vm353_vm0, %v259_v10  ;;  %v261_v27 = vpack.c.bf16 %v217_v23, %v215_v22  ;;  %v214_v30 = vld [vmem:[%s810_s24 + $0x120] sm:$0xff]  ;;  %v216_v31 = vld [vmem:[%s810_s24 + $0x130] sm:$0xff]  ;;  %v187_v32 = vld [vmem:[%s810_s24 + $0x48] sm:$0xff]  ;;  %v244_v36 = vpack.c.bf16 %v184_v29, %v182_v28 }
  0x14   : > { %v189_v33 = vld [vmem:[%s810_s24 + $0x58] sm:$0xff]  ;;  %v219_v34 = vld [vmem:[%s810_s24 + $0x148] sm:$0xff]  ;;  %v260_v37 = vpack.c.bf16 %v216_v31, %v214_v30  ;;  %v186_v40 = vld [vmem:[%s810_s24 + $0x40] sm:$0xff] }
  0x15   : > { %407 = vmatpush1.bf16.msra.mxu0 %v751_v3  ;;  %733 = vmatpush1.bf16.msra.mxu1 %v751_v3  ;;  %v221_v35 = vld [vmem:[%s810_s24 + $0x158] sm:$0xff]  ;;  %v247_v38 = vpack.c.bf16 %v189_v33, %v187_v32  ;;  %v188_v41 = vld [vmem:[%s810_s24 + $0x50] sm:$0xff]  ;;  %v218_v42 = vld [vmem:[%s810_s24 + $0x140] sm:$0xff] }
  0x16   : > { %408 = vmatprep.subr.bf16.mxu0 %v766_v1  ;;  %725 = vmatprep.subr.bf16.mxu1 %v766_v1  ;;  %v263_v39 = vpack.c.bf16 %v221_v35, %v219_v34  ;;  %v220_v43 = vld [vmem:[%s810_s24 + $0x150] sm:$0xff]  ;;  %v191_v44 = vld [vmem:[%s810_s24 + $0x68] sm:$0xff]  ;;  %v193_v45 = vld [vmem:[%s810_s24 + $0x78] sm:$0xff]  ;;  %v246_v48 = vpack.c.bf16 %v188_v41, %v186_v40 }
  0x17   : > { %v223_v46 = vld [vmem:[%s810_s24 + $0x168] sm:$0xff]  ;;  %v225_v47 = vld [vmem:[%s810_s24 + $0x178] sm:$0xff]  ;;  %v262_v49 = vpack.c.bf16 %v220_v43, %v218_v42  ;;  %v249_v50 = vpack.c.bf16 %v193_v45, %v191_v44  ;;  %v190_v52 = vld [vmem:[%s810_s24 + $0x60] sm:$0xff] }
  0x18   : > { %v265_v51 = vpack.c.bf16 %v225_v47, %v223_v46  ;;  %v192_v53 = vld [vmem:[%s810_s24 + $0x70] sm:$0xff]  ;;  %v222_v54 = vld [vmem:[%s810_s24 + $0x160] sm:$0xff]  ;;  %v195_v56 = vld [vmem:[%s810_s24 + $0x88] sm:$0xff] }
  0x19   : > { %409 = vmatpush1.bf16.msra.mxu0 %v752_v7  ;;  %734 = vmatpush1.bf16.msra.mxu1 %v752_v7  ;;  %v224_v55 = vld [vmem:[%s810_s24 + $0x170] sm:$0xff]  ;;  %v197_v57 = vld [vmem:[%s810_s24 + $0x98] sm:$0xff]  ;;  %v227_v58 = vld [vmem:[%s810_s24 + $0x188] sm:$0xff]  ;;  %v248_v60 = vpack.c.bf16 %v192_v53, %v190_v52 }
  0x1a   : > { %410 = vmatprep.subr.bf16.mxu0 %v766_v1  ;;  %726 = vmatprep.subr.bf16.mxu1 %v766_v1  ;;  %v229_v59 = vld [vmem:[%s810_s24 + $0x198] sm:$0xff]  ;;  %v264_v61 = vpack.c.bf16 %v224_v55, %v222_v54  ;;  %v251_v62 = vpack.c.bf16 %v197_v57, %v195_v56  ;;  %v194_v0 = vld [vmem:[%s810_s24 + $0x80] sm:$0xff]  ;;  %v228_v3 = vld [vmem:[%s810_s24 + $0x190] sm:$0xff] }
  0x1b   : > { %v267_v63 = vpack.c.bf16 %v229_v59, %v227_v58  ;;  %v226_v2 = vld [vmem:[%s810_s24 + $0x180] sm:$0xff]  ;;  %v199_v4 = vld [vmem:[%s810_s24 + $0xa8] sm:$0xff]  ;;  %v201_v5 = vld [vmem:[%s810_s24 + $0xb8] sm:$0xff] }
  0x1c   : > { %v231_v6 = vld [vmem:[%s810_s24 + $0x1a8] sm:$0xff]  ;;  %v233_v7 = vld [vmem:[%s810_s24 + $0x1b8] sm:$0xff]  ;;  %v266_v9 = vpack.c.bf16 %v228_v3, %v226_v2  ;;  %v253_v10 = vpack.c.bf16 %v201_v5, %v199_v4  ;;  %v913_v42 = vld [vmem:[%s1022_s2] ss:$0 sm:$0xff] }
  0x1d   : > { %411 = vmatpush1.bf16.msra.mxu0 %v753_v11  ;;  %735 = vmatpush1.bf16.msra.mxu1 %v753_v11  ;;  %v269_v11 = vpack.c.bf16 %v233_v7, %v231_v6  ;;  %v203_v16 = vld [vmem:[%s810_s24 + $0xc8] sm:$0xff]  ;;  %v205_v17 = vld [vmem:[%s810_s24 + $0xd8] sm:$0xff] }
  0x1e   : > { %412 = vmatprep.subr.bf16.mxu0 %v766_v1  ;;  %727 = vmatprep.subr.bf16.mxu1 %v766_v1  ;;  %v235_v18 = vld [vmem:[%s810_s24 + $0x1c8] sm:$0xff]  ;;  %v237_v19 = vld [vmem:[%s810_s24 + $0x1d8] sm:$0xff]  ;;  %v255_v22 = vpack.c.bf16 %v205_v17, %v203_v16 }
  0x1f   : > { %v271_v23 = vpack.c.bf16 %v237_v19, %v235_v18  ;;  %v207_v28 = vld [vmem:[%s810_s24 + $0xe8] sm:$0xff]  ;;  %v209_v29 = vld [vmem:[%s810_s24 + $0xf8] sm:$0xff] }
  0x20   : > { %v239_v30 = vld [vmem:[%s810_s24 + $0x1e8] sm:$0xff]  ;;  %v241_v31 = vld [vmem:[%s810_s24 + $0x1f8] sm:$0xff]  ;;  %v257_v34 = vpack.c.bf16 %v209_v29, %v207_v28 }
  0x21   : > { %413 = vmatpush1.bf16.msra.mxu0 %v754_v12  ;;  %736 = vmatpush1.bf16.msra.mxu1 %v754_v12  ;;  %v198_v12 = vld [vmem:[%s810_s24 + $0xa0] sm:$0xff]  ;;  %v273_v35 = vpack.c.bf16 %v241_v31, %v239_v30 }
  0x22   : > { %414 = vmatprep.subr.bf16.mxu0 %v766_v1  ;;  %728 = vmatprep.subr.bf16.mxu1 %v766_v1 }
  0x25   : > { %415 = vmatpush1.bf16.msra.mxu0 %v755_v13  ;;  %737 = vmatpush1.bf16.msra.mxu1 %v755_v13  ;;  %v200_v13 = vld [vmem:[%s810_s24 + $0xb0] sm:$0xff] }
  0x26   : > { %416 = vmatprep.subr.bf16.mxu0 %v766_v1  ;;  %729 = vmatprep.subr.bf16.mxu1 %v766_v1  ;;  %v252_v20 = vpack.c.bf16 %v200_v13, %v198_v12 }
  0x29   : > { %417 = vmatpush1.bf16.msra.mxu0 %v756_v14  ;;  %738 = vmatpush1.bf16.msra.mxu1 %v756_v14  ;;  %v230_v14 = vld [vmem:[%s810_s24 + $0x1a0] sm:$0xff] }
  0x2a   : > { %432 = vmatprep.subr.bf16.mxu0 %v766_v1  ;;  %730 = vmatprep.subr.bf16.mxu1 %v766_v1  ;;  %v196_v1 = vld [vmem:[%s810_s24 + $0x90] sm:$0xff] }
  0x2b   : > { %v250_v8 = vpack.c.bf16 %v196_v1, %v194_v0 }
  0x2d   : > { %433 = vmatpush2.bf16.msra.mxu0 %v757_v15  ;;  %739 = vmatpush2.bf16.msra.mxu1 %v757_v15  ;;  %v232_v15 = vld [vmem:[%s810_s24 + $0x1b0] sm:$0xff] }
  0x2e   : > { %v268_v21 = vpack.c.bf16 %v232_v15, %v230_v14 }
  0x30   : > { %435 = vmatmul.mubr.bf16.vlgmr.msra.gmra.mxu0 %v242_v24  ;;  %499 = vmatmul.mubr.bf16.vlgmr.msra.gmra.mxu1 %v258_v25  ;;  %v202_v24 = vld [vmem:[%s810_s24 + $0xc0] sm:$0xff]  ;;  %v204_v25 = vld [vmem:[%s810_s24 + $0xd0] sm:$0xff] }
  0x31   : > { %704 = vmatprep.mubr.msk.bf16.mxu0 %vm353_vm0, %v245_v26  ;;  %712 = vmatprep.mubr.msk.bf16.mxu1 %vm353_vm0, %v261_v27  ;;  %v234_v26 = vld [vmem:[%s810_s24 + $0x1c0] sm:$0xff]  ;;  %v236_v27 = vld [vmem:[%s810_s24 + $0x1d0] sm:$0xff]  ;;  %v254_v32 = vpack.c.bf16 %v204_v25, %v202_v24 }
  0x32   : > { %v270_v33 = vpack.c.bf16 %v236_v27, %v234_v26 }
  0x38   : > { %443 = vmatmul.mubr.bf16.gmra.mxu0 %v244_v36  ;;  %507 = vmatmul.mubr.bf16.gmra.mxu1 %v260_v37  ;;  %v206_v36 = vld [vmem:[%s810_s24 + $0xe0] sm:$0xff]  ;;  %v208_v37 = vld [vmem:[%s810_s24 + $0xf0] sm:$0xff] }
  0x39   : > { %705 = vmatprep.mubr.msk.bf16.mxu0 %vm353_vm0, %v247_v38  ;;  %713 = vmatprep.mubr.msk.bf16.mxu1 %vm353_vm0, %v263_v39  ;;  %v238_v38 = vld [vmem:[%s810_s24 + $0x1e0] sm:$0xff]  ;;  %v240_v39 = vld [vmem:[%s810_s24 + $0x1f0] sm:$0xff]  ;;  %v256_v40 = vpack.c.bf16 %v208_v37, %v206_v36 }
  0x3a   : > { %v272_v41 = vpack.c.bf16 %v240_v39, %v238_v38 }
  0x40   : > { %451 = vmatmul.mubr.bf16.gmra.mxu0 %v246_v48  ;;  %515 = vmatmul.mubr.bf16.gmra.mxu1 %v262_v49 }
  0x41   : > { %706 = vmatprep.mubr.msk.bf16.mxu0 %vm353_vm0, %v249_v50  ;;  %714 = vmatprep.mubr.msk.bf16.mxu1 %vm353_vm0, %v265_v51 }
  0x48   : > { %459 = vmatmul.mubr.bf16.gmra.mxu0 %v248_v60  ;;  %523 = vmatmul.mubr.bf16.gmra.mxu1 %v264_v61 }
  0x49   : > { %707 = vmatprep.mubr.msk.bf16.mxu0 %vm353_vm0, %v251_v62  ;;  %715 = vmatprep.mubr.msk.bf16.mxu1 %vm353_vm0, %v267_v63 }
  0x50   : > { %467 = vmatmul.mubr.bf16.gmra.mxu0 %v250_v8  ;;  %531 = vmatmul.mubr.bf16.gmra.mxu1 %v266_v9 }
  0x51   : > { %708 = vmatprep.mubr.msk.bf16.mxu0 %vm353_vm0, %v253_v10  ;;  %716 = vmatprep.mubr.msk.bf16.mxu1 %vm353_vm0, %v269_v11 }
  0x58   : > { %475 = vmatmul.mubr.bf16.gmra.mxu0 %v252_v20  ;;  %539 = vmatmul.mubr.bf16.gmra.mxu1 %v268_v21 }
  0x59   : > { %709 = vmatprep.mubr.msk.bf16.mxu0 %vm353_vm0, %v255_v22  ;;  %717 = vmatprep.mubr.msk.bf16.mxu1 %vm353_vm0, %v271_v23 }
  0x60   : > { %483 = vmatmul.mubr.bf16.gmra.mxu0 %v254_v32  ;;  %547 = vmatmul.mubr.bf16.gmra.mxu1 %v270_v33 }
  0x61   : > { %710 = vmatprep.mubr.msk.bf16.mxu0 %vm353_vm0, %v257_v34  ;;  %718 = vmatprep.mubr.msk.bf16.mxu1 %vm353_vm0, %v273_v35 }
  0x68   : > { %491 = vmatmul.mubr.bf16.gmra.mxu0 %v256_v40  ;;  %555 = vmatmul.mubr.bf16.gmra.mxu1 %v272_v41 }
  0xf0   : > { %v436_v43 = vpop.f32.mrf.mxu0  ;;  %v500_v44 = vpop.f32.mrf.mxu1 }
  0xf1   : > { %v437_v45 = vadd.f32 %v913_v42, %v436_v43  ;;  %v501_v46 = vadd.f32 %v913_v42, %v500_v44 }
  0xf2   : > { %v438_v47 = vpop.f32.mrf.mxu0  ;;  %v502_v48 = vpop.f32.mrf.mxu1 }
  0xf3   : > { %v563_v49 = vmax.f32 %v437_v45, 0.0  ;;  %v579_v50 = vmax.f32 %v501_v46, 0.0 }
  0xf4   : > { %v439_v51 = vpop.f32.mrf.mxu0  ;;  %v503_v52 = vpop.f32.mrf.mxu1 }
  0xf5   : > { %595 = vst.msk [vmem:[%s921_s17] sm:$0xff] %vm353_vm0, %v563_v49  ;;  %611 = vst.msk [vmem:[%s921_s17 + $0x80] sm:$0xff] %vm353_vm0, %v579_v50  ;;  %v440_v53 = vadd.f32 %v913_v42, %v439_v51  ;;  %v504_v54 = vadd.f32 %v913_v42, %v503_v52 }
  0xf6   : > { %v441_v55 = vpop.f32.mrf.mxu0  ;;  %v505_v56 = vpop.f32.mrf.mxu1 }
  0xf7   : > { %v564_v57 = vmax.f32 %v440_v53, 0.0  ;;  %v580_v58 = vmax.f32 %v504_v54, 0.0 }
  0xf8   : > { %v444_v59 = vpop.f32.mrf.mxu0  ;;  %v508_v60 = vpop.f32.mrf.mxu1 }
  0xf9   : > { %596 = vst.msk [vmem:[%s921_s17 + $0x8] sm:$0xff] %vm353_vm0, %v564_v57  ;;  %612 = vst.msk [vmem:[%s921_s17 + $0x88] sm:$0xff] %vm353_vm0, %v580_v58  ;;  %v445_v61 = vadd.f32 %v913_v42, %v444_v59  ;;  %v509_v62 = vadd.f32 %v913_v42, %v508_v60 }
  0xfa   : > { %v446_v63 = vpop.f32.mrf.mxu0  ;;  %v510_v0 = vpop.f32.mrf.mxu1 }
  0xfb   : > { %v565_v1 = vmax.f32 %v445_v61, 0.0  ;;  %v581_v2 = vmax.f32 %v509_v62, 0.0 }
  0xfc   : > { %v447_v3 = vpop.f32.mrf.mxu0  ;;  %v511_v4 = vpop.f32.mrf.mxu1 }
  0xfd   : > { %597 = vst.msk [vmem:[%s921_s17 + $0x10] sm:$0xff] %vm353_vm0, %v565_v1  ;;  %613 = vst.msk [vmem:[%s921_s17 + $0x90] sm:$0xff] %vm353_vm0, %v581_v2  ;;  %v448_v5 = vadd.f32 %v913_v42, %v447_v3  ;;  %v512_v6 = vadd.f32 %v913_v42, %v511_v4 }
  0xfe   : > { %v449_v7 = vpop.f32.mrf.mxu0  ;;  %v513_v8 = vpop.f32.mrf.mxu1 }
  0xff   : > { %v566_v9 = vmax.f32 %v448_v5, 0.0  ;;  %v582_v10 = vmax.f32 %v512_v6, 0.0 }
 0x100   : > { %v452_v11 = vpop.f32.mrf.mxu0  ;;  %v516_v12 = vpop.f32.mrf.mxu1 }
 0x101   : > { %598 = vst.msk [vmem:[%s921_s17 + $0x18] sm:$0xff] %vm353_vm0, %v566_v9  ;;  %614 = vst.msk [vmem:[%s921_s17 + $0x98] sm:$0xff] %vm353_vm0, %v582_v10  ;;  %v453_v13 = vadd.f32 %v913_v42, %v452_v11  ;;  %v517_v14 = vadd.f32 %v913_v42, %v516_v12 }
 0x102   : > { %v454_v15 = vpop.f32.mrf.mxu0  ;;  %v518_v16 = vpop.f32.mrf.mxu1 }
 0x103   : > { %v567_v17 = vmax.f32 %v453_v13, 0.0  ;;  %v583_v18 = vmax.f32 %v517_v14, 0.0 }
 0x104   : > { %v455_v19 = vpop.f32.mrf.mxu0  ;;  %v519_v20 = vpop.f32.mrf.mxu1 }
 0x105   : > { %599 = vst.msk [vmem:[%s921_s17 + $0x20] sm:$0xff] %vm353_vm0, %v567_v17  ;;  %615 = vst.msk [vmem:[%s921_s17 + $0xa0] sm:$0xff] %vm353_vm0, %v583_v18  ;;  %v456_v21 = vadd.f32 %v913_v42, %v455_v19  ;;  %v520_v22 = vadd.f32 %v913_v42, %v519_v20 }
 0x106   : > { %v457_v23 = vpop.f32.mrf.mxu0  ;;  %v521_v24 = vpop.f32.mrf.mxu1 }
 0x107   : > { %v568_v25 = vmax.f32 %v456_v21, 0.0  ;;  %v584_v26 = vmax.f32 %v520_v22, 0.0 }
 0x108   : > { %v460_v27 = vpop.f32.mrf.mxu0  ;;  %v524_v28 = vpop.f32.mrf.mxu1 }
 0x109   : > { %600 = vst.msk [vmem:[%s921_s17 + $0x28] sm:$0xff] %vm353_vm0, %v568_v25  ;;  %616 = vst.msk [vmem:[%s921_s17 + $0xa8] sm:$0xff] %vm353_vm0, %v584_v26  ;;  %v461_v29 = vadd.f32 %v913_v42, %v460_v27  ;;  %v525_v30 = vadd.f32 %v913_v42, %v524_v28 }
 0x10a   : > { %v462_v31 = vpop.f32.mrf.mxu0  ;;  %v526_v32 = vpop.f32.mrf.mxu1 }
 0x10b   : > { %v569_v33 = vmax.f32 %v461_v29, 0.0  ;;  %v585_v34 = vmax.f32 %v525_v30, 0.0 }
 0x10c   : > { %v463_v35 = vpop.f32.mrf.mxu0  ;;  %v527_v36 = vpop.f32.mrf.mxu1 }
 0x10d   : > { %601 = vst.msk [vmem:[%s921_s17 + $0x30] sm:$0xff] %vm353_vm0, %v569_v33  ;;  %617 = vst.msk [vmem:[%s921_s17 + $0xb0] sm:$0xff] %vm353_vm0, %v585_v34  ;;  %v464_v37 = vadd.f32 %v913_v42, %v463_v35  ;;  %v528_v38 = vadd.f32 %v913_v42, %v527_v36 }
 0x10e   : > { %v465_v39 = vpop.f32.mrf.mxu0  ;;  %v529_v40 = vpop.f32.mrf.mxu1 }
 0x10f   : > { %v570_v41 = vmax.f32 %v464_v37, 0.0  ;;  %v586_v43 = vmax.f32 %v528_v38, 0.0 }
 0x110   : > { %v468_v44 = vpop.f32.mrf.mxu0  ;;  %v532_v45 = vpop.f32.mrf.mxu1 }
 0x111   : > { %602 = vst.msk [vmem:[%s921_s17 + $0x38] sm:$0xff] %vm353_vm0, %v570_v41  ;;  %618 = vst.msk [vmem:[%s921_s17 + $0xb8] sm:$0xff] %vm353_vm0, %v586_v43  ;;  %v469_v46 = vadd.f32 %v913_v42, %v468_v44  ;;  %v533_v47 = vadd.f32 %v913_v42, %v532_v45 }
 0x112   : > { %v470_v48 = vpop.f32.mrf.mxu0  ;;  %v534_v49 = vpop.f32.mrf.mxu1 }
 0x113   : > { %v571_v50 = vmax.f32 %v469_v46, 0.0  ;;  %v587_v51 = vmax.f32 %v533_v47, 0.0 }
 0x114   : > { %v471_v52 = vpop.f32.mrf.mxu0  ;;  %v535_v53 = vpop.f32.mrf.mxu1 }
 0x115   : > { %603 = vst.msk [vmem:[%s921_s17 + $0x40] sm:$0xff] %vm353_vm0, %v571_v50  ;;  %619 = vst.msk [vmem:[%s921_s17 + $0xc0] sm:$0xff] %vm353_vm0, %v587_v51  ;;  %v472_v54 = vadd.f32 %v913_v42, %v471_v52  ;;  %v536_v55 = vadd.f32 %v913_v42, %v535_v53 }
 0x116   : > { %v473_v56 = vpop.f32.mrf.mxu0  ;;  %v537_v57 = vpop.f32.mrf.mxu1 }
 0x117   : > { %v572_v58 = vmax.f32 %v472_v54, 0.0  ;;  %v588_v59 = vmax.f32 %v536_v55, 0.0 }
 0x118   : > { %v476_v60 = vpop.f32.mrf.mxu0  ;;  %v540_v61 = vpop.f32.mrf.mxu1 }
 0x119   : > { %604 = vst.msk [vmem:[%s921_s17 + $0x48] sm:$0xff] %vm353_vm0, %v572_v58  ;;  %620 = vst.msk [vmem:[%s921_s17 + $0xc8] sm:$0xff] %vm353_vm0, %v588_v59  ;;  %v477_v62 = vadd.f32 %v913_v42, %v476_v60  ;;  %v541_v63 = vadd.f32 %v913_v42, %v540_v61 }
 0x11a   : > { %v478_v0 = vpop.f32.mrf.mxu0  ;;  %v542_v1 = vpop.f32.mrf.mxu1 }
 0x11b   : > { %v573_v2 = vmax.f32 %v477_v62, 0.0  ;;  %v589_v3 = vmax.f32 %v541_v63, 0.0 }
 0x11c   : > { %v479_v4 = vpop.f32.mrf.mxu0  ;;  %v543_v5 = vpop.f32.mrf.mxu1 }
 0x11d   : > { %605 = vst.msk [vmem:[%s921_s17 + $0x50] sm:$0xff] %vm353_vm0, %v573_v2  ;;  %621 = vst.msk [vmem:[%s921_s17 + $0xd0] sm:$0xff] %vm353_vm0, %v589_v3  ;;  %v480_v6 = vadd.f32 %v913_v42, %v479_v4  ;;  %v544_v7 = vadd.f32 %v913_v42, %v543_v5 }
 0x11e   : > { %v481_v8 = vpop.f32.mrf.mxu0  ;;  %v545_v9 = vpop.f32.mrf.mxu1 }
 0x11f   : > { %v574_v10 = vmax.f32 %v480_v6, 0.0  ;;  %v590_v11 = vmax.f32 %v544_v7, 0.0 }
 0x120   : > { %v484_v12 = vpop.f32.mrf.mxu0  ;;  %v548_v13 = vpop.f32.mrf.mxu1 }
 0x121   : > { %606 = vst.msk [vmem:[%s921_s17 + $0x58] sm:$0xff] %vm353_vm0, %v574_v10  ;;  %622 = vst.msk [vmem:[%s921_s17 + $0xd8] sm:$0xff] %vm353_vm0, %v590_v11  ;;  %v485_v14 = vadd.f32 %v913_v42, %v484_v12  ;;  %v549_v15 = vadd.f32 %v913_v42, %v548_v13 }
 0x122   : > { %v486_v16 = vpop.f32.mrf.mxu0  ;;  %v550_v17 = vpop.f32.mrf.mxu1 }
 0x123   : > { %v575_v18 = vmax.f32 %v485_v14, 0.0  ;;  %v591_v19 = vmax.f32 %v549_v15, 0.0 }
 0x124   : > { %v487_v20 = vpop.f32.mrf.mxu0  ;;  %v551_v21 = vpop.f32.mrf.mxu1 }
 0x125   : > { %607 = vst.msk [vmem:[%s921_s17 + $0x60] sm:$0xff] %vm353_vm0, %v575_v18  ;;  %623 = vst.msk [vmem:[%s921_s17 + $0xe0] sm:$0xff] %vm353_vm0, %v591_v19  ;;  %v488_v22 = vadd.f32 %v913_v42, %v487_v20  ;;  %v552_v23 = vadd.f32 %v913_v42, %v551_v21 }
 0x126   : > { %v489_v24 = vpop.f32.mrf.mxu0  ;;  %v553_v25 = vpop.f32.mrf.mxu1 }
 0x127   : > { %v576_v26 = vmax.f32 %v488_v22, 0.0  ;;  %v592_v27 = vmax.f32 %v552_v23, 0.0 }
 0x128   : > { %v492_v28 = vpop.f32.mrf.mxu0  ;;  %v556_v29 = vpop.f32.mrf.mxu1 }
 0x129   : > { %608 = vst.msk [vmem:[%s921_s17 + $0x68] sm:$0xff] %vm353_vm0, %v576_v26  ;;  %624 = vst.msk [vmem:[%s921_s17 + $0xe8] sm:$0xff] %vm353_vm0, %v592_v27  ;;  %v493_v30 = vadd.f32 %v913_v42, %v492_v28  ;;  %v557_v31 = vadd.f32 %v913_v42, %v556_v29 }
 0x12a   : > { %v494_v32 = vpop.f32.mrf.mxu0  ;;  %v558_v33 = vpop.f32.mrf.mxu1 }
 0x12b   : > { %v577_v34 = vmax.f32 %v493_v30, 0.0  ;;  %v593_v35 = vmax.f32 %v557_v31, 0.0 }
 0x12c   : > { %v495_v36 = vpop.f32.mrf.mxu0  ;;  %v559_v37 = vpop.f32.mrf.mxu1 }
 0x12d   : > { %609 = vst.msk [vmem:[%s921_s17 + $0x70] sm:$0xff] %vm353_vm0, %v577_v34  ;;  %625 = vst.msk [vmem:[%s921_s17 + $0xf0] sm:$0xff] %vm353_vm0, %v593_v35  ;;  %v496_v38 = vadd.f32 %v913_v42, %v495_v36  ;;  %v560_v39 = vadd.f32 %v913_v42, %v559_v37 }
 0x12e   : > { %v497_v40 = vpop.f32.mrf.mxu0  ;;  %v561_v41 = vpop.f32.mrf.mxu1 }
 0x12f   : > { %v578_v43 = vmax.f32 %v496_v38, 0.0  ;;  %v594_v44 = vmax.f32 %v560_v39, 0.0 }
 0x131   : > { %610 = vst.msk [vmem:[%s921_s17 + $0x78] sm:$0xff] %vm353_vm0, %v578_v43  ;;  %626 = vst.msk [vmem:[%s921_s17 + $0xf8] sm:$0xff] %vm353_vm0, %v594_v44 }
 0x132 PF: > { %s13_s12 = sadd.s32 1, %s764_s12  }
 0x133   : > { %p10_p4 = scmp.ge.s32.totalorder %s13_s12, 4  }
 0x135   :  { %12 = sbr.rel (!%p10_p4) target bundleno = 1 (0x1), region = 62 }

// kernel: vit_forward.8
= control target key start
LH: loop header
LB: loop body
LE: loop exit
PB: predicated region body
PF: predicated region fallthrough
CT: control target
= control target key end

     0   :  { %v347_v0 = vmov 0   ;;  %vm142_vm0 = vcmask 130048   ;;  %vm280_vm1 = vcmask 261120   ;;  %s584_s1 = inlined_call_operand.vmem [shape: bf16[144,32], index: 1, kind: input, shape index: {}]   ;;  %s585_s0 = inlined_call_operand.vmem [shape: f32[128,144], index: 0, kind: input, shape index: {}]   ;;  %s586_s2 = inlined_call_operand.vmem [shape: f32[1,32], index: 2, kind: input, shape index: {}]   ;;  %s587_s3 = inlined_call_operand.vmem [shape: f32[128,32], index: 3, kind: output, shape index: {}]  }
   0x1   :  { %167 = vmatprep.subr.bf16.mxu0 %v347_v0  ;;  %319 = vmatprep.subr.bf16.mxu1 %v347_v0  ;;  %v338_v1 = vld [vmem:[%s584_s1 + $0x38] sm:$0xff]   ;;  %v339_v2 = vld [vmem:[%s584_s1 + $0x30] sm:$0xff]   ;;  %v340_v3 = vld [vmem:[%s584_s1 + $0x28] sm:$0xff]  }
   0x2   :  { %168 = vmatpush1.bf16.msra.mxu0 %v338_v1  ;;  %328 = vmatpush1.bf16.msra.mxu1 %v338_v1  ;;  %v16_v4 = vld [vmem:[%s585_s0 + $0x8] sm:$0xff]  ;;  %v18_v5 = vld [vmem:[%s585_s0 + $0x18] sm:$0xff]  ;;  %v341_v7 = vld [vmem:[%s584_s1 + $0x20] sm:$0xff]  }
   0x3   :  { %169 = vmatprep.subr.bf16.mxu0 %v347_v0  ;;  %320 = vmatprep.subr.bf16.mxu1 %v347_v0  ;;  %v32_v6 = vld [vmem:[%s585_s0 + $0x88] sm:$0xff]  ;;  %v48_v8 = vpack.c.bf16 %v18_v5, %v16_v4  ;;  %v34_v9 = vld [vmem:[%s585_s0 + $0x98] sm:$0xff]  ;;  %v343_v12 = vld [vmem:[%s584_s1 + $0x10] sm:$0xff]  }
   0x4   :  { %v56_v10 = vpack.c.bf16 %v34_v9, %v32_v6  ;;  %v342_v11 = vld [vmem:[%s584_s1 + $0x18] sm:$0xff]   ;;  %v344_v13 = vld [vmem:[%s584_s1 + $0x8] sm:$0xff]   ;;  %v345_v14 = vld [vmem:[%s584_s1] sm:$0xff]  }
   0x5   :  { %311 = vmatprep.mubr.msk.bf16.mxu0 %vm142_vm0, %v48_v8  ;;  %v346_v15 = vld [vmem:[%s584_s1 + $0x40] sm:$0xff]   ;;  %v17_v17 = vld [vmem:[%s585_s0 + $0x10] sm:$0xff]  ;;  %v20_v20 = vld [vmem:[%s585_s0 + $0x28] sm:$0xff] }
   0x6   :  { %170 = vmatpush1.bf16.msra.mxu0 %v339_v2  ;;  %329 = vmatpush1.bf16.msra.mxu1 %v339_v2  ;;  %v15_v16 = vld [vmem:[%s585_s0] sm:$0xff]  ;;  %v33_v19 = vld [vmem:[%s585_s0 + $0x90] sm:$0xff]  ;;  %v22_v21 = vld [vmem:[%s585_s0 + $0x38] sm:$0xff] }
   0x7   :  { %171 = vmatprep.subr.bf16.mxu0 %v347_v0  ;;  %321 = vmatprep.subr.bf16.mxu1 %v347_v0  ;;  %v31_v18 = vld [vmem:[%s585_s0 + $0x80] sm:$0xff]  ;;  %v36_v22 = vld [vmem:[%s585_s0 + $0xa8] sm:$0xff]  ;;  %v38_v23 = vld [vmem:[%s585_s0 + $0xb8] sm:$0xff]  ;;  %v47_v24 = vpack.c.bf16 %v17_v17, %v15_v16  ;;  %v50_v26 = vpack.c.bf16 %v22_v21, %v20_v20 }
   0x8   :  { %315 = vmatprep.mubr.msk.bf16.mxu1 %vm142_vm0, %v56_v10  ;;  %v55_v25 = vpack.c.bf16 %v33_v19, %v31_v18  ;;  %v58_v27 = vpack.c.bf16 %v38_v23, %v36_v22  ;;  %v19_v28 = vld [vmem:[%s585_s0 + $0x20] sm:$0xff]  ;;  %v21_v29 = vld [vmem:[%s585_s0 + $0x30] sm:$0xff]  ;;  %v24_v32 = vld [vmem:[%s585_s0 + $0x48] sm:$0xff] }
   0x9   :  { %v35_v30 = vld [vmem:[%s585_s0 + $0xa0] sm:$0xff]  ;;  %v37_v31 = vld [vmem:[%s585_s0 + $0xb0] sm:$0xff]  ;;  %v26_v33 = vld [vmem:[%s585_s0 + $0x58] sm:$0xff]  ;;  %v49_v36 = vpack.c.bf16 %v21_v29, %v19_v28 }
   0xa   :  { %172 = vmatpush1.bf16.msra.mxu0 %v340_v3  ;;  %330 = vmatpush1.bf16.msra.mxu1 %v340_v3  ;;  %v40_v34 = vld [vmem:[%s585_s0 + $0xc8] sm:$0xff]  ;;  %v42_v35 = vld [vmem:[%s585_s0 + $0xd8] sm:$0xff]  ;;  %v57_v37 = vpack.c.bf16 %v37_v31, %v35_v30  ;;  %v52_v38 = vpack.c.bf16 %v26_v33, %v24_v32  ;;  %v23_v40 = vld [vmem:[%s585_s0 + $0x40] sm:$0xff] }
   0xb   :  { %173 = vmatprep.subr.bf16.mxu0 %v347_v0  ;;  %322 = vmatprep.subr.bf16.mxu1 %v347_v0  ;;  %v60_v39 = vpack.c.bf16 %v42_v35, %v40_v34  ;;  %v25_v41 = vld [vmem:[%s585_s0 + $0x50] sm:$0xff]  ;;  %v39_v42 = vld [vmem:[%s585_s0 + $0xc0] sm:$0xff]  ;;  %v28_v44 = vld [vmem:[%s585_s0 + $0x68] sm:$0xff] }
   0xc   :  { %v41_v43 = vld [vmem:[%s585_s0 + $0xd0] sm:$0xff]  ;;  %v30_v45 = vld [vmem:[%s585_s0 + $0x78] sm:$0xff]  ;;  %v44_v46 = vld [vmem:[%s585_s0 + $0xe8] sm:$0xff]  ;;  %v51_v48 = vpack.c.bf16 %v25_v41, %v23_v40 }
   0xd   :  { %v46_v47 = vld [vmem:[%s585_s0 + $0xf8] sm:$0xff]  ;;  %v59_v49 = vpack.c.bf16 %v41_v43, %v39_v42  ;;  %v54_v50 = vpack.c.bf16 %v30_v45, %v28_v44  ;;  %v27_v52 = vld [vmem:[%s585_s0 + $0x60] sm:$0xff]  ;;  %v29_v53 = vld [vmem:[%s585_s0 + $0x70] sm:$0xff] }
   0xe   :  { %174 = vmatpush1.bf16.msra.mxu0 %v341_v7  ;;  %331 = vmatpush1.bf16.msra.mxu1 %v341_v7  ;;  %v62_v51 = vpack.c.bf16 %v46_v47, %v44_v46  ;;  %v43_v54 = vld [vmem:[%s585_s0 + $0xe0] sm:$0xff]  ;;  %v45_v55 = vld [vmem:[%s585_s0 + $0xf0] sm:$0xff]  ;;  %v53_v56 = vpack.c.bf16 %v29_v53, %v27_v52 }
   0xf   :  { %175 = vmatprep.subr.bf16.mxu0 %v347_v0  ;;  %323 = vmatprep.subr.bf16.mxu1 %v347_v0  ;;  %v61_v57 = vpack.c.bf16 %v45_v55, %v43_v54  ;;  %v502_v58 = vld [vmem:[%s586_s2] ss:$0 sm:$0xff] }
  0x12   :  { %176 = vmatpush1.bf16.msra.mxu0 %v342_v11  ;;  %332 = vmatpush1.bf16.msra.mxu1 %v342_v11 }
  0x13   :  { %177 = vmatprep.subr.bf16.mxu0 %v347_v0  ;;  %324 = vmatprep.subr.bf16.mxu1 %v347_v0 }
  0x16   :  { %178 = vmatpush1.bf16.msra.mxu0 %v343_v12  ;;  %333 = vmatpush1.bf16.msra.mxu1 %v343_v12 }
  0x17   :  { %179 = vmatprep.subr.bf16.mxu0 %v347_v0  ;;  %325 = vmatprep.subr.bf16.mxu1 %v347_v0 }
  0x1a   :  { %180 = vmatpush1.bf16.msra.mxu0 %v344_v13  ;;  %334 = vmatpush1.bf16.msra.mxu1 %v344_v13 }
  0x1b   :  { %181 = vmatprep.subr.bf16.mxu0 %v347_v0  ;;  %326 = vmatprep.subr.bf16.mxu1 %v347_v0 }
  0x1e   :  { %182 = vmatpush1.bf16.msra.mxu0 %v345_v14  ;;  %335 = vmatpush1.bf16.msra.mxu1 %v345_v14 }
  0x1f   :  { %197 = vmatprep.subr.bf16.mxu0 %v347_v0  ;;  %327 = vmatprep.subr.bf16.mxu1 %v347_v0 }
  0x22   :  { %198 = vmatpush2.bf16.msra.mxu0 %v346_v15  ;;  %336 = vmatpush2.bf16.msra.mxu1 %v346_v15 }
  0x25   :  { %200 = vmatmul.mubr.bf16.vlgmr.msra.gmra.mxu0 %v47_v24  ;;  %232 = vmatmul.mubr.bf16.vlgmr.msra.gmra.mxu1 %v55_v25 }
  0x26   :  { %312 = vmatprep.mubr.msk.bf16.mxu0 %vm142_vm0, %v50_v26  ;;  %316 = vmatprep.mubr.msk.bf16.mxu1 %vm142_vm0, %v58_v27 }
  0x2d   :  { %208 = vmatmul.mubr.bf16.gmra.mxu0 %v49_v36  ;;  %240 = vmatmul.mubr.bf16.gmra.mxu1 %v57_v37 }
  0x2e   :  { %313 = vmatprep.mubr.msk.bf16.mxu0 %vm142_vm0, %v52_v38  ;;  %317 = vmatprep.mubr.msk.bf16.mxu1 %vm142_vm0, %v60_v39 }
  0x35   :  { %216 = vmatmul.mubr.bf16.gmra.mxu0 %v51_v48  ;;  %248 = vmatmul.mubr.bf16.gmra.mxu1 %v59_v49 }
  0x36   :  { %314 = vmatprep.mubr.msk.bf16.mxu0 %vm142_vm0, %v54_v50  ;;  %318 = vmatprep.mubr.msk.bf16.mxu1 %vm142_vm0, %v62_v51 }
  0x3d   :  { %224 = vmatmul.mubr.bf16.gmra.mxu0 %v53_v56  ;;  %256 = vmatmul.mubr.bf16.gmra.mxu1 %v61_v57 }
  0xe5   :  { %v201_v59 = vpop.f32.mrf.mxu0  ;;  %v233_v60 = vpop.f32.mrf.mxu1 }
  0xe6   :  { %v202_v61 = vadd.f32 %v502_v58, %v201_v59  ;;  %v234_v62 = vadd.f32 %v502_v58, %v233_v60 }
  0xe7   :  { %v203_v63 = vpop.f32.mrf.mxu0  ;;  %v235_v0 = vpop.f32.mrf.mxu1 }
  0xe8   :  { %v264_v1 = vmax.f32 %v202_v61, 0.0  ;;  %v272_v2 = vmax.f32 %v234_v62, 0.0 }
  0xe9   :  { %v204_v3 = vpop.f32.mrf.mxu0  ;;  %v236_v4 = vpop.f32.mrf.mxu1 }
  0xea   :  { %281 = vst.msk [vmem:[%s587_s3] sm:$0xff] %vm280_vm1, %v264_v1  ;;  %289 = vst.msk [vmem:[%s587_s3 + $0x40] sm:$0xff] %vm280_vm1, %v272_v2  ;;  %v205_v5 = vadd.f32 %v502_v58, %v204_v3  ;;  %v237_v6 = vadd.f32 %v502_v58, %v236_v4 }
  0xeb   :  { %v206_v7 = vpop.f32.mrf.mxu0  ;;  %v238_v8 = vpop.f32.mrf.mxu1 }
  0xec   :  { %v265_v9 = vmax.f32 %v205_v5, 0.0  ;;  %v273_v10 = vmax.f32 %v237_v6, 0.0 }
  0xed   :  { %v209_v11 = vpop.f32.mrf.mxu0  ;;  %v241_v12 = vpop.f32.mrf.mxu1 }
  0xee   :  { %282 = vst.msk [vmem:[%s587_s3 + $0x8] sm:$0xff] %vm280_vm1, %v265_v9  ;;  %290 = vst.msk [vmem:[%s587_s3 + $0x48] sm:$0xff] %vm280_vm1, %v273_v10  ;;  %v210_v13 = vadd.f32 %v502_v58, %v209_v11  ;;  %v242_v14 = vadd.f32 %v502_v58, %v241_v12 }
  0xef   :  { %v211_v15 = vpop.f32.mrf.mxu0  ;;  %v243_v16 = vpop.f32.mrf.mxu1 }
  0xf0   :  { %v266_v17 = vmax.f32 %v210_v13, 0.0  ;;  %v274_v18 = vmax.f32 %v242_v14, 0.0 }
  0xf1   :  { %v212_v19 = vpop.f32.mrf.mxu0  ;;  %v244_v20 = vpop.f32.mrf.mxu1 }
  0xf2   :  { %283 = vst.msk [vmem:[%s587_s3 + $0x10] sm:$0xff] %vm280_vm1, %v266_v17  ;;  %291 = vst.msk [vmem:[%s587_s3 + $0x50] sm:$0xff] %vm280_vm1, %v274_v18  ;;  %v213_v21 = vadd.f32 %v502_v58, %v212_v19  ;;  %v245_v22 = vadd.f32 %v502_v58, %v244_v20 }
  0xf3   :  { %v214_v23 = vpop.f32.mrf.mxu0  ;;  %v246_v24 = vpop.f32.mrf.mxu1 }
  0xf4   :  { %v267_v25 = vmax.f32 %v213_v21, 0.0  ;;  %v275_v26 = vmax.f32 %v245_v22, 0.0 }
  0xf5   :  { %v217_v27 = vpop.f32.mrf.mxu0  ;;  %v249_v28 = vpop.f32.mrf.mxu1 }
  0xf6   :  { %284 = vst.msk [vmem:[%s587_s3 + $0x18] sm:$0xff] %vm280_vm1, %v267_v25  ;;  %292 = vst.msk [vmem:[%s587_s3 + $0x58] sm:$0xff] %vm280_vm1, %v275_v26  ;;  %v218_v29 = vadd.f32 %v502_v58, %v217_v27  ;;  %v250_v30 = vadd.f32 %v502_v58, %v249_v28 }
  0xf7   :  { %v219_v31 = vpop.f32.mrf.mxu0  ;;  %v251_v32 = vpop.f32.mrf.mxu1 }
  0xf8   :  { %v268_v33 = vmax.f32 %v218_v29, 0.0  ;;  %v276_v34 = vmax.f32 %v250_v30, 0.0 }
  0xf9   :  { %v220_v35 = vpop.f32.mrf.mxu0  ;;  %v252_v36 = vpop.f32.mrf.mxu1 }
  0xfa   :  { %285 = vst.msk [vmem:[%s587_s3 + $0x20] sm:$0xff] %vm280_vm1, %v268_v33  ;;  %293 = vst.msk [vmem:[%s587_s3 + $0x60] sm:$0xff] %vm280_vm1, %v276_v34  ;;  %v221_v37 = vadd.f32 %v502_v58, %v220_v35  ;;  %v253_v38 = vadd.f32 %v502_v58, %v252_v36 }
  0xfb   :  { %v222_v39 = vpop.f32.mrf.mxu0  ;;  %v254_v40 = vpop.f32.mrf.mxu1 }
  0xfc   :  { %v269_v41 = vmax.f32 %v221_v37, 0.0  ;;  %v277_v42 = vmax.f32 %v253_v38, 0.0 }
  0xfd   :  { %v225_v43 = vpop.f32.mrf.mxu0  ;;  %v257_v44 = vpop.f32.mrf.mxu1 }
  0xfe   :  { %286 = vst.msk [vmem:[%s587_s3 + $0x28] sm:$0xff] %vm280_vm1, %v269_v41  ;;  %294 = vst.msk [vmem:[%s587_s3 + $0x68] sm:$0xff] %vm280_vm1, %v277_v42  ;;  %v226_v45 = vadd.f32 %v502_v58, %v225_v43  ;;  %v258_v46 = vadd.f32 %v502_v58, %v257_v44 }
  0xff   :  { %v227_v47 = vpop.f32.mrf.mxu0  ;;  %v259_v48 = vpop.f32.mrf.mxu1 }
 0x100   :  { %v270_v49 = vmax.f32 %v226_v45, 0.0  ;;  %v278_v50 = vmax.f32 %v258_v46, 0.0 }
 0x101   :  { %v228_v51 = vpop.f32.mrf.mxu0  ;;  %v260_v52 = vpop.f32.mrf.mxu1 }
 0x102   :  { %287 = vst.msk [vmem:[%s587_s3 + $0x30] sm:$0xff] %vm280_vm1, %v270_v49  ;;  %295 = vst.msk [vmem:[%s587_s3 + $0x70] sm:$0xff] %vm280_vm1, %v278_v50  ;;  %v229_v53 = vadd.f32 %v502_v58, %v228_v51  ;;  %v261_v54 = vadd.f32 %v502_v58, %v260_v52 }
 0x103   :  { %v230_v55 = vpop.f32.mrf.mxu0  ;;  %v262_v56 = vpop.f32.mrf.mxu1 }
 0x104   :  { %v271_v57 = vmax.f32 %v229_v53, 0.0  ;;  %v279_v59 = vmax.f32 %v261_v54, 0.0 }
 0x106   :  { %288 = vst.msk [vmem:[%s587_s3 + $0x38] sm:$0xff] %vm280_vm1, %v271_v57  ;;  %296 = vst.msk [vmem:[%s587_s3 + $0x78] sm:$0xff] %vm280_vm1, %v279_v59 }

// kernel: vit_forward.9
= control target key start
LH: loop header
LB: loop body
LE: loop exit
PB: predicated region body
PF: predicated region fallthrough
CT: control target
= control target key end

     0   :  { %vm184_vm0 = vcmask 261120   ;;  %s511_s1 = inlined_call_operand.vmem [shape: bf16[288,32], index: 1, kind: input, shape index: {}]   ;;  %s512_s0 = inlined_call_operand.vmem [shape: f32[32,288], index: 0, kind: input, shape index: {}]   ;;  %s513_s2 = inlined_call_operand.vmem [shape: f32[1,32], index: 2, kind: input, shape index: {}]   ;;  %s514_s3 = inlined_call_operand.vmem [shape: f32[32,32], index: 3, kind: output, shape index: {}]  }
   0x1   :  { %v362_v0 = vld [vmem:[%s511_s1 + $0x78] sm:$0xff]   ;;  %v364_v2 = vld [vmem:[%s511_s1 + $0x70] sm:$0xff]   ;;  %v366_v4 = vld [vmem:[%s511_s1 + $0x68] sm:$0xff]  }
   0x2   :  { %v363_v1 = vld [vmem:[%s511_s1 + $0x38] sm:$0xff]   ;;  %322 = vmatprep.subr.bf16.mxu0 %v362_v0  ;;  %v365_v3 = vld [vmem:[%s511_s1 + $0x30] sm:$0xff]   ;;  %v367_v5 = vld [vmem:[%s511_s1 + $0x28] sm:$0xff]  }
   0x3   :  { %323 = vmatpush3.bf16.msra.mxu0 %v363_v1  ;;  %v368_v6 = vld [vmem:[%s511_s1 + $0x60] sm:$0xff]   ;;  %v370_v8 = vld [vmem:[%s511_s1 + $0x58] sm:$0xff]   ;;  %v377_v10 = vld [vmem:[%s511_s1 + $0x88] sm:$0xff]  }
   0x4   :  { %324 = vmatprep.subr.bf16.mxu0 %v364_v2  ;;  %v369_v7 = vld [vmem:[%s511_s1 + $0x20] sm:$0xff]   ;;  %v371_v9 = vld [vmem:[%s511_s1 + $0x18] sm:$0xff]   ;;  %v372_v11 = vld [vmem:[%s511_s1 + $0x50] sm:$0xff]   ;;  %354 = vmatprep.subr.bf16.mxu1 %v377_v10 }
   0x5   :  { %v16_v12 = vld [vmem:[%s512_s0 + $0x8] sm:$0xff]  ;;  %v19_v13 = vld [vmem:[%s512_s0 + $0x20] sm:$0xff]  ;;  %v373_v14 = vld [vmem:[%s511_s1 + $0x10] sm:$0xff]   ;;  %355 = vmatpush3.bf16.msra.mxu1 %v377_v10 }
   0x6   :  { %v28_v15 = vpack.c.bf16 %v19_v13, %v16_v12  ;;  %v379_v16 = vld [vmem:[%s511_s1 + $0x80] sm:$0xff]   ;;  %v17_v17 = vld [vmem:[%s512_s0 + $0x10] sm:$0xff]  ;;  %v20_v18 = vld [vmem:[%s512_s0 + $0x28] sm:$0xff] }
   0x7   :  { %325 = vmatpush3.bf16.msra.mxu0 %v365_v3  ;;  %v374_v19 = vld [vmem:[%s511_s1 + $0x48] sm:$0xff]   ;;  %v29_v20 = vpack.c.bf16 %v20_v18, %v17_v17  ;;  %v23_v21 = vld [vmem:[%s512_s0 + $0x40] sm:$0xff]  ;;  %v26_v22 = vld [vmem:[%s512_s0 + $0x58] sm:$0xff]  ;;  %356 = vmatprep.subr.bf16.mxu1 %v379_v16 }
   0x8   :  { %326 = vmatprep.subr.bf16.mxu0 %v366_v4  ;;  %223 = vmatprep.mubr.bf16.mxu0 %v28_v15  ;;  %v32_v23 = vpack.c.bf16 %v26_v22, %v23_v21  ;;  %v375_v24 = vld [vmem:[%s511_s1 + $0x8] sm:$0xff]   ;;  %v376_v25 = vld [vmem:[%s511_s1 + $0x40] sm:$0xff]   ;;  %v18_v28 = vld [vmem:[%s512_s0 + $0x18] sm:$0xff] }
   0x9   :  { %357 = vmatpush3.bf16.msra.mxu1 %v379_v16  ;;  %358 = vmatprep.mubr.msk.bf16.mxu1 %vm184_vm0, %v29_v20  ;;  %v378_v26 = vld [vmem:[%s511_s1] sm:$0xff]   ;;  %v22_v29 = vld [vmem:[%s512_s0 + $0x38] sm:$0xff]  ;;  %v25_v30 = vld [vmem:[%s512_s0 + $0x50] sm:$0xff] }
   0xa   :  { %v15_v27 = vld [vmem:[%s512_s0] sm:$0xff]  ;;  %v31_v32 = vpack.c.bf16 %v25_v30, %v22_v29  ;;  %v21_v33 = vld [vmem:[%s512_s0 + $0x30] sm:$0xff]  ;;  %v24_v34 = vld [vmem:[%s512_s0 + $0x48] sm:$0xff] }
   0xb   :  { %327 = vmatpush3.bf16.msra.mxu0 %v367_v5  ;;  %v27_v31 = vpack.c.bf16 %v18_v28, %v15_v27  ;;  %v30_v35 = vpack.c.bf16 %v24_v34, %v21_v33  ;;  %v301_v40 = vld [vmem:[%s513_s2] ss:$0 sm:$0xff] }
   0xc   :  { %328 = vmatprep.subr.bf16.mxu0 %v368_v6  ;;  %359 = vmatmul.mubr.msk.bf16.vlgmr.msra.gmra.mxu1 %vm184_vm0, %v32_v23 }
   0xf   :  { %329 = vmatpush3.bf16.msra.mxu0 %v369_v7 }
  0x10   :  { %330 = vmatprep.subr.bf16.mxu0 %v370_v8 }
  0x13   :  { %331 = vmatpush3.bf16.msra.mxu0 %v371_v9 }
  0x14   :  { %332 = vmatprep.subr.bf16.mxu0 %v372_v11 }
  0x17   :  { %333 = vmatpush3.bf16.msra.mxu0 %v373_v14 }
  0x18   :  { %334 = vmatprep.subr.bf16.mxu0 %v374_v19 }
  0x1b   :  { %335 = vmatpush3.bf16.msra.mxu0 %v375_v24 }
  0x1c   :  { %336 = vmatprep.subr.bf16.mxu0 %v376_v25 }
  0x1f   :  { %337 = vmatpush3.bf16.msra.mxu0 %v378_v26 }
  0x22   :  { %224 = vmatmul.mubr.bf16.vlgmr.msra.gmra.mxu0 %v27_v31 }
  0x23   :  { %231 = vmatprep.mubr.bf16.mxu0 %v31_v32 }
  0x2a   :  { %232 = vmatmul.mubr.bf16.gmra.mxu0 %v30_v35 }
  0xcc   :  { %v360_v36 = vpop.f32.mrf.mxu1 }
  0xce   :  { %v274_v38 = vpop.f32.mrf.mxu1 }
  0xd0   :  { %v361_v43 = vpop.f32.mrf.mxu1 }
  0xd2   :  { %v277_v49 = vpop.f32.mrf.mxu1 }
  0xe2   :  { %v338_v37 = vpop.f32.mrf.mxu0 }
  0xe4   :  { %v339_v39 = vpop.f32.mrf.mxu0 }
  0xe5   :  { %v340_v41 = vadd.f32 %v339_v39, %v338_v37 }
  0xe6   :  { %v341_v42 = vpop.f32.mrf.mxu0 }
  0xe7   :  { %v226_v44 = vadd.f32 %v340_v41, %v301_v40 }
  0xe8   :  { %v342_v45 = vpop.f32.mrf.mxu0 }
  0xe9   :  { %v343_v46 = vadd.f32 %v342_v45, %v341_v42  ;;  %v275_v47 = vadd.f32 %v274_v38, %v226_v44 }
  0xea   :  { %v344_v48 = vpop.f32.mrf.mxu0 }
  0xeb   :  { %v289_v50 = vmax.f32 %v275_v47, 0.0  ;;  %v229_v51 = vadd.f32 %v343_v46, %v301_v40 }
  0xec   :  { %v345_v52 = vpop.f32.mrf.mxu0 }
  0xed   :  { %293 = vst.msk [vmem:[%s514_s3] sm:$0xff] %vm184_vm0, %v289_v50  ;;  %v346_v53 = vadd.f32 %v345_v52, %v344_v48  ;;  %v278_v54 = vadd.f32 %v277_v49, %v229_v51 }
  0xee   :  { %v347_v55 = vpop.f32.mrf.mxu0 }
  0xef   :  { %v234_v56 = vadd.f32 %v346_v53, %v301_v40  ;;  %v290_v57 = vmax.f32 %v278_v54, 0.0 }
  0xf0   :  { %v348_v58 = vpop.f32.mrf.mxu0 }
  0xf1   :  { %v283_v59 = vadd.f32 %v360_v36, %v234_v56  ;;  %294 = vst.msk [vmem:[%s514_s3 + $0x8] sm:$0xff] %vm184_vm0, %v290_v57  ;;  %v349_v60 = vadd.f32 %v348_v58, %v347_v55 }
  0xf3   :  { %v291_v61 = vmax.f32 %v283_v59, 0.0  ;;  %v237_v62 = vadd.f32 %v349_v60, %v301_v40 }
  0xf5   :  { %295 = vst.msk [vmem:[%s514_s3 + $0x10] sm:$0xff] %vm184_vm0, %v291_v61  ;;  %v286_v63 = vadd.f32 %v361_v43, %v237_v62 }
  0xf7   :  { %v292_v0 = vmax.f32 %v286_v63, 0.0 }
  0xf9   :  { %296 = vst.msk [vmem:[%s514_s3 + $0x18] sm:$0xff] %vm184_vm0, %v292_v0 }

// kernel: vit_forward.10
= control target key start
LH: loop header
LB: loop body
LE: loop exit
PB: predicated region body
PF: predicated region fallthrough
CT: control target
= control target key end

     0   :  { %v5227_v0 = vmov 0.0   ;;  %vm5228_vm0 = vmmov 0   ;;  %vm73_vm1 = vcmask 261120   ;;  %vm120_vm2 = vcmask 1040384   ;;  %s6184_s1 = inlined_call_operand.vmem [shape: bf16[32,32], index: 1, kind: input, shape index: {}]   ;;  %s6185_s0 = inlined_call_operand.vmem [shape: f32[2,16,32], index: 0, kind: input, shape index: {}]   ;;  %s6186_s2 = inlined_call_operand.vmem [shape: f32[17,32], index: 2, kind: input, shape index: {}]   ;;  %s6187_s5 = inlined_call_operand.vmem [shape: bf16[4,32,8], index: 5, kind: input, shape index: {}]   ;;  %s6188_s6 = inlined_call_operand.vmem [shape: bf16[4,32,8], index: 6, kind: input, shape index: {}]   ;;  %s6189_s7 = inlined_call_operand.vmem [shape: bf16[4,32,8], index: 7, kind: input, shape index: {}]   ;;  %s6190_s3 = inlined_call_operand.vmem [shape: f32[1,32], index: 3, kind: input, shape index: {}]   ;;  %s6191_s4 = inlined_call_operand.vmem [shape: f32[1,32], index: 4, kind: input, shape index: {}]   ;;  %s6192_s8 = inlined_call_operand.vmem [shape: bf16[4,8,32], index: 8, kind: input, shape index: {}]   ;;  %s6193_s9 = inlined_call_operand.vmem [shape: f32[1,32], index: 9, kind: input, shape index: {}]   ;;  %s6194_s12 = inlined_call_operand.vmem [shape: bf16[32,64], index: 12, kind: input, shape index: {}]   ;;  %s6195_s14 = inlined_call_operand.vmem [shape: bf16[64,32], index: 14, kind: input, shape index: {}]   ;;  %s6196_s10 = inlined_call_operand.vmem [shape: f32[1,32], index: 10, kind: input, shape index: {}]   ;;  %s6197_s11 = inlined_call_operand.vmem [shape: f32[1,32], index: 11, kind: input, shape index: {}]   ;;  %s6198_s13 = inlined_call_operand.vmem [shape: f32[1,64], index: 13, kind: input, shape index: {}]   ;;  %s6199_s15 = inlined_call_operand.vmem [shape: f32[1,32], index: 15, kind: input, shape index: {}]   ;;  %s6200_s16 = inlined_call_operand.vmem [shape: f32[2,17,32], index: 16, kind: output, shape index: {}]  }
   0x1   :  { %6202 = sst [smem:[#allocation2_spill]] %s6184_s1  ;;  %4592 = vmatprep.subr.bf16.mxu1 %v5227_v0  ;;  %4596 = vmatprep.mubr.msk.bf16.mxu1 %vm5228_vm0, %v5227_v0  ;;  %v54_v3 = vld [vmem:[%s6185_s0] sm:$0xff]  ;;  %v55_v4 = vld [vmem:[%s6185_s0 + $0x8] sm:$0xff]  ;;  %v130_v13 = vld [vmem:[%s6186_s2 + $0x10] sm:$0x1]  ;;  %vm142_vm3 = vcmask 253952  }
   0x2   :  { %s6203_s23 = sld [smem:[#allocation2_spill]]  ;;  %v56_v5 = vpack.c.bf16 %v55_v4, %v54_v3  ;;  %v128_v8 = vld [vmem:[%s6186_s2] sm:$0xff]  ;;  %v129_v15 = vld [vmem:[%s6186_s2 + $0x8] sm:$0xff]  ;;  %v5046_v39 = vld [vmem:[%s6187_s5 + $0x18] sm:$0xff]   ;;  %vm987_vm4 = vcmask 64512   ;;  %vm1235_vm5 = vcmask 131072  }
   0x3   :  { %v5045_v38 = vld [vmem:[%s6187_s5 + $0x8] sm:$0xff]   ;;  %4608 = vmatprep.subr.bf16.mxu0 %v5046_v39  ;;  %v5047_v40 = vld [vmem:[%s6187_s5] sm:$0xff]   ;;  %v5048_v41 = vld [vmem:[%s6187_s5 + $0x10] sm:$0xff]   ;;  %vm1228_vm6 = vcmask 138240   ;;  %vm1626_vm7 = vcmask 1043456   ;;  %vm2065_vm8 = vcmask 523264  }
   0x4   :  { %4609 = vmatpush3.bf16.msra.mxu0 %v5046_v39  ;;  %v5049_v42 = vld [vmem:[%s6187_s5 + $0x28] sm:$0xff]   ;;  %v5050_v43 = vld [vmem:[%s6187_s5 + $0x38] sm:$0xff]   ;;  %v4196_v55 = vld [vmem:[%s6190_s3] ss:$0 sm:$0xff] }
   0x5   :  { %4610 = vmatprep.subr.bf16.mxu0 %v5048_v41  ;;  %v4197_v61 = vld [vmem:[%s6191_s4] ss:$0 sm:$0xff] }
   0x8   :  { %v5043_v1 = vld [vmem:[%s6203_s23 + $0x8] sm:$0xff]   ;;  %v5044_v2 = vld [vmem:[%s6203_s23] sm:$0xff]   ;;  %4611 = vmatpush3.bf16.msra.mxu0 %v5048_v41 }
   0x9   :  { %4593 = vmatpush3.bf16.msra.mxu1 %v5043_v1  ;;  %4624 = vmatprep.subr.bf16.mxu0 %v5050_v43 }
   0xa   :  { %4594 = vmatprep.subr.bf16.mxu1 %v5227_v0 }
   0xd   :  { %4595 = vmatpush3.bf16.msra.mxu1 %v5044_v2 }
   0xe   :  { %4600 = vmatprep.subr.bf16.mxu1 %v5045_v38 }
  0x10   :  { %4597 = vmatmul.mubr.msk.bf16.vlgmr.msra.gmra.mxu1 %vm73_vm1, %v56_v5 }
  0x11   :  { %4601 = vmatpush3.bf16.msra.mxu1 %v5045_v38 }
  0x12   :  { %4602 = vmatprep.subr.bf16.mxu1 %v5047_v40 }
  0x15   :  { %4603 = vmatpush3.bf16.msra.mxu1 %v5047_v40 }
  0x16   :  { %4616 = vmatprep.subr.bf16.mxu1 %v5049_v42 }
  0xd0   :  { %v111_v6 = vpop.f32.mrf.mxu1 }
  0xd1   :  { %v121_v7 = vrot.slane %v111_v6, 7  ;;  %v5051_v6 = vld [vmem:[%s6187_s5 + $0x20] sm:$0xff]  }
  0xd2   :  { %v4598_v9 = vpop.f32.mrf.mxu1 }
  0xd3   :  { %v127_v10 = vsel %vm120_vm2, 0.0, %v121_v7  ;;  %v5054_v9 = vld [vmem:[%s6188_s6 + $0x18] sm:$0xff]  }
  0xd4   :  { %v5336_v11 = vadd.f32 %v128_v8, %v127_v10  ;;  %v114_v12 = vpop.f32.mrf.mxu1  ;;  %v5053_v8 = vld [vmem:[%s6188_s6 + $0x8] sm:$0xff]   ;;  %v5055_v10 = vld [vmem:[%s6188_s6] sm:$0xff]  }
  0xd5   :  { %v122_v14 = vrot.slane %v114_v12, 7  ;;  %v5056_v12 = vld [vmem:[%s6188_s6 + $0x10] sm:$0xff]  }
  0xd6   :  { %v4599_v16 = vpop.f32.mrf.mxu1  ;;  %v136_v17 = vsel %vm73_vm1, %v5336_v11, 0.0 }
  0xd7   :  { %v123_v18 = vsel %vm120_vm2, %v121_v7, %v122_v14  ;;  %v5347_v19 = vadd.f32 %v130_v13, %v122_v14  ;;  %137 = vadd.xlane.f32.xlu0 %v136_v17  ;;  %v5052_v7 = vld [vmem:[%s6187_s5 + $0x30] sm:$0xff]   ;;  %v5057_v13 = vld [vmem:[%s6188_s6 + $0x28] sm:$0xff]   ;;  %v5058_v14 = vld [vmem:[%s6188_s6 + $0x38] sm:$0xff]  }
  0xd8   :  { %v5349_v20 = vadd.f32 %v129_v15, %v123_v18  ;;  %v5059_v15 = vld [vmem:[%s6188_s6 + $0x20] sm:$0xff]   ;;  %v5060_v16 = vld [vmem:[%s6188_s6 + $0x30] sm:$0xff]   ;;  %v5061_v17 = vld [vmem:[%s6189_s7 + $0x8] sm:$0xff]  }
  0xd9   :  { %v143_v21 = vsel %vm142_vm3, %v5347_v19, 0.0  ;;  %v5062_v18 = vld [vmem:[%s6189_s7 + $0x18] sm:$0xff]  }
  0xda   :  { %144 = vadd.xlane.f32.xlu1 %v143_v21  ;;  %v139_v22 = vsel %vm73_vm1, %v5349_v20, 0.0  ;;  %v5063_v21 = vld [vmem:[%s6189_s7] sm:$0xff]  }
  0xdb   :  { %140 = vadd.xlane.f32.xlu0 %v139_v22  ;;  %v5064_v22 = vld [vmem:[%s6189_s7 + $0x10] sm:$0xff]  }
 0x160   :  { %v138_v23 = vpop.xlane.xlu0 %137 }
 0x161   :  { %v147_v24 = vmul.f32 0.03125, %v138_v23  ;;  %v5065_v23 = vld [vmem:[%s6189_s7 + $0x28] sm:$0xff]  }
 0x163   :  { %v150_v25 = vsub.f32 %v5336_v11, %v147_v24  ;;  %v145_v26 = vpop.xlane.xlu1 %144  ;;  %v5066_v24 = vld [vmem:[%s6189_s7 + $0x38] sm:$0xff]  }
 0x164   :  { %v149_v27 = vmul.f32 0.03125, %v145_v26  ;;  %v141_v28 = vpop.xlane.xlu0 %140  ;;  %v5068_v26 = vld [vmem:[%s6189_s7 + $0x30] sm:$0xff]  }
 0x165   :  { %v148_v29 = vmul.f32 0.03125, %v141_v28  ;;  %v153_v30 = vmul.f32 %v150_v25, %v150_v25 }
 0x166   :  { %v152_v31 = vsub.f32 %v5347_v19, %v149_v27 }
 0x167   :  { %v151_v32 = vsub.f32 %v5349_v20, %v148_v29  ;;  %v156_v33 = vsel %vm73_vm1, %v153_v30, 0.0 }
 0x168   :  { %157 = vadd.xlane.f32.xlu1 %v156_v33  ;;  %v155_v34 = vmul.f32 %v152_v31, %v152_v31 }
 0x169   :  { %v154_v35 = vmul.f32 %v151_v32, %v151_v32 }
 0x16a   :  { %v162_v36 = vsel %vm142_vm3, %v155_v34, 0.0 }
 0x16b   :  { %v159_v37 = vsel %vm73_vm1, %v154_v35, 0.0 }
 0x16c   :  { %163 = vadd.xlane.f32.xlu1 %v162_v36  ;;  %160 = vadd.xlane.f32.xlu0 %v159_v37 }
 0x1f1   :  { %v158_v44 = vpop.xlane.xlu1 %157 }
 0x1f2   :  { %v165_v45 = vmul.f32 0.03125, %v158_v44 }
 0x1f4   :  { %v168_v46 = vadd.f32 1e-05, %v165_v45 }
 0x1f5   :  { %v164_v47 = vpop.xlane.xlu1 %163  ;;  %v161_v48 = vpop.xlane.xlu0 %160 }
 0x1f6   :  { %5107 = vrsqrt.f32 %v168_v46  ;;  %v167_v49 = vmul.f32 0.03125, %v164_v47  ;;  %v166_v50 = vmul.f32 0.03125, %v161_v48 }
 0x1f8   :  { %v170_v51 = vadd.f32 1e-05, %v167_v49  ;;  %v169_v52 = vadd.f32 1e-05, %v166_v50 }
 0x1fa   :  { %5109 = vrsqrt.f32 %v170_v51 }
 0x1fb   :  { %5111 = vrsqrt.f32 %v169_v52 }
 0x203   :  { %v5108_v53 = vpop.eup %5107 }
 0x204   :  { %v174_v54 = vmul.f32 %v5108_v53, %v150_v25  ;;  %v5067_v25 = vld [vmem:[%s6189_s7 + $0x20] sm:$0xff]  }
 0x206   :  { %v183_v59 = vmul.f32 %v4196_v55, %v174_v54 }
 0x207   :  { %v5110_v56 = vpop.eup %5109 }
 0x208   :  { %v5112_v57 = vpop.eup %5111  ;;  %v176_v58 = vmul.f32 %v5110_v56, %v152_v31  ;;  %v192_v2 = vadd.f32 %v4197_v61, %v183_v59 }
 0x209   :  { %v175_v60 = vmul.f32 %v5112_v57, %v151_v32 }
 0x20a   :  { %v185_v62 = vmul.f32 %v4196_v55, %v176_v58 }
 0x20b   :  { %v184_v63 = vmul.f32 %v4196_v55, %v175_v60 }
 0x20c   :  { %v194_v1 = vadd.f32 %v4197_v61, %v185_v62 }
 0x20d   :  { %v193_v3 = vadd.f32 %v4197_v61, %v184_v63 }
 0x20e   :  { %v5385_v4 = vpack.c.bf16 %v194_v1, %v194_v1 }
 0x20f   :  { %v5387_v5 = vpack.c.bf16 %v193_v3, %v192_v2 }
 0x211   :  { %4604 = vmatprep.mubr.msk.bf16.mxu1 %vm73_vm1, %v5387_v5  ;;  %4612 = vmatprep.mubr.msk.bf16.mxu0 %vm73_vm1, %v5387_v5 }
 0x212   :  { %4605 = vmatmul.mubr.msk.bf16.vlgmr.msra.gmra.mxu1 %vm73_vm1, %v5385_v4  ;;  %4613 = vmatmul.mubr.msk.bf16.vlgmr.msra.gmra.mxu0 %vm73_vm1, %v5385_v4 }
 0x213   :  { %4617 = vmatpush3.bf16.msra.mxu1 %v5049_v42  ;;  %4625 = vmatpush3.bf16.msra.mxu0 %v5050_v43 }
 0x214   :  { %4620 = vmatprep.mubr.msk.bf16.mxu1 %vm73_vm1, %v5387_v5  ;;  %4628 = vmatprep.mubr.msk.bf16.mxu0 %vm73_vm1, %v5387_v5 }
 0x215   :  { %4618 = vmatprep.subr.bf16.mxu1 %v5051_v6  ;;  %4626 = vmatprep.subr.bf16.mxu0 %v5052_v7 }
 0x217   :  { %4619 = vmatpush3.bf16.msra.mxu1 %v5051_v6  ;;  %4627 = vmatpush3.bf16.msra.mxu0 %v5052_v7 }
 0x218   :  { %4632 = vmatprep.subr.bf16.mxu1 %v5053_v8  ;;  %4640 = vmatprep.subr.bf16.mxu0 %v5054_v9 }
 0x21a   :  { %4621 = vmatmul.mubr.msk.bf16.vlgmr.msra.gmra.mxu1 %vm73_vm1, %v5385_v4  ;;  %4629 = vmatmul.mubr.msk.bf16.vlgmr.msra.gmra.mxu0 %vm73_vm1, %v5385_v4 }
 0x21b   :  { %4633 = vmatpush3.bf16.msra.mxu1 %v5053_v8  ;;  %4641 = vmatpush3.bf16.msra.mxu0 %v5054_v9 }
 0x21c   :  { %4636 = vmatprep.mubr.msk.bf16.mxu1 %vm73_vm1, %v5387_v5  ;;  %4644 = vmatprep.mubr.msk.bf16.mxu0 %vm73_vm1, %v5387_v5 }
 0x21d   :  { %4634 = vmatprep.subr.bf16.mxu1 %v5055_v10  ;;  %4642 = vmatprep.subr.bf16.mxu0 %v5056_v12 }
 0x21f   :  { %4635 = vmatpush3.bf16.msra.mxu1 %v5055_v10  ;;  %4643 = vmatpush3.bf16.msra.mxu0 %v5056_v12 }
 0x220   :  { %4648 = vmatprep.subr.bf16.mxu1 %v5057_v13  ;;  %4656 = vmatprep.subr.bf16.mxu0 %v5058_v14 }
 0x222   :  { %4637 = vmatmul.mubr.msk.bf16.vlgmr.msra.gmra.mxu1 %vm73_vm1, %v5385_v4  ;;  %4645 = vmatmul.mubr.msk.bf16.vlgmr.msra.gmra.mxu0 %vm73_vm1, %v5385_v4 }
 0x223   :  { %4649 = vmatpush3.bf16.msra.mxu1 %v5057_v13  ;;  %4652 = vmatprep.mubr.msk.bf16.mxu1 %vm73_vm1, %v5387_v5 }
 0x224   :  { %4657 = vmatpush3.bf16.msra.mxu0 %v5058_v14  ;;  %4660 = vmatprep.mubr.msk.bf16.mxu0 %vm73_vm1, %v5387_v5 }
 0x225   :  { %4650 = vmatprep.subr.bf16.mxu1 %v5059_v15  ;;  %4658 = vmatprep.subr.bf16.mxu0 %v5060_v16 }
 0x227   :  { %4651 = vmatpush3.bf16.msra.mxu1 %v5059_v15 }
 0x228   :  { %4659 = vmatpush3.bf16.msra.mxu0 %v5060_v16  ;;  %4664 = vmatprep.subr.bf16.mxu1 %v5061_v17 }
 0x229   :  { %4672 = vmatprep.subr.bf16.mxu0 %v5062_v18 }
 0x22a   :  { %4653 = vmatmul.mubr.msk.bf16.vlgmr.msra.gmra.mxu1 %vm73_vm1, %v5385_v4 }
 0x22b   :  { %4661 = vmatmul.mubr.msk.bf16.vlgmr.msra.gmra.mxu0 %vm73_vm1, %v5385_v4  ;;  %4665 = vmatpush3.bf16.msra.mxu1 %v5061_v17 }
 0x22c   :  { %4668 = vmatprep.mubr.msk.bf16.mxu1 %vm73_vm1, %v5387_v5  ;;  %4673 = vmatpush3.bf16.msra.mxu0 %v5062_v18 }
 0x22d   :  { %4676 = vmatprep.mubr.msk.bf16.mxu0 %vm73_vm1, %v5387_v5  ;;  %4666 = vmatprep.subr.bf16.mxu1 %v5063_v21 }
 0x22e   :  { %4674 = vmatprep.subr.bf16.mxu0 %v5064_v22 }
 0x22f   :  { %4667 = vmatpush3.bf16.msra.mxu1 %v5063_v21 }
 0x230   :  { %4675 = vmatpush3.bf16.msra.mxu0 %v5064_v22  ;;  %4680 = vmatprep.subr.bf16.mxu1 %v5065_v23 }
 0x231   :  { %4688 = vmatprep.subr.bf16.mxu0 %v5066_v24 }
 0x232   :  { %4669 = vmatmul.mubr.msk.bf16.vlgmr.msra.gmra.mxu1 %vm73_vm1, %v5385_v4 }
 0x233   :  { %4677 = vmatmul.mubr.msk.bf16.vlgmr.msra.gmra.mxu0 %vm73_vm1, %v5385_v4  ;;  %4681 = vmatpush3.bf16.msra.mxu1 %v5065_v23 }
 0x234   :  { %4684 = vmatprep.mubr.msk.bf16.mxu1 %vm73_vm1, %v5387_v5  ;;  %4689 = vmatpush3.bf16.msra.mxu0 %v5066_v24 }
 0x235   :  { %4692 = vmatprep.mubr.msk.bf16.mxu0 %vm73_vm1, %v5387_v5  ;;  %4682 = vmatprep.subr.bf16.mxu1 %v5067_v25 }
 0x236   :  { %4690 = vmatprep.subr.bf16.mxu0 %v5068_v26 }
 0x237   :  { %4683 = vmatpush3.bf16.msra.mxu1 %v5067_v25 }
 0x238   :  { %4691 = vmatpush3.bf16.msra.mxu0 %v5068_v26 }
 0x23a   :  { %4685 = vmatmul.mubr.msk.bf16.vlgmr.msra.gmra.mxu1 %vm73_vm1, %v5385_v4 }
 0x23b   :  { %4693 = vmatmul.mubr.msk.bf16.vlgmr.msra.gmra.mxu0 %vm73_vm1, %v5385_v4 }
 0x2d2   :  { %v5491_v27 = vpop.f32.mrf.mxu1  ;;  %v5493_v28 = vpop.f32.mrf.mxu0 }
 0x2d3   :  { %v972_v9 = vpack.c.bf16 %v5491_v27, %v5491_v27  ;;  %v974_v10 = vpack.c.bf16 %v5493_v28, %v5493_v28  ;;  %v5229_v28 = vmov 0  }
 0x2d4   :  { %v265_v29 = vpop.f32.mrf.mxu1  ;;  %v325_v30 = vpop.f32.mrf.mxu0 }
 0x2d6   :  { %v4607_v31 = vpop.f32.mrf.mxu1  ;;  %v4615_v32 = vpop.f32.mrf.mxu0 }
 0x2d8   :  { %v268_v33 = vpop.f32.mrf.mxu1  ;;  %v328_v34 = vpop.f32.mrf.mxu0 }
 0x2d9   :  { %v971_v35 = vpack.c.bf16 %v268_v33, %v265_v29  ;;  %v973_v36 = vpack.c.bf16 %v328_v34, %v325_v30  ;;  %v5524_v29 = vsel %vm120_vm2, 65535, %v5229_v28 }
 0x2da   :  { %v5495_v37 = vpop.f32.mrf.mxu1  ;;  %v5497_v38 = vpop.f32.mrf.mxu0 }
 0x2db   :  { %4700 = vmatprep.mubr.msk.bf16.mxu1 %vm987_vm4, %v971_v35  ;;  %4708 = vmatprep.mubr.msk.bf16.mxu0 %vm987_vm4, %v973_v36 }
 0x2dc   :  { %v385_v39 = vpop.f32.mrf.mxu1  ;;  %v445_v40 = vpop.f32.mrf.mxu0 }
 0x2de   :  { %v4623_v41 = vpop.f32.mrf.mxu1  ;;  %v4631_v42 = vpop.f32.mrf.mxu0 }
 0x2e0   :  { %v388_v43 = vpop.f32.mrf.mxu1  ;;  %v448_v44 = vpop.f32.mrf.mxu0 }
 0x2e1   :  { %v975_v13 = vpack.c.bf16 %v388_v43, %v385_v39  ;;  %v977_v15 = vpack.c.bf16 %v448_v44, %v445_v40  ;;  %v976_v43 = vpack.c.bf16 %v5495_v37, %v5495_v37  ;;  %v978_v44 = vpack.c.bf16 %v5497_v38, %v5497_v38 }
 0x2e2   :  { %v4638_v45 = vpop.f32.mrf.mxu1  ;;  %v4646_v46 = vpop.f32.mrf.mxu0 }
 0x2e3   :  { %v980_v47 = vpack.c.bf16 %v4638_v45, %v4638_v45  ;;  %v982_v48 = vpack.c.bf16 %v4646_v46, %v4646_v46 }
 0x2e4   :  { %v521_v49 = vpop.f32.mrf.mxu1  ;;  %v581_v50 = vpop.f32.mrf.mxu0 }
 0x2e5   :  { %v998_v51 = vsel %vm987_vm4, %v980_v47, 0  ;;  %v1058_v52 = vsel %vm987_vm4, %v982_v48, 0  ;;  %5016 = vmatprep.subr.msk.bf16.mxu1 %vm987_vm4, %v980_v47  ;;  %5018 = vmatprep.subr.msk.bf16.mxu0 %vm987_vm4, %v982_v48 }
 0x2e6   :  { %v4639_v53 = vpop.f32.mrf.mxu1  ;;  %v4647_v54 = vpop.f32.mrf.mxu0  ;;  %4697 = vmatpush3.bf16.xpose.msra.mxu1 %v998_v51  ;;  %4705 = vmatpush3.bf16.xpose.msra.mxu0 %v1058_v52 }
 0x2e8   :  { %v524_v55 = vpop.f32.mrf.mxu1  ;;  %v584_v56 = vpop.f32.mrf.mxu0 }
 0x2e9   :  { %v979_v57 = vpack.c.bf16 %v524_v55, %v521_v49  ;;  %v981_v58 = vpack.c.bf16 %v584_v56, %v581_v50 }
 0x2ea   :  { %v4654_v59 = vpop.f32.mrf.mxu1 }
 0x2eb   :  { %v4662_v60 = vpop.f32.mrf.mxu0  ;;  %5017 = vmatprep.subr.msk.bf16.mxu1 %vm987_vm4, %v979_v57  ;;  %5019 = vmatprep.subr.msk.bf16.mxu0 %vm987_vm4, %v981_v58  ;;  %v995_v62 = vsel %vm987_vm4, %v979_v57, 0  ;;  %v1055_v63 = vsel %vm987_vm4, %v981_v58, 0  ;;  %v984_v1 = vpack.c.bf16 %v4654_v59, %v4654_v59 }
 0x2ec   :  { %v641_v61 = vpop.f32.mrf.mxu1  ;;  %v986_v2 = vpack.c.bf16 %v4662_v60, %v4662_v60 }
 0x2ed   :  { %v701_v3 = vpop.f32.mrf.mxu0  ;;  %v1118_v16 = vsel %vm987_vm4, %v984_v1, 0 }
 0x2ee   :  { %v4655_v4 = vpop.f32.mrf.mxu1  ;;  %4699 = vmatpush3.bf16.xpose.msra.mxu1 %v995_v62  ;;  %4707 = vmatpush3.bf16.xpose.msra.mxu0 %v1055_v63  ;;  %v1178_v18 = vsel %vm987_vm4, %v986_v2, 0 }
 0x2ef   :  { %v4663_v5 = vpop.f32.mrf.mxu0  ;;  %5020 = vmatprep.subr.msk.bf16.mxu1 %vm987_vm4, %v984_v1  ;;  %5022 = vmatprep.subr.msk.bf16.mxu0 %vm987_vm4, %v986_v2 }
 0x2f0   :  { %v644_v6 = vpop.f32.mrf.mxu1 }
 0x2f1   :  { %v704_v7 = vpop.f32.mrf.mxu0  ;;  %v983_v21 = vpack.c.bf16 %v644_v6, %v641_v61 }
 0x2f2   :  { %v4670_v8 = vpop.f32.mrf.mxu1  ;;  %v985_v22 = vpack.c.bf16 %v704_v7, %v701_v3 }
 0x2f3   :  { %v4678_v12 = vpop.f32.mrf.mxu0  ;;  %v1371_v26 = vpack.c.bf16 %v4670_v8, %v4670_v8  ;;  %v1115_v34 = vsel %vm987_vm4, %v983_v21, 0 }
 0x2f4   :  { %v777_v14 = vpop.f32.mrf.mxu1  ;;  %v1373_v30 = vpack.c.bf16 %v4678_v12, %v4678_v12  ;;  %v1175_v39 = vsel %vm987_vm4, %v985_v22, 0 }
 0x2f5   :  { %v837_v17 = vpop.f32.mrf.mxu0  ;;  %4701 = vmatmul.mubr.msk.bf16.vlgmr.msra.gmra.mxu1 %vm987_vm4, %v972_v9  ;;  %4709 = vmatmul.mubr.msk.bf16.vlgmr.msra.gmra.mxu0 %vm987_vm4, %v974_v10  ;;  %v1387_v35 = vand.u32 %v5524_v29, %v1371_v26 }
 0x2f6   :  { %v4671_v23 = vpop.f32.mrf.mxu1  ;;  %4713 = vmatpush3.bf16.xpose.msra.mxu1 %v1118_v16  ;;  %4716 = vmatprep.mubr.msk.bf16.mxu1 %vm987_vm4, %v975_v13  ;;  %v1444_v40 = vand.u32 %v5524_v29, %v1373_v30 }
 0x2f7   :  { %v4679_v24 = vpop.f32.mrf.mxu0  ;;  %4721 = vmatpush3.bf16.xpose.msra.mxu0 %v1178_v18  ;;  %4724 = vmatprep.mubr.msk.bf16.mxu0 %vm987_vm4, %v977_v15 }
 0x2f8   :  { %5021 = vmatprep.subr.msk.bf16.mxu1 %vm987_vm4, %v983_v21  ;;  %5023 = vmatprep.subr.msk.bf16.mxu0 %vm987_vm4, %v985_v22  ;;  %v780_v25 = vpop.f32.mrf.mxu1 }
 0x2f9   :  { %v840_v27 = vpop.f32.mrf.mxu0  ;;  %v1370_v45 = vpack.c.bf16 %v780_v25, %v777_v14 }
 0x2fa   :  { %v4686_v31 = vpop.f32.mrf.mxu1  ;;  %v1372_v47 = vpack.c.bf16 %v840_v27, %v837_v17 }
 0x2fb   :  { %v4694_v32 = vpop.f32.mrf.mxu0  ;;  %v1375_v46 = vpack.c.bf16 %v4686_v31, %v4686_v31 }
 0x2fc   :  { %v5526_v33 = vpop.f32.mrf.mxu1  ;;  %v1377_v48 = vpack.c.bf16 %v4694_v32, %v4694_v32 }
 0x2fd   :  { %v5530_v36 = vpop.f32.mrf.mxu0  ;;  %v5541_v49 = vand.u32 %v5524_v29, %v1375_v46 }
 0x2fe   :  { %v4687_v41 = vpop.f32.mrf.mxu1  ;;  %4715 = vmatpush3.bf16.xpose.msra.mxu1 %v1115_v34  ;;  %v5544_v37 = vand.u32 %v5524_v29, %v1377_v48 }
 0x2ff   :  { %v4695_v42 = vpop.f32.mrf.mxu0  ;;  %4723 = vmatpush3.bf16.xpose.msra.mxu0 %v1175_v39  ;;  %4728 = vmatprep.subr.bf16.mxu1 %v1387_v35 }
 0x300   :  { %4736 = vmatprep.subr.bf16.mxu0 %v1444_v40  ;;  %v5548_v38 = vpop.f32.mrf.mxu1 }
 0x301   :  { %v5550_v50 = vpop.f32.mrf.mxu0 }
 0x305   :  { %4717 = vmatmul.mubr.msk.bf16.vlgmr.msra.gmra.mxu1 %vm987_vm4, %v976_v43 }
 0x306   :  { %4725 = vmatmul.mubr.msk.bf16.vlgmr.msra.gmra.mxu0 %vm987_vm4, %v978_v44  ;;  %4729 = vmatpush3.bf16.msra.mxu1 %v1387_v35 }
 0x307   :  { %4737 = vmatpush3.bf16.msra.mxu0 %v1444_v40  ;;  %4730 = vmatprep.subr.bf16.mxu1 %v1370_v45 }
 0x308   :  { %4738 = vmatprep.subr.bf16.mxu0 %v1372_v47 }
 0x30a   :  { %4731 = vmatpush3.bf16.msra.mxu1 %v1370_v45 }
 0x30b   :  { %4739 = vmatpush3.bf16.msra.mxu0 %v1372_v47  ;;  %4744 = vmatprep.subr.bf16.mxu1 %v5541_v49 }
 0x30c   :  { %4752 = vmatprep.subr.bf16.mxu0 %v5544_v37 }
 0x3b5   :  { %v4702_v51 = vpop.f32.mrf.mxu1  ;;  %v4710_v52 = vpop.f32.mrf.mxu0 }
 0x3b6   :  { %v1245_v53 = vsel %vm1235_vm5, %v4710_v52, -inf  ;;  %v1236_v54 = vsel %vm1235_vm5, %v4702_v51, -inf }
 0x3b7   :  { %1246 = vmax.xlane.f32.xlu1 %v1245_v53  ;;  %v1094_v55 = vpop.f32.mrf.mxu0  ;;  %1237 = vmax.xlane.f32.xlu0 %v1236_v54  ;;  %v1034_v56 = vpop.f32.mrf.mxu1 }
 0x3b8   :  { %v1239_v59 = vsel %vm1228_vm6, %v1094_v55, -inf  ;;  %v1229_v60 = vsel %vm1228_vm6, %v1034_v56, -inf }
 0x3b9   :  { %v4703_v57 = vpop.f32.mrf.mxu1  ;;  %v4711_v58 = vpop.f32.mrf.mxu0 }
 0x3bb   :  { %1240 = vmax.xlane.f32.xlu1 %v1239_v59  ;;  %v1097_v61 = vpop.f32.mrf.mxu0  ;;  %1230 = vmax.xlane.f32.xlu0 %v1229_v60  ;;  %v1037_v62 = vpop.f32.mrf.mxu1 }
 0x3bc   :  { %v1242_v63 = vsel %vm1228_vm6, %v1097_v61, -inf  ;;  %v1232_v1 = vsel %vm1228_vm6, %v1037_v62, -inf }
 0x3bf   :  { %1243 = vmax.xlane.f32.xlu0 %v1242_v63  ;;  %1233 = vmax.xlane.f32.xlu1 %v1232_v1 }
 0x3c5   :  { %v4718_v2 = vpop.f32.mrf.mxu1 }
 0x3c6   :  { %v5558_v3 = vpop.f32.mrf.mxu0  ;;  %v1254_v4 = vsel %vm1235_vm5, %v4718_v2, -inf }
 0x3c7   :  { %1255 = vmax.xlane.f32.xlu0 %v1254_v4  ;;  %v1154_v5 = vpop.f32.mrf.mxu1  ;;  %v1263_v16 = vsel %vm1235_vm5, %v5558_v3, -inf }
 0x3c8   :  { %v1214_v6 = vpop.f32.mrf.mxu0  ;;  %v1248_v10 = vsel %vm1228_vm6, %v1154_v5, -inf }
 0x3c9   :  { %v1257_v7 = vsel %vm1228_vm6, %v1214_v6, -inf  ;;  %v4719_v8 = vpop.f32.mrf.mxu1 }
 0x3ca   :  { %v4727_v9 = vpop.f32.mrf.mxu0  ;;  %1258 = vmax.xlane.f32.xlu1 %v1257_v7 }
 0x3cb   :  { %1249 = vmax.xlane.f32.xlu0 %v1248_v10  ;;  %v1157_v12 = vpop.f32.mrf.mxu1 }
 0x3cc   :  { %v1217_v13 = vpop.f32.mrf.mxu0  ;;  %v1251_v14 = vsel %vm1228_vm6, %v1157_v12, -inf }
 0x3cd   :  { %v1260_v15 = vsel %vm1228_vm6, %v1217_v13, -inf }
 0x3ce   :  { %1252 = vmax.xlane.f32.xlu1 %v1251_v14 }
 0x3cf   :  { %1261 = vmax.xlane.f32.xlu0 %v1260_v15 }
 0x3d2   :  { %1264 = vmax.xlane.f32.xlu1 %v1263_v16 }
 0x440   :  { %v1247_v17 = vpop.xlane.xlu1 %1246  ;;  %v1238_v18 = vpop.xlane.xlu0 %1237 }
 0x441   :  { %v1271_v21 = vsub.f32 %v4710_v52, %v1247_v17  ;;  %v1268_v22 = vsub.f32 %v4702_v51, %v1238_v18 }
 0x443   :  { %v1288_v23 = vmul.f32 1.442695, %v1271_v21  ;;  %v1282_v24 = vmul.f32 1.442695, %v1268_v22 }
 0x444   :  { %v1241_v25 = vpop.xlane.xlu1 %1240  ;;  %v1231_v26 = vpop.xlane.xlu0 %1230 }
 0x445   :  { %5113 = vpow2.f32 %v1288_v23  ;;  %v1269_v27 = vsub.f32 %v1094_v55, %v1241_v25  ;;  %v1266_v28 = vsub.f32 %v1034_v56, %v1231_v26 }
 0x446   :  { %5115 = vpow2.f32 %v1282_v24 }
 0x447   :  { %v1284_v30 = vmul.f32 1.442695, %v1269_v27  ;;  %v1278_v31 = vmul.f32 1.442695, %v1266_v28 }
 0x448   :  { %v1244_v32 = vpop.xlane.xlu0 %1243  ;;  %v1234_v34 = vpop.xlane.xlu1 %1233 }
 0x449   :  { %5117 = vpow2.f32 %v1284_v30  ;;  %v1270_v35 = vsub.f32 %v1097_v61, %v1244_v32  ;;  %v1267_v39 = vsub.f32 %v1037_v62, %v1234_v34 }
 0x44a   :  { %5119 = vpow2.f32 %v1278_v31 }
 0x44b   :  { %v1286_v40 = vmul.f32 1.442695, %v1270_v35  ;;  %v1280_v41 = vmul.f32 1.442695, %v1267_v39 }
 0x44d   :  { %5121 = vpow2.f32 %v1286_v40 }
 0x44e   :  { %5123 = vpow2.f32 %v1280_v41 }
 0x450   :  { %v1256_v42 = vpop.xlane.xlu0 %1255 }
 0x451   :  { %v1274_v43 = vsub.f32 %v4718_v2, %v1256_v42 }
 0x452   :  { %v5567_v44 = vpop.eup %5113 }
 0x453   :  { %v5569_v45 = vpop.eup %5115  ;;  %v1294_v46 = vmul.f32 1.442695, %v1274_v43  ;;  %v1259_v47 = vpop.xlane.xlu1 %1258  ;;  %v1317_v48 = vsel %vm1235_vm5, %v5567_v44, 0.0 }
 0x454   :  { %v1275_v51 = vsub.f32 %v1214_v6, %v1259_v47  ;;  %v1308_v52 = vsel %vm1235_vm5, %v5569_v45, 0.0  ;;  %v1250_v53 = vpop.xlane.xlu0 %1249  ;;  %1318 = vadd.xlane.f32.xlu1 %v1317_v48 }
 0x455   :  { %5125 = vpow2.f32 %v1294_v46  ;;  %1309 = vadd.xlane.f32.xlu0 %v1308_v52  ;;  %v1272_v54 = vsub.f32 %v1154_v5, %v1250_v53 }
 0x456   :  { %v5575_v55 = vpop.eup %5117  ;;  %v1296_v56 = vmul.f32 1.442695, %v1275_v51 }
 0x457   :  { %v5577_v57 = vpop.eup %5119  ;;  %v1290_v58 = vmul.f32 1.442695, %v1272_v54  ;;  %v1253_v59 = vpop.xlane.xlu1 %1252  ;;  %v1311_v60 = vsel %vm1228_vm6, %v5575_v55, 0.0 }
 0x458   :  { %5127 = vpow2.f32 %v1296_v56  ;;  %v1273_v61 = vsub.f32 %v1157_v12, %v1253_v59  ;;  %v1302_v62 = vsel %vm1228_vm6, %v5577_v57, 0.0  ;;  %v1262_v63 = vpop.xlane.xlu0 %1261  ;;  %1312 = vadd.xlane.f32.xlu1 %v1311_v60 }
 0x459   :  { %5129 = vpow2.f32 %v1290_v58  ;;  %1303 = vadd.xlane.f32.xlu0 %v1302_v62  ;;  %v1276_v1 = vsub.f32 %v1217_v13, %v1262_v63 }
 0x45a   :  { %v5122_v2 = vpop.eup %5121  ;;  %v1292_v4 = vmul.f32 1.442695, %v1273_v61 }
 0x45b   :  { %v5583_v5 = vpop.eup %5123  ;;  %v1298_v6 = vmul.f32 1.442695, %v1276_v1  ;;  %v1265_v7 = vpop.xlane.xlu1 %1264  ;;  %v1314_v8 = vsel %vm1228_vm6, %v5122_v2, 0.0  ;;  %v1376_v1 = vpack.c.bf16 %v5550_v50, %v5530_v36 }
 0x45c   :  { %5131 = vpow2.f32 %v1292_v4  ;;  %v1277_v9 = vsub.f32 %v5558_v3, %v1265_v7  ;;  %v1305_v10 = vsel %vm1228_vm6, %v5583_v5, 0.0 }
 0x45d   :  { %5133 = vpow2.f32 %v1298_v6  ;;  %1315 = vadd.xlane.f32.xlu0 %v1314_v8  ;;  %1306 = vadd.xlane.f32.xlu1 %v1305_v10 }
 0x45e   :  { %v1300_v12 = vmul.f32 1.442695, %v1277_v9 }
 0x460   :  { %5135 = vpow2.f32 %v1300_v12  ;;  %v1616_v12 = vld [vmem:[%s6192_s8] sm:$0xf] }
 0x462   :  { %v5589_v13 = vpop.eup %5125 }
 0x463   :  { %v1326_v14 = vsel %vm1235_vm5, %v5589_v13, 0.0 }
 0x464   :  { %1327 = vadd.xlane.f32.xlu0 %v1326_v14  ;;  %v1628_v14 = vsel %vm1626_vm7, %v1616_v12, 0 }
 0x465   :  { %v5593_v15 = vpop.eup %5127 }
 0x466   :  { %v5595_v16 = vpop.eup %5129  ;;  %v1329_v3 = vsel %vm1228_vm6, %v5593_v15, 0.0 }
 0x467   :  { %1330 = vadd.xlane.f32.xlu1 %v1329_v3  ;;  %v1320_v17 = vsel %vm1228_vm6, %v5595_v16, 0.0  ;;  %v1619_v3 = vld [vmem:[%s6192_s8 + $0xc] sm:$0xf] }
 0x468   :  { %1321 = vadd.xlane.f32.xlu0 %v1320_v17 }
 0x469   :  { %v5601_v18 = vpop.eup %5131 }
 0x46a   :  { %v5603_v21 = vpop.eup %5133  ;;  %v1323_v22 = vsel %vm1228_vm6, %v5601_v18, 0.0 }
 0x46b   :  { %1324 = vadd.xlane.f32.xlu1 %v1323_v22  ;;  %v1332_v23 = vsel %vm1228_vm6, %v5603_v21, 0.0 }
 0x46c   :  { %1333 = vadd.xlane.f32.xlu0 %v1332_v23 }
 0x46d   :  { %v5609_v24 = vpop.eup %5135 }
 0x46e   :  { %v1335_v25 = vsel %vm1235_vm5, %v5609_v24, 0.0 }
 0x46f   :  { %1336 = vadd.xlane.f32.xlu1 %v1335_v25 }
 0x4dd   :  { %v1319_v26 = vpop.xlane.xlu1 %1318 }
 0x4de   :  { %v1310_v27 = vpop.xlane.xlu0 %1309  ;;  %5137 = vrcp.f32 %v1319_v26 }
 0x4df   :  { %5139 = vrcp.f32 %v1310_v27 }
 0x4e1   :  { %v1313_v28 = vpop.xlane.xlu1 %1312 }
 0x4e2   :  { %v1304_v30 = vpop.xlane.xlu0 %1303  ;;  %5141 = vrcp.f32 %v1313_v28 }
 0x4e3   :  { %5143 = vrcp.f32 %v1304_v30 }
 0x4e6   :  { %v1316_v31 = vpop.xlane.xlu0 %1315  ;;  %v1307_v32 = vpop.xlane.xlu1 %1306 }
 0x4e7   :  { %5145 = vrcp.f32 %v1316_v31  ;;  %v1799_v31 = vsel %vm1626_vm7, %v1619_v3, 0 }
 0x4e8   :  { %5147 = vrcp.f32 %v1307_v32 }
 0x4eb   :  { %v5138_v35 = vpop.eup %5137 }
 0x4ec   :  { %v5140_v40 = vpop.eup %5139  ;;  %v1355_v48 = vmul.f32 %v5138_v35, %v5567_v44 }
 0x4ed   :  { %v1328_v34 = vpop.xlane.xlu0 %1327  ;;  %v1352_v56 = vmul.f32 %v5140_v40, %v5569_v45  ;;  %v1374_v45 = vpack.c.bf16 %v5548_v38, %v5526_v33 }
 0x4ee   :  { %5149 = vrcp.f32 %v1328_v34  ;;  %v1365_v63 = vpack.c.bf16 %v1355_v48, %v1355_v48 }
 0x4ef   :  { %v5142_v42 = vpop.eup %5141  ;;  %v1363_v44 = vpack.c.bf16 %v1352_v56, %v1352_v56 }
 0x4f0   :  { %v1331_v39 = vpop.xlane.xlu1 %1330  ;;  %v5144_v43 = vpop.eup %5143  ;;  %v1353_v53 = vmul.f32 %v5142_v42, %v5575_v55 }
 0x4f1   :  { %v1322_v41 = vpop.xlane.xlu0 %1321  ;;  %v1350_v58 = vmul.f32 %v5144_v43, %v5577_v57 }
 0x4f2   :  { %5151 = vrcp.f32 %v1322_v41 }
 0x4f3   :  { %5153 = vrcp.f32 %v1331_v39 }
 0x4f4   :  { %v5146_v46 = vpop.eup %5145  ;;  %v1325_v47 = vpop.xlane.xlu1 %1324 }
 0x4f5   :  { %v5148_v51 = vpop.eup %5147  ;;  %5155 = vrcp.f32 %v1325_v47  ;;  %v1334_v52 = vpop.xlane.xlu0 %1333  ;;  %v1354_v54 = vmul.f32 %v5146_v46, %v5122_v2 }
 0x4f6   :  { %5157 = vrcp.f32 %v1334_v52  ;;  %v1351_v59 = vmul.f32 %v5148_v51, %v5583_v5 }
 0x4f7   :  { %v1364_v60 = vpack.c.bf16 %v1354_v54, %v1353_v53 }
 0x4f8   :  { %v1337_v61 = vpop.xlane.xlu1 %1336  ;;  %v1362_v62 = vpack.c.bf16 %v1351_v59, %v1350_v58 }
 0x4f9   :  { %5159 = vrcp.f32 %v1337_v61  ;;  %4740 = vmatprep.mubr.msk.bf16.mxu0 %vm1228_vm6, %v1364_v60 }
 0x4fa   :  { %4732 = vmatprep.mubr.msk.bf16.mxu1 %vm1228_vm6, %v1362_v62  ;;  %4741 = vmatmul.mubr.msk.bf16.vlgmr.msra.gmra.mxu0 %vm1228_vm6, %v1365_v63 }
 0x4fb   :  { %4733 = vmatmul.mubr.msk.bf16.vlgmr.msra.gmra.mxu1 %vm1228_vm6, %v1363_v44  ;;  %4753 = vmatpush3.bf16.msra.mxu0 %v5544_v37  ;;  %v5150_v55 = vpop.eup %5149 }
 0x4fc   :  { %4745 = vmatpush3.bf16.msra.mxu1 %v5541_v49  ;;  %4754 = vmatprep.subr.bf16.mxu0 %v1376_v1  ;;  %v1358_v2 = vmul.f32 %v5150_v55, %v5589_v13  ;;  %v1617_v13 = vld [vmem:[%s6192_s8 + $0x4] sm:$0xf] }
 0x4fd   :  { %4746 = vmatprep.subr.bf16.mxu1 %v1374_v45 }
 0x4fe   :  { %v1367_v7 = vpack.c.bf16 %v1358_v2, %v1358_v2 }
 0x4ff   :  { %4755 = vmatpush3.bf16.msra.mxu0 %v1376_v1  ;;  %v5152_v57 = vpop.eup %5151 }
 0x500   :  { %4747 = vmatpush3.bf16.msra.mxu1 %v1374_v45  ;;  %v5154_v36 = vpop.eup %5153  ;;  %v1356_v5 = vmul.f32 %v5152_v57, %v5595_v16  ;;  %5025 = vmatprep.subr.msk.bf16.mxu0 %vm1626_vm7, %v1617_v13  ;;  %v1618_v16 = vld [vmem:[%s6192_s8 + $0x8] sm:$0xf] }
 0x501   :  { %v1359_v38 = vmul.f32 %v5154_v36, %v5593_v15  ;;  %5024 = vmatprep.subr.msk.bf16.mxu1 %vm1626_vm7, %v1616_v12  ;;  %v1685_v15 = vsel %vm1626_vm7, %v1617_v13, 0  ;;  %v1742_v34 = vsel %vm1626_vm7, %v1618_v16, 0 }
 0x502   :  { %v5156_v50 = vpop.eup %5155 }
 0x503   :  { %v5158_v4 = vpop.eup %5157  ;;  %v1357_v33 = vmul.f32 %v5156_v50, %v5601_v18 }
 0x504   :  { %v1360_v37 = vmul.f32 %v5158_v4, %v5603_v21 }
 0x505   :  { %v1366_v49 = vpack.c.bf16 %v1357_v33, %v1356_v5 }
 0x506   :  { %v5160_v6 = vpop.eup %5159  ;;  %v1368_v8 = vpack.c.bf16 %v1360_v37, %v1359_v38 }
 0x507   :  { %4748 = vmatprep.mubr.msk.bf16.mxu1 %vm1228_vm6, %v1366_v49  ;;  %v1361_v9 = vmul.f32 %v5160_v6, %v5609_v24 }
 0x508   :  { %4749 = vmatmul.mubr.msk.bf16.vlgmr.msra.gmra.mxu1 %vm1228_vm6, %v1367_v7  ;;  %4756 = vmatprep.mubr.msk.bf16.mxu0 %vm1228_vm6, %v1368_v8 }
 0x509   :  { %v1369_v10 = vpack.c.bf16 %v1361_v9, %v1361_v9  ;;  %4761 = vmatpush3.bf16.msra.mxu1 %v1628_v14 }
 0x50a   :  { %5026 = vmatprep.subr.msk.bf16.mxu1 %vm1626_vm7, %v1618_v16 }
 0x50b   :  { %4757 = vmatmul.mubr.msk.bf16.vlgmr.msra.gmra.mxu0 %vm1228_vm6, %v1369_v10 }
 0x50c   :  { %4767 = vmatpush3.bf16.msra.mxu0 %v1685_v15 }
 0x50d   :  { %5027 = vmatprep.subr.msk.bf16.mxu0 %vm1626_vm7, %v1619_v3 }
 0x5ba   :  { %v4742_v17 = vpop.f32.mrf.mxu0 }
 0x5bb   :  { %v4734_v18 = vpop.f32.mrf.mxu1  ;;  %v1611_v28 = vpack.c.bf16 %v4742_v17, %v4742_v17 }
 0x5bc   :  { %v1480_v21 = vpop.f32.mrf.mxu0  ;;  %v1609_v32 = vpack.c.bf16 %v4734_v18, %v4734_v18 }
 0x5bd   :  { %v1423_v22 = vpop.f32.mrf.mxu1 }
 0x5be   :  { %v4743_v23 = vpop.f32.mrf.mxu0 }
 0x5bf   :  { %v4735_v24 = vpop.f32.mrf.mxu1 }
 0x5c0   :  { %v1483_v25 = vpop.f32.mrf.mxu0  ;;  %v4270_v24 = vld [vmem:[%s6193_s9] ss:$0 sm:$0xff] }
 0x5c1   :  { %v1426_v26 = vpop.f32.mrf.mxu1  ;;  %v1610_v27 = vpack.c.bf16 %v1483_v25, %v1480_v21 }
 0x5c2   :  { %v1608_v30 = vpack.c.bf16 %v1426_v26, %v1423_v22 }
 0x5c3   :  { %4768 = vmatprep.mubr.msk.bf16.mxu0 %vm987_vm4, %v1610_v27 }
 0x5c4   :  { %4762 = vmatprep.mubr.msk.bf16.mxu1 %vm987_vm4, %v1608_v30  ;;  %4769 = vmatmul.mubr.msk.bf16.vlgmr.msra.gmra.mxu0 %vm987_vm4, %v1611_v28 }
 0x5c5   :  { %4763 = vmatmul.mubr.msk.bf16.vlgmr.msra.gmra.mxu1 %vm987_vm4, %v1609_v32  ;;  %4779 = vmatpush3.bf16.msra.mxu0 %v1799_v31 }
 0x5c6   :  { %4773 = vmatpush3.bf16.msra.mxu1 %v1742_v34 }
 0x5c8   :  { %v4750_v35 = vpop.f32.mrf.mxu1 }
 0x5c9   :  { %v1613_v48 = vpack.c.bf16 %v4750_v35, %v4750_v35 }
 0x5ca   :  { %v1537_v39 = vpop.f32.mrf.mxu1 }
 0x5cb   :  { %v4758_v40 = vpop.f32.mrf.mxu0 }
 0x5cc   :  { %v4751_v41 = vpop.f32.mrf.mxu1  ;;  %v1615_v53 = vpack.c.bf16 %v4758_v40, %v4758_v40 }
 0x5cd   :  { %v1594_v42 = vpop.f32.mrf.mxu0 }
 0x5ce   :  { %v1540_v43 = vpop.f32.mrf.mxu1 }
 0x5cf   :  { %v1612_v46 = vpack.c.bf16 %v1540_v43, %v1537_v39  ;;  %v4759_v47 = vpop.f32.mrf.mxu0 }
 0x5d1   :  { %v1597_v51 = vpop.f32.mrf.mxu0  ;;  %4774 = vmatprep.mubr.msk.bf16.mxu1 %vm987_vm4, %v1612_v46 }
 0x5d2   :  { %v1614_v52 = vpack.c.bf16 %v1597_v51, %v1594_v42  ;;  %4775 = vmatmul.mubr.msk.bf16.vlgmr.msra.gmra.mxu1 %vm987_vm4, %v1613_v48 }
 0x5d4   :  { %4780 = vmatprep.mubr.msk.bf16.mxu0 %vm987_vm4, %v1614_v52 }
 0x5d5   :  { %4781 = vmatmul.mubr.msk.bf16.vlgmr.msra.gmra.mxu0 %vm987_vm4, %v1615_v53 }
 0x684   :  { %v4770_v54 = vpop.f32.mrf.mxu0 }
 0x685   :  { %v4764_v56 = vpop.f32.mrf.mxu1  ;;  %v1864_v63 = vsel %vm142_vm3, %v4770_v54, 0.0  ;;  %v5069_v54 = vld [vmem:[%s6194_s12 + $0x8] sm:$0xff]  }
 0x686   :  { %v1721_v58 = vpop.f32.mrf.mxu0  ;;  %v1863_v62 = vsel %vm142_vm3, %v4764_v56, 0.0  ;;  %v5070_v56 = vld [vmem:[%s6194_s12] sm:$0xff]   ;;  %4784 = vmatprep.subr.bf16.mxu1 %v5069_v54 }
 0x687   :  { %v1664_v59 = vpop.f32.mrf.mxu1  ;;  %v1850_v45 = vsel %vm73_vm1, %v1721_v58, 0.0  ;;  %v1865_v55 = vadd.f32 %v1864_v63, %v1863_v62  ;;  %4785 = vmatpush3.bf16.msra.mxu1 %v5069_v54  ;;  %v5073_v58 = vld [vmem:[%s6195_s14 + $0x18] sm:$0xff]  }
 0x688   :  { %v4771_v60 = vpop.f32.mrf.mxu0  ;;  %v1849_v1 = vsel %vm73_vm1, %v1664_v59, 0.0  ;;  %4786 = vmatprep.subr.bf16.mxu1 %v5070_v56  ;;  %4792 = vmatprep.subr.bf16.mxu0 %v5073_v58 }
 0x689   :  { %v4765_v61 = vpop.f32.mrf.mxu1  ;;  %v1851_v2 = vadd.f32 %v1850_v45, %v1849_v1  ;;  %4793 = vmatpush3.bf16.msra.mxu0 %v5073_v58 }
 0x68a   :  { %v1724_v57 = vpop.f32.mrf.mxu0 }
 0x68b   :  { %v1667_v44 = vpop.f32.mrf.mxu1  ;;  %v1857_v38 = vsel %vm73_vm1, %v1724_v57, 0.0  ;;  %4787 = vmatpush3.bf16.msra.mxu1 %v5070_v56 }
 0x68c   :  { %v1856_v33 = vsel %vm73_vm1, %v1667_v44, 0.0  ;;  %4804 = vmatprep.subr.bf16.mxu1 %v5227_v0 }
 0x68d   :  { %v1858_v12 = vadd.f32 %v1857_v38, %v1856_v33 }
 0x692   :  { %v4776_v36 = vpop.f32.mrf.mxu1 }
 0x693   :  { %v1866_v50 = vsel %vm142_vm3, %v4776_v36, 0.0 }
 0x694   :  { %v1867_v4 = vadd.f32 %v1866_v50, %v1865_v55  ;;  %v1778_v5 = vpop.f32.mrf.mxu1  ;;  %v4271_v50 = vld [vmem:[%s6196_s10] ss:$0 sm:$0xff] }
 0x695   :  { %v1852_v37 = vsel %vm73_vm1, %v1778_v5, 0.0  ;;  %v4782_v49 = vpop.f32.mrf.mxu0 }
 0x696   :  { %v1853_v6 = vadd.f32 %v1852_v37, %v1851_v2  ;;  %v1868_v7 = vsel %vm142_vm3, %v4782_v49, 0.0  ;;  %v4777_v8 = vpop.f32.mrf.mxu1  ;;  %v4272_v37 = vld [vmem:[%s6197_s11] ss:$0 sm:$0xff] }
 0x697   :  { %v1869_v9 = vadd.f32 %v1868_v7, %v1867_v4  ;;  %v1835_v10 = vpop.f32.mrf.mxu0 }
 0x698   :  { %v1854_v13 = vsel %vm73_vm1, %v1835_v10, 0.0  ;;  %v1781_v14 = vpop.f32.mrf.mxu1 }
 0x699   :  { %v1855_v15 = vadd.f32 %v1854_v13, %v1853_v6  ;;  %v1859_v16 = vsel %vm73_vm1, %v1781_v14, 0.0  ;;  %v4783_v3 = vpop.f32.mrf.mxu0  ;;  %v1872_v18 = vadd.f32 %v1869_v9, %v5347_v19  ;;  %v5072_v14 = vld [vmem:[%s6203_s23] sm:$0xff]  }
 0x69a   :  { %v1860_v17 = vadd.f32 %v1859_v16, %v1858_v12  ;;  %v5071_v12 = vld [vmem:[%s6203_s23 + $0x8] sm:$0xff]   ;;  %v4286_v16 = vld [vmem:[%s6185_s0 + $0x18] sm:$0xff] }
 0x69b   :  { %v1870_v21 = vadd.f32 %v1855_v15, %v5336_v11  ;;  %v1838_v22 = vpop.f32.mrf.mxu0  ;;  %v5688_v30 = vadd.f32 %v4270_v24, %v1872_v18  ;;  %v4285_v15 = vld [vmem:[%s6185_s0 + $0x10] sm:$0xff]  ;;  %v5075_v18 = vld [vmem:[%s6195_s14 + $0x8] sm:$0xff]  }
 0x69c   :  { %v1861_v23 = vsel %vm73_vm1, %v1838_v22, 0.0  ;;  %v2129_v3 = vpack.c.bf16 %v4286_v16, %v4285_v15  ;;  %v4273_v22 = vld [vmem:[%s6198_s13] ss:$0 sm:$0xff] }
 0x69d   :  { %v1862_v25 = vadd.f32 %v1861_v23, %v1860_v17  ;;  %v5683_v26 = vadd.f32 %v4270_v24, %v1870_v21  ;;  %v1891_v11 = vsel %vm142_vm3, %v5688_v30, 0.0  ;;  %v5074_v17 = vld [vmem:[%s6195_s14 + $0x10] sm:$0xff]  }
 0x69e   :  { %4794 = vmatprep.subr.bf16.mxu0 %v5074_v17 }
 0x69f   :  { %v1871_v27 = vadd.f32 %v1862_v25, %v5349_v20  ;;  %v1885_v28 = vsel %vm73_vm1, %v5683_v26, 0.0  ;;  %4795 = vmatpush3.bf16.msra.mxu0 %v5074_v17 }
 0x6a0   :  { %1886 = vadd.xlane.f32.xlu0 %v1885_v28  ;;  %4796 = vmatprep.subr.bf16.mxu0 %v5075_v18 }
 0x6a1   :  { %v5690_v19 = vadd.f32 %v4270_v24, %v1871_v27 }
 0x6a3   :  { %v1888_v31 = vsel %vm73_vm1, %v5690_v19, 0.0  ;;  %4797 = vmatpush3.bf16.msra.mxu0 %v5075_v18 }
 0x6a4   :  { %1892 = vadd.xlane.f32.xlu0 %v1891_v11  ;;  %1889 = vadd.xlane.f32.xlu1 %v1888_v31 }
 0x729   :  { %v1887_v32 = vpop.xlane.xlu0 %1886 }
 0x72a   :  { %v1894_v34 = vmul.f32 0.03125, %v1887_v32 }
 0x72c   :  { %v1897_v20 = vsub.f32 %v5683_v26, %v1894_v34 }
 0x72d   :  { %v1893_v35 = vpop.xlane.xlu0 %1892  ;;  %v1890_v39 = vpop.xlane.xlu1 %1889 }
 0x72e   :  { %v1896_v40 = vmul.f32 0.03125, %v1893_v35  ;;  %v1895_v41 = vmul.f32 0.03125, %v1890_v39  ;;  %v1900_v42 = vmul.f32 %v1897_v20, %v1897_v20  ;;  %v2199_v39 = vld [vmem:[%s6186_s2] sm:$0xff] }
 0x730   :  { %v1899_v43 = vsub.f32 %v5688_v30, %v1896_v40  ;;  %v1898_v46 = vsub.f32 %v5690_v19, %v1895_v41  ;;  %v1903_v47 = vsel %vm73_vm1, %v1900_v42, 0.0 }
 0x731   :  { %1904 = vadd.xlane.f32.xlu1 %v1903_v47 }
 0x732   :  { %v1902_v48 = vmul.f32 %v1899_v43, %v1899_v43  ;;  %v1901_v51 = vmul.f32 %v1898_v46, %v1898_v46 }
 0x734   :  { %v1909_v52 = vsel %vm142_vm3, %v1902_v48, 0.0  ;;  %v1906_v53 = vsel %vm73_vm1, %v1901_v51, 0.0  ;;  %v2201_v48 = vld [vmem:[%s6186_s2 + $0x10] sm:$0x1] }
 0x735   :  { %1910 = vadd.xlane.f32.xlu1 %v1909_v52  ;;  %1907 = vadd.xlane.f32.xlu0 %v1906_v53  ;;  %v2200_v52 = vld [vmem:[%s6186_s2 + $0x8] sm:$0xff] }
 0x7ba   :  { %v1905_v59 = vpop.xlane.xlu1 %1904 }
 0x7bb   :  { %v1912_v60 = vmul.f32 0.03125, %v1905_v59 }
 0x7bd   :  { %v1915_v61 = vadd.f32 1e-05, %v1912_v60 }
 0x7be   :  { %v1908_v62 = vpop.xlane.xlu0 %1907  ;;  %v1911_v63 = vpop.xlane.xlu1 %1910 }
 0x7bf   :  { %5161 = vrsqrt.f32 %v1915_v61  ;;  %v1913_v44 = vmul.f32 0.03125, %v1908_v62  ;;  %v1914_v1 = vmul.f32 0.03125, %v1911_v63 }
 0x7c1   :  { %v1916_v45 = vadd.f32 1e-05, %v1913_v44  ;;  %v1917_v55 = vadd.f32 1e-05, %v1914_v1 }
 0x7c3   :  { %5163 = vrsqrt.f32 %v1916_v45 }
 0x7c4   :  { %5165 = vrsqrt.f32 %v1917_v55 }
 0x7cc   :  { %v5162_v57 = vpop.eup %5161 }
 0x7cd   :  { %v1921_v36 = vmul.f32 %v5162_v57, %v1897_v20 }
 0x7cf   :  { %v1930_v33 = vmul.f32 %v4271_v50, %v1921_v36 }
 0x7d0   :  { %v5164_v2 = vpop.eup %5163 }
 0x7d1   :  { %v5166_v4 = vpop.eup %5165  ;;  %v1922_v5 = vmul.f32 %v5164_v2, %v1898_v46  ;;  %v1939_v7 = vadd.f32 %v4272_v37, %v1930_v33 }
 0x7d2   :  { %v1923_v38 = vmul.f32 %v5166_v4, %v1899_v43 }
 0x7d3   :  { %v1931_v49 = vmul.f32 %v4271_v50, %v1922_v5 }
 0x7d4   :  { %v1932_v6 = vmul.f32 %v4271_v50, %v1923_v38 }
 0x7d5   :  { %v1940_v8 = vadd.f32 %v4272_v37, %v1931_v49  ;;  %v5077_v49 = vld [vmem:[%s6187_s5 + $0x8] sm:$0xff]  }
 0x7d6   :  { %v1941_v9 = vadd.f32 %v4272_v37, %v1932_v6  ;;  %v5078_v6 = vld [vmem:[%s6187_s5 + $0x18] sm:$0xff]  }
 0x7d7   :  { %v1942_v10 = vpack.c.bf16 %v1940_v8, %v1939_v7  ;;  %v5079_v7 = vld [vmem:[%s6187_s5] sm:$0xff]   ;;  %v5080_v8 = vld [vmem:[%s6187_s5 + $0x10] sm:$0xff]  }
 0x7d8   :  { %v1943_v13 = vpack.c.bf16 %v1941_v9, %v1941_v9  ;;  %v5081_v9 = vld [vmem:[%s6187_s5 + $0x28] sm:$0xff]  }
 0x7d9   :  { %4788 = vmatprep.mubr.msk.bf16.mxu1 %vm73_vm1, %v1942_v10  ;;  %v5082_v10 = vld [vmem:[%s6187_s5 + $0x38] sm:$0xff]  }
 0x7da   :  { %4789 = vmatmul.mubr.msk.bf16.vlgmr.msra.gmra.mxu1 %vm73_vm1, %v1943_v13 }
 0x7db   :  { %4805 = vmatpush3.bf16.msra.mxu1 %v5071_v12  ;;  %4808 = vmatprep.mubr.msk.bf16.mxu1 %vm5228_vm0, %v5227_v0  ;;  %v4278_v12 = vld [vmem:[%s6199_s15] ss:$0 sm:$0xff] }
 0x7dc   :  { %4806 = vmatprep.subr.bf16.mxu1 %v5227_v0  ;;  %v5076_v0 = vld [vmem:[%s6195_s14] sm:$0xff]  }
 0x7dd   :  { %4798 = vmatprep.subr.bf16.mxu0 %v5076_v0 }
 0x7de   :  { %4799 = vmatpush3.bf16.msra.mxu0 %v5076_v0 }
 0x7df   :  { %4807 = vmatpush3.bf16.msra.mxu1 %v5072_v14  ;;  %4820 = vmatprep.subr.bf16.mxu0 %v5078_v6 }
 0x7e0   :  { %4812 = vmatprep.subr.bf16.mxu1 %v5077_v49 }
 0x7e2   :  { %4809 = vmatmul.mubr.msk.bf16.vlgmr.msra.gmra.mxu1 %vm73_vm1, %v2129_v3 }
 0x7e3   :  { %4813 = vmatpush3.bf16.msra.mxu1 %v5077_v49 }
 0x7e4   :  { %4814 = vmatprep.subr.bf16.mxu1 %v5079_v7 }
 0x7e7   :  { %4815 = vmatpush3.bf16.msra.mxu1 %v5079_v7 }
 0x7e8   :  { %4828 = vmatprep.subr.bf16.mxu1 %v5081_v9 }
 0x89a   :  { %v4790_v21 = vpop.f32.mrf.mxu1 }
 0x89b   :  { %v2016_v24 = vadd.f32 %v4790_v21, %v4273_v22 }
 0x89c   :  { %v2007_v23 = vpop.f32.mrf.mxu1 }
 0x89d   :  { %v2008_v27 = vadd.f32 %v4273_v22, %v2007_v23  ;;  %v2023_v31 = vmax.f32 %v2016_v24, 0.0 }
 0x89e   :  { %v4791_v25 = vpop.f32.mrf.mxu1 }
 0x89f   :  { %v2021_v34 = vmax.f32 %v2008_v27, 0.0  ;;  %v2025_v43 = vpack.c.bf16 %v2023_v31, %v2023_v31 }
 0x8a0   :  { %v2010_v28 = vpop.f32.mrf.mxu1 }
 0x8a1   :  { %v2011_v11 = vadd.f32 %v4273_v22, %v2010_v28 }
 0x8a2   :  { %v2183_v32 = vpop.f32.mrf.mxu1 }
 0x8a3   :  { %v2022_v20 = vmax.f32 %v2011_v11, 0.0  ;;  %v2192_v35 = vrot.slane %v2183_v32, 7 }
 0x8a4   :  { %v4810_v40 = vpop.f32.mrf.mxu1 }
 0x8a5   :  { %v2024_v41 = vpack.c.bf16 %v2022_v20, %v2021_v34  ;;  %v2198_v42 = vsel %vm120_vm2, 0.0, %v2192_v35 }
 0x8a6   :  { %v5752_v46 = vadd.f32 %v2199_v39, %v2198_v42  ;;  %v2186_v47 = vpop.f32.mrf.mxu1 }
 0x8a7   :  { %v2193_v51 = vrot.slane %v2186_v47, 7  ;;  %4800 = vmatprep.mubr.msk.bf16.mxu0 %vm2065_vm8, %v2024_v41  ;;  %v4291_v41 = vld [vmem:[%s6191_s4] ss:$0 sm:$0xff] }
 0x8a8   :  { %4801 = vmatmul.mubr.msk.bf16.vlgmr.msra.gmra.mxu0 %vm2065_vm8, %v2025_v43  ;;  %v4811_v53 = vpop.f32.mrf.mxu1  ;;  %v2207_v54 = vsel %vm73_vm1, %v5752_v46, 0.0 }
 0x8a9   :  { %v2194_v56 = vsel %vm120_vm2, %v2192_v35, %v2193_v51  ;;  %v5765_v58 = vadd.f32 %v2201_v48, %v2193_v51  ;;  %2208 = vadd.xlane.f32.xlu0 %v2207_v54  ;;  %4821 = vmatpush3.bf16.msra.mxu0 %v5078_v6 }
 0x8aa   :  { %v5767_v59 = vadd.f32 %v2200_v52, %v2194_v56  ;;  %4822 = vmatprep.subr.bf16.mxu0 %v5080_v8  ;;  %v5083_v56 = vld [vmem:[%s6187_s5 + $0x20] sm:$0xff]  }
 0x8ab   :  { %v2213_v60 = vsel %vm142_vm3, %v5765_v58, 0.0 }
 0x8ac   :  { %v2210_v61 = vsel %vm73_vm1, %v5767_v59, 0.0 }
 0x8ad   :  { %2214 = vadd.xlane.f32.xlu0 %v2213_v60  ;;  %2211 = vadd.xlane.f32.xlu1 %v2210_v61  ;;  %v5084_v60 = vld [vmem:[%s6187_s5 + $0x30] sm:$0xff]   ;;  %v5085_v61 = vld [vmem:[%s6188_s6 + $0x8] sm:$0xff]  }
 0x8ae   :  { %4823 = vmatpush3.bf16.msra.mxu0 %v5080_v8 }
 0x8af   :  { %4836 = vmatprep.subr.bf16.mxu0 %v5082_v10 }
 0x932   :  { %v2209_v62 = vpop.xlane.xlu0 %2208 }
 0x933   :  { %v2216_v63 = vmul.f32 0.03125, %v2209_v62  ;;  %v5086_v62 = vld [vmem:[%s6188_s6 + $0x18] sm:$0xff]  }
 0x935   :  { %v2219_v44 = vsub.f32 %v5752_v46, %v2216_v63  ;;  %v5087_v63 = vld [vmem:[%s6188_s6] sm:$0xff]  }
 0x936   :  { %v2215_v1 = vpop.xlane.xlu0 %2214  ;;  %v2212_v45 = vpop.xlane.xlu1 %2211 }
 0x937   :  { %v2218_v55 = vmul.f32 0.03125, %v2215_v1  ;;  %v2217_v57 = vmul.f32 0.03125, %v2212_v45  ;;  %v2222_v36 = vmul.f32 %v2219_v44, %v2219_v44  ;;  %v5089_v1 = vld [vmem:[%s6188_s6 + $0x28] sm:$0xff]   ;;  %v5090_v45 = vld [vmem:[%s6188_s6 + $0x38] sm:$0xff]  }
 0x939   :  { %v2221_v50 = vsub.f32 %v5765_v58, %v2218_v55  ;;  %v2220_v2 = vsub.f32 %v5767_v59, %v2217_v57  ;;  %v2225_v4 = vsel %vm73_vm1, %v2222_v36, 0.0  ;;  %v5091_v55 = vld [vmem:[%s6188_s6 + $0x20] sm:$0xff]   ;;  %v5092_v57 = vld [vmem:[%s6188_s6 + $0x30] sm:$0xff]   ;;  %v5093_v36 = vld [vmem:[%s6189_s7 + $0x8] sm:$0xff]  }
 0x93a   :  { %2226 = vadd.xlane.f32.xlu1 %v2225_v4  ;;  %v5096_v4 = vld [vmem:[%s6189_s7 + $0x10] sm:$0xff]  }
 0x93b   :  { %v2224_v5 = vmul.f32 %v2221_v50, %v2221_v50  ;;  %v2223_v33 = vmul.f32 %v2220_v2, %v2220_v2 }
 0x93d   :  { %v2231_v38 = vsel %vm142_vm3, %v2224_v5, 0.0  ;;  %v2228_v37 = vsel %vm73_vm1, %v2223_v33, 0.0  ;;  %v5097_v5 = vld [vmem:[%s6189_s7 + $0x28] sm:$0xff]   ;;  %v5098_v33 = vld [vmem:[%s6189_s7 + $0x38] sm:$0xff]  }
 0x93e   :  { %2232 = vadd.xlane.f32.xlu1 %v2231_v38  ;;  %2229 = vadd.xlane.f32.xlu0 %v2228_v37  ;;  %v5099_v38 = vld [vmem:[%s6189_s7 + $0x20] sm:$0xff]   ;;  %v5100_v37 = vld [vmem:[%s6189_s7 + $0x30] sm:$0xff]  }
 0x968   :  { %v4802_v13 = vpop.f32.mrf.mxu0 }
 0x969   :  { %v2115_v14 = vadd.f32 %v4802_v13, %v4278_v12 }
 0x96a   :  { %v2106_v15 = vpop.f32.mrf.mxu0 }
 0x96b   :  { %v2122_v16 = vadd.f32 %v2115_v14, %v5688_v30  ;;  %v2107_v3 = vadd.f32 %v4278_v12, %v2106_v15 }
 0x96c   :  { %v4803_v17 = vpop.f32.mrf.mxu0 }
 0x96d   :  { %2125 = vst.msk [vmem:[%s6200_s16 + $0x10] sm:$0x1] %vm142_vm3, %v2122_v16  ;;  %v2120_v18 = vadd.f32 %v2107_v3, %v5683_v26 }
 0x96e   :  { %v2109_v0 = vpop.f32.mrf.mxu0 }
 0x96f   :  { %2123 = vst.msk [vmem:[%s6200_s16] sm:$0xff] %vm73_vm1, %v2120_v18  ;;  %v2110_v21 = vadd.f32 %v4278_v12, %v2109_v0 }
 0x971   :  { %v2121_v22 = vadd.f32 %v2110_v21, %v5690_v19  ;;  %v4290_v19 = vld [vmem:[%s6190_s3] ss:$0 sm:$0xff] }
 0x973   :  { %2124 = vst.msk [vmem:[%s6200_s16 + $0x8] sm:$0xff] %vm73_vm1, %v2121_v22 }
 0x9c3   :  { %v2227_v30 = vpop.xlane.xlu1 %2226 }
 0x9c4   :  { %v2234_v23 = vmul.f32 0.03125, %v2227_v30 }
 0x9c6   :  { %v2237_v24 = vadd.f32 1e-05, %v2234_v23 }
 0x9c7   :  { %v2230_v25 = vpop.xlane.xlu0 %2229  ;;  %v2233_v27 = vpop.xlane.xlu1 %2232 }
 0x9c8   :  { %5167 = vrsqrt.f32 %v2237_v24  ;;  %v2235_v26 = vmul.f32 0.03125, %v2230_v25  ;;  %v2236_v28 = vmul.f32 0.03125, %v2233_v27 }
 0x9ca   :  { %v2238_v11 = vadd.f32 1e-05, %v2235_v26  ;;  %v2239_v31 = vadd.f32 1e-05, %v2236_v28 }
 0x9cc   :  { %5169 = vrsqrt.f32 %v2238_v11 }
 0x9cd   :  { %5171 = vrsqrt.f32 %v2239_v31 }
 0x9d5   :  { %v5168_v32 = vpop.eup %5167 }
 0x9d6   :  { %v2243_v34 = vmul.f32 %v5168_v32, %v2219_v44  ;;  %v5088_v44 = vld [vmem:[%s6188_s6 + $0x10] sm:$0xff]  }
 0x9d8   :  { %v2252_v39 = vmul.f32 %v4290_v19, %v2243_v34 }
 0x9d9   :  { %v5170_v20 = vpop.eup %5169 }
 0x9da   :  { %v5172_v35 = vpop.eup %5171  ;;  %v2244_v40 = vmul.f32 %v5170_v20, %v2220_v2  ;;  %v2261_v48 = vadd.f32 %v4291_v41, %v2252_v39  ;;  %v5095_v2 = vld [vmem:[%s6189_s7] sm:$0xff]  }
 0x9db   :  { %v2245_v42 = vmul.f32 %v5172_v35, %v2221_v50  ;;  %v5094_v50 = vld [vmem:[%s6189_s7 + $0x18] sm:$0xff]  }
 0x9dc   :  { %v2253_v43 = vmul.f32 %v4290_v19, %v2244_v40 }
 0x9dd   :  { %v2254_v47 = vmul.f32 %v4290_v19, %v2245_v42 }
 0x9de   :  { %v2262_v51 = vadd.f32 %v4291_v41, %v2253_v43 }
 0x9df   :  { %v2263_v52 = vadd.f32 %v4291_v41, %v2254_v47 }
 0x9e0   :  { %v5821_v53 = vpack.c.bf16 %v2262_v51, %v2261_v48 }
 0x9e1   :  { %v5823_v54 = vpack.c.bf16 %v2263_v52, %v2263_v52 }
 0x9e2   :  { %4816 = vmatprep.mubr.msk.bf16.mxu1 %vm73_vm1, %v5821_v53  ;;  %4824 = vmatprep.mubr.msk.bf16.mxu0 %vm73_vm1, %v5821_v53 }
 0x9e3   :  { %4817 = vmatmul.mubr.msk.bf16.vlgmr.msra.gmra.mxu1 %vm73_vm1, %v5823_v54  ;;  %4825 = vmatmul.mubr.msk.bf16.vlgmr.msra.gmra.mxu0 %vm73_vm1, %v5823_v54 }
 0x9e4   :  { %4829 = vmatpush3.bf16.msra.mxu1 %v5081_v9  ;;  %4837 = vmatpush3.bf16.msra.mxu0 %v5082_v10 }
 0x9e5   :  { %4832 = vmatprep.mubr.msk.bf16.mxu1 %vm73_vm1, %v5821_v53  ;;  %4840 = vmatprep.mubr.msk.bf16.mxu0 %vm73_vm1, %v5821_v53 }
 0x9e6   :  { %4830 = vmatprep.subr.bf16.mxu1 %v5083_v56  ;;  %4838 = vmatprep.subr.bf16.mxu0 %v5084_v60 }
 0x9e8   :  { %4831 = vmatpush3.bf16.msra.mxu1 %v5083_v56  ;;  %4839 = vmatpush3.bf16.msra.mxu0 %v5084_v60 }
 0x9e9   :  { %4844 = vmatprep.subr.bf16.mxu1 %v5085_v61  ;;  %4852 = vmatprep.subr.bf16.mxu0 %v5086_v62 }
 0x9eb   :  { %4833 = vmatmul.mubr.msk.bf16.vlgmr.msra.gmra.mxu1 %vm73_vm1, %v5823_v54  ;;  %4841 = vmatmul.mubr.msk.bf16.vlgmr.msra.gmra.mxu0 %vm73_vm1, %v5823_v54 }
 0x9ec   :  { %4845 = vmatpush3.bf16.msra.mxu1 %v5085_v61  ;;  %4853 = vmatpush3.bf16.msra.mxu0 %v5086_v62 }
 0x9ed   :  { %4848 = vmatprep.mubr.msk.bf16.mxu1 %vm73_vm1, %v5821_v53  ;;  %4856 = vmatprep.mubr.msk.bf16.mxu0 %vm73_vm1, %v5821_v53 }
 0x9ee   :  { %4846 = vmatprep.subr.bf16.mxu1 %v5087_v63  ;;  %4854 = vmatprep.subr.bf16.mxu0 %v5088_v44 }
 0x9f0   :  { %4847 = vmatpush3.bf16.msra.mxu1 %v5087_v63  ;;  %4855 = vmatpush3.bf16.msra.mxu0 %v5088_v44 }
 0x9f1   :  { %4860 = vmatprep.subr.bf16.mxu1 %v5089_v1  ;;  %4868 = vmatprep.subr.bf16.mxu0 %v5090_v45 }
 0x9f3   :  { %4849 = vmatmul.mubr.msk.bf16.vlgmr.msra.gmra.mxu1 %vm73_vm1, %v5823_v54  ;;  %4857 = vmatmul.mubr.msk.bf16.vlgmr.msra.gmra.mxu0 %vm73_vm1, %v5823_v54 }
 0x9f4   :  { %4861 = vmatpush3.bf16.msra.mxu1 %v5089_v1  ;;  %4864 = vmatprep.mubr.msk.bf16.mxu1 %vm73_vm1, %v5821_v53 }
 0x9f5   :  { %4869 = vmatpush3.bf16.msra.mxu0 %v5090_v45  ;;  %4872 = vmatprep.mubr.msk.bf16.mxu0 %vm73_vm1, %v5821_v53 }
 0x9f6   :  { %4862 = vmatprep.subr.bf16.mxu1 %v5091_v55  ;;  %4870 = vmatprep.subr.bf16.mxu0 %v5092_v57 }
 0x9f8   :  { %4863 = vmatpush3.bf16.msra.mxu1 %v5091_v55 }
 0x9f9   :  { %4871 = vmatpush3.bf16.msra.mxu0 %v5092_v57  ;;  %4876 = vmatprep.subr.bf16.mxu1 %v5093_v36 }
 0x9fa   :  { %4884 = vmatprep.subr.bf16.mxu0 %v5094_v50 }
 0x9fb   :  { %4865 = vmatmul.mubr.msk.bf16.vlgmr.msra.gmra.mxu1 %vm73_vm1, %v5823_v54 }
 0x9fc   :  { %4873 = vmatmul.mubr.msk.bf16.vlgmr.msra.gmra.mxu0 %vm73_vm1, %v5823_v54  ;;  %4877 = vmatpush3.bf16.msra.mxu1 %v5093_v36 }
 0x9fd   :  { %4880 = vmatprep.mubr.msk.bf16.mxu1 %vm73_vm1, %v5821_v53  ;;  %4885 = vmatpush3.bf16.msra.mxu0 %v5094_v50 }
 0x9fe   :  { %4888 = vmatprep.mubr.msk.bf16.mxu0 %vm73_vm1, %v5821_v53  ;;  %4878 = vmatprep.subr.bf16.mxu1 %v5095_v2 }
 0x9ff   :  { %4886 = vmatprep.subr.bf16.mxu0 %v5096_v4 }
 0xa00   :  { %4879 = vmatpush3.bf16.msra.mxu1 %v5095_v2 }
 0xa01   :  { %4887 = vmatpush3.bf16.msra.mxu0 %v5096_v4  ;;  %4892 = vmatprep.subr.bf16.mxu1 %v5097_v5 }
 0xa02   :  { %4900 = vmatprep.subr.bf16.mxu0 %v5098_v33 }
 0xa03   :  { %4881 = vmatmul.mubr.msk.bf16.vlgmr.msra.gmra.mxu1 %vm73_vm1, %v5823_v54 }
 0xa04   :  { %4889 = vmatmul.mubr.msk.bf16.vlgmr.msra.gmra.mxu0 %vm73_vm1, %v5823_v54  ;;  %4893 = vmatpush3.bf16.msra.mxu1 %v5097_v5 }
 0xa05   :  { %4896 = vmatprep.mubr.msk.bf16.mxu1 %vm73_vm1, %v5821_v53  ;;  %4901 = vmatpush3.bf16.msra.mxu0 %v5098_v33 }
 0xa06   :  { %4904 = vmatprep.mubr.msk.bf16.mxu0 %vm73_vm1, %v5821_v53  ;;  %4894 = vmatprep.subr.bf16.mxu1 %v5099_v38 }
 0xa07   :  { %4902 = vmatprep.subr.bf16.mxu0 %v5100_v37 }
 0xa08   :  { %4895 = vmatpush3.bf16.msra.mxu1 %v5099_v38 }
 0xa09   :  { %4903 = vmatpush3.bf16.msra.mxu0 %v5100_v37 }
 0xa0b   :  { %4897 = vmatmul.mubr.msk.bf16.vlgmr.msra.gmra.mxu1 %vm73_vm1, %v5823_v54 }
 0xa0c   :  { %4905 = vmatmul.mubr.msk.bf16.vlgmr.msra.gmra.mxu0 %vm73_vm1, %v5823_v54 }
 0xaa3   :  { %v5927_v49 = vpop.f32.mrf.mxu1  ;;  %v5929_v6 = vpop.f32.mrf.mxu0 }
 0xaa4   :  { %v3041_v62 = vpack.c.bf16 %v5927_v49, %v5927_v49  ;;  %v3043_v63 = vpack.c.bf16 %v5929_v6, %v5929_v6 }
 0xaa5   :  { %v2334_v7 = vpop.f32.mrf.mxu1  ;;  %v2394_v8 = vpop.f32.mrf.mxu0 }
 0xaa7   :  { %v4819_v9 = vpop.f32.mrf.mxu1  ;;  %v4827_v10 = vpop.f32.mrf.mxu0 }
 0xaa9   :  { %v2337_v12 = vpop.f32.mrf.mxu1  ;;  %v2397_v13 = vpop.f32.mrf.mxu0 }
 0xaaa   :  { %v3040_v14 = vpack.c.bf16 %v2337_v12, %v2334_v7  ;;  %v3042_v15 = vpack.c.bf16 %v2397_v13, %v2394_v8 }
 0xaab   :  { %v5931_v16 = vpop.f32.mrf.mxu1  ;;  %v5933_v3 = vpop.f32.mrf.mxu0 }
 0xaac   :  { %4912 = vmatprep.mubr.msk.bf16.mxu1 %vm987_vm4, %v3040_v14  ;;  %4920 = vmatprep.mubr.msk.bf16.mxu0 %vm987_vm4, %v3042_v15 }
 0xaad   :  { %v2454_v17 = vpop.f32.mrf.mxu1  ;;  %v2514_v18 = vpop.f32.mrf.mxu0 }
 0xaaf   :  { %v4835_v0 = vpop.f32.mrf.mxu1  ;;  %v4843_v21 = vpop.f32.mrf.mxu0 }
 0xab0   :  { %v3045_v0 = vpack.c.bf16 %v5931_v16, %v5931_v16  ;;  %v3047_v21 = vpack.c.bf16 %v5933_v3, %v5933_v3 }
 0xab1   :  { %v2457_v22 = vpop.f32.mrf.mxu1  ;;  %v2517_v30 = vpop.f32.mrf.mxu0 }
 0xab2   :  { %v3044_v1 = vpack.c.bf16 %v2457_v22, %v2454_v17  ;;  %v3046_v55 = vpack.c.bf16 %v2517_v30, %v2514_v18 }
 0xab3   :  { %v4850_v23 = vpop.f32.mrf.mxu1  ;;  %v4858_v24 = vpop.f32.mrf.mxu0 }
 0xab4   :  { %v3049_v25 = vpack.c.bf16 %v4850_v23, %v4850_v23  ;;  %v3051_v27 = vpack.c.bf16 %v4858_v24, %v4858_v24 }
 0xab5   :  { %v2590_v26 = vpop.f32.mrf.mxu1  ;;  %v2650_v28 = vpop.f32.mrf.mxu0 }
 0xab6   :  { %v3066_v11 = vsel %vm987_vm4, %v3049_v25, 0  ;;  %v3126_v31 = vsel %vm987_vm4, %v3051_v27, 0  ;;  %5028 = vmatprep.subr.msk.bf16.mxu1 %vm987_vm4, %v3049_v25  ;;  %5030 = vmatprep.subr.msk.bf16.mxu0 %vm987_vm4, %v3051_v27 }
 0xab7   :  { %v4851_v32 = vpop.f32.mrf.mxu1  ;;  %v4859_v34 = vpop.f32.mrf.mxu0  ;;  %4909 = vmatpush3.bf16.xpose.msra.mxu1 %v3066_v11  ;;  %4917 = vmatpush3.bf16.xpose.msra.mxu0 %v3126_v31 }
 0xab9   :  { %v2593_v19 = vpop.f32.mrf.mxu1  ;;  %v2653_v20 = vpop.f32.mrf.mxu0 }
 0xaba   :  { %v3048_v35 = vpack.c.bf16 %v2593_v19, %v2590_v26  ;;  %v3050_v39 = vpack.c.bf16 %v2653_v20, %v2650_v28 }
 0xabb   :  { %v4866_v40 = vpop.f32.mrf.mxu1 }
 0xabc   :  { %v4874_v41 = vpop.f32.mrf.mxu0  ;;  %5029 = vmatprep.subr.msk.bf16.mxu1 %vm987_vm4, %v3048_v35  ;;  %5031 = vmatprep.subr.msk.bf16.mxu0 %vm987_vm4, %v3050_v39  ;;  %v3063_v43 = vsel %vm987_vm4, %v3048_v35, 0  ;;  %v3123_v47 = vsel %vm987_vm4, %v3050_v39, 0  ;;  %v3053_v48 = vpack.c.bf16 %v4866_v40, %v4866_v40 }
 0xabd   :  { %v2710_v42 = vpop.f32.mrf.mxu1  ;;  %v3055_v51 = vpack.c.bf16 %v4874_v41, %v4874_v41 }
 0xabe   :  { %v2770_v52 = vpop.f32.mrf.mxu0  ;;  %v3186_v57 = vsel %vm987_vm4, %v3053_v48, 0 }
 0xabf   :  { %v4867_v53 = vpop.f32.mrf.mxu1  ;;  %4911 = vmatpush3.bf16.xpose.msra.mxu1 %v3063_v43  ;;  %4919 = vmatpush3.bf16.xpose.msra.mxu0 %v3123_v47  ;;  %v3246_v50 = vsel %vm987_vm4, %v3055_v51, 0 }
 0xac0   :  { %v4875_v54 = vpop.f32.mrf.mxu0  ;;  %5032 = vmatprep.subr.msk.bf16.mxu1 %vm987_vm4, %v3053_v48  ;;  %5034 = vmatprep.subr.msk.bf16.mxu0 %vm987_vm4, %v3055_v51 }
 0xac1   :  { %v2713_v56 = vpop.f32.mrf.mxu1 }
 0xac2   :  { %v2773_v60 = vpop.f32.mrf.mxu0  ;;  %v3052_v2 = vpack.c.bf16 %v2713_v56, %v2710_v42 }
 0xac3   :  { %v4882_v61 = vpop.f32.mrf.mxu1  ;;  %v3054_v4 = vpack.c.bf16 %v2773_v60, %v2770_v52 }
 0xac4   :  { %v4890_v44 = vpop.f32.mrf.mxu0  ;;  %v3437_v37 = vpack.c.bf16 %v4882_v61, %v4882_v61  ;;  %v3183_v10 = vsel %vm987_vm4, %v3052_v2, 0 }
 0xac5   :  { %v2846_v45 = vpop.f32.mrf.mxu1  ;;  %v3439_v6 = vpack.c.bf16 %v4890_v44, %v4890_v44  ;;  %v3243_v14 = vsel %vm987_vm4, %v3054_v4, 0 }
 0xac6   :  { %v2906_v36 = vpop.f32.mrf.mxu0  ;;  %4913 = vmatmul.mubr.msk.bf16.vlgmr.msra.gmra.mxu1 %vm987_vm4, %v3041_v62  ;;  %4921 = vmatmul.mubr.msk.bf16.vlgmr.msra.gmra.mxu0 %vm987_vm4, %v3043_v63  ;;  %v3451_v12 = vand.u32 %v3437_v37, %v5524_v29 }
 0xac7   :  { %v4883_v5 = vpop.f32.mrf.mxu1  ;;  %4925 = vmatpush3.bf16.xpose.msra.mxu1 %v3186_v57  ;;  %4928 = vmatprep.mubr.msk.bf16.mxu1 %vm987_vm4, %v3044_v1  ;;  %v3508_v15 = vand.u32 %v3439_v6, %v5524_v29 }
 0xac8   :  { %v4891_v33 = vpop.f32.mrf.mxu0  ;;  %4933 = vmatpush3.bf16.xpose.msra.mxu0 %v3246_v50  ;;  %4936 = vmatprep.mubr.msk.bf16.mxu0 %vm987_vm4, %v3046_v55 }
 0xac9   :  { %5033 = vmatprep.subr.msk.bf16.mxu1 %vm987_vm4, %v3052_v2  ;;  %5035 = vmatprep.subr.msk.bf16.mxu0 %vm987_vm4, %v3054_v4  ;;  %v2849_v38 = vpop.f32.mrf.mxu1 }
 0xaca   :  { %v2909_v49 = vpop.f32.mrf.mxu0  ;;  %v3436_v22 = vpack.c.bf16 %v2849_v38, %v2846_v45 }
 0xacb   :  { %v4898_v7 = vpop.f32.mrf.mxu1  ;;  %v3438_v23 = vpack.c.bf16 %v2909_v49, %v2906_v36 }
 0xacc   :  { %v4906_v8 = vpop.f32.mrf.mxu0  ;;  %v3441_v30 = vpack.c.bf16 %v4898_v7, %v4898_v7 }
 0xacd   :  { %v5959_v9 = vpop.f32.mrf.mxu1  ;;  %v3443_v24 = vpack.c.bf16 %v4906_v8, %v4906_v8 }
 0xace   :  { %v5963_v13 = vpop.f32.mrf.mxu0  ;;  %v5974_v25 = vand.u32 %v3441_v30, %v5524_v29 }
 0xacf   :  { %v4899_v17 = vpop.f32.mrf.mxu1  ;;  %4927 = vmatpush3.bf16.xpose.msra.mxu1 %v3183_v10  ;;  %v5977_v16 = vand.u32 %v3443_v24, %v5524_v29 }
 0xad0   :  { %v4907_v18 = vpop.f32.mrf.mxu0  ;;  %4935 = vmatpush3.bf16.xpose.msra.mxu0 %v3243_v14  ;;  %4940 = vmatprep.subr.bf16.mxu1 %v3451_v12 }
 0xad1   :  { %4948 = vmatprep.subr.bf16.mxu0 %v3508_v15  ;;  %v5981_v3 = vpop.f32.mrf.mxu1 }
 0xad2   :  { %v5983_v27 = vpop.f32.mrf.mxu0 }
 0xad6   :  { %4929 = vmatmul.mubr.msk.bf16.vlgmr.msra.gmra.mxu1 %vm987_vm4, %v3045_v0 }
 0xad7   :  { %4937 = vmatmul.mubr.msk.bf16.vlgmr.msra.gmra.mxu0 %vm987_vm4, %v3047_v21  ;;  %4941 = vmatpush3.bf16.msra.mxu1 %v3451_v12 }
 0xad8   :  { %4949 = vmatpush3.bf16.msra.mxu0 %v3508_v15  ;;  %4942 = vmatprep.subr.bf16.mxu1 %v3436_v22 }
 0xad9   :  { %4950 = vmatprep.subr.bf16.mxu0 %v3438_v23 }
 0xadb   :  { %4943 = vmatpush3.bf16.msra.mxu1 %v3436_v22 }
 0xadc   :  { %4951 = vmatpush3.bf16.msra.mxu0 %v3438_v23  ;;  %4956 = vmatprep.subr.bf16.mxu1 %v5974_v25 }
 0xadd   :  { %4964 = vmatprep.subr.bf16.mxu0 %v5977_v16 }
 0xb86   :  { %v4914_v26 = vpop.f32.mrf.mxu1  ;;  %v4922_v28 = vpop.f32.mrf.mxu0 }
 0xb87   :  { %v3302_v11 = vsel %vm1235_vm5, %v4914_v26, -inf  ;;  %v3311_v31 = vsel %vm1235_vm5, %v4922_v28, -inf }
 0xb88   :  { %3303 = vmax.xlane.f32.xlu0 %v3302_v11  ;;  %v3102_v32 = vpop.f32.mrf.mxu1  ;;  %3312 = vmax.xlane.f32.xlu1 %v3311_v31  ;;  %v3162_v29 = vpop.f32.mrf.mxu0 }
 0xb89   :  { %v3296_v20 = vsel %vm1228_vm6, %v3102_v32, -inf  ;;  %v3305_v35 = vsel %vm1228_vm6, %v3162_v29, -inf }
 0xb8a   :  { %v4915_v34 = vpop.f32.mrf.mxu1  ;;  %v4923_v19 = vpop.f32.mrf.mxu0 }
 0xb8c   :  { %3297 = vmax.xlane.f32.xlu0 %v3296_v20  ;;  %v3105_v39 = vpop.f32.mrf.mxu1  ;;  %3306 = vmax.xlane.f32.xlu1 %v3305_v35  ;;  %v3165_v40 = vpop.f32.mrf.mxu0 }
 0xb8d   :  { %v3299_v41 = vsel %vm1228_vm6, %v3105_v39, -inf  ;;  %v3308_v42 = vsel %vm1228_vm6, %v3165_v40, -inf }
 0xb90   :  { %3300 = vmax.xlane.f32.xlu1 %v3299_v41  ;;  %3309 = vmax.xlane.f32.xlu0 %v3308_v42 }
 0xb96   :  { %v4930_v43 = vpop.f32.mrf.mxu1 }
 0xb97   :  { %v5991_v47 = vpop.f32.mrf.mxu0  ;;  %v3320_v48 = vsel %vm1235_vm5, %v4930_v43, -inf }
 0xb98   :  { %v3222_v51 = vpop.f32.mrf.mxu1  ;;  %3321 = vmax.xlane.f32.xlu0 %v3320_v48  ;;  %v3329_v1 = vsel %vm1235_vm5, %v5991_v47, -inf }
 0xb99   :  { %v3282_v52 = vpop.f32.mrf.mxu0  ;;  %v3314_v60 = vsel %vm1228_vm6, %v3222_v51, -inf }
 0xb9a   :  { %v4931_v53 = vpop.f32.mrf.mxu1  ;;  %v3323_v54 = vsel %vm1228_vm6, %v3282_v52, -inf }
 0xb9b   :  { %3324 = vmax.xlane.f32.xlu1 %v3323_v54  ;;  %v4939_v56 = vpop.f32.mrf.mxu0 }
 0xb9c   :  { %v3225_v61 = vpop.f32.mrf.mxu1  ;;  %3315 = vmax.xlane.f32.xlu0 %v3314_v60 }
 0xb9d   :  { %v3285_v62 = vpop.f32.mrf.mxu0  ;;  %v3317_v63 = vsel %vm1228_vm6, %v3225_v61, -inf }
 0xb9e   :  { %v3326_v44 = vsel %vm1228_vm6, %v3285_v62, -inf }
 0xb9f   :  { %3318 = vmax.xlane.f32.xlu1 %v3317_v63 }
 0xba0   :  { %3327 = vmax.xlane.f32.xlu0 %v3326_v44 }
 0xba3   :  { %3330 = vmax.xlane.f32.xlu1 %v3329_v1 }
 0xc11   :  { %v3304_v45 = vpop.xlane.xlu0 %3303  ;;  %v3313_v55 = vpop.xlane.xlu1 %3312 }
 0xc12   :  { %v3334_v57 = vsub.f32 %v4914_v26, %v3304_v45  ;;  %v3337_v36 = vsub.f32 %v4922_v28, %v3313_v55 }
 0xc14   :  { %v3348_v50 = vmul.f32 1.442695, %v3334_v57  ;;  %v3354_v2 = vmul.f32 1.442695, %v3337_v36 }
 0xc15   :  { %v3298_v4 = vpop.xlane.xlu0 %3297  ;;  %v3307_v5 = vpop.xlane.xlu1 %3306 }
 0xc16   :  { %5173 = vpow2.f32 %v3348_v50  ;;  %v3332_v33 = vsub.f32 %v3102_v32, %v3298_v4  ;;  %v3335_v38 = vsub.f32 %v3162_v29, %v3307_v5 }
 0xc17   :  { %5175 = vpow2.f32 %v3354_v2 }
 0xc18   :  { %v3344_v37 = vmul.f32 1.442695, %v3332_v33  ;;  %v3350_v49 = vmul.f32 1.442695, %v3335_v38 }
 0xc19   :  { %v3301_v6 = vpop.xlane.xlu1 %3300  ;;  %v3310_v7 = vpop.xlane.xlu0 %3309 }
 0xc1a   :  { %5177 = vpow2.f32 %v3344_v37  ;;  %v3333_v8 = vsub.f32 %v3105_v39, %v3301_v6  ;;  %v3336_v10 = vsub.f32 %v3165_v40, %v3310_v7 }
 0xc1b   :  { %5179 = vpow2.f32 %v3350_v49 }
 0xc1c   :  { %v3346_v12 = vmul.f32 1.442695, %v3333_v8  ;;  %v3352_v14 = vmul.f32 1.442695, %v3336_v10 }
 0xc1e   :  { %5181 = vpow2.f32 %v3346_v12 }
 0xc1f   :  { %5183 = vpow2.f32 %v3352_v14 }
 0xc21   :  { %v3322_v15 = vpop.xlane.xlu0 %3321 }
 0xc22   :  { %v3340_v17 = vsub.f32 %v4930_v43, %v3322_v15 }
 0xc23   :  { %v6000_v18 = vpop.eup %5173 }
 0xc24   :  { %v6002_v0 = vpop.eup %5175  ;;  %v3360_v21 = vmul.f32 1.442695, %v3340_v17  ;;  %v3325_v22 = vpop.xlane.xlu1 %3324  ;;  %v3374_v30 = vsel %vm1235_vm5, %v6000_v18, 0.0 }
 0xc25   :  { %v3341_v23 = vsub.f32 %v3282_v52, %v3325_v22  ;;  %v3316_v24 = vpop.xlane.xlu0 %3315  ;;  %v3383_v26 = vsel %vm1235_vm5, %v6002_v0, 0.0  ;;  %3375 = vadd.xlane.f32.xlu0 %v3374_v30 }
 0xc26   :  { %5185 = vpow2.f32 %v3360_v21  ;;  %v3338_v28 = vsub.f32 %v3222_v51, %v3316_v24  ;;  %3384 = vadd.xlane.f32.xlu1 %v3383_v26 }
 0xc27   :  { %v6008_v11 = vpop.eup %5177  ;;  %v3362_v31 = vmul.f32 1.442695, %v3341_v23 }
 0xc28   :  { %v6010_v32 = vpop.eup %5179  ;;  %v3356_v29 = vmul.f32 1.442695, %v3338_v28  ;;  %v3319_v34 = vpop.xlane.xlu1 %3318  ;;  %v3368_v19 = vsel %vm1228_vm6, %v6008_v11, 0.0 }
 0xc29   :  { %5187 = vpow2.f32 %v3362_v31  ;;  %v3339_v20 = vsub.f32 %v3225_v61, %v3319_v34  ;;  %v3377_v35 = vsel %vm1228_vm6, %v6010_v32, 0.0  ;;  %3369 = vadd.xlane.f32.xlu0 %v3368_v19  ;;  %v3328_v39 = vpop.xlane.xlu0 %3327 }
 0xc2a   :  { %5189 = vpow2.f32 %v3356_v29  ;;  %3378 = vadd.xlane.f32.xlu1 %v3377_v35  ;;  %v3342_v40 = vsub.f32 %v3285_v62, %v3328_v39  ;;  %v3440_v35 = vpack.c.bf16 %v5981_v3, %v5959_v9 }
 0xc2b   :  { %v5182_v41 = vpop.eup %5181  ;;  %v3358_v42 = vmul.f32 1.442695, %v3339_v20 }
 0xc2c   :  { %v6016_v43 = vpop.eup %5183  ;;  %v3364_v48 = vmul.f32 1.442695, %v3342_v40  ;;  %v3331_v51 = vpop.xlane.xlu1 %3330  ;;  %v3371_v52 = vsel %vm1228_vm6, %v5182_v41, 0.0 }
 0xc2d   :  { %5191 = vpow2.f32 %v3358_v42  ;;  %v3343_v53 = vsub.f32 %v5991_v47, %v3331_v51  ;;  %v3380_v54 = vsel %vm1228_vm6, %v6016_v43, 0.0 }
 0xc2e   :  { %5193 = vpow2.f32 %v3364_v48  ;;  %3372 = vadd.xlane.f32.xlu1 %v3371_v52  ;;  %3381 = vadd.xlane.f32.xlu0 %v3380_v54  ;;  %v3681_v54 = vld [vmem:[%s6192_s8 + $0x4] sm:$0xf] }
 0xc2f   :  { %v3366_v56 = vmul.f32 1.442695, %v3343_v53  ;;  %v3680_v53 = vld [vmem:[%s6192_s8] sm:$0xf] }
 0xc31   :  { %5195 = vpow2.f32 %v3366_v56  ;;  %v3691_v56 = vsel %vm1626_vm7, %v3680_v53, 0 }
 0xc33   :  { %v6022_v60 = vpop.eup %5185 }
 0xc34   :  { %v3392_v61 = vsel %vm1235_vm5, %v6022_v60, 0.0 }
 0xc35   :  { %3393 = vadd.xlane.f32.xlu0 %v3392_v61  ;;  %v3682_v61 = vld [vmem:[%s6192_s8 + $0x8] sm:$0xf] }
 0xc36   :  { %v6026_v62 = vpop.eup %5187 }
 0xc37   :  { %v6028_v63 = vpop.eup %5189  ;;  %v3395_v47 = vsel %vm1228_vm6, %v6026_v62, 0.0 }
 0xc38   :  { %3396 = vadd.xlane.f32.xlu1 %v3395_v47  ;;  %v3386_v44 = vsel %vm1228_vm6, %v6028_v63, 0.0 }
 0xc39   :  { %3387 = vadd.xlane.f32.xlu0 %v3386_v44 }
 0xc3a   :  { %v6034_v1 = vpop.eup %5191 }
 0xc3b   :  { %v6036_v45 = vpop.eup %5193  ;;  %v3389_v55 = vsel %vm1228_vm6, %v6034_v1, 0.0 }
 0xc3c   :  { %3390 = vadd.xlane.f32.xlu1 %v3389_v55  ;;  %v3398_v57 = vsel %vm1228_vm6, %v6036_v45, 0.0 }
 0xc3d   :  { %3399 = vadd.xlane.f32.xlu0 %v3398_v57 }
 0xc3e   :  { %v6042_v36 = vpop.eup %5195 }
 0xc3f   :  { %v3401_v50 = vsel %vm1235_vm5, %v6042_v36, 0.0 }
 0xc40   :  { %3402 = vadd.xlane.f32.xlu1 %v3401_v50 }
 0xcae   :  { %v3376_v2 = vpop.xlane.xlu0 %3375 }
 0xcaf   :  { %v3385_v4 = vpop.xlane.xlu1 %3384  ;;  %5197 = vrcp.f32 %v3376_v2 }
 0xcb0   :  { %5199 = vrcp.f32 %v3385_v4 }
 0xcb2   :  { %v3370_v5 = vpop.xlane.xlu0 %3369 }
 0xcb3   :  { %v3379_v33 = vpop.xlane.xlu1 %3378  ;;  %5201 = vrcp.f32 %v3370_v5  ;;  %v3805_v5 = vsel %vm1626_vm7, %v3682_v61, 0 }
 0xcb4   :  { %5203 = vrcp.f32 %v3379_v33 }
 0xcb7   :  { %v3373_v38 = vpop.xlane.xlu1 %3372  ;;  %v3382_v37 = vpop.xlane.xlu0 %3381 }
 0xcb8   :  { %5205 = vrcp.f32 %v3373_v38 }
 0xcb9   :  { %5207 = vrcp.f32 %v3382_v37 }
 0xcbc   :  { %v5198_v6 = vpop.eup %5197 }
 0xcbd   :  { %v5200_v8 = vpop.eup %5199  ;;  %v3418_v21 = vmul.f32 %v5198_v6, %v6000_v18 }
 0xcbe   :  { %v3394_v49 = vpop.xlane.xlu0 %3393  ;;  %v3421_v26 = vmul.f32 %v5200_v8, %v6002_v0  ;;  %v3442_v0 = vpack.c.bf16 %v5983_v27, %v5963_v13 }
 0xcbf   :  { %5209 = vrcp.f32 %v3394_v49  ;;  %v3429_v20 = vpack.c.bf16 %v3418_v21, %v3418_v21 }
 0xcc0   :  { %v5202_v12 = vpop.eup %5201  ;;  %v3431_v18 = vpack.c.bf16 %v3421_v26, %v3421_v26 }
 0xcc1   :  { %v3397_v7 = vpop.xlane.xlu1 %3396  ;;  %v5204_v14 = vpop.eup %5203  ;;  %v3416_v23 = vmul.f32 %v5202_v12, %v6008_v11 }
 0xcc2   :  { %v3388_v10 = vpop.xlane.xlu0 %3387  ;;  %v3419_v28 = vmul.f32 %v5204_v14, %v6010_v32 }
 0xcc3   :  { %5211 = vrcp.f32 %v3388_v10 }
 0xcc4   :  { %5213 = vrcp.f32 %v3397_v7 }
 0xcc5   :  { %v5206_v15 = vpop.eup %5205  ;;  %v3391_v17 = vpop.xlane.xlu1 %3390 }
 0xcc6   :  { %v5208_v22 = vpop.eup %5207  ;;  %5215 = vrcp.f32 %v3391_v17  ;;  %v3400_v30 = vpop.xlane.xlu0 %3399  ;;  %v3417_v24 = vmul.f32 %v5206_v15, %v5182_v41 }
 0xcc7   :  { %5217 = vrcp.f32 %v3400_v30  ;;  %v3420_v31 = vmul.f32 %v5208_v22, %v6016_v43 }
 0xcc8   :  { %v3428_v29 = vpack.c.bf16 %v3417_v24, %v3416_v23 }
 0xcc9   :  { %v3403_v34 = vpop.xlane.xlu1 %3402  ;;  %v3430_v19 = vpack.c.bf16 %v3420_v31, %v3419_v28 }
 0xcca   :  { %5219 = vrcp.f32 %v3403_v34  ;;  %4944 = vmatprep.mubr.msk.bf16.mxu1 %vm1228_vm6, %v3428_v29 }
 0xccb   :  { %4952 = vmatprep.mubr.msk.bf16.mxu0 %vm1228_vm6, %v3430_v19  ;;  %4945 = vmatmul.mubr.msk.bf16.vlgmr.msra.gmra.mxu1 %vm1228_vm6, %v3429_v20 }
 0xccc   :  { %4953 = vmatmul.mubr.msk.bf16.vlgmr.msra.gmra.mxu0 %vm1228_vm6, %v3431_v18  ;;  %4957 = vmatpush3.bf16.msra.mxu1 %v5974_v25  ;;  %v5210_v11 = vpop.eup %5209 }
 0xccd   :  { %4965 = vmatpush3.bf16.msra.mxu0 %v5977_v16  ;;  %4958 = vmatprep.subr.bf16.mxu1 %v3440_v35  ;;  %v3424_v39 = vmul.f32 %v5210_v11, %v6022_v60  ;;  %v3748_v60 = vsel %vm1626_vm7, %v3681_v54, 0 }
 0xcce   :  { %4966 = vmatprep.subr.bf16.mxu0 %v3442_v0 }
 0xccf   :  { %v3433_v43 = vpack.c.bf16 %v3424_v39, %v3424_v39 }
 0xcd0   :  { %4959 = vmatpush3.bf16.msra.mxu1 %v3440_v35  ;;  %v5212_v32 = vpop.eup %5211 }
 0xcd1   :  { %4967 = vmatpush3.bf16.msra.mxu0 %v3442_v0  ;;  %v5214_v9 = vpop.eup %5213  ;;  %v3422_v41 = vmul.f32 %v5212_v32, %v6028_v63  ;;  %5036 = vmatprep.subr.msk.bf16.mxu1 %vm1626_vm7, %v3680_v53 }
 0xcd2   :  { %v3425_v27 = vmul.f32 %v5214_v9, %v6026_v62  ;;  %5037 = vmatprep.subr.msk.bf16.mxu0 %vm1626_vm7, %v3681_v54  ;;  %v3683_v62 = vld [vmem:[%s6192_s8 + $0xc] sm:$0xf] }
 0xcd3   :  { %v5216_v3 = vpop.eup %5215  ;;  %v3862_v38 = vsel %vm1626_vm7, %v3683_v62, 0 }
 0xcd4   :  { %v5218_v40 = vpop.eup %5217  ;;  %v3423_v13 = vmul.f32 %v5216_v3, %v6034_v1 }
 0xcd5   :  { %v3426_v25 = vmul.f32 %v5218_v40, %v6036_v45 }
 0xcd6   :  { %v3432_v16 = vpack.c.bf16 %v3423_v13, %v3422_v41 }
 0xcd7   :  { %v5220_v42 = vpop.eup %5219  ;;  %v3434_v48 = vpack.c.bf16 %v3426_v25, %v3425_v27 }
 0xcd8   :  { %4960 = vmatprep.mubr.msk.bf16.mxu1 %vm1228_vm6, %v3432_v16  ;;  %v3427_v51 = vmul.f32 %v5220_v42, %v6042_v36 }
 0xcd9   :  { %4961 = vmatmul.mubr.msk.bf16.vlgmr.msra.gmra.mxu1 %vm1228_vm6, %v3433_v43  ;;  %4968 = vmatprep.mubr.msk.bf16.mxu0 %vm1228_vm6, %v3434_v48 }
 0xcda   :  { %v3435_v52 = vpack.c.bf16 %v3427_v51, %v3427_v51  ;;  %4973 = vmatpush3.bf16.msra.mxu1 %v3691_v56 }
 0xcdb   :  { %5038 = vmatprep.subr.msk.bf16.mxu1 %vm1626_vm7, %v3682_v61 }
 0xcdc   :  { %4969 = vmatmul.mubr.msk.bf16.vlgmr.msra.gmra.mxu0 %vm1228_vm6, %v3435_v52 }
 0xcdd   :  { %4979 = vmatpush3.bf16.msra.mxu0 %v3748_v60 }
 0xcde   :  { %5039 = vmatprep.subr.msk.bf16.mxu0 %vm1626_vm7, %v3683_v62 }
 0xd8b   :  { %v4946_v63 = vpop.f32.mrf.mxu1 }
 0xd8c   :  { %v4954_v47 = vpop.f32.mrf.mxu0  ;;  %v3673_v2 = vpack.c.bf16 %v4946_v63, %v4946_v63 }
 0xd8d   :  { %v3487_v44 = vpop.f32.mrf.mxu1  ;;  %v3675_v33 = vpack.c.bf16 %v4954_v47, %v4954_v47 }
 0xd8e   :  { %v3544_v1 = vpop.f32.mrf.mxu0 }
 0xd8f   :  { %v4947_v45 = vpop.f32.mrf.mxu1 }
 0xd90   :  { %v4955_v55 = vpop.f32.mrf.mxu0 }
 0xd91   :  { %v3490_v57 = vpop.f32.mrf.mxu1 }
 0xd92   :  { %v3672_v36 = vpack.c.bf16 %v3490_v57, %v3487_v44  ;;  %v3547_v50 = vpop.f32.mrf.mxu0 }
 0xd93   :  { %v3674_v4 = vpack.c.bf16 %v3547_v50, %v3544_v1  ;;  %v4364_v1 = vld [vmem:[%s6193_s9] ss:$0 sm:$0xff] }
 0xd94   :  { %4974 = vmatprep.mubr.msk.bf16.mxu1 %vm987_vm4, %v3672_v36 }
 0xd95   :  { %4980 = vmatprep.mubr.msk.bf16.mxu0 %vm987_vm4, %v3674_v4  ;;  %4975 = vmatmul.mubr.msk.bf16.vlgmr.msra.gmra.mxu1 %vm987_vm4, %v3673_v2 }
 0xd96   :  { %4981 = vmatmul.mubr.msk.bf16.vlgmr.msra.gmra.mxu0 %vm987_vm4, %v3675_v33  ;;  %4985 = vmatpush3.bf16.msra.mxu1 %v3805_v5 }
 0xd97   :  { %4991 = vmatpush3.bf16.msra.mxu0 %v3862_v38 }
 0xd99   :  { %v4962_v37 = vpop.f32.mrf.mxu1 }
 0xd9a   :  { %v3677_v15 = vpack.c.bf16 %v4962_v37, %v4962_v37 }
 0xd9b   :  { %v3601_v49 = vpop.f32.mrf.mxu1 }
 0xd9c   :  { %v4970_v6 = vpop.f32.mrf.mxu0 }
 0xd9d   :  { %v4963_v7 = vpop.f32.mrf.mxu1  ;;  %v3679_v22 = vpack.c.bf16 %v4970_v6, %v4970_v6 }
 0xd9e   :  { %v3658_v8 = vpop.f32.mrf.mxu0 }
 0xd9f   :  { %v3604_v10 = vpop.f32.mrf.mxu1 }
 0xda0   :  { %v3676_v12 = vpack.c.bf16 %v3604_v10, %v3601_v49  ;;  %v4971_v14 = vpop.f32.mrf.mxu0 }
 0xda2   :  { %v3661_v17 = vpop.f32.mrf.mxu0  ;;  %4986 = vmatprep.mubr.msk.bf16.mxu1 %vm987_vm4, %v3676_v12 }
 0xda3   :  { %v3678_v21 = vpack.c.bf16 %v3661_v17, %v3658_v8  ;;  %4987 = vmatmul.mubr.msk.bf16.vlgmr.msra.gmra.mxu1 %vm987_vm4, %v3677_v15 }
 0xda5   :  { %4992 = vmatprep.mubr.msk.bf16.mxu0 %vm987_vm4, %v3678_v21  ;;  %v5101_v21 = vld [vmem:[%s6194_s12 + $0x8] sm:$0xff]  }
 0xda6   :  { %4993 = vmatmul.mubr.msk.bf16.vlgmr.msra.gmra.mxu0 %vm987_vm4, %v3679_v22  ;;  %v5102_v22 = vld [vmem:[%s6194_s12] sm:$0xff]   ;;  %4996 = vmatprep.subr.bf16.mxu1 %v5101_v21 }
 0xda7   :  { %4997 = vmatpush3.bf16.msra.mxu1 %v5101_v21 }
 0xda8   :  { %4998 = vmatprep.subr.bf16.mxu1 %v5102_v22 }
 0xdab   :  { %4999 = vmatpush3.bf16.msra.mxu1 %v5102_v22 }
 0xe55   :  { %v4976_v30 = vpop.f32.mrf.mxu1 }
 0xe56   :  { %v4982_v23 = vpop.f32.mrf.mxu0  ;;  %v3926_v29 = vsel %vm142_vm3, %v4976_v30, 0.0  ;;  %v5103_v30 = vld [vmem:[%s6195_s14 + $0x18] sm:$0xff]  }
 0xe57   :  { %v3727_v24 = vpop.f32.mrf.mxu1  ;;  %v3927_v34 = vsel %vm142_vm3, %v4982_v23, 0.0  ;;  %5004 = vmatprep.subr.bf16.mxu0 %v5103_v30 }
 0xe58   :  { %v3784_v26 = vpop.f32.mrf.mxu0  ;;  %v3912_v20 = vsel %vm73_vm1, %v3727_v24, 0.0  ;;  %v3928_v35 = vadd.f32 %v3927_v34, %v3926_v29  ;;  %5005 = vmatpush3.bf16.msra.mxu0 %v5103_v30 }
 0xe59   :  { %v4977_v28 = vpop.f32.mrf.mxu1  ;;  %v3913_v18 = vsel %vm73_vm1, %v3784_v26, 0.0 }
 0xe5a   :  { %v4983_v31 = vpop.f32.mrf.mxu0  ;;  %v3914_v9 = vadd.f32 %v3913_v18, %v3912_v20 }
 0xe5b   :  { %v3730_v19 = vpop.f32.mrf.mxu1 }
 0xe5c   :  { %v3787_v0 = vpop.f32.mrf.mxu0  ;;  %v3919_v40 = vsel %vm73_vm1, %v3730_v19, 0.0 }
 0xe5d   :  { %v3920_v41 = vsel %vm73_vm1, %v3787_v0, 0.0  ;;  %v4365_v0 = vld [vmem:[%s6196_s10] ss:$0 sm:$0xff] }
 0xe5e   :  { %v3921_v51 = vadd.f32 %v3920_v41, %v3919_v40  ;;  %v4366_v40 = vld [vmem:[%s6197_s11] ss:$0 sm:$0xff] }
 0xe63   :  { %v4988_v11 = vpop.f32.mrf.mxu1 }
 0xe64   :  { %v3929_v32 = vsel %vm142_vm3, %v4988_v11, 0.0 }
 0xe65   :  { %v3930_v3 = vadd.f32 %v3929_v32, %v3928_v35  ;;  %v3841_v39 = vpop.f32.mrf.mxu1 }
 0xe66   :  { %v3915_v13 = vsel %vm73_vm1, %v3841_v39, 0.0  ;;  %v4994_v27 = vpop.f32.mrf.mxu0 }
 0xe67   :  { %v3916_v25 = vadd.f32 %v3915_v13, %v3914_v9  ;;  %v3931_v16 = vsel %vm142_vm3, %v4994_v27, 0.0  ;;  %v4989_v42 = vpop.f32.mrf.mxu1 }
 0xe68   :  { %v3932_v43 = vadd.f32 %v3931_v16, %v3930_v3  ;;  %v3898_v48 = vpop.f32.mrf.mxu0 }
 0xe69   :  { %v3917_v52 = vsel %vm73_vm1, %v3898_v48, 0.0  ;;  %v3844_v53 = vpop.f32.mrf.mxu1  ;;  %v5104_v48 = vld [vmem:[%s6195_s14 + $0x10] sm:$0xff]  }
 0xe6a   :  { %v3918_v54 = vadd.f32 %v3917_v52, %v3916_v25  ;;  %v3922_v56 = vsel %vm73_vm1, %v3844_v53, 0.0  ;;  %v4995_v60 = vpop.f32.mrf.mxu0  ;;  %v3935_v62 = vadd.f32 %v3932_v43, %v5765_v58  ;;  %5006 = vmatprep.subr.bf16.mxu0 %v5104_v48  ;;  %v5106_v52 = vld [vmem:[%s6195_s14] sm:$0xff]  }
 0xe6b   :  { %v3923_v61 = vadd.f32 %v3922_v56, %v3921_v51  ;;  %5007 = vmatpush3.bf16.msra.mxu0 %v5104_v48  ;;  %v5105_v51 = vld [vmem:[%s6195_s14 + $0x8] sm:$0xff]  }
 0xe6c   :  { %v3933_v63 = vadd.f32 %v3918_v54, %v5752_v46  ;;  %v3901_v47 = vpop.f32.mrf.mxu0  ;;  %v6121_v50 = vadd.f32 %v4364_v1, %v3935_v62  ;;  %5008 = vmatprep.subr.bf16.mxu0 %v5105_v51  ;;  %v4367_v54 = vld [vmem:[%s6198_s13] ss:$0 sm:$0xff] }
 0xe6d   :  { %v3924_v44 = vsel %vm73_vm1, %v3901_v47, 0.0 }
 0xe6e   :  { %v3925_v45 = vadd.f32 %v3924_v44, %v3923_v61  ;;  %v6116_v55 = vadd.f32 %v4364_v1, %v3933_v63  ;;  %v3954_v46 = vsel %vm142_vm3, %v6121_v50, 0.0 }
 0xe6f   :  { %5009 = vmatpush3.bf16.msra.mxu0 %v5105_v51 }
 0xe70   :  { %v3934_v57 = vadd.f32 %v3925_v45, %v5767_v59  ;;  %v3948_v36 = vsel %vm73_vm1, %v6116_v55, 0.0  ;;  %5010 = vmatprep.subr.bf16.mxu0 %v5106_v52 }
 0xe71   :  { %3949 = vadd.xlane.f32.xlu0 %v3948_v36 }
 0xe72   :  { %v6123_v58 = vadd.f32 %v4364_v1, %v3934_v57 }
 0xe73   :  { %5011 = vmatpush3.bf16.msra.mxu0 %v5106_v52 }
 0xe74   :  { %v3951_v2 = vsel %vm73_vm1, %v6123_v58, 0.0 }
 0xe75   :  { %3955 = vadd.xlane.f32.xlu0 %v3954_v46  ;;  %3952 = vadd.xlane.f32.xlu1 %v3951_v2  ;;  %v4372_v46 = vld [vmem:[%s6199_s15] ss:$0 sm:$0xff] }
 0xefa   :  { %v3950_v4 = vpop.xlane.xlu0 %3949 }
 0xefb   :  { %v3957_v5 = vmul.f32 0.03125, %v3950_v4 }
 0xefd   :  { %v3960_v59 = vsub.f32 %v6116_v55, %v3957_v5 }
 0xefe   :  { %v3956_v33 = vpop.xlane.xlu0 %3955  ;;  %v3953_v38 = vpop.xlane.xlu1 %3952 }
 0xeff   :  { %v3959_v37 = vmul.f32 0.03125, %v3956_v33  ;;  %v3958_v49 = vmul.f32 0.03125, %v3953_v38  ;;  %v3963_v6 = vmul.f32 %v3960_v59, %v3960_v59 }
 0xf01   :  { %v3962_v7 = vsub.f32 %v6121_v50, %v3959_v37  ;;  %v3961_v8 = vsub.f32 %v6123_v58, %v3958_v49  ;;  %v3966_v10 = vsel %vm73_vm1, %v3963_v6, 0.0 }
 0xf02   :  { %3967 = vadd.xlane.f32.xlu1 %v3966_v10 }
 0xf03   :  { %v3965_v12 = vmul.f32 %v3962_v7, %v3962_v7  ;;  %v3964_v14 = vmul.f32 %v3961_v8, %v3961_v8 }
 0xf05   :  { %v3972_v15 = vsel %vm142_vm3, %v3965_v12, 0.0  ;;  %v3969_v17 = vsel %vm73_vm1, %v3964_v14, 0.0 }
 0xf06   :  { %3973 = vadd.xlane.f32.xlu1 %v3972_v15  ;;  %3970 = vadd.xlane.f32.xlu0 %v3969_v17 }
 0xf8b   :  { %v3968_v23 = vpop.xlane.xlu1 %3967 }
 0xf8c   :  { %v3975_v24 = vmul.f32 0.03125, %v3968_v23 }
 0xf8e   :  { %v3978_v26 = vadd.f32 1e-05, %v3975_v24 }
 0xf8f   :  { %v3971_v28 = vpop.xlane.xlu0 %3970  ;;  %v3974_v31 = vpop.xlane.xlu1 %3973 }
 0xf90   :  { %5221 = vrsqrt.f32 %v3978_v26  ;;  %v3976_v29 = vmul.f32 0.03125, %v3971_v28  ;;  %v3977_v34 = vmul.f32 0.03125, %v3974_v31 }
 0xf92   :  { %v3979_v19 = vadd.f32 1e-05, %v3976_v29  ;;  %v3980_v20 = vadd.f32 1e-05, %v3977_v34 }
 0xf94   :  { %5223 = vrsqrt.f32 %v3979_v19 }
 0xf95   :  { %5225 = vrsqrt.f32 %v3980_v20 }
 0xf9d   :  { %v5222_v18 = vpop.eup %5221 }
 0xf9e   :  { %v3984_v35 = vmul.f32 %v5222_v18, %v3960_v59 }
 0xfa0   :  { %v3993_v3 = vmul.f32 %v4365_v0, %v3984_v35 }
 0xfa1   :  { %v5224_v11 = vpop.eup %5223 }
 0xfa2   :  { %v5226_v32 = vpop.eup %5225  ;;  %v3985_v9 = vmul.f32 %v5224_v11, %v3961_v8  ;;  %v4002_v27 = vadd.f32 %v4366_v40, %v3993_v3 }
 0xfa3   :  { %v3986_v39 = vmul.f32 %v5226_v32, %v3962_v7 }
 0xfa4   :  { %v3994_v41 = vmul.f32 %v4365_v0, %v3985_v9 }
 0xfa5   :  { %v3995_v13 = vmul.f32 %v4365_v0, %v3986_v39 }
 0xfa6   :  { %v4003_v25 = vadd.f32 %v4366_v40, %v3994_v41 }
 0xfa7   :  { %v4004_v16 = vadd.f32 %v4366_v40, %v3995_v13 }
 0xfa8   :  { %v4005_v42 = vpack.c.bf16 %v4003_v25, %v4002_v27 }
 0xfa9   :  { %v4006_v43 = vpack.c.bf16 %v4004_v16, %v4004_v16 }
 0xfaa   :  { %5000 = vmatprep.mubr.msk.bf16.mxu1 %vm73_vm1, %v4005_v42 }
 0xfab   :  { %5001 = vmatmul.mubr.msk.bf16.vlgmr.msra.gmra.mxu1 %vm73_vm1, %v4006_v43 }
0x106b   :  { %v5002_v53 = vpop.f32.mrf.mxu1 }
0x106c   :  { %v4079_v60 = vadd.f32 %v5002_v53, %v4367_v54 }
0x106d   :  { %v4070_v56 = vpop.f32.mrf.mxu1 }
0x106e   :  { %v4071_v62 = vadd.f32 %v4367_v54, %v4070_v56  ;;  %v4086_v44 = vmax.f32 %v4079_v60, 0.0 }
0x106f   :  { %v5003_v61 = vpop.f32.mrf.mxu1 }
0x1070   :  { %v4084_v1 = vmax.f32 %v4071_v62, 0.0  ;;  %v4088_v36 = vpack.c.bf16 %v4086_v44, %v4086_v44 }
0x1071   :  { %v4073_v63 = vpop.f32.mrf.mxu1 }
0x1072   :  { %v4074_v47 = vadd.f32 %v4367_v54, %v4073_v63 }
0x1074   :  { %v4085_v45 = vmax.f32 %v4074_v47, 0.0 }
0x1076   :  { %v4087_v57 = vpack.c.bf16 %v4085_v45, %v4084_v1 }
0x1078   :  { %5012 = vmatprep.mubr.msk.bf16.mxu0 %vm2065_vm8, %v4087_v57 }
0x1079   :  { %5013 = vmatmul.mubr.msk.bf16.vlgmr.msra.gmra.mxu0 %vm2065_vm8, %v4088_v36 }
0x1139   :  { %v5014_v2 = vpop.f32.mrf.mxu0 }
0x113a   :  { %v4177_v4 = vadd.f32 %v5014_v2, %v4372_v46 }
0x113b   :  { %v4168_v5 = vpop.f32.mrf.mxu0 }
0x113c   :  { %v4184_v59 = vadd.f32 %v4177_v4, %v6121_v50  ;;  %v4169_v33 = vadd.f32 %v4372_v46, %v4168_v5 }
0x113d   :  { %v5015_v38 = vpop.f32.mrf.mxu0 }
0x113e   :  { %4381 = vst.msk [vmem:[%s6200_s16 + $0x28] sm:$0x1] %vm142_vm3, %v4184_v59  ;;  %v4182_v37 = vadd.f32 %v4169_v33, %v6116_v55 }
0x113f   :  { %v4171_v49 = vpop.f32.mrf.mxu0 }
0x1140   :  { %4379 = vst.msk [vmem:[%s6200_s16 + $0x18] sm:$0xff] %vm73_vm1, %v4182_v37  ;;  %v4172_v6 = vadd.f32 %v4372_v46, %v4171_v49 }
0x1142   :  { %v4183_v7 = vadd.f32 %v4172_v6, %v6123_v58 }
0x1144   :  { %4380 = vst.msk [vmem:[%s6200_s16 + $0x20] sm:$0xff] %vm73_vm1, %v4183_v7 }

// kernel: vit_forward.11
= control target key start
LH: loop header
LB: loop body
LE: loop exit
PB: predicated region body
PF: predicated region fallthrough
CT: control target
= control target key end

     0   :  { %vm53_vm0 = vcmask 261120   ;;  %vm60_vm1 = vcmask 253952   ;;  %vm905_vm2 = vcmask 64512   ;;  %vm1302_vm3 = vcmask 1040384   ;;  %s5987_s0 = inlined_call_operand.vmem [shape: f32[2,17,32], index: 0, kind: input, shape index: {}]   ;;  %s5988_s3 = inlined_call_operand.vmem [shape: bf16[4,32,8], index: 3, kind: input, shape index: {}]   ;;  %s5989_s4 = inlined_call_operand.vmem [shape: bf16[4,32,8], index: 4, kind: input, shape index: {}]   ;;  %s5990_s5 = inlined_call_operand.vmem [shape: bf16[4,32,8], index: 5, kind: input, shape index: {}]   ;;  %s5991_s1 = inlined_call_operand.vmem [shape: f32[1,32], index: 1, kind: input, shape index: {}]   ;;  %s5992_s2 = inlined_call_operand.vmem [shape: f32[1,32], index: 2, kind: input, shape index: {}]   ;;  %s5993_s6 = inlined_call_operand.vmem [shape: bf16[4,8,32], index: 6, kind: input, shape index: {}]   ;;  %s5994_s7 = inlined_call_operand.vmem [shape: f32[1,32], index: 7, kind: input, shape index: {}]   ;;  %s5995_s10 = inlined_call_operand.vmem [shape: bf16[32,64], index: 10, kind: input, shape index: {}]   ;;  %s5996_s8 = inlined_call_operand.vmem [shape: f32[1,32], index: 8, kind: input, shape index: {}]   ;;  %s5997_s9 = inlined_call_operand.vmem [shape: f32[1,32], index: 9, kind: input, shape index: {}]   ;;  %s5998_s12 = inlined_call_operand.vmem [shape: bf16[64,32], index: 12, kind: input, shape index: {}]   ;;  %s5999_s11 = inlined_call_operand.vmem [shape: f32[1,64], index: 11, kind: input, shape index: {}]   ;;  %s6000_s13 = inlined_call_operand.vmem [shape: f32[1,32], index: 13, kind: input, shape index: {}]   ;;  %s6001_s14 = inlined_call_operand.vmem [shape: f32[2,17,32], index: 14, kind: output, shape index: {}]  }
   0x1   :  { %v48_v0 = vld [vmem:[%s5987_s0] sm:$0xff]  ;;  %v50_v1 = vld [vmem:[%s5987_s0 + $0x10] sm:$0x1]  ;;  %v49_v2 = vld [vmem:[%s5987_s0 + $0x8] sm:$0xff]  ;;  %vm1153_vm4 = vcmask 131072   ;;  %vm1146_vm5 = vcmask 138240  }
   0x2   :  { %v54_v3 = vsel %vm53_vm0, %v48_v0, 0.0  ;;  %v61_v4 = vsel %vm60_vm1, %v50_v1, 0.0  ;;  %v57_v5 = vsel %vm53_vm0, %v49_v2, 0.0  ;;  %v4858_v21 = vld [vmem:[%s5988_s3 + $0x8] sm:$0xff]   ;;  %v4860_v23 = vld [vmem:[%s5988_s3] sm:$0xff]   ;;  %v4862_v25 = vld [vmem:[%s5988_s3 + $0x18] sm:$0xff]  }
   0x3   :  { %55 = vadd.xlane.f32.xlu0 %v54_v3  ;;  %62 = vadd.xlane.f32.xlu1 %v61_v4  ;;  %v4859_v22 = vld [vmem:[%s5988_s3 + $0x28] sm:$0xff]   ;;  %v4861_v24 = vld [vmem:[%s5988_s3 + $0x20] sm:$0xff]   ;;  %v4864_v52 = vld [vmem:[%s5988_s3 + $0x10] sm:$0xff]   ;;  %vm1545_vm6 = vcmask 1043456   ;;  %vm1984_vm7 = vcmask 523264  }
   0x4   :  { %4425 = vmatprep.subr.bf16.mxu1 %v4858_v21  ;;  %4441 = vmatprep.subr.bf16.mxu0 %v4859_v22  ;;  %v4863_v26 = vld [vmem:[%s5989_s4 + $0x8] sm:$0xff]   ;;  %v4037_v38 = vld [vmem:[%s5991_s1] ss:$0 sm:$0xff]  ;;  %v4866_v54 = vld [vmem:[%s5988_s3 + $0x38] sm:$0xff]  }
   0x5   :  { %4426 = vmatpush3.bf16.msra.mxu1 %v4858_v21  ;;  %4442 = vmatpush3.bf16.msra.mxu0 %v4859_v22  ;;  %v4038_v44 = vld [vmem:[%s5992_s2] ss:$0 sm:$0xff]  ;;  %v4867_v55 = vld [vmem:[%s5989_s4 + $0x28] sm:$0xff]   ;;  %v4868_v56 = vld [vmem:[%s5988_s3 + $0x30] sm:$0xff]  }
   0x6   :  { %4427 = vmatprep.subr.bf16.mxu1 %v4860_v23  ;;  %4443 = vmatprep.subr.bf16.mxu0 %v4861_v24  ;;  %v4865_v53 = vld [vmem:[%s5989_s4] sm:$0xff]   ;;  %v4870_v58 = vld [vmem:[%s5989_s4 + $0x18] sm:$0xff]   ;;  %v4871_v59 = vld [vmem:[%s5990_s5 + $0x8] sm:$0xff]  }
   0x7   :  { %58 = vadd.xlane.f32.xlu0 %v57_v5  ;;  %v4869_v57 = vld [vmem:[%s5989_s4 + $0x20] sm:$0xff]   ;;  %v4872_v60 = vld [vmem:[%s5989_s4 + $0x10] sm:$0xff]   ;;  %v4874_v62 = vld [vmem:[%s5989_s4 + $0x38] sm:$0xff]  }
   0x8   :  { %v4873_v61 = vld [vmem:[%s5990_s5] sm:$0xff]   ;;  %v4875_v63 = vld [vmem:[%s5990_s5 + $0x28] sm:$0xff]   ;;  %v4879_v3 = vld [vmem:[%s5990_s5 + $0x10] sm:$0xff]  }
   0x9   :  { %4428 = vmatpush3.bf16.msra.mxu1 %v4860_v23  ;;  %4444 = vmatpush3.bf16.msra.mxu0 %v4861_v24  ;;  %v4880_v4 = vld [vmem:[%s5990_s5 + $0x38] sm:$0xff]   ;;  %v4881_v5 = vld [vmem:[%s5990_s5 + $0x30] sm:$0xff]  }
   0xa   :  { %4433 = vmatprep.subr.bf16.mxu1 %v4862_v25  ;;  %4457 = vmatprep.subr.bf16.mxu0 %v4863_v26 }
  0x8c   :  { %v56_v6 = vpop.xlane.xlu0 %55  ;;  %v63_v7 = vpop.xlane.xlu1 %62 }
  0x8d   :  { %v65_v8 = vmul.f32 0.03125, %v56_v6  ;;  %v67_v9 = vmul.f32 0.03125, %v63_v7 }
  0x8f   :  { %v68_v10 = vsub.f32 %v48_v0, %v65_v8  ;;  %v70_v11 = vsub.f32 %v50_v1, %v67_v9  ;;  %v4876_v0 = vld [vmem:[%s5989_s4 + $0x30] sm:$0xff]   ;;  %v4877_v1 = vld [vmem:[%s5990_s5 + $0x20] sm:$0xff]  }
  0x90   :  { %v59_v12 = vpop.xlane.xlu0 %58 }
  0x91   :  { %v66_v13 = vmul.f32 0.03125, %v59_v12  ;;  %v71_v14 = vmul.f32 %v68_v10, %v68_v10  ;;  %v73_v15 = vmul.f32 %v70_v11, %v70_v11 }
  0x93   :  { %v69_v16 = vsub.f32 %v49_v2, %v66_v13  ;;  %v74_v17 = vsel %vm53_vm0, %v71_v14, 0.0  ;;  %v80_v18 = vsel %vm60_vm1, %v73_v15, 0.0  ;;  %v4878_v2 = vld [vmem:[%s5990_s5 + $0x18] sm:$0xff]  }
  0x94   :  { %75 = vadd.xlane.f32.xlu1 %v74_v17 }
  0x95   :  { %v72_v19 = vmul.f32 %v69_v16, %v69_v16 }
  0x97   :  { %v77_v20 = vsel %vm53_vm0, %v72_v19, 0.0 }
  0x98   :  { %81 = vadd.xlane.f32.xlu1 %v80_v18  ;;  %78 = vadd.xlane.f32.xlu0 %v77_v20 }
 0x11d   :  { %v76_v27 = vpop.xlane.xlu1 %75 }
 0x11e   :  { %v83_v28 = vmul.f32 0.03125, %v76_v27 }
 0x120   :  { %v86_v29 = vadd.f32 1e-05, %v83_v28 }
 0x121   :  { %v82_v30 = vpop.xlane.xlu1 %81  ;;  %v79_v31 = vpop.xlane.xlu0 %78 }
 0x122   :  { %4918 = vrsqrt.f32 %v86_v29  ;;  %v85_v32 = vmul.f32 0.03125, %v82_v30  ;;  %v84_v33 = vmul.f32 0.03125, %v79_v31 }
 0x124   :  { %v88_v34 = vadd.f32 1e-05, %v85_v32  ;;  %v87_v35 = vadd.f32 1e-05, %v84_v33 }
 0x126   :  { %4920 = vrsqrt.f32 %v88_v34 }
 0x127   :  { %4922 = vrsqrt.f32 %v87_v35 }
 0x12f   :  { %v4919_v36 = vpop.eup %4918 }
 0x130   :  { %v92_v37 = vmul.f32 %v4919_v36, %v68_v10 }
 0x132   :  { %v101_v42 = vmul.f32 %v4037_v38, %v92_v37 }
 0x133   :  { %v4921_v39 = vpop.eup %4920 }
 0x134   :  { %v4923_v40 = vpop.eup %4922  ;;  %v94_v41 = vmul.f32 %v4921_v39, %v70_v11  ;;  %v110_v48 = vadd.f32 %v4038_v44, %v101_v42 }
 0x135   :  { %v93_v43 = vmul.f32 %v4923_v40, %v69_v16 }
 0x136   :  { %v103_v45 = vmul.f32 %v4037_v38, %v94_v41 }
 0x137   :  { %v102_v46 = vmul.f32 %v4037_v38, %v93_v43 }
 0x138   :  { %v112_v47 = vadd.f32 %v4038_v44, %v103_v45 }
 0x139   :  { %v111_v49 = vadd.f32 %v4038_v44, %v102_v46 }
 0x13a   :  { %v5159_v50 = vpack.c.bf16 %v112_v47, %v112_v47 }
 0x13b   :  { %v5161_v51 = vpack.c.bf16 %v111_v49, %v110_v48 }
 0x13d   :  { %4429 = vmatprep.mubr.msk.bf16.mxu1 %vm53_vm0, %v5161_v51  ;;  %4445 = vmatprep.mubr.msk.bf16.mxu0 %vm53_vm0, %v5161_v51 }
 0x13e   :  { %4430 = vmatmul.mubr.msk.bf16.vlgmr.msra.gmra.mxu1 %vm53_vm0, %v5159_v50  ;;  %4446 = vmatmul.mubr.msk.bf16.vlgmr.msra.gmra.mxu0 %vm53_vm0, %v5159_v50 }
 0x13f   :  { %4434 = vmatpush3.bf16.msra.mxu1 %v4862_v25  ;;  %4437 = vmatprep.mubr.msk.bf16.mxu1 %vm53_vm0, %v5161_v51 }
 0x140   :  { %4458 = vmatpush3.bf16.msra.mxu0 %v4863_v26  ;;  %4461 = vmatprep.mubr.msk.bf16.mxu0 %vm53_vm0, %v5161_v51 }
 0x141   :  { %4435 = vmatprep.subr.bf16.mxu1 %v4864_v52  ;;  %4459 = vmatprep.subr.bf16.mxu0 %v4865_v53 }
 0x143   :  { %4436 = vmatpush3.bf16.msra.mxu1 %v4864_v52 }
 0x144   :  { %4460 = vmatpush3.bf16.msra.mxu0 %v4865_v53  ;;  %4449 = vmatprep.subr.bf16.mxu1 %v4866_v54 }
 0x145   :  { %4473 = vmatprep.subr.bf16.mxu0 %v4867_v55 }
 0x146   :  { %4438 = vmatmul.mubr.msk.bf16.vlgmr.msra.gmra.mxu1 %vm53_vm0, %v5159_v50 }
 0x147   :  { %4450 = vmatpush3.bf16.msra.mxu1 %v4866_v54  ;;  %4462 = vmatmul.mubr.msk.bf16.vlgmr.msra.gmra.mxu0 %vm53_vm0, %v5159_v50  ;;  %v5044_v54 = vmov 0  }
 0x148   :  { %4453 = vmatprep.mubr.msk.bf16.mxu1 %vm53_vm0, %v5161_v51  ;;  %4474 = vmatpush3.bf16.msra.mxu0 %v4867_v55  ;;  %v5286_v55 = vsel %vm1302_vm3, 65535, %v5044_v54 }
 0x149   :  { %4477 = vmatprep.mubr.msk.bf16.mxu0 %vm53_vm0, %v5161_v51  ;;  %4451 = vmatprep.subr.bf16.mxu1 %v4868_v56 }
 0x14a   :  { %4475 = vmatprep.subr.bf16.mxu0 %v4869_v57 }
 0x14b   :  { %4452 = vmatpush3.bf16.msra.mxu1 %v4868_v56 }
 0x14c   :  { %4476 = vmatpush3.bf16.msra.mxu0 %v4869_v57  ;;  %4465 = vmatprep.subr.bf16.mxu1 %v4870_v58 }
 0x14d   :  { %4489 = vmatprep.subr.bf16.mxu0 %v4871_v59 }
 0x14e   :  { %4454 = vmatmul.mubr.msk.bf16.vlgmr.msra.gmra.mxu1 %vm53_vm0, %v5159_v50 }
 0x14f   :  { %4466 = vmatpush3.bf16.msra.mxu1 %v4870_v58  ;;  %4478 = vmatmul.mubr.msk.bf16.vlgmr.msra.gmra.mxu0 %vm53_vm0, %v5159_v50 }
 0x150   :  { %4469 = vmatprep.mubr.msk.bf16.mxu1 %vm53_vm0, %v5161_v51  ;;  %4490 = vmatpush3.bf16.msra.mxu0 %v4871_v59 }
 0x151   :  { %4493 = vmatprep.mubr.msk.bf16.mxu0 %vm53_vm0, %v5161_v51  ;;  %4467 = vmatprep.subr.bf16.mxu1 %v4872_v60 }
 0x152   :  { %4491 = vmatprep.subr.bf16.mxu0 %v4873_v61 }
 0x153   :  { %4468 = vmatpush3.bf16.msra.mxu1 %v4872_v60 }
 0x154   :  { %4492 = vmatpush3.bf16.msra.mxu0 %v4873_v61  ;;  %4481 = vmatprep.subr.bf16.mxu1 %v4874_v62 }
 0x155   :  { %4505 = vmatprep.subr.bf16.mxu0 %v4875_v63 }
 0x156   :  { %4470 = vmatmul.mubr.msk.bf16.vlgmr.msra.gmra.mxu1 %vm53_vm0, %v5159_v50 }
 0x157   :  { %4494 = vmatmul.mubr.msk.bf16.vlgmr.msra.gmra.mxu0 %vm53_vm0, %v5159_v50  ;;  %4482 = vmatpush3.bf16.msra.mxu1 %v4874_v62 }
 0x158   :  { %4485 = vmatprep.mubr.msk.bf16.mxu1 %vm53_vm0, %v5161_v51  ;;  %4506 = vmatpush3.bf16.msra.mxu0 %v4875_v63 }
 0x159   :  { %4509 = vmatprep.mubr.msk.bf16.mxu0 %vm53_vm0, %v5161_v51  ;;  %4483 = vmatprep.subr.bf16.mxu1 %v4876_v0 }
 0x15a   :  { %4507 = vmatprep.subr.bf16.mxu0 %v4877_v1 }
 0x15b   :  { %4484 = vmatpush3.bf16.msra.mxu1 %v4876_v0 }
 0x15c   :  { %4508 = vmatpush3.bf16.msra.mxu0 %v4877_v1  ;;  %4497 = vmatprep.subr.bf16.mxu1 %v4878_v2 }
 0x15e   :  { %4486 = vmatmul.mubr.msk.bf16.vlgmr.msra.gmra.mxu1 %vm53_vm0, %v5159_v50 }
 0x15f   :  { %4510 = vmatmul.mubr.msk.bf16.vlgmr.msra.gmra.mxu0 %vm53_vm0, %v5159_v50  ;;  %4498 = vmatpush3.bf16.msra.mxu1 %v4878_v2 }
 0x160   :  { %4501 = vmatprep.mubr.msk.bf16.mxu1 %vm53_vm0, %v5161_v51  ;;  %4499 = vmatprep.subr.bf16.mxu1 %v4879_v3 }
 0x163   :  { %4500 = vmatpush3.bf16.msra.mxu1 %v4879_v3 }
 0x164   :  { %4513 = vmatprep.subr.bf16.mxu1 %v4880_v4 }
 0x166   :  { %4502 = vmatmul.mubr.msk.bf16.vlgmr.msra.gmra.mxu1 %vm53_vm0, %v5159_v50 }
 0x167   :  { %4514 = vmatpush3.bf16.msra.mxu1 %v4880_v4  ;;  %4517 = vmatprep.mubr.msk.bf16.mxu1 %vm53_vm0, %v5161_v51 }
 0x168   :  { %4515 = vmatprep.subr.bf16.mxu1 %v4881_v5 }
 0x16b   :  { %4516 = vmatpush3.bf16.msra.mxu1 %v4881_v5 }
 0x16e   :  { %4518 = vmatmul.mubr.msk.bf16.vlgmr.msra.gmra.mxu1 %vm53_vm0, %v5159_v50 }
 0x1fe   :  { %v4431_v6 = vpop.f32.mrf.mxu1  ;;  %v5265_v7 = vpop.f32.mrf.mxu0 }
 0x1ff   :  { %v890_v40 = vpack.c.bf16 %v4431_v6, %v4431_v6  ;;  %v894_v4 = vpack.c.bf16 %v5265_v7, %v5265_v7 }
 0x200   :  { %v183_v8 = vpop.f32.mrf.mxu1  ;;  %v303_v9 = vpop.f32.mrf.mxu0 }
 0x202   :  { %v4432_v10 = vpop.f32.mrf.mxu1  ;;  %v4448_v11 = vpop.f32.mrf.mxu0 }
 0x204   :  { %v186_v12 = vpop.f32.mrf.mxu1  ;;  %v306_v13 = vpop.f32.mrf.mxu0 }
 0x205   :  { %v889_v14 = vpack.c.bf16 %v186_v12, %v183_v8  ;;  %v893_v42 = vpack.c.bf16 %v306_v13, %v303_v9 }
 0x206   :  { %v5267_v15 = vpop.f32.mrf.mxu1 }
 0x207   :  { %v4463_v16 = vpop.f32.mrf.mxu0  ;;  %4525 = vmatprep.mubr.msk.bf16.mxu0 %vm905_vm2, %v889_v14  ;;  %v892_v3 = vpack.c.bf16 %v5267_v15, %v5267_v15 }
 0x208   :  { %v898_v17 = vpack.c.bf16 %v4463_v16, %v4463_v16  ;;  %v243_v18 = vpop.f32.mrf.mxu1 }
 0x209   :  { %v439_v19 = vpop.f32.mrf.mxu0 }
 0x20a   :  { %v916_v20 = vsel %vm905_vm2, %v898_v17, 0  ;;  %4833 = vmatprep.subr.msk.bf16.mxu0 %vm905_vm2, %v898_v17  ;;  %v4440_v21 = vpop.f32.mrf.mxu1 }
 0x20b   :  { %v4464_v22 = vpop.f32.mrf.mxu0  ;;  %4522 = vmatpush3.bf16.xpose.msra.mxu0 %v916_v20 }
 0x20c   :  { %v246_v23 = vpop.f32.mrf.mxu1 }
 0x20d   :  { %v891_v24 = vpack.c.bf16 %v246_v23, %v243_v18  ;;  %v442_v25 = vpop.f32.mrf.mxu0 }
 0x20e   :  { %v897_v26 = vpack.c.bf16 %v442_v25, %v439_v19  ;;  %v5272_v27 = vpop.f32.mrf.mxu1 }
 0x20f   :  { %v4479_v28 = vpop.f32.mrf.mxu0  ;;  %4533 = vmatprep.mubr.msk.bf16.mxu1 %vm905_vm2, %v891_v24  ;;  %v896_v20 = vpack.c.bf16 %v5272_v27, %v5272_v27 }
 0x210   :  { %4834 = vmatprep.subr.msk.bf16.mxu0 %vm905_vm2, %v897_v26  ;;  %v5276_v29 = vpop.f32.mrf.mxu1  ;;  %v913_v31 = vsel %vm905_vm2, %v897_v26, 0  ;;  %v902_v32 = vpack.c.bf16 %v4479_v28, %v4479_v28 }
 0x211   :  { %v559_v30 = vpop.f32.mrf.mxu0 }
 0x212   :  { %v4456_v33 = vpop.f32.mrf.mxu1  ;;  %v1036_v45 = vsel %vm905_vm2, %v902_v32, 0 }
 0x213   :  { %v4480_v34 = vpop.f32.mrf.mxu0  ;;  %4524 = vmatpush3.bf16.xpose.msra.mxu0 %v913_v31 }
 0x214   :  { %4837 = vmatprep.subr.msk.bf16.mxu0 %vm905_vm2, %v902_v32  ;;  %v366_v35 = vpop.f32.mrf.mxu1 }
 0x215   :  { %v562_v36 = vpop.f32.mrf.mxu0  ;;  %v895_v6 = vpack.c.bf16 %v366_v35, %v5276_v29 }
 0x216   :  { %v4471_v37 = vpop.f32.mrf.mxu1  ;;  %v901_v46 = vpack.c.bf16 %v562_v36, %v559_v30 }
 0x217   :  { %v900_v38 = vpack.c.bf16 %v4471_v37, %v4471_v37  ;;  %v4495_v39 = vpop.f32.mrf.mxu0 }
 0x218   :  { %v499_v41 = vpop.f32.mrf.mxu1  ;;  %v1289_v52 = vpack.c.bf16 %v4495_v39, %v4495_v39  ;;  %v1033_v61 = vsel %vm905_vm2, %v901_v46, 0 }
 0x219   :  { %v976_v43 = vsel %vm905_vm2, %v900_v38, 0  ;;  %v695_v44 = vpop.f32.mrf.mxu0  ;;  %4835 = vmatprep.subr.msk.bf16.mxu1 %vm905_vm2, %v900_v38 }
 0x21a   :  { %4526 = vmatmul.mubr.msk.bf16.vlgmr.msra.gmra.mxu0 %vm905_vm2, %v890_v40  ;;  %v4472_v47 = vpop.f32.mrf.mxu1  ;;  %4530 = vmatpush3.bf16.xpose.msra.mxu1 %v976_v43  ;;  %v1306_v62 = vand.u32 %v5286_v55, %v1289_v52 }
 0x21b   :  { %v4496_v48 = vpop.f32.mrf.mxu0  ;;  %4538 = vmatpush3.bf16.xpose.msra.mxu0 %v1036_v45  ;;  %4541 = vmatprep.mubr.msk.bf16.mxu0 %vm905_vm2, %v893_v42 }
 0x21c   :  { %4838 = vmatprep.subr.msk.bf16.mxu0 %vm905_vm2, %v901_v46  ;;  %v502_v49 = vpop.f32.mrf.mxu1 }
 0x21d   :  { %v899_v50 = vpack.c.bf16 %v502_v49, %v499_v41  ;;  %v698_v51 = vpop.f32.mrf.mxu0 }
 0x21e   :  { %v4487_v53 = vpop.f32.mrf.mxu1  ;;  %v1288_v9 = vpack.c.bf16 %v698_v51, %v695_v44 }
 0x21f   :  { %v4511_v56 = vpop.f32.mrf.mxu0  ;;  %4836 = vmatprep.subr.msk.bf16.mxu1 %vm905_vm2, %v899_v50  ;;  %v973_v58 = vsel %vm905_vm2, %v899_v50, 0  ;;  %v904_v59 = vpack.c.bf16 %v4487_v53, %v4487_v53 }
 0x220   :  { %v619_v57 = vpop.f32.mrf.mxu1  ;;  %v1293_v10 = vpack.c.bf16 %v4511_v56, %v4511_v56 }
 0x221   :  { %v5290_v60 = vpop.f32.mrf.mxu0  ;;  %v1096_v8 = vsel %vm905_vm2, %v904_v59, 0 }
 0x222   :  { %v4488_v63 = vpop.f32.mrf.mxu1  ;;  %4532 = vmatpush3.bf16.xpose.msra.mxu1 %v973_v58  ;;  %v5306_v14 = vand.u32 %v5286_v55, %v1293_v10 }
 0x223   :  { %v4512_v0 = vpop.f32.mrf.mxu0  ;;  %4540 = vmatpush3.bf16.xpose.msra.mxu0 %v1033_v61  ;;  %4839 = vmatprep.subr.msk.bf16.mxu1 %vm905_vm2, %v904_v59 }
 0x224   :  { %4553 = vmatprep.subr.bf16.mxu0 %v1306_v62  ;;  %v622_v1 = vpop.f32.mrf.mxu1 }
 0x225   :  { %v903_v11 = vpack.c.bf16 %v622_v1, %v619_v57  ;;  %v5320_v24 = vpop.f32.mrf.mxu0 }
 0x226   :  { %v4503_v2 = vpop.f32.mrf.mxu1 }
 0x227   :  { %v1291_v13 = vpack.c.bf16 %v4503_v2, %v4503_v2  ;;  %v1093_v17 = vsel %vm905_vm2, %v903_v11, 0 }
 0x228   :  { %v755_v5 = vpop.f32.mrf.mxu1 }
 0x229   :  { %4534 = vmatmul.mubr.msk.bf16.vlgmr.msra.gmra.mxu1 %vm905_vm2, %v892_v3  ;;  %v1363_v18 = vand.u32 %v5286_v55, %v1291_v13 }
 0x22a   :  { %4542 = vmatmul.mubr.msk.bf16.vlgmr.msra.gmra.mxu0 %vm905_vm2, %v894_v4  ;;  %v4504_v12 = vpop.f32.mrf.mxu1  ;;  %4546 = vmatpush3.bf16.xpose.msra.mxu1 %v1096_v8 }
 0x22b   :  { %4549 = vmatprep.mubr.msk.bf16.mxu1 %vm905_vm2, %v895_v6  ;;  %4554 = vmatpush3.bf16.msra.mxu0 %v1306_v62 }
 0x22c   :  { %4840 = vmatprep.subr.msk.bf16.mxu1 %vm905_vm2, %v903_v11  ;;  %4555 = vmatprep.subr.bf16.mxu0 %v1288_v9  ;;  %v758_v7 = vpop.f32.mrf.mxu1 }
 0x22d   :  { %v1290_v21 = vpack.c.bf16 %v758_v7, %v755_v5 }
 0x22e   :  { %v4519_v15 = vpop.f32.mrf.mxu1 }
 0x22f   :  { %4556 = vmatpush3.bf16.msra.mxu0 %v1288_v9  ;;  %v1295_v22 = vpack.c.bf16 %v4519_v15, %v4519_v15 }
 0x230   :  { %4569 = vmatprep.subr.bf16.mxu0 %v5306_v14  ;;  %v5309_v16 = vpop.f32.mrf.mxu1 }
 0x231   :  { %v5317_v23 = vand.u32 %v5286_v55, %v1295_v22 }
 0x232   :  { %v4520_v19 = vpop.f32.mrf.mxu1  ;;  %4548 = vmatpush3.bf16.xpose.msra.mxu1 %v1093_v17 }
 0x233   :  { %4561 = vmatprep.subr.bf16.mxu1 %v1363_v18 }
 0x234   :  { %v5325_v32 = vpop.f32.mrf.mxu1 }
 0x239   :  { %4550 = vmatmul.mubr.msk.bf16.vlgmr.msra.gmra.mxu1 %vm905_vm2, %v896_v20 }
 0x23a   :  { %4562 = vmatpush3.bf16.msra.mxu1 %v1363_v18 }
 0x23b   :  { %4563 = vmatprep.subr.bf16.mxu1 %v1290_v21 }
 0x23e   :  { %4564 = vmatpush3.bf16.msra.mxu1 %v1290_v21 }
 0x23f   :  { %4577 = vmatprep.subr.bf16.mxu1 %v5317_v23 }
 0x2da   :  { %v4527_v25 = vpop.f32.mrf.mxu0 }
 0x2db   :  { %v1154_v26 = vsel %vm1153_vm4, %v4527_v25, -inf }
 0x2dc   :  { %1155 = vmax.xlane.f32.xlu0 %v1154_v26  ;;  %v952_v27 = vpop.f32.mrf.mxu0 }
 0x2dd   :  { %v1147_v29 = vsel %vm1146_vm5, %v952_v27, -inf }
 0x2de   :  { %v4528_v28 = vpop.f32.mrf.mxu0 }
 0x2e0   :  { %1148 = vmax.xlane.f32.xlu0 %v1147_v29  ;;  %v955_v30 = vpop.f32.mrf.mxu0 }
 0x2e1   :  { %v1150_v31 = vsel %vm1146_vm5, %v955_v30, -inf }
 0x2e2   :  { %1151 = vmax.xlane.f32.xlu1 %v1150_v31 }
 0x2e9   :  { %v4535_v33 = vpop.f32.mrf.mxu1 }
 0x2ea   :  { %v5327_v34 = vpop.f32.mrf.mxu0  ;;  %v1163_v35 = vsel %vm1153_vm4, %v4535_v33, -inf }
 0x2eb   :  { %1164 = vmax.xlane.f32.xlu1 %v1163_v35  ;;  %v1012_v36 = vpop.f32.mrf.mxu1  ;;  %v1172_v46 = vsel %vm1153_vm4, %v5327_v34, -inf }
 0x2ec   :  { %v1072_v37 = vpop.f32.mrf.mxu0  ;;  %v1157_v41 = vsel %vm1146_vm5, %v1012_v36, -inf }
 0x2ed   :  { %v1166_v38 = vsel %vm1146_vm5, %v1072_v37, -inf  ;;  %v4536_v39 = vpop.f32.mrf.mxu1 }
 0x2ee   :  { %1167 = vmax.xlane.f32.xlu0 %v1166_v38  ;;  %v4544_v40 = vpop.f32.mrf.mxu0 }
 0x2ef   :  { %1158 = vmax.xlane.f32.xlu1 %v1157_v41  ;;  %v1015_v42 = vpop.f32.mrf.mxu1 }
 0x2f0   :  { %v1075_v43 = vpop.f32.mrf.mxu0  ;;  %v1160_v44 = vsel %vm1146_vm5, %v1015_v42, -inf }
 0x2f1   :  { %v1169_v45 = vsel %vm1146_vm5, %v1075_v43, -inf }
 0x2f2   :  { %1161 = vmax.xlane.f32.xlu0 %v1160_v44 }
 0x2f3   :  { %1170 = vmax.xlane.f32.xlu1 %v1169_v45 }
 0x2f6   :  { %1173 = vmax.xlane.f32.xlu0 %v1172_v46 }
 0x2f9   :  { %v5336_v47 = vpop.f32.mrf.mxu1 }
 0x2fa   :  { %v1181_v52 = vsel %vm1153_vm4, %v5336_v47, -inf }
 0x2fb   :  { %v1132_v48 = vpop.f32.mrf.mxu1 }
 0x2fc   :  { %v1175_v49 = vsel %vm1146_vm5, %v1132_v48, -inf }
 0x2fd   :  { %1176 = vmax.xlane.f32.xlu1 %v1175_v49  ;;  %v4552_v50 = vpop.f32.mrf.mxu1 }
 0x2ff   :  { %v5339_v51 = vpop.f32.mrf.mxu1 }
 0x300   :  { %v1178_v53 = vsel %vm1146_vm5, %v5339_v51, -inf }
 0x301   :  { %1182 = vmax.xlane.f32.xlu1 %v1181_v52  ;;  %1179 = vmax.xlane.f32.xlu0 %v1178_v53 }
 0x365   :  { %v1156_v54 = vpop.xlane.xlu0 %1155 }
 0x366   :  { %v1186_v56 = vsub.f32 %v4527_v25, %v1156_v54 }
 0x368   :  { %v1200_v57 = vmul.f32 1.442695, %v1186_v56 }
 0x369   :  { %v1149_v58 = vpop.xlane.xlu0 %1148 }
 0x36a   :  { %4924 = vpow2.f32 %v1200_v57  ;;  %v1184_v59 = vsub.f32 %v952_v27, %v1149_v58 }
 0x36b   :  { %v1152_v61 = vpop.xlane.xlu1 %1151 }
 0x36c   :  { %v1196_v62 = vmul.f32 1.442695, %v1184_v59  ;;  %v1185_v63 = vsub.f32 %v955_v30, %v1152_v61 }
 0x36e   :  { %4926 = vpow2.f32 %v1196_v62  ;;  %v1198_v0 = vmul.f32 1.442695, %v1185_v63 }
 0x370   :  { %4928 = vpow2.f32 %v1198_v0 }
 0x374   :  { %v1165_v1 = vpop.xlane.xlu1 %1164 }
 0x375   :  { %v1189_v2 = vsub.f32 %v4535_v33, %v1165_v1 }
 0x377   :  { %v5345_v3 = vpop.eup %4924  ;;  %v1206_v4 = vmul.f32 1.442695, %v1189_v2  ;;  %v1168_v5 = vpop.xlane.xlu0 %1167 }
 0x378   :  { %v1190_v6 = vsub.f32 %v1072_v37, %v1168_v5  ;;  %v1159_v8 = vpop.xlane.xlu1 %1158  ;;  %v1226_v9 = vsel %vm1153_vm4, %v5345_v3, 0.0 }
 0x379   :  { %4930 = vpow2.f32 %v1206_v4  ;;  %v1187_v10 = vsub.f32 %v1012_v36, %v1159_v8  ;;  %1227 = vadd.xlane.f32.xlu0 %v1226_v9 }
 0x37a   :  { %v1208_v11 = vmul.f32 1.442695, %v1190_v6 }
 0x37b   :  { %v5349_v12 = vpop.eup %4926  ;;  %v1202_v7 = vmul.f32 1.442695, %v1187_v10  ;;  %v1162_v13 = vpop.xlane.xlu0 %1161 }
 0x37c   :  { %4932 = vpow2.f32 %v1208_v11  ;;  %v1188_v15 = vsub.f32 %v1015_v42, %v1162_v13  ;;  %v1171_v17 = vpop.xlane.xlu1 %1170  ;;  %v1220_v18 = vsel %vm1146_vm5, %v5349_v12, 0.0  ;;  %v1292_v13 = vpack.c.bf16 %v5320_v24, %v5290_v60 }
 0x37d   :  { %v5353_v19 = vpop.eup %4928  ;;  %4934 = vpow2.f32 %v1202_v7  ;;  %v1191_v20 = vsub.f32 %v1075_v43, %v1171_v17  ;;  %1221 = vadd.xlane.f32.xlu0 %v1220_v18 }
 0x37e   :  { %v1204_v21 = vmul.f32 1.442695, %v1188_v15  ;;  %v1223_v22 = vsel %vm1146_vm5, %v5353_v19, 0.0 }
 0x37f   :  { %v1210_v25 = vmul.f32 1.442695, %v1191_v20  ;;  %v1174_v26 = vpop.xlane.xlu0 %1173  ;;  %1224 = vadd.xlane.f32.xlu1 %v1223_v22 }
 0x380   :  { %4936 = vpow2.f32 %v1204_v21  ;;  %v1192_v27 = vsub.f32 %v5327_v34, %v1174_v26 }
 0x381   :  { %4938 = vpow2.f32 %v1210_v25 }
 0x382   :  { %v1212_v28 = vmul.f32 1.442695, %v1192_v27 }
 0x384   :  { %4940 = vpow2.f32 %v1212_v28 }
 0x386   :  { %v5358_v29 = vpop.eup %4930  ;;  %v1177_v30 = vpop.xlane.xlu1 %1176 }
 0x387   :  { %v1193_v31 = vsub.f32 %v1132_v48, %v1177_v30  ;;  %v1235_v33 = vsel %vm1153_vm4, %v5358_v29, 0.0 }
 0x388   :  { %1236 = vadd.xlane.f32.xlu1 %v1235_v33  ;;  %v1294_v33 = vpack.c.bf16 %v5325_v32, %v5309_v16 }
 0x389   :  { %v5362_v35 = vpop.eup %4932  ;;  %v1214_v36 = vmul.f32 1.442695, %v1193_v31 }
 0x38a   :  { %v5364_v37 = vpop.eup %4934  ;;  %v1183_v38 = vpop.xlane.xlu1 %1182  ;;  %v1238_v34 = vsel %vm1146_vm5, %v5362_v35, 0.0 }
 0x38b   :  { %v1180_v39 = vpop.xlane.xlu0 %1179  ;;  %4942 = vpow2.f32 %v1214_v36  ;;  %v1195_v40 = vsub.f32 %v5336_v47, %v1183_v38  ;;  %1239 = vadd.xlane.f32.xlu0 %v1238_v34  ;;  %v1229_v42 = vsel %vm1146_vm5, %v5364_v37, 0.0 }
 0x38c   :  { %v1194_v41 = vsub.f32 %v5339_v51, %v1180_v39  ;;  %1230 = vadd.xlane.f32.xlu1 %v1229_v42  ;;  %v1536_v42 = vld [vmem:[%s5993_s6 + $0x4] sm:$0xf] }
 0x38d   :  { %v5372_v43 = vpop.eup %4936  ;;  %v1218_v44 = vmul.f32 1.442695, %v1195_v40 }
 0x38e   :  { %v1216_v45 = vmul.f32 1.442695, %v1194_v41  ;;  %v5374_v46 = vpop.eup %4938  ;;  %v1232_v48 = vsel %vm1146_vm5, %v5372_v43, 0.0 }
 0x38f   :  { %4944 = vpow2.f32 %v1218_v44  ;;  %1233 = vadd.xlane.f32.xlu0 %v1232_v48  ;;  %v1241_v47 = vsel %vm1146_vm5, %v5374_v46, 0.0  ;;  %v1537_v44 = vld [vmem:[%s5993_s6 + $0x8] sm:$0xf] }
 0x390   :  { %4946 = vpow2.f32 %v1216_v45  ;;  %1242 = vadd.xlane.f32.xlu1 %v1241_v47  ;;  %v1538_v45 = vld [vmem:[%s5993_s6 + $0xc] sm:$0xf] }
 0x391   :  { %v5380_v49 = vpop.eup %4940 }
 0x392   :  { %v1244_v50 = vsel %vm1153_vm4, %v5380_v49, 0.0 }
 0x393   :  { %1245 = vadd.xlane.f32.xlu0 %v1244_v50 }
 0x398   :  { %v5384_v51 = vpop.eup %4942 }
 0x399   :  { %v1247_v52 = vsel %vm1146_vm5, %v5384_v51, 0.0 }
 0x39a   :  { %1248 = vadd.xlane.f32.xlu1 %v1247_v52  ;;  %v1661_v52 = vsel %vm1545_vm6, %v1537_v44, 0 }
 0x39c   :  { %v5388_v53 = vpop.eup %4944 }
 0x39d   :  { %v5390_v54 = vpop.eup %4946  ;;  %v1253_v56 = vsel %vm1153_vm4, %v5388_v53, 0.0 }
 0x39e   :  { %1254 = vadd.xlane.f32.xlu1 %v1253_v56  ;;  %v1250_v57 = vsel %vm1146_vm5, %v5390_v54, 0.0 }
 0x39f   :  { %1251 = vadd.xlane.f32.xlu0 %v1250_v57 }
 0x402   :  { %v1228_v58 = vpop.xlane.xlu0 %1227 }
 0x403   :  { %4948 = vrcp.f32 %v1228_v58 }
 0x406   :  { %v1222_v59 = vpop.xlane.xlu0 %1221 }
 0x407   :  { %4950 = vrcp.f32 %v1222_v59 }
 0x408   :  { %v1225_v61 = vpop.xlane.xlu1 %1224 }
 0x409   :  { %4952 = vrcp.f32 %v1225_v61 }
 0x410   :  { %v4949_v63 = vpop.eup %4948 }
 0x411   :  { %v1237_v62 = vpop.xlane.xlu1 %1236  ;;  %v1270_v5 = vmul.f32 %v4949_v63, %v5345_v3 }
 0x412   :  { %4954 = vrcp.f32 %v1237_v62 }
 0x413   :  { %v1281_v7 = vpack.c.bf16 %v1270_v5, %v1270_v5 }
 0x414   :  { %v4951_v0 = vpop.eup %4950  ;;  %v1240_v1 = vpop.xlane.xlu0 %1239 }
 0x415   :  { %v1231_v2 = vpop.xlane.xlu1 %1230  ;;  %v1268_v6 = vmul.f32 %v4951_v0, %v5349_v12  ;;  %v1718_v0 = vsel %vm1545_vm6, %v1538_v45, 0 }
 0x416   :  { %v4953_v4 = vpop.eup %4952  ;;  %4956 = vrcp.f32 %v1231_v2 }
 0x417   :  { %v1269_v8 = vmul.f32 %v4953_v4, %v5353_v19  ;;  %4958 = vrcp.f32 %v1240_v1 }
 0x418   :  { %v1234_v9 = vpop.xlane.xlu0 %1233 }
 0x419   :  { %4960 = vrcp.f32 %v1234_v9  ;;  %v1243_v10 = vpop.xlane.xlu1 %1242  ;;  %v1280_v11 = vpack.c.bf16 %v1269_v8, %v1268_v6 }
 0x41a   :  { %4962 = vrcp.f32 %v1243_v10 }
 0x41b   :  { %4557 = vmatprep.mubr.msk.bf16.mxu0 %vm1146_vm5, %v1280_v11 }
 0x41c   :  { %4558 = vmatmul.mubr.msk.bf16.vlgmr.msra.gmra.mxu0 %vm1146_vm5, %v1281_v7  ;;  %v1246_v3 = vpop.xlane.xlu0 %1245 }
 0x41d   :  { %4570 = vmatpush3.bf16.msra.mxu0 %v5306_v14  ;;  %4964 = vrcp.f32 %v1246_v3 }
 0x41e   :  { %4571 = vmatprep.subr.bf16.mxu0 %v1292_v13 }
 0x41f   :  { %v4955_v12 = vpop.eup %4954 }
 0x420   :  { %v1273_v20 = vmul.f32 %v4955_v12, %v5358_v29 }
 0x421   :  { %4572 = vmatpush3.bf16.msra.mxu0 %v1292_v13 }
 0x422   :  { %v1283_v30 = vpack.c.bf16 %v1273_v20, %v1273_v20 }
 0x423   :  { %v1249_v15 = vpop.xlane.xlu1 %1248  ;;  %v4957_v17 = vpop.eup %4956 }
 0x424   :  { %v4959_v18 = vpop.eup %4958  ;;  %4966 = vrcp.f32 %v1249_v15  ;;  %v1271_v60 = vmul.f32 %v4957_v17, %v5364_v37 }
 0x425   :  { %v1274_v14 = vmul.f32 %v4959_v18, %v5362_v35 }
 0x426   :  { %v4961_v19 = vpop.eup %4960 }
 0x427   :  { %v4963_v21 = vpop.eup %4962  ;;  %v1255_v22 = vpop.xlane.xlu1 %1254  ;;  %v1272_v24 = vmul.f32 %v4961_v19, %v5372_v43  ;;  %v1604_v43 = vsel %vm1545_vm6, %v1536_v42, 0 }
 0x428   :  { %4968 = vrcp.f32 %v1255_v22  ;;  %v1252_v25 = vpop.xlane.xlu0 %1251  ;;  %v1275_v26 = vmul.f32 %v4963_v21, %v5374_v46 }
 0x429   :  { %4970 = vrcp.f32 %v1252_v25  ;;  %v1282_v27 = vpack.c.bf16 %v1272_v24, %v1271_v60 }
 0x42a   :  { %v4965_v28 = vpop.eup %4964  ;;  %v1284_v31 = vpack.c.bf16 %v1275_v26, %v1274_v14 }
 0x42b   :  { %4565 = vmatprep.mubr.msk.bf16.mxu1 %vm1146_vm5, %v1282_v27  ;;  %v1276_v29 = vmul.f32 %v4965_v28, %v5380_v49 }
 0x42c   :  { %4566 = vmatmul.mubr.msk.bf16.vlgmr.msra.gmra.mxu1 %vm1146_vm5, %v1283_v30  ;;  %4573 = vmatprep.mubr.msk.bf16.mxu0 %vm1146_vm5, %v1284_v31 }
 0x42d   :  { %4578 = vmatpush3.bf16.msra.mxu1 %v5317_v23  ;;  %v1285_v35 = vpack.c.bf16 %v1276_v29, %v1276_v29  ;;  %v1535_v23 = vld [vmem:[%s5993_s6] sm:$0xf] }
 0x42e   :  { %4579 = vmatprep.subr.bf16.mxu1 %v1294_v33  ;;  %4841 = vmatprep.subr.msk.bf16.mxu0 %vm1545_vm6, %v1535_v23  ;;  %v1547_v41 = vsel %vm1545_vm6, %v1535_v23, 0 }
 0x42f   :  { %4574 = vmatmul.mubr.msk.bf16.vlgmr.msra.gmra.mxu0 %vm1146_vm5, %v1285_v35 }
 0x430   :  { %4586 = vmatpush3.bf16.msra.mxu0 %v1547_v41 }
 0x431   :  { %4580 = vmatpush3.bf16.msra.mxu1 %v1294_v33  ;;  %v4967_v36 = vpop.eup %4966  ;;  %4843 = vmatprep.subr.msk.bf16.mxu0 %vm1545_vm6, %v1537_v44 }
 0x432   :  { %v1277_v39 = vmul.f32 %v4967_v36, %v5384_v51  ;;  %4842 = vmatprep.subr.msk.bf16.mxu1 %vm1545_vm6, %v1536_v42 }
 0x435   :  { %v4969_v37 = vpop.eup %4968 }
 0x436   :  { %v4971_v38 = vpop.eup %4970  ;;  %v1279_v34 = vmul.f32 %v4969_v37, %v5388_v53 }
 0x437   :  { %v1278_v16 = vmul.f32 %v4971_v38, %v5390_v54 }
 0x438   :  { %v1287_v32 = vpack.c.bf16 %v1279_v34, %v1279_v34 }
 0x439   :  { %v1286_v40 = vpack.c.bf16 %v1278_v16, %v1277_v39 }
 0x43b   :  { %4581 = vmatprep.mubr.msk.bf16.mxu1 %vm1146_vm5, %v1286_v40 }
 0x43c   :  { %4582 = vmatmul.mubr.msk.bf16.vlgmr.msra.gmra.mxu1 %vm1146_vm5, %v1287_v32 }
 0x43d   :  { %4592 = vmatpush3.bf16.msra.mxu1 %v1604_v43  ;;  %v5038_v43 = vld [vmem:[%s5987_s0 + $0x10] sm:$0x1] }
 0x43e   :  { %4844 = vmatprep.subr.msk.bf16.mxu1 %vm1545_vm6, %v1538_v45  ;;  %v5039_v45 = vld [vmem:[%s5987_s0] sm:$0xff] }
 0x4dc   :  { %v4559_v46 = vpop.f32.mrf.mxu0 }
 0x4dd   :  { %v1528_v51 = vpack.c.bf16 %v4559_v46, %v4559_v46 }
 0x4de   :  { %v1342_v48 = vpop.f32.mrf.mxu0 }
 0x4e0   :  { %v4560_v47 = vpop.f32.mrf.mxu0 }
 0x4e2   :  { %v1345_v49 = vpop.f32.mrf.mxu0 }
 0x4e3   :  { %v1527_v50 = vpack.c.bf16 %v1345_v49, %v1342_v48  ;;  %v4111_v49 = vld [vmem:[%s5994_s7] ss:$0 sm:$0xff] }
 0x4e5   :  { %4587 = vmatprep.mubr.msk.bf16.mxu0 %vm905_vm2, %v1527_v50 }
 0x4e6   :  { %4588 = vmatmul.mubr.msk.bf16.vlgmr.msra.gmra.mxu0 %vm905_vm2, %v1528_v51 }
 0x4e7   :  { %4598 = vmatpush3.bf16.msra.mxu0 %v1661_v52  ;;  %v5040_v52 = vld [vmem:[%s5987_s0 + $0x8] sm:$0xff] }
 0x4ec   :  { %v4567_v53 = vpop.f32.mrf.mxu1 }
 0x4ed   :  { %v1530_v63 = vpack.c.bf16 %v4567_v53, %v4567_v53 }
 0x4ee   :  { %v1399_v54 = vpop.f32.mrf.mxu1 }
 0x4ef   :  { %v4575_v56 = vpop.f32.mrf.mxu0 }
 0x4f0   :  { %v4568_v57 = vpop.f32.mrf.mxu1  ;;  %v1532_v4 = vpack.c.bf16 %v4575_v56, %v4575_v56 }
 0x4f1   :  { %v1456_v58 = vpop.f32.mrf.mxu0 }
 0x4f2   :  { %v1402_v59 = vpop.f32.mrf.mxu1 }
 0x4f3   :  { %v1529_v61 = vpack.c.bf16 %v1402_v59, %v1399_v54  ;;  %v4576_v62 = vpop.f32.mrf.mxu0 }
 0x4f5   :  { %v1459_v1 = vpop.f32.mrf.mxu0  ;;  %4593 = vmatprep.mubr.msk.bf16.mxu1 %vm905_vm2, %v1529_v61 }
 0x4f6   :  { %v1531_v2 = vpack.c.bf16 %v1459_v1, %v1456_v58  ;;  %4594 = vmatmul.mubr.msk.bf16.vlgmr.msra.gmra.mxu1 %vm905_vm2, %v1530_v63 }
 0x4f7   :  { %4604 = vmatpush3.bf16.msra.mxu1 %v1718_v0 }
 0x4f8   :  { %4599 = vmatprep.mubr.msk.bf16.mxu0 %vm905_vm2, %v1531_v2 }
 0x4f9   :  { %4600 = vmatmul.mubr.msk.bf16.vlgmr.msra.gmra.mxu0 %vm905_vm2, %v1532_v4 }
 0x4fc   :  { %v4583_v5 = vpop.f32.mrf.mxu1 }
 0x4fd   :  { %v1534_v11 = vpack.c.bf16 %v4583_v5, %v4583_v5 }
 0x4fe   :  { %v1513_v6 = vpop.f32.mrf.mxu1 }
 0x500   :  { %v4584_v8 = vpop.f32.mrf.mxu1 }
 0x502   :  { %v1516_v9 = vpop.f32.mrf.mxu1 }
 0x503   :  { %v1533_v10 = vpack.c.bf16 %v1516_v9, %v1513_v6 }
 0x505   :  { %4605 = vmatprep.mubr.msk.bf16.mxu1 %vm905_vm2, %v1533_v10 }
 0x506   :  { %4606 = vmatmul.mubr.msk.bf16.vlgmr.msra.gmra.mxu1 %vm905_vm2, %v1534_v11 }
 0x5a6   :  { %v4589_v7 = vpop.f32.mrf.mxu0 }
 0x5a7   :  { %v1782_v60 = vsel %vm60_vm1, %v4589_v7, 0.0  ;;  %v4127_v7 = vld [vmem:[%s5987_s0 + $0x20] sm:$0xff] }
 0x5a8   :  { %v1583_v13 = vpop.f32.mrf.mxu0 }
 0x5a9   :  { %v1768_v26 = vsel %vm53_vm0, %v1583_v13, 0.0  ;;  %v4126_v13 = vld [vmem:[%s5987_s0 + $0x18] sm:$0xff] }
 0x5aa   :  { %v4590_v3 = vpop.f32.mrf.mxu0 }
 0x5ac   :  { %v1586_v15 = vpop.f32.mrf.mxu0 }
 0x5ad   :  { %v1775_v36 = vsel %vm53_vm0, %v1586_v15, 0.0  ;;  %v2054_v15 = vsel %vm53_vm0, %v4127_v7, 0.0 }
 0x5b6   :  { %v4595_v12 = vpop.f32.mrf.mxu1 }
 0x5b7   :  { %v1783_v22 = vsel %vm60_vm1, %v4595_v12, 0.0 }
 0x5b8   :  { %v1640_v17 = vpop.f32.mrf.mxu1  ;;  %v1784_v25 = vadd.f32 %v1783_v22, %v1782_v60 }
 0x5b9   :  { %v4601_v18 = vpop.f32.mrf.mxu0  ;;  %v1769_v24 = vsel %vm53_vm0, %v1640_v17, 0.0  ;;  %v2051_v17 = vsel %vm53_vm0, %v4126_v13, 0.0 }
 0x5ba   :  { %v4596_v19 = vpop.f32.mrf.mxu1  ;;  %v1785_v27 = vsel %vm60_vm1, %v4601_v18, 0.0  ;;  %v1770_v28 = vadd.f32 %v1769_v24, %v1768_v26  ;;  %v4128_v18 = vld [vmem:[%s5987_s0 + $0x28] sm:$0x1] }
 0x5bb   :  { %v1697_v20 = vpop.f32.mrf.mxu0  ;;  %v1786_v29 = vadd.f32 %v1785_v27, %v1784_v25  ;;  %v2057_v19 = vsel %vm60_vm1, %v4128_v18, 0.0 }
 0x5bc   :  { %v1643_v14 = vpop.f32.mrf.mxu1  ;;  %v1771_v30 = vsel %vm53_vm0, %v1697_v20, 0.0  ;;  %v4882_v20 = vld [vmem:[%s5995_s10 + $0x8] sm:$0xff]  }
 0x5bd   :  { %v4602_v21 = vpop.f32.mrf.mxu0  ;;  %v1776_v31 = vsel %vm53_vm0, %v1643_v14, 0.0  ;;  %v1772_v38 = vadd.f32 %v1771_v30, %v1770_v28  ;;  %4609 = vmatprep.subr.bf16.mxu0 %v4882_v20 }
 0x5be   :  { %v1777_v34 = vadd.f32 %v1776_v31, %v1775_v36  ;;  %v4883_v21 = vld [vmem:[%s5995_s10] sm:$0xff]   ;;  %4610 = vmatpush3.bf16.msra.mxu0 %v4882_v20 }
 0x5bf   :  { %v1700_v33 = vpop.f32.mrf.mxu0  ;;  %4611 = vmatprep.subr.bf16.mxu0 %v4883_v21  ;;  %v4129_v20 = vld [vmem:[%s5991_s1] ss:$0 sm:$0xff] }
 0x5c0   :  { %v1778_v32 = vsel %vm53_vm0, %v1700_v33, 0.0 }
 0x5c1   :  { %v1779_v42 = vadd.f32 %v1778_v32, %v1777_v34 }
 0x5c2   :  { %4612 = vmatpush3.bf16.msra.mxu0 %v4883_v21 }
 0x5c6   :  { %v4607_v35 = vpop.f32.mrf.mxu1 }
 0x5c7   :  { %v1787_v37 = vsel %vm60_vm1, %v4607_v35, 0.0 }
 0x5c8   :  { %v1788_v39 = vadd.f32 %v1787_v37, %v1786_v29  ;;  %v1754_v16 = vpop.f32.mrf.mxu1 }
 0x5c9   :  { %v1773_v40 = vsel %vm53_vm0, %v1754_v16, 0.0 }
 0x5ca   :  { %v1774_v23 = vadd.f32 %v1773_v40, %v1772_v38  ;;  %v4608_v41 = vpop.f32.mrf.mxu1  ;;  %v1791_v44 = vadd.f32 %v5038_v43, %v1788_v39 }
 0x5cc   :  { %v1789_v46 = vadd.f32 %v5039_v45, %v1774_v23  ;;  %v1757_v48 = vpop.f32.mrf.mxu1  ;;  %v5478_v56 = vadd.f32 %v4111_v49, %v1791_v44  ;;  %v4112_v45 = vld [vmem:[%s5996_s8] ss:$0 sm:$0xff] }
 0x5cd   :  { %v1780_v47 = vsel %vm53_vm0, %v1757_v48, 0.0 }
 0x5ce   :  { %v1781_v50 = vadd.f32 %v1780_v47, %v1779_v42  ;;  %v5471_v51 = vadd.f32 %v4111_v49, %v1789_v46  ;;  %v1810_v58 = vsel %vm60_vm1, %v5478_v56, 0.0 }
 0x5d0   :  { %v1790_v53 = vadd.f32 %v5040_v52, %v1781_v50  ;;  %v1804_v54 = vsel %vm53_vm0, %v5471_v51, 0.0  ;;  %v4113_v52 = vld [vmem:[%s5997_s9] ss:$0 sm:$0xff] }
 0x5d1   :  { %1805 = vadd.xlane.f32.xlu0 %v1804_v54 }
 0x5d2   :  { %v5480_v57 = vadd.f32 %v4111_v49, %v1790_v53 }
 0x5d4   :  { %v1807_v59 = vsel %vm53_vm0, %v5480_v57, 0.0 }
 0x5d5   :  { %1811 = vadd.xlane.f32.xlu0 %v1810_v58  ;;  %1808 = vadd.xlane.f32.xlu1 %v1807_v59 }
 0x65a   :  { %v1806_v61 = vpop.xlane.xlu0 %1805 }
 0x65b   :  { %v1813_v62 = vmul.f32 0.03125, %v1806_v61 }
 0x65d   :  { %v5487_v63 = vsub.f32 %v5471_v51, %v1813_v62 }
 0x65e   :  { %v1812_v0 = vpop.xlane.xlu0 %1811  ;;  %v1809_v1 = vpop.xlane.xlu1 %1808 }
 0x65f   :  { %v1815_v2 = vmul.f32 0.03125, %v1812_v0  ;;  %v1814_v4 = vmul.f32 0.03125, %v1809_v1  ;;  %v1819_v5 = vmul.f32 %v5487_v63, %v5487_v63  ;;  %v4884_v0 = vld [vmem:[%s5988_s3 + $0x8] sm:$0xff]   ;;  %v4885_v1 = vld [vmem:[%s5988_s3] sm:$0xff]  }
 0x660   :  { %4629 = vmatprep.subr.bf16.mxu0 %v4884_v0 }
 0x661   :  { %v5492_v6 = vsub.f32 %v5478_v56, %v1815_v2  ;;  %v1817_v8 = vsub.f32 %v5480_v57, %v1814_v4  ;;  %v1822_v9 = vsel %vm53_vm0, %v1819_v5, 0.0  ;;  %v4886_v2 = vld [vmem:[%s5988_s3 + $0x18] sm:$0xff]   ;;  %v4898_v5 = vld [vmem:[%s5998_s12 + $0x10] sm:$0xff]  }
 0x662   :  { %1823 = vadd.xlane.f32.xlu1 %v1822_v9  ;;  %v4896_v4 = vld [vmem:[%s5998_s12 + $0x18] sm:$0xff]   ;;  %v5567_v9 = vld [vmem:[%s5988_s3 + $0x28] sm:$0xff]  }
 0x663   :  { %v1821_v10 = vmul.f32 %v5492_v6, %v5492_v6  ;;  %v1820_v11 = vmul.f32 %v1817_v8, %v1817_v8  ;;  %4617 = vmatprep.subr.bf16.mxu1 %v4896_v4 }
 0x664   :  { %4618 = vmatpush3.bf16.msra.mxu1 %v4896_v4  ;;  %v4909_v4 = vld [vmem:[%s5990_s5] sm:$0xff]  }
 0x665   :  { %v1828_v3 = vsel %vm60_vm1, %v1821_v10, 0.0  ;;  %v1825_v12 = vsel %vm53_vm0, %v1820_v11, 0.0  ;;  %4619 = vmatprep.subr.bf16.mxu1 %v4898_v5 }
 0x666   :  { %1829 = vadd.xlane.f32.xlu1 %v1828_v3  ;;  %1826 = vadd.xlane.f32.xlu0 %v1825_v12 }
 0x668   :  { %4620 = vmatpush3.bf16.msra.mxu1 %v4898_v5  ;;  %v4910_v5 = vld [vmem:[%s5990_s5 + $0x28] sm:$0xff]  }
 0x66a   :  { %2055 = vadd.xlane.f32.xlu1 %v2054_v15  ;;  %2052 = vadd.xlane.f32.xlu0 %v2051_v17 }
 0x66e   :  { %2058 = vadd.xlane.f32.xlu0 %v2057_v19 }
 0x6eb   :  { %v1824_v22 = vpop.xlane.xlu1 %1823 }
 0x6ec   :  { %v1831_v60 = vmul.f32 0.03125, %v1824_v22 }
 0x6ee   :  { %v1834_v24 = vadd.f32 1e-05, %v1831_v60  ;;  %v4130_v60 = vld [vmem:[%s5992_s2] ss:$0 sm:$0xff] }
 0x6ef   :  { %v1827_v25 = vpop.xlane.xlu0 %1826  ;;  %v1830_v14 = vpop.xlane.xlu1 %1829 }
 0x6f0   :  { %4972 = vrsqrt.f32 %v1834_v24  ;;  %v1832_v26 = vmul.f32 0.03125, %v1827_v25  ;;  %v1833_v27 = vmul.f32 0.03125, %v1830_v14 }
 0x6f2   :  { %v1835_v28 = vadd.f32 1e-05, %v1832_v26  ;;  %v1836_v30 = vadd.f32 1e-05, %v1833_v27 }
 0x6f3   :  { %v2053_v31 = vpop.xlane.xlu0 %2052  ;;  %v2056_v29 = vpop.xlane.xlu1 %2055 }
 0x6f4   :  { %4974 = vrsqrt.f32 %v1835_v28  ;;  %v2060_v33 = vmul.f32 0.03125, %v2053_v31  ;;  %v2061_v35 = vmul.f32 0.03125, %v2056_v29 }
 0x6f5   :  { %4976 = vrsqrt.f32 %v1836_v30 }
 0x6f6   :  { %v5518_v36 = vsub.f32 %v4126_v13, %v2060_v33  ;;  %v5520_v37 = vsub.f32 %v4127_v7, %v2061_v35 }
 0x6f7   :  { %v2059_v38 = vpop.xlane.xlu0 %2058 }
 0x6f8   :  { %v2062_v34 = vmul.f32 0.03125, %v2059_v38  ;;  %v2066_v39 = vmul.f32 %v5518_v36, %v5518_v36  ;;  %v2067_v16 = vmul.f32 %v5520_v37, %v5520_v37  ;;  %v4889_v38 = vld [vmem:[%s5988_s3 + $0x30] sm:$0xff]  }
 0x6fa   :  { %v5526_v32 = vsub.f32 %v4128_v18, %v2062_v34  ;;  %v2069_v40 = vsel %vm53_vm0, %v2066_v39, 0.0  ;;  %v2072_v23 = vsel %vm53_vm0, %v2067_v16, 0.0  ;;  %v4890_v34 = vld [vmem:[%s5989_s4 + $0x18] sm:$0xff]   ;;  %v4891_v39 = vld [vmem:[%s5989_s4 + $0x10] sm:$0xff]  }
 0x6fb   :  { %2070 = vadd.xlane.f32.xlu1 %v2069_v40  ;;  %2073 = vadd.xlane.f32.xlu0 %v2072_v23  ;;  %v4892_v16 = vld [vmem:[%s5989_s4 + $0x38] sm:$0xff]   ;;  %v4895_v23 = vld [vmem:[%s5990_s5 + $0x10] sm:$0xff]  }
 0x6fc   :  { %v2068_v41 = vmul.f32 %v5526_v32, %v5526_v32  ;;  %v4894_v40 = vld [vmem:[%s5990_s5 + $0x18] sm:$0xff]  }
 0x6fd   :  { %v4973_v42 = vpop.eup %4972 }
 0x6fe   :  { %v2075_v43 = vsel %vm60_vm1, %v2068_v41, 0.0  ;;  %v1840_v44 = vmul.f32 %v4973_v42, %v5487_v63  ;;  %v4897_v41 = vld [vmem:[%s5990_s5 + $0x38] sm:$0xff]   ;;  %v4899_v42 = vld [vmem:[%s5990_s5 + $0x30] sm:$0xff]  }
 0x6ff   :  { %2076 = vadd.xlane.f32.xlu1 %v2075_v43 }
 0x700   :  { %v1849_v49 = vmul.f32 %v4112_v45, %v1840_v44  ;;  %v4114_v44 = vld [vmem:[%s5999_s11] ss:$0 sm:$0xff] }
 0x701   :  { %v4975_v46 = vpop.eup %4974 }
 0x702   :  { %v4977_v48 = vpop.eup %4976  ;;  %v1841_v47 = vmul.f32 %v4975_v46, %v1817_v8  ;;  %v1858_v58 = vadd.f32 %v4113_v52, %v1849_v49  ;;  %v4901_v8 = vld [vmem:[%s5998_s12] sm:$0xff]  }
 0x703   :  { %v1842_v50 = vmul.f32 %v4977_v48, %v5492_v6  ;;  %v4900_v6 = vld [vmem:[%s5998_s12 + $0x8] sm:$0xff]  }
 0x704   :  { %v1850_v53 = vmul.f32 %v4112_v45, %v1841_v47  ;;  %4621 = vmatprep.subr.bf16.mxu1 %v4900_v6 }
 0x705   :  { %v1851_v54 = vmul.f32 %v4112_v45, %v1842_v50  ;;  %4622 = vmatpush3.bf16.msra.mxu1 %v4900_v6  ;;  %v4911_v6 = vld [vmem:[%s5990_s5 + $0x20] sm:$0xff]  }
 0x706   :  { %v1859_v59 = vadd.f32 %v4113_v52, %v1850_v53  ;;  %4623 = vmatprep.subr.bf16.mxu1 %v4901_v8 }
 0x707   :  { %v1860_v61 = vadd.f32 %v4113_v52, %v1851_v54 }
 0x708   :  { %v1861_v62 = vpack.c.bf16 %v1859_v59, %v1858_v58 }
 0x709   :  { %v1862_v63 = vpack.c.bf16 %v1860_v61, %v1860_v61  ;;  %4624 = vmatpush3.bf16.msra.mxu1 %v4901_v8  ;;  %v4903_v61 = vld [vmem:[%s5988_s3 + $0x20] sm:$0xff]  }
 0x70a   :  { %4613 = vmatprep.mubr.msk.bf16.mxu0 %vm53_vm0, %v1861_v62  ;;  %4645 = vmatprep.subr.bf16.mxu1 %v5567_v9  ;;  %v4904_v62 = vld [vmem:[%s5989_s4 + $0x8] sm:$0xff]  }
 0x70b   :  { %4614 = vmatmul.mubr.msk.bf16.vlgmr.msra.gmra.mxu0 %vm53_vm0, %v1862_v63  ;;  %v4905_v63 = vld [vmem:[%s5989_s4] sm:$0xff]  }
 0x70c   :  { %4630 = vmatpush3.bf16.msra.mxu0 %v4884_v0  ;;  %v4906_v0 = vld [vmem:[%s5989_s4 + $0x28] sm:$0xff]  }
 0x70d   :  { %4631 = vmatprep.subr.bf16.mxu0 %v4885_v1 }
 0x710   :  { %4632 = vmatpush3.bf16.msra.mxu0 %v4885_v1  ;;  %v4907_v1 = vld [vmem:[%s5989_s4 + $0x20] sm:$0xff]  }
 0x711   :  { %4637 = vmatprep.subr.bf16.mxu0 %v4886_v2 }
 0x784   :  { %v2074_v10 = vpop.xlane.xlu0 %2073  ;;  %v2071_v11 = vpop.xlane.xlu1 %2070 }
 0x785   :  { %v2079_v7 = vmul.f32 0.03125, %v2074_v10  ;;  %v2078_v13 = vmul.f32 0.03125, %v2071_v11 }
 0x787   :  { %v2082_v3 = vadd.f32 1e-05, %v2079_v7  ;;  %v2081_v12 = vadd.f32 1e-05, %v2078_v13 }
 0x788   :  { %v2077_v15 = vpop.xlane.xlu1 %2076 }
 0x789   :  { %4978 = vrsqrt.f32 %v2082_v3  ;;  %v2080_v17 = vmul.f32 0.03125, %v2077_v15 }
 0x78a   :  { %4980 = vrsqrt.f32 %v2081_v12 }
 0x78b   :  { %v2083_v18 = vadd.f32 1e-05, %v2080_v17 }
 0x78d   :  { %4982 = vrsqrt.f32 %v2083_v18 }
 0x796   :  { %v4979_v19 = vpop.eup %4978 }
 0x797   :  { %v4981_v21 = vpop.eup %4980  ;;  %v2088_v22 = vmul.f32 %v4979_v19, %v5520_v37  ;;  %v4888_v37 = vld [vmem:[%s5988_s3 + $0x38] sm:$0xff]  }
 0x798   :  { %v2087_v24 = vmul.f32 %v4981_v21, %v5518_v36  ;;  %v4887_v36 = vld [vmem:[%s5988_s3 + $0x10] sm:$0xff]  }
 0x799   :  { %v2097_v25 = vmul.f32 %v4129_v20, %v2088_v22 }
 0x79a   :  { %v4983_v14 = vpop.eup %4982  ;;  %v2096_v26 = vmul.f32 %v4129_v20, %v2087_v24 }
 0x79b   :  { %v2106_v27 = vadd.f32 %v4130_v60, %v2097_v25  ;;  %v2089_v28 = vmul.f32 %v4983_v14, %v5526_v32  ;;  %v4893_v32 = vld [vmem:[%s5989_s4 + $0x30] sm:$0xff]  }
 0x79c   :  { %v2105_v30 = vadd.f32 %v4130_v60, %v2096_v26 }
 0x79d   :  { %v2098_v31 = vmul.f32 %v4129_v20, %v2089_v28 }
 0x79e   :  { %v5579_v29 = vpack.c.bf16 %v2106_v27, %v2105_v30 }
 0x79f   :  { %v2107_v33 = vadd.f32 %v4130_v60, %v2098_v31 }
 0x7a0   :  { %4633 = vmatprep.mubr.msk.bf16.mxu0 %vm53_vm0, %v5579_v29 }
 0x7a1   :  { %v5583_v35 = vpack.c.bf16 %v2107_v33, %v2107_v33 }
 0x7a3   :  { %4634 = vmatmul.mubr.msk.bf16.vlgmr.msra.gmra.mxu0 %vm53_vm0, %v5583_v35 }
 0x7a4   :  { %4638 = vmatpush3.bf16.msra.mxu0 %v4886_v2  ;;  %4641 = vmatprep.mubr.msk.bf16.mxu0 %vm53_vm0, %v5579_v29  ;;  %v4908_v2 = vld [vmem:[%s5990_s5 + $0x8] sm:$0xff]  }
 0x7a5   :  { %4639 = vmatprep.subr.bf16.mxu0 %v4887_v36 }
 0x7a8   :  { %4640 = vmatpush3.bf16.msra.mxu0 %v4887_v36 }
 0x7a9   :  { %4653 = vmatprep.subr.bf16.mxu0 %v4888_v37 }
 0x7ab   :  { %4642 = vmatmul.mubr.msk.bf16.vlgmr.msra.gmra.mxu0 %vm53_vm0, %v5583_v35 }
 0x7ac   :  { %4654 = vmatpush3.bf16.msra.mxu0 %v4888_v37  ;;  %4657 = vmatprep.mubr.msk.bf16.mxu0 %vm53_vm0, %v5579_v29 }
 0x7ad   :  { %4655 = vmatprep.subr.bf16.mxu0 %v4889_v38 }
 0x7b0   :  { %4656 = vmatpush3.bf16.msra.mxu0 %v4889_v38 }
 0x7b1   :  { %4669 = vmatprep.subr.bf16.mxu0 %v4890_v34 }
 0x7b3   :  { %4658 = vmatmul.mubr.msk.bf16.vlgmr.msra.gmra.mxu0 %vm53_vm0, %v5583_v35 }
 0x7b4   :  { %4670 = vmatpush3.bf16.msra.mxu0 %v4890_v34  ;;  %4673 = vmatprep.mubr.msk.bf16.mxu0 %vm53_vm0, %v5579_v29 }
 0x7b5   :  { %4671 = vmatprep.subr.bf16.mxu0 %v4891_v39 }
 0x7b8   :  { %4672 = vmatpush3.bf16.msra.mxu0 %v4891_v39 }
 0x7b9   :  { %4685 = vmatprep.subr.bf16.mxu0 %v4892_v16 }
 0x7bb   :  { %4674 = vmatmul.mubr.msk.bf16.vlgmr.msra.gmra.mxu0 %vm53_vm0, %v5583_v35 }
 0x7bc   :  { %4686 = vmatpush3.bf16.msra.mxu0 %v4892_v16  ;;  %4689 = vmatprep.mubr.msk.bf16.mxu0 %vm53_vm0, %v5579_v29 }
 0x7bd   :  { %4687 = vmatprep.subr.bf16.mxu0 %v4893_v32 }
 0x7c0   :  { %4688 = vmatpush3.bf16.msra.mxu0 %v4893_v32 }
 0x7c1   :  { %4701 = vmatprep.subr.bf16.mxu0 %v4894_v40 }
 0x7c3   :  { %4690 = vmatmul.mubr.msk.bf16.vlgmr.msra.gmra.mxu0 %vm53_vm0, %v5583_v35 }
 0x7c4   :  { %4702 = vmatpush3.bf16.msra.mxu0 %v4894_v40  ;;  %4705 = vmatprep.mubr.msk.bf16.mxu0 %vm53_vm0, %v5579_v29 }
 0x7c5   :  { %4703 = vmatprep.subr.bf16.mxu0 %v4895_v23 }
 0x7c8   :  { %4704 = vmatpush3.bf16.msra.mxu0 %v4895_v23 }
 0x7c9   :  { %4717 = vmatprep.subr.bf16.mxu0 %v4897_v41 }
 0x7cb   :  { %v4615_v43 = vpop.f32.mrf.mxu0  ;;  %4706 = vmatmul.mubr.msk.bf16.vlgmr.msra.gmra.mxu0 %vm53_vm0, %v5583_v35 }
 0x7cc   :  { %4718 = vmatpush3.bf16.msra.mxu0 %v4897_v41  ;;  %4721 = vmatprep.mubr.msk.bf16.mxu0 %vm53_vm0, %v5579_v29  ;;  %v1935_v46 = vadd.f32 %v4615_v43, %v4114_v44 }
 0x7cd   :  { %v1926_v45 = vpop.f32.mrf.mxu0  ;;  %4719 = vmatprep.subr.bf16.mxu0 %v4899_v42 }
 0x7ce   :  { %v1927_v47 = vadd.f32 %v4114_v44, %v1926_v45  ;;  %v1942_v52 = vmax.f32 %v1935_v46, 0.0  ;;  %v5717_v46 = vld [vmem:[%s6000_s13] ss:$0 sm:$0xff] }
 0x7cf   :  { %v4616_v48 = vpop.f32.mrf.mxu0 }
 0x7d0   :  { %4720 = vmatpush3.bf16.msra.mxu0 %v4899_v42  ;;  %v1940_v53 = vmax.f32 %v1927_v47, 0.0  ;;  %v1944_v59 = vpack.c.bf16 %v1942_v52, %v1942_v52 }
 0x7d1   :  { %v1929_v49 = vpop.f32.mrf.mxu0 }
 0x7d2   :  { %v1930_v50 = vadd.f32 %v4114_v44, %v1929_v49 }
 0x7d3   :  { %4722 = vmatmul.mubr.msk.bf16.vlgmr.msra.gmra.mxu0 %vm53_vm0, %v5583_v35 }
 0x7d4   :  { %v1941_v54 = vmax.f32 %v1930_v50, 0.0 }
 0x7d6   :  { %v1943_v58 = vpack.c.bf16 %v1941_v54, %v1940_v53 }
 0x7d8   :  { %4625 = vmatprep.mubr.msk.bf16.mxu1 %vm1984_vm7, %v1943_v58 }
 0x7d9   :  { %4626 = vmatmul.mubr.msk.bf16.vlgmr.msra.gmra.mxu1 %vm1984_vm7, %v1944_v59 }
 0x7da   :  { %4646 = vmatpush3.bf16.msra.mxu1 %v5567_v9  ;;  %4649 = vmatprep.mubr.msk.bf16.mxu1 %vm53_vm0, %v5579_v29 }
 0x7db   :  { %4647 = vmatprep.subr.bf16.mxu1 %v4903_v61 }
 0x7de   :  { %4648 = vmatpush3.bf16.msra.mxu1 %v4903_v61 }
 0x7df   :  { %4661 = vmatprep.subr.bf16.mxu1 %v4904_v62 }
 0x7e1   :  { %4650 = vmatmul.mubr.msk.bf16.vlgmr.msra.gmra.mxu1 %vm53_vm0, %v5583_v35 }
 0x7e2   :  { %4662 = vmatpush3.bf16.msra.mxu1 %v4904_v62  ;;  %4665 = vmatprep.mubr.msk.bf16.mxu1 %vm53_vm0, %v5579_v29 }
 0x7e3   :  { %4663 = vmatprep.subr.bf16.mxu1 %v4905_v63 }
 0x7e6   :  { %4664 = vmatpush3.bf16.msra.mxu1 %v4905_v63 }
 0x7e7   :  { %4677 = vmatprep.subr.bf16.mxu1 %v4906_v0 }
 0x7e9   :  { %4666 = vmatmul.mubr.msk.bf16.vlgmr.msra.gmra.mxu1 %vm53_vm0, %v5583_v35 }
 0x7ea   :  { %4678 = vmatpush3.bf16.msra.mxu1 %v4906_v0  ;;  %4681 = vmatprep.mubr.msk.bf16.mxu1 %vm53_vm0, %v5579_v29 }
 0x7eb   :  { %4679 = vmatprep.subr.bf16.mxu1 %v4907_v1 }
 0x7ee   :  { %4680 = vmatpush3.bf16.msra.mxu1 %v4907_v1 }
 0x7ef   :  { %4693 = vmatprep.subr.bf16.mxu1 %v4908_v2 }
 0x7f1   :  { %4682 = vmatmul.mubr.msk.bf16.vlgmr.msra.gmra.mxu1 %vm53_vm0, %v5583_v35 }
 0x7f2   :  { %4694 = vmatpush3.bf16.msra.mxu1 %v4908_v2  ;;  %4697 = vmatprep.mubr.msk.bf16.mxu1 %vm53_vm0, %v5579_v29 }
 0x7f3   :  { %4695 = vmatprep.subr.bf16.mxu1 %v4909_v4 }
 0x7f6   :  { %4696 = vmatpush3.bf16.msra.mxu1 %v4909_v4 }
 0x7f7   :  { %4709 = vmatprep.subr.bf16.mxu1 %v4910_v5 }
 0x7f9   :  { %4698 = vmatmul.mubr.msk.bf16.vlgmr.msra.gmra.mxu1 %vm53_vm0, %v5583_v35 }
 0x7fa   :  { %4710 = vmatpush3.bf16.msra.mxu1 %v4910_v5  ;;  %4713 = vmatprep.mubr.msk.bf16.mxu1 %vm53_vm0, %v5579_v29 }
 0x7fb   :  { %4711 = vmatprep.subr.bf16.mxu1 %v4911_v6 }
 0x7fe   :  { %4712 = vmatpush3.bf16.msra.mxu1 %v4911_v6 }
 0x801   :  { %4714 = vmatmul.mubr.msk.bf16.vlgmr.msra.gmra.mxu1 %vm53_vm0, %v5583_v35 }
 0x863   :  { %v5697_v8 = vpop.f32.mrf.mxu0 }
 0x865   :  { %v2178_v9 = vpop.f32.mrf.mxu0 }
 0x867   :  { %v4636_v10 = vpop.f32.mrf.mxu0 }
 0x869   :  { %v2181_v11 = vpop.f32.mrf.mxu0 }
 0x86a   :  { %v2884_v7 = vpack.c.bf16 %v2181_v11, %v2178_v9 }
 0x86b   :  { %v4643_v13 = vpop.f32.mrf.mxu0 }
 0x86c   :  { %4729 = vmatprep.mubr.msk.bf16.mxu1 %vm905_vm2, %v2884_v7  ;;  %v2887_v37 = vpack.c.bf16 %v4643_v13, %v4643_v13 }
 0x86d   :  { %v2238_v3 = vpop.f32.mrf.mxu0 }
 0x86f   :  { %v4644_v12 = vpop.f32.mrf.mxu0 }
 0x871   :  { %v2241_v15 = vpop.f32.mrf.mxu0 }
 0x872   :  { %v2886_v17 = vpack.c.bf16 %v2241_v15, %v2238_v3 }
 0x873   :  { %v4659_v18 = vpop.f32.mrf.mxu0 }
 0x874   :  { %4737 = vmatprep.mubr.msk.bf16.mxu0 %vm905_vm2, %v2886_v17  ;;  %v2891_v50 = vpack.c.bf16 %v4659_v18, %v4659_v18 }
 0x875   :  { %v2358_v19 = vpop.f32.mrf.mxu0 }
 0x877   :  { %v4660_v20 = vpop.f32.mrf.mxu0 }
 0x878   :  { %v2885_v20 = vpack.c.bf16 %v5697_v8, %v5697_v8 }
 0x879   :  { %v2361_v21 = vpop.f32.mrf.mxu0 }
 0x87a   :  { %v2890_v38 = vpack.c.bf16 %v2361_v21, %v2358_v19 }
 0x87b   :  { %v4675_v22 = vpop.f32.mrf.mxu0 }
 0x87c   :  { %v2895_v60 = vpack.c.bf16 %v4675_v22, %v4675_v22 }
 0x87d   :  { %v2494_v24 = vpop.f32.mrf.mxu0 }
 0x87e   :  { %v2970_v25 = vsel %vm905_vm2, %v2895_v60, 0  ;;  %4847 = vmatprep.subr.msk.bf16.mxu0 %vm905_vm2, %v2895_v60 }
 0x87f   :  { %v4676_v14 = vpop.f32.mrf.mxu0  ;;  %4734 = vmatpush3.bf16.xpose.msra.mxu0 %v2970_v25 }
 0x881   :  { %v2497_v26 = vpop.f32.mrf.mxu0 }
 0x882   :  { %v2894_v27 = vpack.c.bf16 %v2497_v26, %v2494_v24 }
 0x883   :  { %v4691_v28 = vpop.f32.mrf.mxu0 }
 0x884   :  { %4848 = vmatprep.subr.msk.bf16.mxu0 %vm905_vm2, %v2894_v27  ;;  %v2967_v31 = vsel %vm905_vm2, %v2894_v27, 0  ;;  %v2899_v29 = vpack.c.bf16 %v4691_v28, %v4691_v28 }
 0x885   :  { %v2614_v30 = vpop.f32.mrf.mxu0 }
 0x886   :  { %v3090_v39 = vsel %vm905_vm2, %v2899_v29, 0 }
 0x887   :  { %v4692_v33 = vpop.f32.mrf.mxu0  ;;  %4736 = vmatpush3.bf16.xpose.msra.mxu0 %v2967_v31 }
 0x888   :  { %4851 = vmatprep.subr.msk.bf16.mxu0 %vm905_vm2, %v2899_v29 }
 0x889   :  { %v2617_v35 = vpop.f32.mrf.mxu0 }
 0x88a   :  { %v2898_v16 = vpack.c.bf16 %v2617_v35, %v2614_v30 }
 0x88b   :  { %v4707_v36 = vpop.f32.mrf.mxu0 }
 0x88c   :  { %v3283_v23 = vpack.c.bf16 %v4707_v36, %v4707_v36  ;;  %v3087_v43 = vsel %vm905_vm2, %v2898_v16, 0 }
 0x88d   :  { %v2750_v34 = vpop.f32.mrf.mxu0 }
 0x88e   :  { %4738 = vmatmul.mubr.msk.bf16.vlgmr.msra.gmra.mxu0 %vm905_vm2, %v2887_v37  ;;  %v3352_v44 = vand.u32 %v3283_v23, %v5286_v55 }
 0x88f   :  { %v4708_v32 = vpop.f32.mrf.mxu0  ;;  %4750 = vmatpush3.bf16.xpose.msra.mxu0 %v3090_v39  ;;  %4753 = vmatprep.mubr.msk.bf16.mxu0 %vm905_vm2, %v2890_v38 }
 0x890   :  { %4852 = vmatprep.subr.msk.bf16.mxu0 %vm905_vm2, %v2898_v16 }
 0x891   :  { %v2753_v40 = vpop.f32.mrf.mxu0 }
 0x892   :  { %v3282_v58 = vpack.c.bf16 %v2753_v40, %v2750_v34 }
 0x893   :  { %v4723_v41 = vpop.f32.mrf.mxu0 }
 0x894   :  { %v3287_v59 = vpack.c.bf16 %v4723_v41, %v4723_v41 }
 0x895   :  { %v5710_v42 = vpop.f32.mrf.mxu0 }
 0x896   :  { %v5734_v0 = vand.u32 %v3287_v59, %v5286_v55 }
 0x897   :  { %v4724_v45 = vpop.f32.mrf.mxu0  ;;  %4752 = vmatpush3.bf16.xpose.msra.mxu0 %v3087_v43 }
 0x898   :  { %4765 = vmatprep.subr.bf16.mxu0 %v3352_v44 }
 0x899   :  { %v4627_v48 = vpop.f32.mrf.mxu1  ;;  %v5762_v37 = vpop.f32.mrf.mxu0 }
 0x89a   :  { %v2034_v47 = vadd.f32 %v4627_v48, %v5717_v46 }
 0x89b   :  { %v2025_v49 = vpop.f32.mrf.mxu1 }
 0x89c   :  { %v2041_v52 = vadd.f32 %v2034_v47, %v5478_v56  ;;  %v2026_v53 = vadd.f32 %v5717_v46, %v2025_v49 }
 0x89d   :  { %v4628_v54 = vpop.f32.mrf.mxu1 }
 0x89e   :  { %2044 = vst.msk [vmem:[%s6001_s14 + $0x10] sm:$0x1] %vm60_vm1, %v2041_v52  ;;  %v2039_v61 = vadd.f32 %v2026_v53, %v5471_v51  ;;  %4754 = vmatmul.mubr.msk.bf16.vlgmr.msra.gmra.mxu0 %vm905_vm2, %v2891_v50 }
 0x89f   :  { %v2028_v62 = vpop.f32.mrf.mxu1  ;;  %4766 = vmatpush3.bf16.msra.mxu0 %v3352_v44 }
 0x8a0   :  { %2042 = vst.msk [vmem:[%s6001_s14] sm:$0xff] %vm53_vm0, %v2039_v61  ;;  %v2029_v56 = vadd.f32 %v5717_v46, %v2028_v62  ;;  %4767 = vmatprep.subr.bf16.mxu0 %v3282_v58 }
 0x8a1   :  { %v4651_v63 = vpop.f32.mrf.mxu1 }
 0x8a2   :  { %v2040_v1 = vadd.f32 %v2029_v56, %v5480_v57  ;;  %v2889_v29 = vpack.c.bf16 %v4651_v63, %v4651_v63 }
 0x8a3   :  { %v2298_v2 = vpop.f32.mrf.mxu1  ;;  %4768 = vmatpush3.bf16.msra.mxu0 %v3282_v58 }
 0x8a4   :  { %2043 = vst.msk [vmem:[%s6001_s14 + $0x8] sm:$0xff] %vm53_vm0, %v2040_v1  ;;  %4781 = vmatprep.subr.bf16.mxu0 %v5734_v0 }
 0x8a5   :  { %v4652_v51 = vpop.f32.mrf.mxu1 }
 0x8a7   :  { %v2301_v4 = vpop.f32.mrf.mxu1 }
 0x8a8   :  { %v2888_v21 = vpack.c.bf16 %v2301_v4, %v2298_v2 }
 0x8a9   :  { %v4667_v5 = vpop.f32.mrf.mxu1 }
 0x8aa   :  { %v2893_v6 = vpack.c.bf16 %v4667_v5, %v4667_v5 }
 0x8ab   :  { %v2434_v9 = vpop.f32.mrf.mxu1 }
 0x8ac   :  { %v2910_v10 = vsel %vm905_vm2, %v2893_v6, 0  ;;  %4845 = vmatprep.subr.msk.bf16.mxu1 %vm905_vm2, %v2893_v6 }
 0x8ad   :  { %v4668_v11 = vpop.f32.mrf.mxu1  ;;  %4726 = vmatpush3.bf16.xpose.msra.mxu1 %v2910_v10 }
 0x8af   :  { %v2437_v57 = vpop.f32.mrf.mxu1 }
 0x8b0   :  { %v2892_v7 = vpack.c.bf16 %v2437_v57, %v2434_v9 }
 0x8b1   :  { %v4683_v13 = vpop.f32.mrf.mxu1 }
 0x8b2   :  { %4846 = vmatprep.subr.msk.bf16.mxu1 %vm905_vm2, %v2892_v7  ;;  %v2907_v12 = vsel %vm905_vm2, %v2892_v7, 0  ;;  %v2897_v15 = vpack.c.bf16 %v4683_v13, %v4683_v13 }
 0x8b3   :  { %v2554_v3 = vpop.f32.mrf.mxu1 }
 0x8b4   :  { %v3030_v60 = vsel %vm905_vm2, %v2897_v15, 0 }
 0x8b5   :  { %v4684_v17 = vpop.f32.mrf.mxu1  ;;  %4728 = vmatpush3.bf16.xpose.msra.mxu1 %v2907_v12 }
 0x8b6   :  { %4849 = vmatprep.subr.msk.bf16.mxu1 %vm905_vm2, %v2897_v15 }
 0x8b7   :  { %v2557_v18 = vpop.f32.mrf.mxu1 }
 0x8b8   :  { %v2896_v24 = vpack.c.bf16 %v2557_v18, %v2554_v3 }
 0x8b9   :  { %v4699_v19 = vpop.f32.mrf.mxu1 }
 0x8ba   :  { %v3281_v26 = vpack.c.bf16 %v4699_v19, %v4699_v19  ;;  %v3027_v8 = vsel %vm905_vm2, %v2896_v24, 0 }
 0x8bb   :  { %v2690_v22 = vpop.f32.mrf.mxu1 }
 0x8bc   :  { %4730 = vmatmul.mubr.msk.bf16.vlgmr.msra.gmra.mxu1 %vm905_vm2, %v2885_v20  ;;  %v3295_v30 = vand.u32 %v3281_v26, %v5286_v55 }
 0x8bd   :  { %v4700_v25 = vpop.f32.mrf.mxu1  ;;  %4742 = vmatpush3.bf16.xpose.msra.mxu1 %v3030_v60  ;;  %4745 = vmatprep.mubr.msk.bf16.mxu1 %vm905_vm2, %v2888_v21 }
 0x8be   :  { %4850 = vmatprep.subr.msk.bf16.mxu1 %vm905_vm2, %v2896_v24 }
 0x8bf   :  { %v2693_v14 = vpop.f32.mrf.mxu1 }
 0x8c0   :  { %v3280_v33 = vpack.c.bf16 %v2693_v14, %v2690_v22 }
 0x8c1   :  { %v4715_v27 = vpop.f32.mrf.mxu1 }
 0x8c2   :  { %v3285_v35 = vpack.c.bf16 %v4715_v27, %v4715_v27 }
 0x8c3   :  { %v5753_v28 = vpop.f32.mrf.mxu1 }
 0x8c4   :  { %v5759_v36 = vand.u32 %v3285_v35, %v5286_v55 }
 0x8c5   :  { %v4716_v31 = vpop.f32.mrf.mxu1  ;;  %4744 = vmatpush3.bf16.xpose.msra.mxu1 %v3027_v8 }
 0x8c6   :  { %4757 = vmatprep.subr.bf16.mxu1 %v3295_v30 }
 0x8c7   :  { %v5771_v44 = vpop.f32.mrf.mxu1 }
 0x8cc   :  { %4746 = vmatmul.mubr.msk.bf16.vlgmr.msra.gmra.mxu1 %vm905_vm2, %v2889_v29 }
 0x8cd   :  { %4758 = vmatpush3.bf16.msra.mxu1 %v3295_v30 }
 0x8ce   :  { %4759 = vmatprep.subr.bf16.mxu1 %v3280_v33 }
 0x8d1   :  { %4760 = vmatpush3.bf16.msra.mxu1 %v3280_v33 }
 0x8d2   :  { %4773 = vmatprep.subr.bf16.mxu1 %v5759_v36 }
 0x94e   :  { %v4739_v38 = vpop.f32.mrf.mxu0 }
 0x94f   :  { %v3155_v34 = vsel %vm1153_vm4, %v4739_v38, -inf }
 0x950   :  { %3156 = vmax.xlane.f32.xlu1 %v3155_v34  ;;  %v3006_v39 = vpop.f32.mrf.mxu0 }
 0x951   :  { %v3149_v32 = vsel %vm1146_vm5, %v3006_v39, -inf }
 0x952   :  { %v4740_v16 = vpop.f32.mrf.mxu0 }
 0x954   :  { %3150 = vmax.xlane.f32.xlu1 %v3149_v32  ;;  %v3009_v40 = vpop.f32.mrf.mxu0 }
 0x955   :  { %v3152_v23 = vsel %vm1146_vm5, %v3009_v40, -inf }
 0x956   :  { %3153 = vmax.xlane.f32.xlu0 %v3152_v23 }
 0x95e   :  { %v5767_v55 = vpop.f32.mrf.mxu0 }
 0x95f   :  { %v3173_v4 = vsel %vm1153_vm4, %v5767_v55, -inf }
 0x960   :  { %v5769_v41 = vpop.f32.mrf.mxu0 }
 0x961   :  { %v3167_v54 = vsel %vm1146_vm5, %v5769_v41, -inf }
 0x962   :  { %v4756_v43 = vpop.f32.mrf.mxu0 }
 0x964   :  { %v5780_v63 = vpop.f32.mrf.mxu0 }
 0x965   :  { %v3170_v51 = vsel %vm1146_vm5, %v5780_v63, -inf }
 0x97c   :  { %v4731_v45 = vpop.f32.mrf.mxu1 }
 0x97d   :  { %v3146_v48 = vsel %vm1153_vm4, %v4731_v45, -inf }
 0x97e   :  { %v2946_v47 = vpop.f32.mrf.mxu1  ;;  %3147 = vmax.xlane.f32.xlu0 %v3146_v48 }
 0x97f   :  { %v3140_v50 = vsel %vm1146_vm5, %v2946_v47, -inf }
 0x980   :  { %v4732_v49 = vpop.f32.mrf.mxu1 }
 0x982   :  { %v2949_v52 = vpop.f32.mrf.mxu1  ;;  %3141 = vmax.xlane.f32.xlu0 %v3140_v50 }
 0x983   :  { %v3143_v53 = vsel %vm1146_vm5, %v2949_v52, -inf }
 0x984   :  { %3144 = vmax.xlane.f32.xlu1 %v3143_v53 }
 0x988   :  { %3168 = vmax.xlane.f32.xlu1 %v3167_v54 }
 0x98c   :  { %v4747_v58 = vpop.f32.mrf.mxu1 }
 0x98d   :  { %v3164_v59 = vsel %vm1153_vm4, %v4747_v58, -inf }
 0x98e   :  { %v3066_v61 = vpop.f32.mrf.mxu1  ;;  %3165 = vmax.xlane.f32.xlu0 %v3164_v59 }
 0x98f   :  { %v3158_v56 = vsel %vm1146_vm5, %v3066_v61, -inf }
 0x990   :  { %v4748_v62 = vpop.f32.mrf.mxu1 }
 0x992   :  { %v5782_v1 = vpop.f32.mrf.mxu1  ;;  %3159 = vmax.xlane.f32.xlu0 %v3158_v56 }
 0x993   :  { %v3161_v2 = vsel %vm1146_vm5, %v5782_v1, -inf }
 0x994   :  { %3162 = vmax.xlane.f32.xlu1 %v3161_v2 }
 0x996   :  { %3171 = vmax.xlane.f32.xlu0 %v3170_v51 }
 0x998   :  { %3174 = vmax.xlane.f32.xlu1 %v3173_v4 }
 0x9d9   :  { %v3157_v5 = vpop.xlane.xlu1 %3156 }
 0x9da   :  { %v3181_v6 = vsub.f32 %v4739_v38, %v3157_v5 }
 0x9dc   :  { %v3198_v11 = vmul.f32 1.442695, %v3181_v6 }
 0x9dd   :  { %v3151_v9 = vpop.xlane.xlu1 %3150 }
 0x9de   :  { %v3179_v10 = vsub.f32 %v3006_v39, %v3151_v9 }
 0x9df   :  { %v3154_v57 = vpop.xlane.xlu0 %3153 }
 0x9e0   :  { %v3194_v7 = vmul.f32 1.442695, %v3179_v10  ;;  %v3180_v13 = vsub.f32 %v3009_v40, %v3154_v57 }
 0x9e2   :  { %4984 = vpow2.f32 %v3194_v7  ;;  %v3196_v3 = vmul.f32 1.442695, %v3180_v13 }
 0x9e3   :  { %4986 = vpow2.f32 %v3198_v11 }
 0x9e4   :  { %4988 = vpow2.f32 %v3196_v3 }
 0x9ef   :  { %v5790_v12 = vpop.eup %4984 }
 0x9f0   :  { %v5792_v15 = vpop.eup %4986  ;;  %v3221_v17 = vsel %vm1146_vm5, %v5790_v12, 0.0 }
 0x9f1   :  { %v5796_v18 = vpop.eup %4988  ;;  %3222 = vadd.xlane.f32.xlu1 %v3221_v17  ;;  %v3227_v20 = vsel %vm1153_vm4, %v5792_v15, 0.0 }
 0x9f2   :  { %v3224_v19 = vsel %vm1146_vm5, %v5796_v18, 0.0 }
 0x9f3   :  { %3225 = vadd.xlane.f32.xlu0 %v3224_v19 }
 0x9f5   :  { %3228 = vadd.xlane.f32.xlu1 %v3227_v20 }
 0xa07   :  { %v3148_v21 = vpop.xlane.xlu0 %3147 }
 0xa08   :  { %v3178_v22 = vsub.f32 %v4731_v45, %v3148_v21 }
 0xa0a   :  { %v3192_v60 = vmul.f32 1.442695, %v3178_v22 }
 0xa0b   :  { %v3142_v24 = vpop.xlane.xlu0 %3141 }
 0xa0c   :  { %4990 = vpow2.f32 %v3192_v60  ;;  %v3176_v25 = vsub.f32 %v2946_v47, %v3142_v24  ;;  %v3286_v60 = vpack.c.bf16 %v5762_v37, %v5710_v42 }
 0xa0d   :  { %v3145_v14 = vpop.xlane.xlu1 %3144 }
 0xa0e   :  { %v3188_v26 = vmul.f32 1.442695, %v3176_v25  ;;  %v3177_v27 = vsub.f32 %v2949_v52, %v3145_v14 }
 0xa10   :  { %4992 = vpow2.f32 %v3188_v26  ;;  %v3190_v8 = vmul.f32 1.442695, %v3177_v27 }
 0xa11   :  { %v3169_v30 = vpop.xlane.xlu1 %3168 }
 0xa12   :  { %4994 = vpow2.f32 %v3190_v8  ;;  %v3185_v31 = vsub.f32 %v5769_v41, %v3169_v30 }
 0xa14   :  { %v3206_v29 = vmul.f32 1.442695, %v3185_v31 }
 0xa16   :  { %4996 = vpow2.f32 %v3206_v29 }
 0xa17   :  { %v3166_v33 = vpop.xlane.xlu0 %3165 }
 0xa18   :  { %v3184_v35 = vsub.f32 %v4747_v58, %v3166_v33 }
 0xa19   :  { %v5803_v38 = vpop.eup %4990 }
 0xa1a   :  { %v3204_v34 = vmul.f32 1.442695, %v3184_v35  ;;  %v3218_v39 = vsel %vm1153_vm4, %v5803_v38, 0.0  ;;  %v3284_v35 = vpack.c.bf16 %v5771_v44, %v5753_v28 }
 0xa1b   :  { %v3160_v16 = vpop.xlane.xlu0 %3159  ;;  %3219 = vadd.xlane.f32.xlu0 %v3218_v39 }
 0xa1c   :  { %4998 = vpow2.f32 %v3204_v34  ;;  %v3182_v32 = vsub.f32 %v3066_v61, %v3160_v16 }
 0xa1d   :  { %v5807_v40 = vpop.eup %4992  ;;  %v3163_v23 = vpop.xlane.xlu1 %3162 }
 0xa1e   :  { %v3200_v43 = vmul.f32 1.442695, %v3182_v32  ;;  %v3183_v41 = vsub.f32 %v5782_v1, %v3163_v23  ;;  %v3212_v45 = vsel %vm1146_vm5, %v5807_v40, 0.0 }
 0xa1f   :  { %v5812_v48 = vpop.eup %4994  ;;  %3213 = vadd.xlane.f32.xlu0 %v3212_v45  ;;  %v3172_v47 = vpop.xlane.xlu0 %3171 }
 0xa20   :  { %5000 = vpow2.f32 %v3200_v43  ;;  %v3202_v49 = vmul.f32 1.442695, %v3183_v41  ;;  %v3186_v50 = vsub.f32 %v5780_v63, %v3172_v47  ;;  %v3215_v52 = vsel %vm1146_vm5, %v5812_v48, 0.0 }
 0xa21   :  { %3216 = vadd.xlane.f32.xlu1 %v3215_v52  ;;  %v3175_v53 = vpop.xlane.xlu1 %3174  ;;  %v3525_v52 = vld [vmem:[%s5993_s6 + $0x4] sm:$0xf] }
 0xa22   :  { %5002 = vpow2.f32 %v3202_v49  ;;  %v3208_v54 = vmul.f32 1.442695, %v3186_v50  ;;  %v3187_v58 = vsub.f32 %v5767_v55, %v3175_v53  ;;  %v3592_v53 = vsel %vm1545_vm6, %v3525_v52, 0 }
 0xa23   :  { %v5818_v59 = vpop.eup %4996 }
 0xa24   :  { %5004 = vpow2.f32 %v3208_v54  ;;  %v3210_v61 = vmul.f32 1.442695, %v3187_v58  ;;  %v3239_v62 = vsel %vm1146_vm5, %v5818_v59, 0.0  ;;  %v3524_v54 = vld [vmem:[%s5993_s6] sm:$0xf] }
 0xa25   :  { %3240 = vadd.xlane.f32.xlu1 %v3239_v62  ;;  %v3535_v58 = vsel %vm1545_vm6, %v3524_v54, 0 }
 0xa26   :  { %5006 = vpow2.f32 %v3210_v61  ;;  %v3527_v61 = vld [vmem:[%s5993_s6 + $0xc] sm:$0xf] }
 0xa29   :  { %v5822_v56 = vpop.eup %4998 }
 0xa2a   :  { %v3236_v63 = vsel %vm1153_vm4, %v5822_v56, 0.0 }
 0xa2b   :  { %3237 = vadd.xlane.f32.xlu0 %v3236_v63 }
 0xa2d   :  { %v5826_v1 = vpop.eup %5000 }
 0xa2e   :  { %v3230_v55 = vsel %vm1146_vm5, %v5826_v1, 0.0 }
 0xa2f   :  { %v5830_v2 = vpop.eup %5002  ;;  %3231 = vadd.xlane.f32.xlu0 %v3230_v55 }
 0xa30   :  { %v3233_v51 = vsel %vm1146_vm5, %v5830_v2, 0.0 }
 0xa31   :  { %v5834_v4 = vpop.eup %5004  ;;  %3234 = vadd.xlane.f32.xlu1 %v3233_v51  ;;  %v3706_v51 = vsel %vm1545_vm6, %v3527_v61, 0 }
 0xa32   :  { %v3242_v5 = vsel %vm1146_vm5, %v5834_v4, 0.0 }
 0xa33   :  { %v5838_v6 = vpop.eup %5006  ;;  %3243 = vadd.xlane.f32.xlu0 %v3242_v5 }
 0xa34   :  { %v3245_v9 = vsel %vm1153_vm4, %v5838_v6, 0.0 }
 0xa35   :  { %3246 = vadd.xlane.f32.xlu1 %v3245_v9 }
 0xa7a   :  { %v3223_v10 = vpop.xlane.xlu1 %3222 }
 0xa7b   :  { %5008 = vrcp.f32 %v3223_v10 }
 0xa7c   :  { %v3226_v11 = vpop.xlane.xlu0 %3225 }
 0xa7d   :  { %5010 = vrcp.f32 %v3226_v11 }
 0xa7e   :  { %v3229_v57 = vpop.xlane.xlu1 %3228 }
 0xa7f   :  { %5012 = vrcp.f32 %v3229_v57 }
 0xa88   :  { %v5009_v7 = vpop.eup %5008 }
 0xa89   :  { %v3263_v3 = vmul.f32 %v5009_v7, %v5790_v12 }
 0xa8a   :  { %v5011_v13 = vpop.eup %5010 }
 0xa8b   :  { %v3264_v17 = vmul.f32 %v5011_v13, %v5796_v18 }
 0xa8c   :  { %v5013_v19 = vpop.eup %5012 }
 0xa8d   :  { %v3274_v20 = vpack.c.bf16 %v3264_v17, %v3263_v3  ;;  %v3265_v21 = vmul.f32 %v5013_v19, %v5792_v15 }
 0xa8f   :  { %4769 = vmatprep.mubr.msk.bf16.mxu0 %vm1146_vm5, %v3274_v20  ;;  %v3275_v22 = vpack.c.bf16 %v3265_v21, %v3265_v21 }
 0xa91   :  { %4770 = vmatmul.mubr.msk.bf16.vlgmr.msra.gmra.mxu0 %vm1146_vm5, %v3275_v22 }
 0xa92   :  { %4782 = vmatpush3.bf16.msra.mxu0 %v5734_v0 }
 0xa93   :  { %4783 = vmatprep.subr.bf16.mxu0 %v3286_v60 }
 0xa96   :  { %4784 = vmatpush3.bf16.msra.mxu0 %v3286_v60 }
 0xa97   :  { %4854 = vmatprep.subr.msk.bf16.mxu0 %vm1545_vm6, %v3525_v52 }
 0xaa4   :  { %v3220_v24 = vpop.xlane.xlu0 %3219 }
 0xaa5   :  { %5014 = vrcp.f32 %v3220_v24 }
 0xaa8   :  { %v3214_v12 = vpop.xlane.xlu0 %3213 }
 0xaa9   :  { %5016 = vrcp.f32 %v3214_v12 }
 0xaaa   :  { %v3217_v18 = vpop.xlane.xlu1 %3216 }
 0xaab   :  { %5018 = vrcp.f32 %v3217_v18 }
 0xaae   :  { %v3241_v26 = vpop.xlane.xlu1 %3240 }
 0xab2   :  { %v5015_v15 = vpop.eup %5014 }
 0xab3   :  { %v3262_v42 = vmul.f32 %v5015_v15, %v5803_v38 }
 0xab4   :  { %v3238_v25 = vpop.xlane.xlu0 %3237 }
 0xab5   :  { %5020 = vrcp.f32 %v3238_v25  ;;  %v3273_v33 = vpack.c.bf16 %v3262_v42, %v3262_v42 }
 0xab6   :  { %v5017_v14 = vpop.eup %5016 }
 0xab7   :  { %v3260_v0 = vmul.f32 %v5017_v14, %v5807_v40 }
 0xab8   :  { %v5019_v27 = vpop.eup %5018  ;;  %v3232_v8 = vpop.xlane.xlu0 %3231 }
 0xab9   :  { %5022 = vrcp.f32 %v3232_v8  ;;  %v3261_v37 = vmul.f32 %v5019_v27, %v5812_v48 }
 0xaba   :  { %5024 = vrcp.f32 %v3241_v26  ;;  %v3235_v30 = vpop.xlane.xlu1 %3234 }
 0xabb   :  { %5026 = vrcp.f32 %v3235_v30  ;;  %v3272_v31 = vpack.c.bf16 %v3261_v37, %v3260_v0 }
 0xabc   :  { %v3244_v29 = vpop.xlane.xlu0 %3243 }
 0xabd   :  { %5028 = vrcp.f32 %v3244_v29  ;;  %4761 = vmatprep.mubr.msk.bf16.mxu1 %vm1146_vm5, %v3272_v31 }
 0xabe   :  { %v3247_v34 = vpop.xlane.xlu1 %3246  ;;  %4762 = vmatmul.mubr.msk.bf16.vlgmr.msra.gmra.mxu1 %vm1146_vm5, %v3273_v33 }
 0xabf   :  { %5030 = vrcp.f32 %v3247_v34  ;;  %4774 = vmatpush3.bf16.msra.mxu1 %v5759_v36 }
 0xac0   :  { %4775 = vmatprep.subr.bf16.mxu1 %v3284_v35 }
 0xac2   :  { %v5021_v38 = vpop.eup %5020 }
 0xac3   :  { %4776 = vmatpush3.bf16.msra.mxu1 %v3284_v35  ;;  %v3268_v40 = vmul.f32 %v5021_v38, %v5822_v56 }
 0xac4   :  { %4853 = vmatprep.subr.msk.bf16.mxu1 %vm1545_vm6, %v3524_v54 }
 0xac5   :  { %v3277_v36 = vpack.c.bf16 %v3268_v40, %v3268_v40 }
 0xac6   :  { %v5023_v39 = vpop.eup %5022 }
 0xac7   :  { %v5025_v16 = vpop.eup %5024  ;;  %v3266_v23 = vmul.f32 %v5023_v39, %v5826_v1 }
 0xac8   :  { %v5027_v32 = vpop.eup %5026  ;;  %v3269_v44 = vmul.f32 %v5025_v16, %v5818_v59  ;;  %v3526_v59 = vld [vmem:[%s5993_s6 + $0x8] sm:$0xf] }
 0xac9   :  { %v3267_v43 = vmul.f32 %v5027_v32, %v5830_v2  ;;  %v3649_v57 = vsel %vm1545_vm6, %v3526_v59, 0 }
 0xaca   :  { %v5029_v41 = vpop.eup %5028 }
 0xacb   :  { %v3276_v28 = vpack.c.bf16 %v3267_v43, %v3266_v23  ;;  %v3270_v45 = vmul.f32 %v5029_v41, %v5834_v4 }
 0xacc   :  { %v5031_v48 = vpop.eup %5030 }
 0xacd   :  { %4777 = vmatprep.mubr.msk.bf16.mxu1 %vm1146_vm5, %v3276_v28  ;;  %v3278_v47 = vpack.c.bf16 %v3270_v45, %v3269_v44  ;;  %v3271_v49 = vmul.f32 %v5031_v48, %v5838_v6 }
 0xace   :  { %4778 = vmatmul.mubr.msk.bf16.vlgmr.msra.gmra.mxu1 %vm1146_vm5, %v3277_v36 }
 0xacf   :  { %4785 = vmatprep.mubr.msk.bf16.mxu0 %vm1146_vm5, %v3278_v47  ;;  %v3279_v50 = vpack.c.bf16 %v3271_v49, %v3271_v49  ;;  %4790 = vmatpush3.bf16.msra.mxu1 %v3535_v58  ;;  %v5041_v58 = vld [vmem:[%s5987_s0 + $0x28] sm:$0x1] }
 0xad0   :  { %4855 = vmatprep.subr.msk.bf16.mxu1 %vm1545_vm6, %v3526_v59 }
 0xad1   :  { %4786 = vmatmul.mubr.msk.bf16.vlgmr.msra.gmra.mxu0 %vm1146_vm5, %v3279_v50 }
 0xad2   :  { %4796 = vmatpush3.bf16.msra.mxu0 %v3592_v53 }
 0xad3   :  { %4856 = vmatprep.subr.msk.bf16.mxu0 %vm1545_vm6, %v3527_v61  ;;  %v5042_v61 = vld [vmem:[%s5987_s0 + $0x18] sm:$0xff] }
 0xb51   :  { %v4771_v62 = vpop.f32.mrf.mxu0 }
 0xb52   :  { %v3519_v2 = vpack.c.bf16 %v4771_v62, %v4771_v62 }
 0xb53   :  { %v3388_v56 = vpop.f32.mrf.mxu0 }
 0xb55   :  { %v4772_v63 = vpop.f32.mrf.mxu0 }
 0xb57   :  { %v3391_v1 = vpop.f32.mrf.mxu0 }
 0xb58   :  { %v3518_v55 = vpack.c.bf16 %v3391_v1, %v3388_v56  ;;  %v4203_v1 = vld [vmem:[%s5994_s7] ss:$0 sm:$0xff] }
 0xb5a   :  { %4797 = vmatprep.mubr.msk.bf16.mxu0 %vm905_vm2, %v3518_v55 }
 0xb5b   :  { %4798 = vmatmul.mubr.msk.bf16.vlgmr.msra.gmra.mxu0 %vm905_vm2, %v3519_v2 }
 0xb5c   :  { %4808 = vmatpush3.bf16.msra.mxu0 %v3706_v51  ;;  %v5043_v51 = vld [vmem:[%s5987_s0 + $0x20] sm:$0xff] }
 0xb7e   :  { %v4763_v4 = vpop.f32.mrf.mxu1 }
 0xb7f   :  { %v3517_v11 = vpack.c.bf16 %v4763_v4, %v4763_v4 }
 0xb80   :  { %v3331_v5 = vpop.f32.mrf.mxu1 }
 0xb82   :  { %v4764_v6 = vpop.f32.mrf.mxu1 }
 0xb84   :  { %v3334_v9 = vpop.f32.mrf.mxu1 }
 0xb85   :  { %v3516_v10 = vpack.c.bf16 %v3334_v9, %v3331_v5 }
 0xb87   :  { %4791 = vmatprep.mubr.msk.bf16.mxu1 %vm905_vm2, %v3516_v10 }
 0xb88   :  { %4792 = vmatmul.mubr.msk.bf16.vlgmr.msra.gmra.mxu1 %vm905_vm2, %v3517_v11 }
 0xb89   :  { %4802 = vmatpush3.bf16.msra.mxu1 %v3649_v57 }
 0xb8e   :  { %v4779_v7 = vpop.f32.mrf.mxu1 }
 0xb8f   :  { %v3521_v60 = vpack.c.bf16 %v4779_v7, %v4779_v7 }
 0xb90   :  { %v3445_v13 = vpop.f32.mrf.mxu1 }
 0xb91   :  { %v4787_v3 = vpop.f32.mrf.mxu0 }
 0xb92   :  { %v4780_v17 = vpop.f32.mrf.mxu1  ;;  %v3523_v18 = vpack.c.bf16 %v4787_v3, %v4787_v3 }
 0xb93   :  { %v3502_v19 = vpop.f32.mrf.mxu0 }
 0xb94   :  { %v3448_v20 = vpop.f32.mrf.mxu1 }
 0xb95   :  { %v3520_v21 = vpack.c.bf16 %v3448_v20, %v3445_v13  ;;  %v4788_v22 = vpop.f32.mrf.mxu0 }
 0xb97   :  { %v3505_v24 = vpop.f32.mrf.mxu0  ;;  %4803 = vmatprep.mubr.msk.bf16.mxu1 %vm905_vm2, %v3520_v21 }
 0xb98   :  { %v3522_v12 = vpack.c.bf16 %v3505_v24, %v3502_v19  ;;  %4804 = vmatmul.mubr.msk.bf16.vlgmr.msra.gmra.mxu1 %vm905_vm2, %v3521_v60 }
 0xb9a   :  { %4809 = vmatprep.mubr.msk.bf16.mxu0 %vm905_vm2, %v3522_v12 }
 0xb9b   :  { %4810 = vmatmul.mubr.msk.bf16.vlgmr.msra.gmra.mxu0 %vm905_vm2, %v3523_v18 }
 0xc1b   :  { %v4799_v25 = vpop.f32.mrf.mxu0 }
 0xc1c   :  { %v3771_v37 = vsel %vm60_vm1, %v4799_v25, 0.0 }
 0xc1d   :  { %v3628_v15 = vpop.f32.mrf.mxu0 }
 0xc1e   :  { %v3757_v33 = vsel %vm53_vm0, %v3628_v15, 0.0 }
 0xc1f   :  { %v4800_v14 = vpop.f32.mrf.mxu0 }
 0xc20   :  { %v4912_v14 = vld [vmem:[%s5995_s10 + $0x8] sm:$0xff]  }
 0xc21   :  { %v3631_v35 = vpop.f32.mrf.mxu0  ;;  %4813 = vmatprep.subr.bf16.mxu1 %v4912_v14 }
 0xc22   :  { %v3764_v44 = vsel %vm53_vm0, %v3631_v35, 0.0  ;;  %4814 = vmatpush3.bf16.msra.mxu1 %v4912_v14 }
 0xc48   :  { %v4793_v26 = vpop.f32.mrf.mxu1 }
 0xc49   :  { %v3770_v42 = vsel %vm60_vm1, %v4793_v26, 0.0  ;;  %v4913_v26 = vld [vmem:[%s5995_s10] sm:$0xff]  }
 0xc4a   :  { %v3571_v27 = vpop.f32.mrf.mxu1  ;;  %v3772_v31 = vadd.f32 %v3771_v37, %v3770_v42  ;;  %4815 = vmatprep.subr.bf16.mxu1 %v4913_v26 }
 0xc4b   :  { %v3756_v30 = vsel %vm53_vm0, %v3571_v27, 0.0  ;;  %4816 = vmatpush3.bf16.msra.mxu1 %v4913_v26  ;;  %v4914_v27 = vld [vmem:[%s5998_s12 + $0x18] sm:$0xff]  }
 0xc4c   :  { %v4794_v8 = vpop.f32.mrf.mxu1  ;;  %v3758_v38 = vadd.f32 %v3757_v33, %v3756_v30  ;;  %4821 = vmatprep.subr.bf16.mxu0 %v4914_v27 }
 0xc4d   :  { %4822 = vmatpush3.bf16.msra.mxu0 %v4914_v27 }
 0xc4e   :  { %v3574_v0 = vpop.f32.mrf.mxu1 }
 0xc4f   :  { %v3763_v32 = vsel %vm53_vm0, %v3574_v0, 0.0 }
 0xc50   :  { %v3765_v36 = vadd.f32 %v3764_v44, %v3763_v32 }
 0xc58   :  { %v4805_v29 = vpop.f32.mrf.mxu1 }
 0xc59   :  { %v3773_v34 = vsel %vm60_vm1, %v4805_v29, 0.0 }
 0xc5a   :  { %v3774_v39 = vadd.f32 %v3773_v34, %v3772_v31  ;;  %v3685_v16 = vpop.f32.mrf.mxu1 }
 0xc5b   :  { %v3759_v40 = vsel %vm53_vm0, %v3685_v16, 0.0  ;;  %v4811_v23 = vpop.f32.mrf.mxu0 }
 0xc5c   :  { %v3760_v43 = vadd.f32 %v3759_v40, %v3758_v38  ;;  %v3775_v41 = vsel %vm60_vm1, %v4811_v23, 0.0  ;;  %v4806_v28 = vpop.f32.mrf.mxu1 }
 0xc5d   :  { %v3776_v45 = vadd.f32 %v3775_v41, %v3774_v39  ;;  %v3742_v48 = vpop.f32.mrf.mxu0  ;;  %v4204_v39 = vld [vmem:[%s5996_s8] ss:$0 sm:$0xff] }
 0xc5e   :  { %v3761_v47 = vsel %vm53_vm0, %v3742_v48, 0.0  ;;  %v3688_v49 = vpop.f32.mrf.mxu1  ;;  %v4205_v41 = vld [vmem:[%s5997_s9] ss:$0 sm:$0xff] }
 0xc5f   :  { %v3762_v50 = vadd.f32 %v3761_v47, %v3760_v43  ;;  %v3766_v52 = vsel %vm53_vm0, %v3688_v49, 0.0  ;;  %v4812_v53 = vpop.f32.mrf.mxu0  ;;  %v3779_v59 = vadd.f32 %v5041_v58, %v3776_v45  ;;  %v4206_v58 = vld [vmem:[%s5999_s11] ss:$0 sm:$0xff] }
 0xc60   :  { %v3767_v54 = vadd.f32 %v3766_v52, %v3765_v36  ;;  %v4916_v52 = vld [vmem:[%s5998_s12 + $0x8] sm:$0xff]   ;;  %v4917_v53 = vld [vmem:[%s5998_s12] sm:$0xff]  }
 0xc61   :  { %v3777_v62 = vadd.f32 %v5042_v61, %v3762_v50  ;;  %v3745_v56 = vpop.f32.mrf.mxu0  ;;  %v5924_v6 = vadd.f32 %v4203_v1, %v3779_v59  ;;  %v4915_v50 = vld [vmem:[%s5998_s12 + $0x10] sm:$0xff]  }
 0xc62   :  { %v3768_v63 = vsel %vm53_vm0, %v3745_v56, 0.0  ;;  %4823 = vmatprep.subr.bf16.mxu0 %v4915_v50 }
 0xc63   :  { %v3769_v55 = vadd.f32 %v3768_v63, %v3767_v54  ;;  %v5917_v2 = vadd.f32 %v4203_v1, %v3777_v62  ;;  %v3798_v10 = vsel %vm60_vm1, %v5924_v6, 0.0  ;;  %4824 = vmatpush3.bf16.msra.mxu0 %v4915_v50 }
 0xc64   :  { %4825 = vmatprep.subr.bf16.mxu0 %v4916_v52 }
 0xc65   :  { %v3778_v4 = vadd.f32 %v5043_v51, %v3769_v55  ;;  %v3792_v5 = vsel %vm53_vm0, %v5917_v2, 0.0 }
 0xc66   :  { %3793 = vadd.xlane.f32.xlu0 %v3792_v5 }
 0xc67   :  { %v5926_v9 = vadd.f32 %v4203_v1, %v3778_v4  ;;  %4826 = vmatpush3.bf16.msra.mxu0 %v4916_v52 }
 0xc68   :  { %4827 = vmatprep.subr.bf16.mxu0 %v4917_v53 }
 0xc69   :  { %v3795_v11 = vsel %vm53_vm0, %v5926_v9, 0.0 }
 0xc6a   :  { %3799 = vadd.xlane.f32.xlu0 %v3798_v10  ;;  %3796 = vadd.xlane.f32.xlu1 %v3795_v11 }
 0xc6b   :  { %4828 = vmatpush3.bf16.msra.mxu0 %v4917_v53 }
 0xcef   :  { %v3794_v57 = vpop.xlane.xlu0 %3793 }
 0xcf0   :  { %v3801_v7 = vmul.f32 0.03125, %v3794_v57 }
 0xcf2   :  { %v3804_v13 = vsub.f32 %v5917_v2, %v3801_v7 }
 0xcf3   :  { %v3800_v3 = vpop.xlane.xlu0 %3799  ;;  %v3797_v17 = vpop.xlane.xlu1 %3796 }
 0xcf4   :  { %v3803_v19 = vmul.f32 0.03125, %v3800_v3  ;;  %v3802_v20 = vmul.f32 0.03125, %v3797_v17  ;;  %v3807_v21 = vmul.f32 %v3804_v13, %v3804_v13 }
 0xcf6   :  { %v3806_v22 = vsub.f32 %v5924_v6, %v3803_v19  ;;  %v3805_v60 = vsub.f32 %v5926_v9, %v3802_v20  ;;  %v3810_v24 = vsel %vm53_vm0, %v3807_v21, 0.0 }
 0xcf7   :  { %3811 = vadd.xlane.f32.xlu1 %v3810_v24 }
 0xcf8   :  { %v3809_v12 = vmul.f32 %v3806_v22, %v3806_v22  ;;  %v3808_v18 = vmul.f32 %v3805_v60, %v3805_v60 }
 0xcfa   :  { %v3816_v25 = vsel %vm60_vm1, %v3809_v12, 0.0  ;;  %v3813_v15 = vsel %vm53_vm0, %v3808_v18, 0.0 }
 0xcfb   :  { %3817 = vadd.xlane.f32.xlu1 %v3816_v25  ;;  %3814 = vadd.xlane.f32.xlu0 %v3813_v15 }
 0xd80   :  { %v3812_v8 = vpop.xlane.xlu1 %3811 }
 0xd81   :  { %v3819_v42 = vmul.f32 0.03125, %v3812_v8 }
 0xd83   :  { %v3822_v0 = vadd.f32 1e-05, %v3819_v42 }
 0xd84   :  { %v3815_v37 = vpop.xlane.xlu0 %3814  ;;  %v3818_v30 = vpop.xlane.xlu1 %3817 }
 0xd85   :  { %5032 = vrsqrt.f32 %v3822_v0  ;;  %v3820_v31 = vmul.f32 0.03125, %v3815_v37  ;;  %v3821_v29 = vmul.f32 0.03125, %v3818_v30 }
 0xd87   :  { %v3823_v33 = vadd.f32 1e-05, %v3820_v31  ;;  %v3824_v35 = vadd.f32 1e-05, %v3821_v29 }
 0xd89   :  { %5034 = vrsqrt.f32 %v3823_v33 }
 0xd8a   :  { %5036 = vrsqrt.f32 %v3824_v35 }
 0xd92   :  { %v5033_v34 = vpop.eup %5032 }
 0xd93   :  { %v3828_v38 = vmul.f32 %v5033_v34, %v3804_v13 }
 0xd95   :  { %v3837_v23 = vmul.f32 %v4204_v39, %v3828_v38 }
 0xd96   :  { %v5035_v16 = vpop.eup %5034 }
 0xd97   :  { %v5037_v32 = vpop.eup %5036  ;;  %v3829_v40 = vmul.f32 %v5035_v16, %v3805_v60  ;;  %v3846_v45 = vadd.f32 %v4205_v41, %v3837_v23 }
 0xd98   :  { %v3830_v43 = vmul.f32 %v5037_v32, %v3806_v22 }
 0xd99   :  { %v3838_v28 = vmul.f32 %v4204_v39, %v3829_v40 }
 0xd9a   :  { %v3839_v44 = vmul.f32 %v4204_v39, %v3830_v43 }
 0xd9b   :  { %v3847_v48 = vadd.f32 %v4205_v41, %v3838_v28 }
 0xd9c   :  { %v3848_v36 = vadd.f32 %v4205_v41, %v3839_v44 }
 0xd9d   :  { %v3849_v47 = vpack.c.bf16 %v3847_v48, %v3846_v45 }
 0xd9e   :  { %v3850_v49 = vpack.c.bf16 %v3848_v36, %v3848_v36 }
 0xd9f   :  { %4817 = vmatprep.mubr.msk.bf16.mxu1 %vm53_vm0, %v3849_v47 }
 0xda0   :  { %4818 = vmatmul.mubr.msk.bf16.vlgmr.msra.gmra.mxu1 %vm53_vm0, %v3850_v49 }
 0xe60   :  { %v4819_v54 = vpop.f32.mrf.mxu1 }
 0xe61   :  { %v3923_v61 = vadd.f32 %v4819_v54, %v4206_v58 }
 0xe62   :  { %v3914_v59 = vpop.f32.mrf.mxu1 }
 0xe63   :  { %v3915_v56 = vadd.f32 %v4206_v58, %v3914_v59  ;;  %v3930_v55 = vmax.f32 %v3923_v61, 0.0 }
 0xe64   :  { %v4820_v62 = vpop.f32.mrf.mxu1 }
 0xe65   :  { %v3928_v51 = vmax.f32 %v3915_v56, 0.0  ;;  %v3932_v10 = vpack.c.bf16 %v3930_v55, %v3930_v55 }
 0xe66   :  { %v3917_v63 = vpop.f32.mrf.mxu1 }
 0xe67   :  { %v3918_v1 = vadd.f32 %v4206_v58, %v3917_v63 }
 0xe69   :  { %v3929_v4 = vmax.f32 %v3918_v1, 0.0 }
 0xe6b   :  { %v3931_v5 = vpack.c.bf16 %v3929_v4, %v3928_v51 }
 0xe6d   :  { %4829 = vmatprep.mubr.msk.bf16.mxu0 %vm1984_vm7, %v3931_v5 }
 0xe6e   :  { %4830 = vmatmul.mubr.msk.bf16.vlgmr.msra.gmra.mxu0 %vm1984_vm7, %v3932_v10 }
 0xf2e   :  { %v4831_v11 = vpop.f32.mrf.mxu0 }
 0xf2f   :  { %v4021_v57 = vadd.f32 %v4831_v11, %v5717_v46 }
 0xf30   :  { %v4012_v7 = vpop.f32.mrf.mxu0 }
 0xf31   :  { %v4028_v13 = vadd.f32 %v4021_v57, %v5924_v6  ;;  %v4013_v3 = vadd.f32 %v5717_v46, %v4012_v7 }
 0xf32   :  { %v4832_v17 = vpop.f32.mrf.mxu0 }
 0xf33   :  { %4220 = vst.msk [vmem:[%s6001_s14 + $0x28] sm:$0x1] %vm60_vm1, %v4028_v13  ;;  %v4026_v19 = vadd.f32 %v4013_v3, %v5917_v2 }
 0xf34   :  { %v4015_v20 = vpop.f32.mrf.mxu0 }
 0xf35   :  { %4218 = vst.msk [vmem:[%s6001_s14 + $0x18] sm:$0xff] %vm53_vm0, %v4026_v19  ;;  %v4016_v21 = vadd.f32 %v5717_v46, %v4015_v20 }
 0xf37   :  { %v4027_v6 = vadd.f32 %v4016_v21, %v5926_v9 }
 0xf39   :  { %4219 = vst.msk [vmem:[%s6001_s14 + $0x20] sm:$0xff] %vm53_vm0, %v4027_v6 }

</bundles_post_ra>
